<compile_context>
chip_gen: v5e
topology: v5e:2x2
jax: 0.10.0
libtpu: 0.0.40
codegen_flags: <defaults>
</compile_context>

<pallas_src>
import functools

import numpy as np
import jax
import jax.numpy as jnp
from jax import lax
from jax.experimental import pallas as pl
from jax.experimental.pallas import tpu as pltpu

# ----------------------------- model geometry ------------------------------
C1, C1P = 3, 8               # conv1 in channels (padded to one f32 sublane tile)
O1, O1P = 20, 32             # conv1 out channels (padded)
C2P = O1P                    # conv2 in channels (padded)
O2, O2P = 50, 64             # conv2 out channels (padded)
KH = KW = 5
H0 = W0 = 32                 # input spatial (fc1 expects 50*5*5 = 1250)
XLEN = H0 * W0               # 1024
XPAD = 1152                  # padded flat input so every tap slice is in bounds

FR1_W = W0                   # conv1 frame row stride (32)
L1E = 896                    # conv1 tap/acc window (covers anchor 27*32+27=891)
K1 = KH * KW * C1P           # 200: conv1 fused contraction depth

P1_HW = 14                   # pool1 output is 14x14
P1_PAD = 256                 # pool1 frame padded to 256 lanes (zero tail)

FR2_W = P1_HW                # 14
L2C = 160                    # conv2 tap/acc window (covers anchor 9*14+9=135)
K2 = KH * KW * C2P           # 800: conv2 fused contraction depth

P2_HW = 5
P2_LEN = P2_HW * P2_HW       # 25
P2_PAD = 128                 # lane-dense per-image feature frame

FEAT = O2P * P2_LEN          # 1600 padded feature length (real = 1250)
FC1, FC1P = 500, 512
NCLS, NCLSP = 10, 128

assert (KH - 1) * FR1_W + (KW - 1) + L1E <= XPAD       # 132 + 896 <= 1152
assert (KH - 1) * FR2_W + (KW - 1) + L2C <= P1_PAD     # 60 + 160 <= 256


# --------------- shifted stride-2 pooling selection matrices ----------------
def _pool_select_shifts(frame_w, pooled_hw, in_rows, out_cols):
    """S[d, r, c] = 1 iff r == (2*ph+di)*frame_w + (2*pw+dj), c = ph*P+pw."""
    s = np.zeros((4, in_rows, out_cols), np.float32)
    for d, (di, dj) in enumerate(((0, 0), (0, 1), (1, 0), (1, 1))):
        for ph in range(pooled_hw):
            for pw in range(pooled_hw):
                r = (2 * ph + di) * frame_w + (2 * pw + dj)
                s[d, r, ph * pooled_hw + pw] = 1.0
    return s


_S1_NP = _pool_select_shifts(FR1_W, P1_HW, L1E, P1_PAD)   # (4, 896, 256)
_S2_NP = _pool_select_shifts(FR2_W, P2_HW, L2C, P2_PAD)   # (4, 160, 128)


# ------------------------------- kernel 1 -----------------------------------
def _features_kernel(x_ref, w1_ref, b1_ref, w2_ref, b2_ref, s1_ref, s2_ref,
                     o_ref, *, block_b):
    """conv1 -> pool+relu -> conv2 -> pool+relu for block_b images, in VMEM."""
    w1 = w1_ref[...]                           # (O1P, K1)  f32
    b1 = b1_ref[...]                           # (O1P, 1)   f32
    w2 = w2_ref[...]                           # (O2P, K2)  bf16
    b2 = b2_ref[...]                           # (O2P, 1)   f32

    for b in range(block_b):
        xi = x_ref[b]                          # (C1P, XPAD) f32

        # conv1: in-VMEM im2col of the 25 taps (tile-aligned 8-row pieces),
        # fused into ONE matmul with K = 200.
        st1 = jnp.concatenate(
            [xi[:, i * FR1_W + j: i * FR1_W + j + L1E]
             for i in range(KH) for j in range(KW)], axis=0)          # (K1, L1E)
        acc1 = jnp.dot(w1, st1, preferred_element_type=jnp.float32)   # (O1P, L1E)

        # 2x2/2 max-pool + bias + ReLU via 4 selection matmuls + max.
        a1 = acc1.astype(jnp.bfloat16)
        p00 = jnp.dot(a1, s1_ref[0], preferred_element_type=jnp.float32)
        p01 = jnp.dot(a1, s1_ref[1], preferred_element_type=jnp.float32)
        p10 = jnp.dot(a1, s1_ref[2], preferred_element_type=jnp.float32)
        p11 = jnp.dot(a1, s1_ref[3], preferred_element_type=jnp.float32)
        h1 = jnp.maximum(
            jnp.maximum(jnp.maximum(p00, p01), jnp.maximum(p10, p11)) + b1,
            0.0)                                                      # (O1P, 256)

        # conv2: im2col of the pooled frame (32-row tile-aligned pieces),
        # fused into ONE matmul with K = 800.
        st2 = jnp.concatenate(
            [h1[:, i * FR2_W + j: i * FR2_W + j + L2C]
             for i in range(KH) for j in range(KW)], axis=0)          # (K2, L2C)
        acc2 = jnp.dot(w2, st2.astype(jnp.bfloat16),
                       preferred_element_type=jnp.float32)            # (O2P, L2C)

        a2 = acc2.astype(jnp.bfloat16)
        q00 = jnp.dot(a2, s2_ref[0], preferred_element_type=jnp.float32)
        q01 = jnp.dot(a2, s2_ref[1], preferred_element_type=jnp.float32)
        q10 = jnp.dot(a2, s2_ref[2], preferred_element_type=jnp.float32)
        q11 = jnp.dot(a2, s2_ref[3], preferred_element_type=jnp.float32)
        h2 = jnp.maximum(
            jnp.maximum(jnp.maximum(q00, q01), jnp.maximum(q10, q11)) + b2,
            0.0)                                                      # (O2P, 128)
        o_ref[b] = h2.astype(o_ref.dtype)


def _extract_features(x, w1m, b1, w2m, b2):
    n = x.shape[0]
    blk = max(1, min(8, n // 2))          # images per grid step (keeps grid >= 2)
    npad = ((n + blk - 1) // blk) * blk
    xf = x.reshape(n, C1, XLEN)
    xf = jnp.pad(xf, ((0, npad - n), (0, C1P - C1), (0, XPAD - XLEN)))
    s1 = jnp.asarray(_S1_NP, dtype=jnp.bfloat16)
    s2 = jnp.asarray(_S2_NP, dtype=jnp.bfloat16)
    out = pl.pallas_call(
        functools.partial(_features_kernel, block_b=blk),
        out_shape=jax.ShapeDtypeStruct((npad, O2P, P2_PAD), jnp.bfloat16),
        grid_spec=pltpu.PrefetchScalarGridSpec(
            num_scalar_prefetch=0,
            grid=(npad // blk,),
            in_specs=[
                pl.BlockSpec((blk, C1P, XPAD), lambda i: (i, 0, 0)),
                pl.BlockSpec((O1P, K1), lambda i: (0, 0)),
                pl.BlockSpec((O1P, 1), lambda i: (0, 0)),
                pl.BlockSpec((O2P, K2), lambda i: (0, 0)),
                pl.BlockSpec((O2P, 1), lambda i: (0, 0)),
                pl.BlockSpec((4, L1E, P1_PAD), lambda i: (0, 0, 0)),
                pl.BlockSpec((4, L2C, P2_PAD), lambda i: (0, 0, 0)),
            ],
            out_specs=pl.BlockSpec((blk, O2P, P2_PAD), lambda i: (i, 0, 0)),
        ),
        compiler_params=pltpu.CompilerParams(
            dimension_semantics=("parallel",),
            vmem_limit_bytes=64 * 1024 * 1024,
        ),
    )(xf, w1m, b1, w2m, b2, s1, s2)
    return out[:n]


# ------------------------------- kernel 2 -----------------------------------
def _mlp_kernel(x_ref, w1_ref, b1_ref, w2_ref, b2_ref, o_ref):
    h = jnp.dot(x_ref[...], w1_ref[...],
                preferred_element_type=jnp.float32) + b1_ref[...]
    h = jnp.maximum(h, 0.0).astype(jnp.bfloat16)
    logits = jnp.dot(h, w2_ref[...],
                     preferred_element_type=jnp.float32) + b2_ref[...]
    # fb2 padding columns carry -1e30, so the reduction over 128 lanes is
    # effectively over the 10 real classes.
    m = jnp.max(logits, axis=-1, keepdims=True)
    z = logits - m
    lse = jnp.log(jnp.sum(jnp.exp(z), axis=-1, keepdims=True))
    o_ref[...] = (z - lse).astype(o_ref.dtype)


def _mlp_head(feats, fw1, fb1, fw2, fb2):
    n = feats.shape[0]
    npad8 = ((n + 7) // 8) * 8
    tm = min(256, npad8)
    npad = ((n + tm - 1) // tm) * tm
    xf = jnp.pad(feats, ((0, npad - n), (0, 0)))
    out = pl.pallas_call(
        _mlp_kernel,
        out_shape=jax.ShapeDtypeStruct((npad, NCLSP), jnp.float32),
        grid_spec=pltpu.PrefetchScalarGridSpec(
            num_scalar_prefetch=0,
            grid=(npad // tm,),
            in_specs=[
                pl.BlockSpec((tm, FEAT), lambda i: (i, 0)),
                pl.BlockSpec((FEAT, FC1P), lambda i: (0, 0)),
                pl.BlockSpec((1, FC1P), lambda i: (0, 0)),
                pl.BlockSpec((FC1P, NCLSP), lambda i: (0, 0)),
                pl.BlockSpec((1, NCLSP), lambda i: (0, 0)),
            ],
            out_specs=pl.BlockSpec((tm, NCLSP), lambda i: (i, 0)),
        ),
        compiler_params=pltpu.CompilerParams(
            dimension_semantics=("parallel",),
            vmem_limit_bytes=32 * 1024 * 1024,
        ),
    )(xf, fw1, fb1, fw2, fb2)
    return out[:n, :NCLS]


# --------------------------- weight preprocessing ---------------------------
def _prepare_params(p):
    """PyTorch-layout params -> fused-tap / zero-padded kernel layouts."""
    # conv1 (20,3,5,5) -> (32, 200) f32, column = (i*KW+j)*C1P + c.
    w1 = jnp.transpose(p["conv1_w"], (0, 2, 3, 1))            # (O1, KH, KW, C1)
    w1 = jnp.pad(w1, ((0, O1P - O1), (0, 0), (0, 0), (0, C1P - C1)))
    w1m = w1.reshape(O1P, K1).astype(jnp.float32)
    b1 = jnp.pad(p["conv1_b"], (0, O1P - O1)).reshape(O1P, 1).astype(jnp.float32)

    # conv2 (50,20,5,5) -> (64, 800) bf16, column = (i*KW+j)*C2P + c.
    w2 = jnp.transpose(p["conv2_w"], (0, 2, 3, 1))            # (O2, KH, KW, O1)
    w2 = jnp.pad(w2, ((0, O2P - O2), (0, 0), (0, 0), (0, C2P - O1)))
    w2m = w2.reshape(O2P, K2).astype(jnp.bfloat16)
    b2 = jnp.pad(p["conv2_b"], (0, O2P - O2)).reshape(O2P, 1).astype(jnp.float32)

    # fc1 (500,1250): feature row = channel*25 + pos, channels padded to 64.
    fw1 = jnp.zeros((FEAT, FC1P), jnp.float32)
    fw1 = fw1.at[:O2 * P2_LEN, :FC1].set(p["fc1_w"].T).astype(jnp.bfloat16)
    fb1 = jnp.pad(p["fc1_b"], (0, FC1P - FC1)).reshape(1, FC1P).astype(jnp.float32)

    # fc2 (10,500) -> (512,128); padded class columns get a -1e30 bias so the
    # in-kernel log_softmax over 128 lanes normalizes over the real 10 classes.
    fw2 = jnp.zeros((FC1P, NCLSP), jnp.float32)
    fw2 = fw2.at[:FC1, :NCLS].set(p["fc2_w"].T).astype(jnp.bfloat16)
    fb2 = jnp.full((1, NCLSP), -1e30, jnp.float32)
    fb2 = fb2.at[0, :NCLS].set(p["fc2_b"])
    return w1m, b1, w2m, b2, fw1, fb1, fw2, fb2


# --------------------------------- forward ----------------------------------
def cnn_forward(params, x):
    """x: (N, 3, 32, 32) NCHW -> (N, 10) log-probs (matches the PyTorch CNN)."""
    w1m, b1, w2m, b2, fw1, fb1, fw2, fb2 = _prepare_params(params)
    feats = _extract_features(x, w1m, b1, w2m, b2)        # (N, 64, 128) bf16
    feats = feats[:, :, :P2_LEN].reshape(x.shape[0], FEAT)
    return _mlp_head(feats, fw1, fb1, fw2, fb2)           # (N, 10)


# ------------------------- pure-JAX reference (check) ------------------------
def cnn_reference(params, x):
    hp = lax.Precision.HIGHEST
    y = lax.conv_general_dilated(
        x, params["conv1_w"], (1, 1), "VALID",
        dimension_numbers=("NCHW", "OIHW", "NCHW"), precision=hp)
    y = y + params["conv1_b"][None, :, None, None]
    y = lax.reduce_window(y, -jnp.inf, lax.max, (1, 1, 2, 2), (1, 1, 2, 2),
                          "VALID")
    y = jnp.maximum(y, 0.0)
    y = lax.conv_general_dilated(
        y, params["conv2_w"], (1, 1), "VALID",
        dimension_numbers=("NCHW", "OIHW", "NCHW"), precision=hp)
    y = y + params["conv2_b"][None, :, None, None]
    y = lax.reduce_window(y, -jnp.inf, lax.max, (1, 1, 2, 2), (1, 1, 2, 2),
                          "VALID")
    y = jnp.maximum(y, 0.0)
    y = y.reshape(y.shape[0], -1)
    y = jnp.maximum(jnp.dot(y, params["fc1_w"].T, precision=hp)
                    + params["fc1_b"], 0.0)
    y = jnp.dot(y, params["fc2_w"].T, precision=hp) + params["fc2_b"]
    return jax.nn.log_softmax(y, axis=-1)


# -------------------------------- param init ---------------------------------
def init_params(key):
    ks = jax.random.split(key, 8)

    def u(k, shape, fan_in):
        bound = 1.0 / jnp.sqrt(jnp.float32(fan_in))
        return jax.random.uniform(k, shape, jnp.float32, -bound, bound)

    # PyTorch layouts: conv (O, C, KH, KW); linear (out, in).
    return {
        "conv1_w": u(ks[0], (O1, C1, KH, KW), C1 * KH * KW),
        "conv1_b": u(ks[1], (O1,), C1 * KH * KW),
        "conv2_w": u(ks[2], (O2, O1, KH, KW), O1 * KH * KW),
        "conv2_b": u(ks[3], (O2,), O1 * KH * KW),
        "fc1_w": u(ks[4], (FC1, O2 * P2_LEN), O2 * P2_LEN),
        "fc1_b": u(ks[5], (FC1,), O2 * P2_LEN),
        "fc2_w": u(ks[6], (NCLS, FC1), FC1),
        "fc2_b": u(ks[7], (NCLS,), FC1),
    }


if __name__ == "__main__":
    key = jax.random.PRNGKey(0)
    k_params, k_x = jax.random.split(key)
    params = init_params(k_params)
    # fc1 expects 1250 = 50*5*5 features -> input must be (N, 3, 32, 32).
    x = jax.random.normal(k_x, (2, 3, 32, 32), dtype=jnp.float32)

    out = jax.jit(cnn_forward)(params, x)
    out = jax.block_until_ready(out)
    assert out.shape == (2, NCLS)
    # log_softmax rows must exponentiate-and-sum to ~1.
    assert jnp.allclose(jnp.sum(jnp.exp(out), axis=1), 1.0, atol=1e-4)
    # Match the plain-JAX reference of the PyTorch forward pass (bf16 weight
    # path inside the kernels -> loose-ish tolerance vs HIGHEST-precision ref).
    ref = cnn_reference(params, x)
    max_err = float(jnp.max(jnp.abs(out - ref)))
    assert max_err < 5e-2, f"mismatch vs reference: max abs err {max_err}"
    print("KERNEL_OK")
</pallas_src>

<mosaic_0001>
module attributes {stable_mosaic.version = 11 : i64} {
  func.func @_features_kernel(%arg0: i32, %arg1: memref<1x8x1152xf32, #tpu.memory_space<vmem>>, %arg2: memref<32x200xf32, #tpu.memory_space<vmem>>, %arg3: memref<32x1xf32, #tpu.memory_space<vmem>>, %arg4: memref<64x800xbf16, #tpu.memory_space<vmem>>, %arg5: memref<64x1xf32, #tpu.memory_space<vmem>>, %arg6: memref<4x896x256xbf16, #tpu.memory_space<vmem>>, %arg7: memref<4x160x128xbf16, #tpu.memory_space<vmem>>, %arg8: memref<1x64x128xbf16, #tpu.memory_space<vmem>>) attributes {dimension_semantics = [#tpu.dimension_semantics<parallel>], iteration_bounds = array<i64: 2>, scalar_prefetch = 0 : i64, scratch_operands = 0 : i64, tpu.core_type = #tpu.core_type<tc>, window_params = [{transform_indices = @transform_0, window_bounds = array<i64: 1, 8, 1152>}, {pipeline_mode = #tpu.pipeline_mode<synchronous>, transform_indices = @transform_1, window_bounds = array<i64: 32, 200>}, {pipeline_mode = #tpu.pipeline_mode<synchronous>, transform_indices = @transform_2, window_bounds = array<i64: 32, 1>}, {pipeline_mode = #tpu.pipeline_mode<synchronous>, transform_indices = @transform_3, window_bounds = array<i64: 64, 800>}, {pipeline_mode = #tpu.pipeline_mode<synchronous>, transform_indices = @transform_4, window_bounds = array<i64: 64, 1>}, {pipeline_mode = #tpu.pipeline_mode<synchronous>, transform_indices = @transform_5, window_bounds = array<i64: 4, 896, 256>}, {pipeline_mode = #tpu.pipeline_mode<synchronous>, transform_indices = @transform_6, window_bounds = array<i64: 4, 160, 128>}, {transform_indices = @transform_7, window_bounds = array<i64: 1, 64, 128>}]} {
    %c0 = arith.constant 0 : index
    %c0_0 = arith.constant 0 : index
    %0 = vector.load %arg2[%c0, %c0_0] : memref<32x200xf32, #tpu.memory_space<vmem>>, vector<32x200xf32>
    %c0_1 = arith.constant 0 : index
    %c0_2 = arith.constant 0 : index
    %1 = vector.load %arg3[%c0_1, %c0_2] : memref<32x1xf32, #tpu.memory_space<vmem>>, vector<32x1xf32>
    %c0_3 = arith.constant 0 : index
    %c0_4 = arith.constant 0 : index
    %2 = vector.load %arg4[%c0_3, %c0_4] : memref<64x800xbf16, #tpu.memory_space<vmem>>, vector<64x800xbf16>
    %c0_5 = arith.constant 0 : index
    %c0_6 = arith.constant 0 : index
    %3 = vector.load %arg5[%c0_5, %c0_6] : memref<64x1xf32, #tpu.memory_space<vmem>>, vector<64x1xf32>
    %c0_7 = arith.constant 0 : index
    %c0_8 = arith.constant 0 : index
    %c0_9 = arith.constant 0 : index
    %4 = vector.load %arg1[%c0_7, %c0_8, %c0_9] : memref<1x8x1152xf32, #tpu.memory_space<vmem>>, vector<1x8x1152xf32>
    %5 = vector.shape_cast %4 : vector<1x8x1152xf32> to vector<8x1152xf32>
    %6 = vector.extract_strided_slice %5 {offsets = [0, 0], sizes = [8, 896], strides = [1, 1]} : vector<8x1152xf32> to vector<8x896xf32>
    %7 = vector.extract_strided_slice %5 {offsets = [0, 1], sizes = [8, 896], strides = [1, 1]} : vector<8x1152xf32> to vector<8x896xf32>
    %8 = vector.extract_strided_slice %5 {offsets = [0, 2], sizes = [8, 896], strides = [1, 1]} : vector<8x1152xf32> to vector<8x896xf32>
    %9 = vector.extract_strided_slice %5 {offsets = [0, 3], sizes = [8, 896], strides = [1, 1]} : vector<8x1152xf32> to vector<8x896xf32>
    %10 = vector.extract_strided_slice %5 {offsets = [0, 4], sizes = [8, 896], strides = [1, 1]} : vector<8x1152xf32> to vector<8x896xf32>
    %11 = vector.extract_strided_slice %5 {offsets = [0, 32], sizes = [8, 896], strides = [1, 1]} : vector<8x1152xf32> to vector<8x896xf32>
    %12 = vector.extract_strided_slice %5 {offsets = [0, 33], sizes = [8, 896], strides = [1, 1]} : vector<8x1152xf32> to vector<8x896xf32>
    %13 = vector.extract_strided_slice %5 {offsets = [0, 34], sizes = [8, 896], strides = [1, 1]} : vector<8x1152xf32> to vector<8x896xf32>
    %14 = vector.extract_strided_slice %5 {offsets = [0, 35], sizes = [8, 896], strides = [1, 1]} : vector<8x1152xf32> to vector<8x896xf32>
    %15 = vector.extract_strided_slice %5 {offsets = [0, 36], sizes = [8, 896], strides = [1, 1]} : vector<8x1152xf32> to vector<8x896xf32>
    %16 = vector.extract_strided_slice %5 {offsets = [0, 64], sizes = [8, 896], strides = [1, 1]} : vector<8x1152xf32> to vector<8x896xf32>
    %17 = vector.extract_strided_slice %5 {offsets = [0, 65], sizes = [8, 896], strides = [1, 1]} : vector<8x1152xf32> to vector<8x896xf32>
    %18 = vector.extract_strided_slice %5 {offsets = [0, 66], sizes = [8, 896], strides = [1, 1]} : vector<8x1152xf32> to vector<8x896xf32>
    %19 = vector.extract_strided_slice %5 {offsets = [0, 67], sizes = [8, 896], strides = [1, 1]} : vector<8x1152xf32> to vector<8x896xf32>
    %20 = vector.extract_strided_slice %5 {offsets = [0, 68], sizes = [8, 896], strides = [1, 1]} : vector<8x1152xf32> to vector<8x896xf32>
    %21 = vector.extract_strided_slice %5 {offsets = [0, 96], sizes = [8, 896], strides = [1, 1]} : vector<8x1152xf32> to vector<8x896xf32>
    %22 = vector.extract_strided_slice %5 {offsets = [0, 97], sizes = [8, 896], strides = [1, 1]} : vector<8x1152xf32> to vector<8x896xf32>
    %23 = vector.extract_strided_slice %5 {offsets = [0, 98], sizes = [8, 896], strides = [1, 1]} : vector<8x1152xf32> to vector<8x896xf32>
    %24 = vector.extract_strided_slice %5 {offsets = [0, 99], sizes = [8, 896], strides = [1, 1]} : vector<8x1152xf32> to vector<8x896xf32>
    %25 = vector.extract_strided_slice %5 {offsets = [0, 100], sizes = [8, 896], strides = [1, 1]} : vector<8x1152xf32> to vector<8x896xf32>
    %26 = vector.extract_strided_slice %5 {offsets = [0, 128], sizes = [8, 896], strides = [1, 1]} : vector<8x1152xf32> to vector<8x896xf32>
    %27 = vector.extract_strided_slice %5 {offsets = [0, 129], sizes = [8, 896], strides = [1, 1]} : vector<8x1152xf32> to vector<8x896xf32>
    %28 = vector.extract_strided_slice %5 {offsets = [0, 130], sizes = [8, 896], strides = [1, 1]} : vector<8x1152xf32> to vector<8x896xf32>
    %29 = vector.extract_strided_slice %5 {offsets = [0, 131], sizes = [8, 896], strides = [1, 1]} : vector<8x1152xf32> to vector<8x896xf32>
    %30 = vector.extract_strided_slice %5 {offsets = [0, 132], sizes = [8, 896], strides = [1, 1]} : vector<8x1152xf32> to vector<8x896xf32>
    %31 = tpu.concatenate %6, %7, %8, %9, %10, %11, %12, %13, %14, %15, %16, %17, %18, %19, %20, %21 in 0 : vector<8x896xf32>, vector<8x896xf32>, vector<8x896xf32>, vector<8x896xf32>, vector<8x896xf32>, vector<8x896xf32>, vector<8x896xf32>, vector<8x896xf32>, vector<8x896xf32>, vector<8x896xf32>, vector<8x896xf32>, vector<8x896xf32>, vector<8x896xf32>, vector<8x896xf32>, vector<8x896xf32>, vector<8x896xf32> -> vector<128x896xf32>
    %32 = tpu.concatenate %22, %23, %24, %25, %26, %27, %28, %29, %30 in 0 : vector<8x896xf32>, vector<8x896xf32>, vector<8x896xf32>, vector<8x896xf32>, vector<8x896xf32>, vector<8x896xf32>, vector<8x896xf32>, vector<8x896xf32>, vector<8x896xf32> -> vector<72x896xf32>
    %33 = tpu.concatenate %31, %32 in 0 : vector<128x896xf32>, vector<72x896xf32> -> vector<200x896xf32>
    %cst = arith.constant dense<0.000000e+00> : vector<32x896xf32>
    %34 = tpu.matmul %0, %33, %cst {dimension_numbers = #tpu.dot_dimension_numbers<[1], [0], [0], [1], [0, 0, 1, 1], [], []>} : vector<32x200xf32>, vector<200x896xf32>, vector<32x896xf32> -> vector<32x896xf32>
    %35 = arith.truncf %34 : vector<32x896xf32> to vector<32x896xbf16>
    %c0_10 = arith.constant 0 : index
    %c0_11 = arith.constant 0 : index
    %c0_12 = arith.constant 0 : index
    %36 = vector.load %arg6[%c0_10, %c0_11, %c0_12] : memref<4x896x256xbf16, #tpu.memory_space<vmem>>, vector<1x896x256xbf16>
    %37 = vector.shape_cast %36 : vector<1x896x256xbf16> to vector<896x256xbf16>
    %cst_13 = arith.constant dense<0.000000e+00> : vector<32x256xf32>
    %38 = tpu.matmul %35, %37, %cst_13 {dimension_numbers = #tpu.dot_dimension_numbers<[1], [0], [0], [1], [0, 0, 1, 1], [], []>} : vector<32x896xbf16>, vector<896x256xbf16>, vector<32x256xf32> -> vector<32x256xf32>
    %c1 = arith.constant 1 : index
    %c0_14 = arith.constant 0 : index
    %c0_15 = arith.constant 0 : index
    %39 = vector.load %arg6[%c1, %c0_14, %c0_15] : memref<4x896x256xbf16, #tpu.memory_space<vmem>>, vector<1x896x256xbf16>
    %40 = vector.shape_cast %39 : vector<1x896x256xbf16> to vector<896x256xbf16>
    %cst_16 = arith.constant dense<0.000000e+00> : vector<32x256xf32>
    %41 = tpu.matmul %35, %40, %cst_16 {dimension_numbers = #tpu.dot_dimension_numbers<[1], [0], [0], [1], [0, 0, 1, 1], [], []>} : vector<32x896xbf16>, vector<896x256xbf16>, vector<32x256xf32> -> vector<32x256xf32>
    %c2 = arith.constant 2 : index
    %c0_17 = arith.constant 0 : index
    %c0_18 = arith.constant 0 : index
    %42 = vector.load %arg6[%c2, %c0_17, %c0_18] : memref<4x896x256xbf16, #tpu.memory_space<vmem>>, vector<1x896x256xbf16>
    %43 = vector.shape_cast %42 : vector<1x896x256xbf16> to vector<896x256xbf16>
    %cst_19 = arith.constant dense<0.000000e+00> : vector<32x256xf32>
    %44 = tpu.matmul %35, %43, %cst_19 {dimension_numbers = #tpu.dot_dimension_numbers<[1], [0], [0], [1], [0, 0, 1, 1], [], []>} : vector<32x896xbf16>, vector<896x256xbf16>, vector<32x256xf32> -> vector<32x256xf32>
    %c3 = arith.constant 3 : index
    %c0_20 = arith.constant 0 : index
    %c0_21 = arith.constant 0 : index
    %45 = vector.load %arg6[%c3, %c0_20, %c0_21] : memref<4x896x256xbf16, #tpu.memory_space<vmem>>, vector<1x896x256xbf16>
    %46 = vector.shape_cast %45 : vector<1x896x256xbf16> to vector<896x256xbf16>
    %cst_22 = arith.constant dense<0.000000e+00> : vector<32x256xf32>
    %47 = tpu.matmul %35, %46, %cst_22 {dimension_numbers = #tpu.dot_dimension_numbers<[1], [0], [0], [1], [0, 0, 1, 1], [], []>} : vector<32x896xbf16>, vector<896x256xbf16>, vector<32x256xf32> -> vector<32x256xf32>
    %48 = arith.maximumf %38, %41 : vector<32x256xf32>
    %49 = arith.maximumf %44, %47 : vector<32x256xf32>
    %50 = arith.maximumf %48, %49 : vector<32x256xf32>
    %51 = vector.broadcast %1 : vector<32x1xf32> to vector<32x256xf32>
    %52 = arith.addf %50, %51 : vector<32x256xf32>
    %cst_23 = arith.constant 0.000000e+00 : f32
    %53 = vector.broadcast %cst_23 : f32 to vector<32x256xf32>
    %54 = arith.maximumf %52, %53 : vector<32x256xf32>
    %55 = vector.extract_strided_slice %54 {offsets = [0, 0], sizes = [32, 160], strides = [1, 1]} : vector<32x256xf32> to vector<32x160xf32>
    %56 = vector.extract_strided_slice %54 {offsets = [0, 1], sizes = [32, 160], strides = [1, 1]} : vector<32x256xf32> to vector<32x160xf32>
    %57 = vector.extract_strided_slice %54 {offsets = [0, 2], sizes = [32, 160], strides = [1, 1]} : vector<32x256xf32> to vector<32x160xf32>
    %58 = vector.extract_strided_slice %54 {offsets = [0, 3], sizes = [32, 160], strides = [1, 1]} : vector<32x256xf32> to vector<32x160xf32>
    %59 = vector.extract_strided_slice %54 {offsets = [0, 4], sizes = [32, 160], strides = [1, 1]} : vector<32x256xf32> to vector<32x160xf32>
    %60 = vector.extract_strided_slice %54 {offsets = [0, 14], sizes = [32, 160], strides = [1, 1]} : vector<32x256xf32> to vector<32x160xf32>
    %61 = vector.extract_strided_slice %54 {offsets = [0, 15], sizes = [32, 160], strides = [1, 1]} : vector<32x256xf32> to vector<32x160xf32>
    %62 = vector.extract_strided_slice %54 {offsets = [0, 16], sizes = [32, 160], strides = [1, 1]} : vector<32x256xf32> to vector<32x160xf32>
    %63 = vector.extract_strided_slice %54 {offsets = [0, 17], sizes = [32, 160], strides = [1, 1]} : vector<32x256xf32> to vector<32x160xf32>
    %64 = vector.extract_strided_slice %54 {offsets = [0, 18], sizes = [32, 160], strides = [1, 1]} : vector<32x256xf32> to vector<32x160xf32>
    %65 = vector.extract_strided_slice %54 {offsets = [0, 28], sizes = [32, 160], strides = [1, 1]} : vector<32x256xf32> to vector<32x160xf32>
    %66 = vector.extract_strided_slice %54 {offsets = [0, 29], sizes = [32, 160], strides = [1, 1]} : vector<32x256xf32> to vector<32x160xf32>
    %67 = vector.extract_strided_slice %54 {offsets = [0, 30], sizes = [32, 160], strides = [1, 1]} : vector<32x256xf32> to vector<32x160xf32>
    %68 = vector.extract_strided_slice %54 {offsets = [0, 31], sizes = [32, 160], strides = [1, 1]} : vector<32x256xf32> to vector<32x160xf32>
    %69 = vector.extract_strided_slice %54 {offsets = [0, 32], sizes = [32, 160], strides = [1, 1]} : vector<32x256xf32> to vector<32x160xf32>
    %70 = vector.extract_strided_slice %54 {offsets = [0, 42], sizes = [32, 160], strides = [1, 1]} : vector<32x256xf32> to vector<32x160xf32>
    %71 = vector.extract_strided_slice %54 {offsets = [0, 43], sizes = [32, 160], strides = [1, 1]} : vector<32x256xf32> to vector<32x160xf32>
    %72 = vector.extract_strided_slice %54 {offsets = [0, 44], sizes = [32, 160], strides = [1, 1]} : vector<32x256xf32> to vector<32x160xf32>
    %73 = vector.extract_strided_slice %54 {offsets = [0, 45], sizes = [32, 160], strides = [1, 1]} : vector<32x256xf32> to vector<32x160xf32>
    %74 = vector.extract_strided_slice %54 {offsets = [0, 46], sizes = [32, 160], strides = [1, 1]} : vector<32x256xf32> to vector<32x160xf32>
    %75 = vector.extract_strided_slice %54 {offsets = [0, 56], sizes = [32, 160], strides = [1, 1]} : vector<32x256xf32> to vector<32x160xf32>
    %76 = vector.extract_strided_slice %54 {offsets = [0, 57], sizes = [32, 160], strides = [1, 1]} : vector<32x256xf32> to vector<32x160xf32>
    %77 = vector.extract_strided_slice %54 {offsets = [0, 58], sizes = [32, 160], strides = [1, 1]} : vector<32x256xf32> to vector<32x160xf32>
    %78 = vector.extract_strided_slice %54 {offsets = [0, 59], sizes = [32, 160], strides = [1, 1]} : vector<32x256xf32> to vector<32x160xf32>
    %79 = vector.extract_strided_slice %54 {offsets = [0, 60], sizes = [32, 160], strides = [1, 1]} : vector<32x256xf32> to vector<32x160xf32>
    %80 = tpu.concatenate %55, %56, %57, %58, %59, %60, %61, %62, %63, %64, %65, %66, %67, %68, %69, %70 in 0 : vector<32x160xf32>, vector<32x160xf32>, vector<32x160xf32>, vector<32x160xf32>, vector<32x160xf32>, vector<32x160xf32>, vector<32x160xf32>, vector<32x160xf32>, vector<32x160xf32>, vector<32x160xf32>, vector<32x160xf32>, vector<32x160xf32>, vector<32x160xf32>, vector<32x160xf32>, vector<32x160xf32>, vector<32x160xf32> -> vector<512x160xf32>
    %81 = tpu.concatenate %71, %72, %73, %74, %75, %76, %77, %78, %79 in 0 : vector<32x160xf32>, vector<32x160xf32>, vector<32x160xf32>, vector<32x160xf32>, vector<32x160xf32>, vector<32x160xf32>, vector<32x160xf32>, vector<32x160xf32>, vector<32x160xf32> -> vector<288x160xf32>
    %82 = tpu.concatenate %80, %81 in 0 : vector<512x160xf32>, vector<288x160xf32> -> vector<800x160xf32>
    %83 = arith.truncf %82 : vector<800x160xf32> to vector<800x160xbf16>
    %cst_24 = arith.constant dense<0.000000e+00> : vector<64x160xf32>
    %84 = tpu.matmul %2, %83, %cst_24 {dimension_numbers = #tpu.dot_dimension_numbers<[1], [0], [0], [1], [0, 0, 1, 1], [], []>} : vector<64x800xbf16>, vector<800x160xbf16>, vector<64x160xf32> -> vector<64x160xf32>
    %85 = arith.truncf %84 : vector<64x160xf32> to vector<64x160xbf16>
    %c0_25 = arith.constant 0 : index
    %c0_26 = arith.constant 0 : index
    %c0_27 = arith.constant 0 : index
    %86 = vector.load %arg7[%c0_25, %c0_26, %c0_27] : memref<4x160x128xbf16, #tpu.memory_space<vmem>>, vector<1x160x128xbf16>
    %87 = vector.shape_cast %86 : vector<1x160x128xbf16> to vector<160x128xbf16>
    %cst_28 = arith.constant dense<0.000000e+00> : vector<64x128xf32>
    %88 = tpu.matmul %85, %87, %cst_28 {dimension_numbers = #tpu.dot_dimension_numbers<[1], [0], [0], [1], [0, 0, 1, 1], [], []>} : vector<64x160xbf16>, vector<160x128xbf16>, vector<64x128xf32> -> vector<64x128xf32>
    %c1_29 = arith.constant 1 : index
    %c0_30 = arith.constant 0 : index
    %c0_31 = arith.constant 0 : index
    %89 = vector.load %arg7[%c1_29, %c0_30, %c0_31] : memref<4x160x128xbf16, #tpu.memory_space<vmem>>, vector<1x160x128xbf16>
    %90 = vector.shape_cast %89 : vector<1x160x128xbf16> to vector<160x128xbf16>
    %cst_32 = arith.constant dense<0.000000e+00> : vector<64x128xf32>
    %91 = tpu.matmul %85, %90, %cst_32 {dimension_numbers = #tpu.dot_dimension_numbers<[1], [0], [0], [1], [0, 0, 1, 1], [], []>} : vector<64x160xbf16>, vector<160x128xbf16>, vector<64x128xf32> -> vector<64x128xf32>
    %c2_33 = arith.constant 2 : index
    %c0_34 = arith.constant 0 : index
    %c0_35 = arith.constant 0 : index
    %92 = vector.load %arg7[%c2_33, %c0_34, %c0_35] : memref<4x160x128xbf16, #tpu.memory_space<vmem>>, vector<1x160x128xbf16>
    %93 = vector.shape_cast %92 : vector<1x160x128xbf16> to vector<160x128xbf16>
    %cst_36 = arith.constant dense<0.000000e+00> : vector<64x128xf32>
    %94 = tpu.matmul %85, %93, %cst_36 {dimension_numbers = #tpu.dot_dimension_numbers<[1], [0], [0], [1], [0, 0, 1, 1], [], []>} : vector<64x160xbf16>, vector<160x128xbf16>, vector<64x128xf32> -> vector<64x128xf32>
    %c3_37 = arith.constant 3 : index
    %c0_38 = arith.constant 0 : index
    %c0_39 = arith.constant 0 : index
    %95 = vector.load %arg7[%c3_37, %c0_38, %c0_39] : memref<4x160x128xbf16, #tpu.memory_space<vmem>>, vector<1x160x128xbf16>
    %96 = vector.shape_cast %95 : vector<1x160x128xbf16> to vector<160x128xbf16>
    %cst_40 = arith.constant dense<0.000000e+00> : vector<64x128xf32>
    %97 = tpu.matmul %85, %96, %cst_40 {dimension_numbers = #tpu.dot_dimension_numbers<[1], [0], [0], [1], [0, 0, 1, 1], [], []>} : vector<64x160xbf16>, vector<160x128xbf16>, vector<64x128xf32> -> vector<64x128xf32>
    %98 = arith.maximumf %88, %91 : vector<64x128xf32>
    %99 = arith.maximumf %94, %97 : vector<64x128xf32>
    %100 = arith.maximumf %98, %99 : vector<64x128xf32>
    %101 = vector.broadcast %3 : vector<64x1xf32> to vector<64x128xf32>
    %102 = arith.addf %100, %101 : vector<64x128xf32>
    %cst_41 = arith.constant 0.000000e+00 : f32
    %103 = vector.broadcast %cst_41 : f32 to vector<64x128xf32>
    %104 = arith.maximumf %102, %103 : vector<64x128xf32>
    %105 = arith.truncf %104 : vector<64x128xf32> to vector<64x128xbf16>
    %c0_42 = arith.constant 0 : index
    %c0_43 = arith.constant 0 : index
    %c0_44 = arith.constant 0 : index
    %106 = vector.load %arg8[%c0_42, %c0_43, %c0_44] : memref<1x64x128xbf16, #tpu.memory_space<vmem>>, vector<1x64x128xbf16>
    %107 = vector.shape_cast %106 : vector<1x64x128xbf16> to vector<64x128xbf16>
    %108 = vector.shape_cast %105 : vector<64x128xbf16> to vector<1x64x128xbf16>
    tpu.vector_store %arg8[%c0_42, %c0_43, %c0_44], %108 {strides = array<i32>} : memref<1x64x128xbf16, #tpu.memory_space<vmem>>, vector<1x64x128xbf16>,
    return
  }
  func.func @transform_0(%arg0: i32) -> (i32, i32, i32) {
    %c0_i32 = arith.constant 0 : i32
    %c0_i32_0 = arith.constant 0 : i32
    %c0_i32_1 = arith.constant 0 : i32
    return %arg0, %c0_i32, %c0_i32_0 : i32, i32, i32
  }
  func.func @transform_1(%arg0: i32) -> (i32, i32) {
    %c0_i32 = arith.constant 0 : i32
    %c0_i32_0 = arith.constant 0 : i32
    %c0_i32_1 = arith.constant 0 : i32
    return %c0_i32, %c0_i32_0 : i32, i32
  }
  func.func @transform_2(%arg0: i32) -> (i32, i32) {
    %c0_i32 = arith.constant 0 : i32
    %c0_i32_0 = arith.constant 0 : i32
    %c0_i32_1 = arith.constant 0 : i32
    return %c0_i32, %c0_i32_0 : i32, i32
  }
  func.func @transform_3(%arg0: i32) -> (i32, i32) {
    %c0_i32 = arith.constant 0 : i32
    %c0_i32_0 = arith.constant 0 : i32
    %c0_i32_1 = arith.constant 0 : i32
    return %c0_i32, %c0_i32_0 : i32, i32
  }
  func.func @transform_4(%arg0: i32) -> (i32, i32) {
    %c0_i32 = arith.constant 0 : i32
    %c0_i32_0 = arith.constant 0 : i32
    %c0_i32_1 = arith.constant 0 : i32
    return %c0_i32, %c0_i32_0 : i32, i32
  }
  func.func @transform_5(%arg0: i32) -> (i32, i32, i32) {
    %c0_i32 = arith.constant 0 : i32
    %c0_i32_0 = arith.constant 0 : i32
    %c0_i32_1 = arith.constant 0 : i32
    %c0_i32_2 = arith.constant 0 : i32
    return %c0_i32, %c0_i32_0, %c0_i32_1 : i32, i32, i32
  }
  func.func @transform_6(%arg0: i32) -> (i32, i32, i32) {
    %c0_i32 = arith.constant 0 : i32
    %c0_i32_0 = arith.constant 0 : i32
    %c0_i32_1 = arith.constant 0 : i32
    %c0_i32_2 = arith.constant 0 : i32
    return %c0_i32, %c0_i32_0, %c0_i32_1 : i32, i32, i32
  }
  func.func @transform_7(%arg0: i32) -> (i32, i32, i32) {
    %c0_i32 = arith.constant 0 : i32
    %c0_i32_0 = arith.constant 0 : i32
    %c0_i32_1 = arith.constant 0 : i32
    return %arg0, %c0_i32, %c0_i32_0 : i32, i32, i32
  }
}

module attributes {stable_mosaic.version = 11 : i64} {
  func.func @_mlp_kernel(%arg0: i32, %arg1: memref<8x1600xbf16, #tpu.memory_space<vmem>>, %arg2: memref<1600x512xbf16, #tpu.memory_space<vmem>>, %arg3: memref<1x512xf32, #tpu.memory_space<vmem>>, %arg4: memref<512x128xbf16, #tpu.memory_space<vmem>>, %arg5: memref<1x128xf32, #tpu.memory_space<vmem>>, %arg6: memref<8x128xf32, #tpu.memory_space<vmem>>) attributes {dimension_semantics = [#tpu.dimension_semantics<parallel>], iteration_bounds = array<i64: 1>, scalar_prefetch = 0 : i64, scratch_operands = 0 : i64, tpu.core_type = #tpu.core_type<tc>, window_params = [{transform_indices = @transform_0, window_bounds = array<i64: 8, 1600>}, {pipeline_mode = #tpu.pipeline_mode<synchronous>, transform_indices = @transform_1, window_bounds = array<i64: 1600, 512>}, {pipeline_mode = #tpu.pipeline_mode<synchronous>, transform_indices = @transform_2, window_bounds = array<i64: 1, 512>}, {pipeline_mode = #tpu.pipeline_mode<synchronous>, transform_indices = @transform_3, window_bounds = array<i64: 512, 128>}, {pipeline_mode = #tpu.pipeline_mode<synchronous>, transform_indices = @transform_4, window_bounds = array<i64: 1, 128>}, {transform_indices = @transform_5, window_bounds = array<i64: 8, 128>}]} {
    %c0 = arith.constant 0 : index
    %c0_0 = arith.constant 0 : index
    %0 = vector.load %arg1[%c0, %c0_0] : memref<8x1600xbf16, #tpu.memory_space<vmem>>, vector<8x1600xbf16>
    %c0_1 = arith.constant 0 : index
    %c0_2 = arith.constant 0 : index
    %1 = vector.load %arg2[%c0_1, %c0_2] : memref<1600x512xbf16, #tpu.memory_space<vmem>>, vector<1600x512xbf16>
    %cst = arith.constant dense<0.000000e+00> : vector<8x512xf32>
    %2 = tpu.matmul %0, %1, %cst {dimension_numbers = #tpu.dot_dimension_numbers<[1], [0], [0], [1], [0, 0, 1, 1], [], []>} : vector<8x1600xbf16>, vector<1600x512xbf16>, vector<8x512xf32> -> vector<8x512xf32>
    %c0_3 = arith.constant 0 : index
    %c0_4 = arith.constant 0 : index
    %3 = vector.load %arg3[%c0_3, %c0_4] : memref<1x512xf32, #tpu.memory_space<vmem>>, vector<1x512xf32>
    %4 = vector.broadcast %3 : vector<1x512xf32> to vector<8x512xf32>
    %5 = arith.addf %2, %4 : vector<8x512xf32>
    %cst_5 = arith.constant 0.000000e+00 : f32
    %6 = vector.broadcast %cst_5 : f32 to vector<8x512xf32>
    %7 = arith.maximumf %5, %6 : vector<8x512xf32>
    %8 = arith.truncf %7 : vector<8x512xf32> to vector<8x512xbf16>
    %c0_6 = arith.constant 0 : index
    %c0_7 = arith.constant 0 : index
    %9 = vector.load %arg4[%c0_6, %c0_7] : memref<512x128xbf16, #tpu.memory_space<vmem>>, vector<512x128xbf16>
    %cst_8 = arith.constant dense<0.000000e+00> : vector<8x128xf32>
    %10 = tpu.matmul %8, %9, %cst_8 {dimension_numbers = #tpu.dot_dimension_numbers<[1], [0], [0], [1], [0, 0, 1, 1], [], []>} : vector<8x512xbf16>, vector<512x128xbf16>, vector<8x128xf32> -> vector<8x128xf32>
    %c0_9 = arith.constant 0 : index
    %c0_10 = arith.constant 0 : index
    %11 = vector.load %arg5[%c0_9, %c0_10] : memref<1x128xf32, #tpu.memory_space<vmem>>, vector<1x128xf32>
    %12 = vector.broadcast %11 : vector<1x128xf32> to vector<8x128xf32>
    %13 = arith.addf %10, %12 : vector<8x128xf32>
    %cst_11 = arith.constant dense<0xFF800000> : vector<8xf32>
    %14 = vector.multi_reduction <maximumf>, %13, %cst_11 [1] : vector<8x128xf32> to vector<8xf32>
    %15 = vector.shape_cast %14 : vector<8xf32> to vector<8x1xf32>
    %16 = vector.broadcast %15 : vector<8x1xf32> to vector<8x128xf32>
    %17 = arith.subf %13, %16 : vector<8x128xf32>
    %18 = math.exp %17 : vector<8x128xf32>
    %cst_12 = arith.constant dense<0.000000e+00> : vector<8xf32>
    %19 = vector.multi_reduction <add>, %18, %cst_12 [1] : vector<8x128xf32> to vector<8xf32>
    %20 = vector.shape_cast %19 : vector<8xf32> to vector<8x1xf32>
    %21 = math.log %20 : vector<8x1xf32>
    %22 = vector.broadcast %21 : vector<8x1xf32> to vector<8x128xf32>
    %23 = arith.subf %17, %22 : vector<8x128xf32>
    %c0_13 = arith.constant 0 : index
    %c0_14 = arith.constant 0 : index
    %24 = vector.load %arg6[%c0_13, %c0_14] : memref<8x128xf32, #tpu.memory_space<vmem>>, vector<8x128xf32>
    tpu.vector_store %arg6[%c0_13, %c0_14], %23 {strides = array<i32>} : memref<8x128xf32, #tpu.memory_space<vmem>>, vector<8x128xf32>,
    return
  }
  func.func @transform_0(%arg0: i32) -> (i32, i32) {
    %c0_i32 = arith.constant 0 : i32
    %c0_i32_0 = arith.constant 0 : i32
    return %arg0, %c0_i32 : i32, i32
  }
  func.func @transform_1(%arg0: i32) -> (i32, i32) {
    %c0_i32 = arith.constant 0 : i32
    %c0_i32_0 = arith.constant 0 : i32
    %c0_i32_1 = arith.constant 0 : i32
    return %c0_i32, %c0_i32_0 : i32, i32
  }
  func.func @transform_2(%arg0: i32) -> (i32, i32) {
    %c0_i32 = arith.constant 0 : i32
    %c0_i32_0 = arith.constant 0 : i32
    %c0_i32_1 = arith.constant 0 : i32
    return %c0_i32, %c0_i32_0 : i32, i32
  }
  func.func @transform_3(%arg0: i32) -> (i32, i32) {
    %c0_i32 = arith.constant 0 : i32
    %c0_i32_0 = arith.constant 0 : i32
    %c0_i32_1 = arith.constant 0 : i32
    return %c0_i32, %c0_i32_0 : i32, i32
  }
  func.func @transform_4(%arg0: i32) -> (i32, i32) {
    %c0_i32 = arith.constant 0 : i32
    %c0_i32_0 = arith.constant 0 : i32
    %c0_i32_1 = arith.constant 0 : i32
    return %c0_i32, %c0_i32_0 : i32, i32
  }
  func.func @transform_5(%arg0: i32) -> (i32, i32) {
    %c0_i32 = arith.constant 0 : i32
    %c0_i32_0 = arith.constant 0 : i32
    return %arg0, %c0_i32 : i32, i32
  }
}

</mosaic_0001>

<bundles_post_ra>
// kernel: cnn_forward.3
= control target key start
LH: loop header
LB: loop body
LE: loop exit
PB: predicated region body
PF: predicated region fallthrough
CT: control target
= control target key end

     0   :  { %vm2483_vm0 = vcmask 523264   ;;  %s8347_s1 = inlined_call_operand.vmem [shape: bf16[1600,512], index: 1, kind: input, shape index: {}]   ;;  %s8348_s0 = inlined_call_operand.vmem [shape: bf16[8,1600], index: 0, kind: input, shape index: {}]   ;;  %s8349_s2 = inlined_call_operand.vmem [shape: f32[1,512], index: 2, kind: input, shape index: {}]   ;;  %s8350_s3 = inlined_call_operand.vmem [shape: bf16[512,128], index: 3, kind: input, shape index: {}]   ;;  %s8351_s4 = inlined_call_operand.vmem [shape: f32[1,128], index: 4, kind: input, shape index: {}]   ;;  %s8352_s5 = inlined_call_operand.vmem [shape: f32[8,128], index: 5, kind: output, shape index: {}]  }
   0x1   :  { %v3612_v0 = vld [vmem:[%s8347_s1 + $0xe0] sm:$0xf]  ;;  %v5260_v1 = vld [vmem:[%s8347_s1 + $0xec] sm:$0xf0] }
   0x2   :  { %v3740_v2 = vld [vmem:[%s8347_s1 + $0x1e0] sm:$0xf]  ;;  %v3613_v3 = vor.u32 %v5260_v1, %v3612_v0  ;;  %v5292_v4 = vld [vmem:[%s8347_s1 + $0x1ec] sm:$0xf0] }
   0x3   :  { %v3868_v5 = vld [vmem:[%s8347_s1 + $0x2e0] sm:$0xf]  ;;  %v5324_v6 = vld [vmem:[%s8347_s1 + $0x2ec] sm:$0xf0]  ;;  %v3741_v7 = vor.u32 %v5292_v4, %v3740_v2 }
   0x4   :  { %v3869_v8 = vor.u32 %v5324_v6, %v3868_v5  ;;  %v3996_v9 = vld [vmem:[%s8347_s1 + $0x3e0] sm:$0xf]  ;;  %v5356_v10 = vld [vmem:[%s8347_s1 + $0x3ec] sm:$0xf0]  ;;  %2487 = vmatpush.bf16.msra.mxu0 %v3613_v3 }
   0x5   :  { %v3596_v11 = vld [vmem:[%s8347_s1 + $0xc0] sm:$0xf]  ;;  %v3997_v12 = vor.u32 %v5356_v10, %v3996_v9  ;;  %v5256_v13 = vld [vmem:[%s8347_s1 + $0xcc] sm:$0xf0]  ;;  %2500 = vmatpush.bf16.msra.mxu1 %v3741_v7 }
   0x6   :  { %v3724_v14 = vld [vmem:[%s8347_s1 + $0x1c0] sm:$0xf]  ;;  %v5288_v15 = vld [vmem:[%s8347_s1 + $0x1cc] sm:$0xf0]  ;;  %2513 = vmatpush.bf16.msra.mxu2 %v3869_v8  ;;  %v3597_v16 = vor.u32 %v5256_v13, %v3596_v11 }
   0x7   :  { %v3725_v17 = vor.u32 %v5288_v15, %v3724_v14  ;;  %v3852_v18 = vld [vmem:[%s8347_s1 + $0x2c0] sm:$0xf]  ;;  %v5320_v19 = vld [vmem:[%s8347_s1 + $0x2cc] sm:$0xf0]  ;;  %2526 = vmatpush.bf16.msra.mxu3 %v3997_v12 }
   0x8   :  { %v3980_v20 = vld [vmem:[%s8347_s1 + $0x3c0] sm:$0xf]  ;;  %v3853_v21 = vor.u32 %v5320_v19, %v3852_v18  ;;  %v5352_v22 = vld [vmem:[%s8347_s1 + $0x3cc] sm:$0xf0]  ;;  %2488 = vmatpush.bf16.msra.mxu0 %v3597_v16 }
   0x9   :  { %v3580_v23 = vld [vmem:[%s8347_s1 + $0xa0] sm:$0xf]  ;;  %v5252_v24 = vld [vmem:[%s8347_s1 + $0xac] sm:$0xf0]  ;;  %v3981_v25 = vor.u32 %v5352_v22, %v3980_v20  ;;  %2501 = vmatpush.bf16.msra.mxu1 %v3725_v17 }
   0xa   :  { %v3708_v26 = vld [vmem:[%s8347_s1 + $0x1a0] sm:$0xf]  ;;  %v5284_v27 = vld [vmem:[%s8347_s1 + $0x1ac] sm:$0xf0]  ;;  %v3581_v29 = vor.u32 %v5252_v24, %v3580_v23  ;;  %2514 = vmatpush.bf16.msra.mxu2 %v3853_v21 }
   0xb   :  { %v3836_v28 = vld [vmem:[%s8347_s1 + $0x2a0] sm:$0xf]  ;;  %v5316_v30 = vld [vmem:[%s8347_s1 + $0x2ac] sm:$0xf0]  ;;  %v3709_v33 = vor.u32 %v5284_v27, %v3708_v26  ;;  %2527 = vmatpush.bf16.msra.mxu3 %v3981_v25 }
   0xc   :  { %v3964_v31 = vld [vmem:[%s8347_s1 + $0x3a0] sm:$0xf]  ;;  %v5348_v32 = vld [vmem:[%s8347_s1 + $0x3ac] sm:$0xf0]  ;;  %v3837_v34 = vor.u32 %v5316_v30, %v3836_v28  ;;  %2489 = vmatpush.bf16.msra.mxu0 %v3581_v29 }
   0xd   :  { %v3564_v35 = vld [vmem:[%s8347_s1 + $0x80] sm:$0xf]  ;;  %v5248_v36 = vld [vmem:[%s8347_s1 + $0x8c] sm:$0xf0]  ;;  %v3965_v38 = vor.u32 %v5348_v32, %v3964_v31  ;;  %2502 = vmatpush.bf16.msra.mxu1 %v3709_v33 }
   0xe   :  { %v3692_v37 = vld [vmem:[%s8347_s1 + $0x180] sm:$0xf]  ;;  %v5280_v39 = vld [vmem:[%s8347_s1 + $0x18c] sm:$0xf0]  ;;  %v3565_v44 = vor.u32 %v5248_v36, %v3564_v35  ;;  %2515 = vmatpush.bf16.msra.mxu2 %v3837_v34 }
   0xf   :  { %v3820_v40 = vld [vmem:[%s8347_s1 + $0x280] sm:$0xf]  ;;  %v5312_v41 = vld [vmem:[%s8347_s1 + $0x28c] sm:$0xf0]  ;;  %v3693_v45 = vor.u32 %v5280_v39, %v3692_v37  ;;  %2528 = vmatpush.bf16.msra.mxu3 %v3965_v38 }
  0x10   :  { %v3948_v42 = vld [vmem:[%s8347_s1 + $0x380] sm:$0xf]  ;;  %v5344_v43 = vld [vmem:[%s8347_s1 + $0x38c] sm:$0xf0]  ;;  %v3821_v46 = vor.u32 %v5312_v41, %v3820_v40  ;;  %2490 = vmatpush.bf16.msra.mxu0 %v3565_v44 }
  0x11   :  { %v3548_v47 = vld [vmem:[%s8347_s1 + $0x60] sm:$0xf]  ;;  %v5244_v48 = vld [vmem:[%s8347_s1 + $0x6c] sm:$0xf0]  ;;  %v3949_v50 = vor.u32 %v5344_v43, %v3948_v42  ;;  %2503 = vmatpush.bf16.msra.mxu1 %v3693_v45 }
  0x12   :  { %v3676_v49 = vld [vmem:[%s8347_s1 + $0x160] sm:$0xf]  ;;  %v5276_v51 = vld [vmem:[%s8347_s1 + $0x16c] sm:$0xf0]  ;;  %v3549_v56 = vor.u32 %v5244_v48, %v3548_v47  ;;  %2516 = vmatpush.bf16.msra.mxu2 %v3821_v46 }
  0x13   :  { %v3804_v52 = vld [vmem:[%s8347_s1 + $0x260] sm:$0xf]  ;;  %v5308_v53 = vld [vmem:[%s8347_s1 + $0x26c] sm:$0xf0]  ;;  %v3677_v57 = vor.u32 %v5276_v51, %v3676_v49  ;;  %2529 = vmatpush.bf16.msra.mxu3 %v3949_v50 }
  0x14   :  { %v3932_v54 = vld [vmem:[%s8347_s1 + $0x360] sm:$0xf]  ;;  %v5340_v55 = vld [vmem:[%s8347_s1 + $0x36c] sm:$0xf0]  ;;  %v3805_v58 = vor.u32 %v5308_v53, %v3804_v52  ;;  %2491 = vmatpush.bf16.msra.mxu0 %v3549_v56 }
  0x15   :  { %v3532_v59 = vld [vmem:[%s8347_s1 + $0x40] sm:$0xf]  ;;  %v5240_v60 = vld [vmem:[%s8347_s1 + $0x4c] sm:$0xf0]  ;;  %v3933_v62 = vor.u32 %v5340_v55, %v3932_v54  ;;  %2504 = vmatpush.bf16.msra.mxu1 %v3677_v57 }
  0x16   :  { %v3660_v61 = vld [vmem:[%s8347_s1 + $0x140] sm:$0xf]  ;;  %v5272_v63 = vld [vmem:[%s8347_s1 + $0x14c] sm:$0xf0]  ;;  %v3533_v4 = vor.u32 %v5240_v60, %v3532_v59  ;;  %2517 = vmatpush.bf16.msra.mxu2 %v3805_v58  ;;  %v22_v58 = vld [vmem:[%s8348_s0 + $0x8] sm:$0xff] }
  0x17   :  { %v3788_v0 = vld [vmem:[%s8347_s1 + $0x240] sm:$0xf]  ;;  %v5304_v1 = vld [vmem:[%s8347_s1 + $0x24c] sm:$0xf0]  ;;  %v3661_v5 = vor.u32 %v5272_v63, %v3660_v61  ;;  %2530 = vmatpush.bf16.msra.mxu3 %v3933_v62  ;;  %v447_v63 = vunpack.c.l.b16 %v22_v58 }
  0x18   :  { %v3916_v2 = vld [vmem:[%s8347_s1 + $0x340] sm:$0xf]  ;;  %v5336_v3 = vld [vmem:[%s8347_s1 + $0x34c] sm:$0xf0]  ;;  %v3789_v6 = vor.u32 %v5304_v1, %v3788_v0  ;;  %2492 = vmatpush.bf16.msra.mxu0 %v3533_v4  ;;  %v448_v0 = vunpack.c.h.b16 %v22_v58 }
  0x19   :  { %v3516_v7 = vld [vmem:[%s8347_s1 + $0x20] sm:$0xf]  ;;  %v5236_v8 = vld [vmem:[%s8347_s1 + $0x2c] sm:$0xf0]  ;;  %v3917_v10 = vor.u32 %v5336_v3, %v3916_v2  ;;  %2505 = vmatpush.bf16.msra.mxu1 %v3661_v5  ;;  %v5965_v4 = vpack.c.b16 %v447_v63, %v447_v63 }
  0x1a   :  { %v3644_v9 = vld [vmem:[%s8347_s1 + $0x120] sm:$0xf]  ;;  %v5268_v11 = vld [vmem:[%s8347_s1 + $0x12c] sm:$0xf0]  ;;  %v3517_v16 = vor.u32 %v5236_v8, %v3516_v7  ;;  %2518 = vmatpush.bf16.msra.mxu2 %v3789_v6  ;;  %v5970_v6 = vpack.c.b16 %v448_v0, %v448_v0 }
  0x1b   :  { %v3772_v12 = vld [vmem:[%s8347_s1 + $0x220] sm:$0xf]  ;;  %v5300_v13 = vld [vmem:[%s8347_s1 + $0x22c] sm:$0xf0]  ;;  %v3645_v19 = vor.u32 %v5268_v11, %v3644_v9  ;;  %2531 = vmatpush.bf16.msra.mxu3 %v3917_v10 }
  0x1c   :  { %v3900_v14 = vld [vmem:[%s8347_s1 + $0x320] sm:$0xf]  ;;  %v5332_v15 = vld [vmem:[%s8347_s1 + $0x32c] sm:$0xf0]  ;;  %v3773_v20 = vor.u32 %v5300_v13, %v3772_v12  ;;  %2493 = vmatpush.bf16.msra.mxu0 %v3517_v16 }
  0x1d   :  { %v3500_v17 = vld [vmem:[%s8347_s1] sm:$0xf]  ;;  %v5232_v18 = vld [vmem:[%s8347_s1 + $0xc] sm:$0xf0]  ;;  %v3901_v24 = vor.u32 %v5332_v15, %v3900_v14  ;;  %2506 = vmatpush.bf16.msra.mxu1 %v3645_v19 }
  0x1e   :  { %v3628_v21 = vld [vmem:[%s8347_s1 + $0x100] sm:$0xf]  ;;  %v5264_v22 = vld [vmem:[%s8347_s1 + $0x10c] sm:$0xf0]  ;;  %v3501_v31 = vor.u32 %v5232_v18, %v3500_v17  ;;  %2519 = vmatpush.bf16.msra.mxu2 %v3773_v20 }
  0x1f   :  { %v3756_v23 = vld [vmem:[%s8347_s1 + $0x200] sm:$0xf]  ;;  %v5296_v25 = vld [vmem:[%s8347_s1 + $0x20c] sm:$0xf0]  ;;  %v3629_v35 = vor.u32 %v5264_v22, %v3628_v21  ;;  %2532 = vmatpush.bf16.msra.mxu3 %v3901_v24 }
  0x20   :  { %v3884_v26 = vld [vmem:[%s8347_s1 + $0x300] sm:$0xf]  ;;  %v5328_v27 = vld [vmem:[%s8347_s1 + $0x30c] sm:$0xf0]  ;;  %v3757_v36 = vor.u32 %v5296_v25, %v3756_v23  ;;  %2494 = vmatpush.bf16.msra.mxu0 %v3501_v31 }
  0x21   :  { %v4124_v28 = vld [vmem:[%s8347_s1 + $0x4e0] sm:$0xf]  ;;  %v5388_v29 = vld [vmem:[%s8347_s1 + $0x4ec] sm:$0xf0]  ;;  %v3885_v39 = vor.u32 %v5328_v27, %v3884_v26  ;;  %2507 = vmatpush.bf16.msra.mxu1 %v3629_v35 }
  0x22   :  { %v4252_v30 = vld [vmem:[%s8347_s1 + $0x5e0] sm:$0xf]  ;;  %v5420_v32 = vld [vmem:[%s8347_s1 + $0x5ec] sm:$0xf0]  ;;  %v4125_v40 = vor.u32 %v5388_v29, %v4124_v28  ;;  %2520 = vmatpush.bf16.msra.mxu2 %v3757_v36 }
  0x23   :  { %v4380_v33 = vld [vmem:[%s8347_s1 + $0x6e0] sm:$0xf]  ;;  %v5452_v34 = vld [vmem:[%s8347_s1 + $0x6ec] sm:$0xf0]  ;;  %v4253_v41 = vor.u32 %v5420_v32, %v4252_v30  ;;  %2533 = vmatpush.bf16.msra.mxu3 %v3885_v39 }
  0x24   :  { %v4508_v37 = vld [vmem:[%s8347_s1 + $0x7e0] sm:$0xf]  ;;  %v5484_v38 = vld [vmem:[%s8347_s1 + $0x7ec] sm:$0xf0]  ;;  %v4381_v42 = vor.u32 %v5452_v34, %v4380_v33  ;;  %2539 = vmatpush.bf16.msrb.mxu0 %v4125_v40 }
  0x25   :  { %v4108_v43 = vld [vmem:[%s8347_s1 + $0x4c0] sm:$0xf]  ;;  %v5384_v44 = vld [vmem:[%s8347_s1 + $0x4cc] sm:$0xf0]  ;;  %v4509_v46 = vor.u32 %v5484_v38, %v4508_v37  ;;  %2552 = vmatpush.bf16.msrb.mxu1 %v4253_v41  ;;  %2521 = vmatmul.bf16.vlgmr.msra.gmra.mxu2 %v5965_v4 }
  0x26   :  { %v4236_v45 = vld [vmem:[%s8347_s1 + $0x5c0] sm:$0xf]  ;;  %v5416_v47 = vld [vmem:[%s8347_s1 + $0x5cc] sm:$0xf0]  ;;  %v4109_v52 = vor.u32 %v5384_v44, %v4108_v43  ;;  %2565 = vmatpush.bf16.msrb.mxu2 %v4381_v42  ;;  %2534 = vmatmul.bf16.vlgmr.msra.gmra.mxu3 %v5970_v6 }
  0x27   :  { %v4364_v48 = vld [vmem:[%s8347_s1 + $0x6c0] sm:$0xf]  ;;  %v5448_v49 = vld [vmem:[%s8347_s1 + $0x6cc] sm:$0xf0]  ;;  %v4237_v54 = vor.u32 %v5416_v47, %v4236_v45  ;;  %2578 = vmatpush.bf16.msrb.mxu3 %v4509_v46 }
  0x28   :  { %v4492_v50 = vld [vmem:[%s8347_s1 + $0x7c0] sm:$0xf]  ;;  %v5480_v51 = vld [vmem:[%s8347_s1 + $0x7cc] sm:$0xf0]  ;;  %v4365_v55 = vor.u32 %v5448_v49, %v4364_v48  ;;  %2540 = vmatpush.bf16.msrb.mxu0 %v4109_v52 }
  0x29   :  { %v4092_v53 = vld [vmem:[%s8347_s1 + $0x4a0] sm:$0xf]  ;;  %v5380_v56 = vld [vmem:[%s8347_s1 + $0x4ac] sm:$0xf0]  ;;  %v4493_v59 = vor.u32 %v5480_v51, %v4492_v50  ;;  %2553 = vmatpush.bf16.msrb.mxu1 %v4237_v54 }
  0x2a   :  { %v4220_v57 = vld [vmem:[%s8347_s1 + $0x5a0] sm:$0xf]  ;;  %v5412_v60 = vld [vmem:[%s8347_s1 + $0x5ac] sm:$0xf0]  ;;  %v4093_v3 = vor.u32 %v5380_v56, %v4092_v53  ;;  %2566 = vmatpush.bf16.msrb.mxu2 %v4365_v55 }
  0x2b   :  { %v4348_v61 = vld [vmem:[%s8347_s1 + $0x6a0] sm:$0xf]  ;;  %v5444_v62 = vld [vmem:[%s8347_s1 + $0x6ac] sm:$0xf0]  ;;  %v4221_v7 = vor.u32 %v5412_v60, %v4220_v57  ;;  %2579 = vmatpush.bf16.msrb.mxu3 %v4493_v59 }
  0x2c   :  { %v4476_v1 = vld [vmem:[%s8347_s1 + $0x7a0] sm:$0xf]  ;;  %v5476_v2 = vld [vmem:[%s8347_s1 + $0x7ac] sm:$0xf0]  ;;  %v4349_v8 = vor.u32 %v5444_v62, %v4348_v61  ;;  %2541 = vmatpush.bf16.msrb.mxu0 %v4093_v3  ;;  %v24_v3 = vld [vmem:[%s8348_s0 + $0x18] sm:$0xff] }
  0x2d   :  { %v21_v5 = vld [vmem:[%s8348_s0] sm:$0xff]  ;;  %v5376_v10 = vld [vmem:[%s8347_s1 + $0x48c] sm:$0xf0]  ;;  %v4477_v14 = vor.u32 %v5476_v2, %v4476_v1  ;;  %2554 = vmatpush.bf16.msrb.mxu1 %v4221_v7 }
  0x2e   :  { %v4076_v9 = vld [vmem:[%s8347_s1 + $0x480] sm:$0xf]  ;;  %v445_v12 = vunpack.c.l.b16 %v21_v5  ;;  %v446_v13 = vunpack.c.h.b16 %v21_v5  ;;  %v5408_v15 = vld [vmem:[%s8347_s1 + $0x58c] sm:$0xf0]  ;;  %2567 = vmatpush.bf16.msrb.mxu2 %v4349_v8 }
  0x2f   :  { %v4204_v11 = vld [vmem:[%s8347_s1 + $0x580] sm:$0xf]  ;;  %v5440_v17 = vld [vmem:[%s8347_s1 + $0x68c] sm:$0xf0]  ;;  %v4077_v22 = vor.u32 %v5376_v10, %v4076_v9  ;;  %2580 = vmatpush.bf16.msrb.mxu3 %v4477_v14 }
  0x30   :  { %v4332_v16 = vld [vmem:[%s8347_s1 + $0x680] sm:$0xf]  ;;  %v5472_v19 = vld [vmem:[%s8347_s1 + $0x78c] sm:$0xf0]  ;;  %v5997_v20 = vpack.c.b16 %v445_v12, %v445_v12  ;;  %v6000_v21 = vpack.c.b16 %v446_v13, %v446_v13  ;;  %v4205_v23 = vor.u32 %v5408_v15, %v4204_v11 }
  0x31   :  { %v4460_v18 = vld [vmem:[%s8347_s1 + $0x780] sm:$0xf]  ;;  %v4333_v24 = vor.u32 %v5440_v17, %v4332_v16  ;;  %v5372_v26 = vld [vmem:[%s8347_s1 + $0x46c] sm:$0xf0]  ;;  %2542 = vmatpush.bf16.msrb.mxu0 %v4077_v22  ;;  %v451_v17 = vunpack.c.l.b16 %v24_v3 }
  0x32   :  { %v4060_v25 = vld [vmem:[%s8347_s1 + $0x460] sm:$0xf]  ;;  %v4461_v28 = vor.u32 %v5472_v19, %v4460_v18  ;;  %v5404_v29 = vld [vmem:[%s8347_s1 + $0x56c] sm:$0xf0]  ;;  %2495 = vmatmul.bf16.vlgmr.msra.gmra.mxu0 %v5997_v20  ;;  %2508 = vmatmul.bf16.vlgmr.msra.gmra.mxu1 %v6000_v21 }
  0x33   :  { %v4188_v27 = vld [vmem:[%s8347_s1 + $0x560] sm:$0xf]  ;;  %v5436_v31 = vld [vmem:[%s8347_s1 + $0x66c] sm:$0xf0]  ;;  %v4061_v34 = vor.u32 %v5372_v26, %v4060_v25  ;;  %2555 = vmatpush.bf16.msrb.mxu1 %v4205_v23  ;;  %2568 = vmatpush.bf16.msrb.mxu2 %v4333_v24  ;;  %v452_v25 = vunpack.c.h.b16 %v24_v3 }
  0x34   :  { %v4316_v30 = vld [vmem:[%s8347_s1 + $0x660] sm:$0xf]  ;;  %v5468_v33 = vld [vmem:[%s8347_s1 + $0x76c] sm:$0xf0]  ;;  %v4189_v35 = vor.u32 %v5404_v29, %v4188_v27  ;;  %2581 = vmatpush.bf16.msrb.mxu3 %v4461_v28 }
  0x35   :  { %v4444_v32 = vld [vmem:[%s8347_s1 + $0x760] sm:$0xf]  ;;  %v4317_v36 = vor.u32 %v5436_v31, %v4316_v30  ;;  %v5368_v38 = vld [vmem:[%s8347_s1 + $0x44c] sm:$0xf0]  ;;  %2543 = vmatpush.bf16.msrb.mxu0 %v4061_v34 }
  0x36   :  { %v4044_v37 = vld [vmem:[%s8347_s1 + $0x440] sm:$0xf]  ;;  %v4445_v40 = vor.u32 %v5468_v33, %v4444_v32  ;;  %v5400_v41 = vld [vmem:[%s8347_s1 + $0x54c] sm:$0xf0] }
  0x37   :  { %v4172_v39 = vld [vmem:[%s8347_s1 + $0x540] sm:$0xf]  ;;  %v5432_v43 = vld [vmem:[%s8347_s1 + $0x64c] sm:$0xf0]  ;;  %v4045_v46 = vor.u32 %v5368_v38, %v4044_v37  ;;  %2556 = vmatpush.bf16.msrb.mxu1 %v4189_v35  ;;  %2569 = vmatpush.bf16.msrb.mxu2 %v4317_v36  ;;  %v6148_v38 = vpack.c.b16 %v451_v17, %v451_v17 }
  0x38   :  { %v4300_v42 = vld [vmem:[%s8347_s1 + $0x640] sm:$0xf]  ;;  %v5464_v45 = vld [vmem:[%s8347_s1 + $0x74c] sm:$0xf0]  ;;  %v4173_v47 = vor.u32 %v5400_v41, %v4172_v39  ;;  %2582 = vmatpush.bf16.msrb.mxu3 %v4445_v40 }
  0x39   :  { %v4428_v44 = vld [vmem:[%s8347_s1 + $0x740] sm:$0xf]  ;;  %v4301_v48 = vor.u32 %v5432_v43, %v4300_v42  ;;  %v5364_v50 = vld [vmem:[%s8347_s1 + $0x42c] sm:$0xf0]  ;;  %2544 = vmatpush.bf16.msrb.mxu0 %v4045_v46  ;;  %v6158_v42 = vpack.c.b16 %v452_v25, %v452_v25 }
  0x3a   :  { %v4028_v49 = vld [vmem:[%s8347_s1 + $0x420] sm:$0xf]  ;;  %v4429_v52 = vor.u32 %v5464_v45, %v4428_v44  ;;  %v5396_v53 = vld [vmem:[%s8347_s1 + $0x52c] sm:$0xf0] }
  0x3b   :  { %v4156_v51 = vld [vmem:[%s8347_s1 + $0x520] sm:$0xf]  ;;  %v5428_v55 = vld [vmem:[%s8347_s1 + $0x62c] sm:$0xf0]  ;;  %v4029_v59 = vor.u32 %v5364_v50, %v4028_v49  ;;  %2557 = vmatpush.bf16.msrb.mxu1 %v4173_v47  ;;  %2570 = vmatpush.bf16.msrb.mxu2 %v4301_v48 }
  0x3c   :  { %v4284_v54 = vld [vmem:[%s8347_s1 + $0x620] sm:$0xf]  ;;  %v5460_v57 = vld [vmem:[%s8347_s1 + $0x72c] sm:$0xf0]  ;;  %v4157_v63 = vor.u32 %v5396_v53, %v4156_v51  ;;  %2583 = vmatpush.bf16.msrb.mxu3 %v4429_v52 }
  0x3d   :  { %v4412_v56 = vld [vmem:[%s8347_s1 + $0x720] sm:$0xf]  ;;  %v5360_v60 = vld [vmem:[%s8347_s1 + $0x40c] sm:$0xf0]  ;;  %v4285_v0 = vor.u32 %v5428_v55, %v4284_v54  ;;  %2545 = vmatpush.bf16.msrb.mxu0 %v4029_v59 }
  0x3e   :  { %v4012_v58 = vld [vmem:[%s8347_s1 + $0x400] sm:$0xf]  ;;  %v5392_v62 = vld [vmem:[%s8347_s1 + $0x50c] sm:$0xf0]  ;;  %v4413_v5 = vor.u32 %v5460_v57, %v4412_v56 }
  0x3f   :  { %v4140_v61 = vld [vmem:[%s8347_s1 + $0x500] sm:$0xf]  ;;  %v5424_v2 = vld [vmem:[%s8347_s1 + $0x60c] sm:$0xf0]  ;;  %v4013_v13 = vor.u32 %v5360_v60, %v4012_v58  ;;  %2558 = vmatpush.bf16.msrb.mxu1 %v4157_v63  ;;  %2571 = vmatpush.bf16.msrb.mxu2 %v4285_v0 }
  0x40   :  { %v4268_v1 = vld [vmem:[%s8347_s1 + $0x600] sm:$0xf]  ;;  %v5456_v8 = vld [vmem:[%s8347_s1 + $0x70c] sm:$0xf0]  ;;  %v4141_v18 = vor.u32 %v5392_v62, %v4140_v61  ;;  %2584 = vmatpush.bf16.msrb.mxu3 %v4413_v5 }
  0x41   :  { %v4396_v7 = vld [vmem:[%s8347_s1 + $0x700] sm:$0xf]  ;;  %v23_v9 = vld [vmem:[%s8348_s0 + $0x10] sm:$0xff]  ;;  %v4269_v19 = vor.u32 %v5424_v2, %v4268_v1  ;;  %2546 = vmatpush.bf16.msrb.mxu0 %v4013_v13 }
  0x42   :  { %v4636_v10 = vld [vmem:[%s8347_s1 + $0x8e0] sm:$0xf]  ;;  %v5516_v11 = vld [vmem:[%s8347_s1 + $0x8ec] sm:$0xf0]  ;;  %v449_v24 = vunpack.c.l.b16 %v23_v9  ;;  %v4397_v26 = vor.u32 %v5456_v8, %v4396_v7  ;;  %v450_v28 = vunpack.c.h.b16 %v23_v9 }
  0x43   :  { %v4764_v12 = vld [vmem:[%s8347_s1 + $0x9e0] sm:$0xf]  ;;  %v5548_v14 = vld [vmem:[%s8347_s1 + $0x9ec] sm:$0xf0]  ;;  %v4637_v27 = vor.u32 %v5516_v11, %v4636_v10  ;;  %2559 = vmatpush.bf16.msrb.mxu1 %v4141_v18  ;;  %2572 = vmatpush.bf16.msrb.mxu2 %v4269_v19 }
  0x44   :  { %v4892_v15 = vld [vmem:[%s8347_s1 + $0xae0] sm:$0xf]  ;;  %v5580_v16 = vld [vmem:[%s8347_s1 + $0xaec] sm:$0xf0]  ;;  %v4765_v29 = vor.u32 %v5548_v14, %v4764_v12  ;;  %v6156_v41 = vpack.c.b16 %v449_v24, %v449_v24  ;;  %2585 = vmatpush.bf16.msrb.mxu3 %v4397_v26  ;;  %v6160_v44 = vpack.c.b16 %v450_v28, %v450_v28 }
  0x45   :  { %v5020_v22 = vld [vmem:[%s8347_s1 + $0xbe0] sm:$0xf]  ;;  %v5612_v23 = vld [vmem:[%s8347_s1 + $0xbec] sm:$0xf0]  ;;  %v4893_v30 = vor.u32 %v5580_v16, %v4892_v15  ;;  %2591 = vmatpush.bf16.msra.mxu0 %v4637_v27 }
  0x46   :  { %v4620_v31 = vld [vmem:[%s8347_s1 + $0x8c0] sm:$0xf]  ;;  %v5512_v32 = vld [vmem:[%s8347_s1 + $0x8cc] sm:$0xf0]  ;;  %v5021_v34 = vor.u32 %v5612_v23, %v5020_v22  ;;  %2573 = vmatmul.bf16.vlgmr.msrb.gmra.mxu2 %v6148_v38  ;;  %2547 = vmatmul.bf16.vlgmr.msrb.gmra.mxu0 %v6156_v41 }
  0x47   :  { %v4748_v33 = vld [vmem:[%s8347_s1 + $0x9c0] sm:$0xf]  ;;  %v5544_v35 = vld [vmem:[%s8347_s1 + $0x9cc] sm:$0xf0]  ;;  %v4621_v43 = vor.u32 %v5512_v32, %v4620_v31  ;;  %2604 = vmatpush.bf16.msra.mxu1 %v4765_v29  ;;  %2617 = vmatpush.bf16.msra.mxu2 %v4893_v30 }
  0x48   :  { %v4876_v36 = vld [vmem:[%s8347_s1 + $0xac0] sm:$0xf]  ;;  %v5576_v37 = vld [vmem:[%s8347_s1 + $0xacc] sm:$0xf0]  ;;  %v4749_v45 = vor.u32 %v5544_v35, %v4748_v33  ;;  %2630 = vmatpush.bf16.msra.mxu3 %v5021_v34  ;;  %2560 = vmatmul.bf16.vlgmr.msrb.gmra.mxu1 %v6160_v44 }
  0x49   :  { %v5004_v39 = vld [vmem:[%s8347_s1 + $0xbc0] sm:$0xf]  ;;  %v5608_v40 = vld [vmem:[%s8347_s1 + $0xbcc] sm:$0xf0]  ;;  %v4877_v46 = vor.u32 %v5576_v37, %v4876_v36  ;;  %2586 = vmatmul.bf16.vlgmr.msrb.gmra.mxu3 %v6158_v42  ;;  %2592 = vmatpush.bf16.msra.mxu0 %v4621_v43 }
  0x4a   :  { %v4604_v47 = vld [vmem:[%s8347_s1 + $0x8a0] sm:$0xf]  ;;  %v5508_v48 = vld [vmem:[%s8347_s1 + $0x8ac] sm:$0xf0]  ;;  %v5005_v50 = vor.u32 %v5608_v40, %v5004_v39 }
  0x4b   :  { %v4732_v49 = vld [vmem:[%s8347_s1 + $0x9a0] sm:$0xf]  ;;  %v5540_v51 = vld [vmem:[%s8347_s1 + $0x9ac] sm:$0xf0]  ;;  %v4605_v56 = vor.u32 %v5508_v48, %v4604_v47  ;;  %2605 = vmatpush.bf16.msra.mxu1 %v4749_v45  ;;  %2618 = vmatpush.bf16.msra.mxu2 %v4877_v46 }
  0x4c   :  { %v4860_v52 = vld [vmem:[%s8347_s1 + $0xaa0] sm:$0xf]  ;;  %v5572_v53 = vld [vmem:[%s8347_s1 + $0xaac] sm:$0xf0]  ;;  %v4733_v57 = vor.u32 %v5540_v51, %v4732_v49  ;;  %2631 = vmatpush.bf16.msra.mxu3 %v5005_v50 }
  0x4d   :  { %v4988_v54 = vld [vmem:[%s8347_s1 + $0xba0] sm:$0xf]  ;;  %v5604_v55 = vld [vmem:[%s8347_s1 + $0xbac] sm:$0xf0]  ;;  %v4861_v58 = vor.u32 %v5572_v53, %v4860_v52  ;;  %2593 = vmatpush.bf16.msra.mxu0 %v4605_v56 }
  0x4e   :  { %v4588_v59 = vld [vmem:[%s8347_s1 + $0x880] sm:$0xf]  ;;  %v5504_v60 = vld [vmem:[%s8347_s1 + $0x88c] sm:$0xf0]  ;;  %v4989_v62 = vor.u32 %v5604_v55, %v4988_v54 }
  0x4f   :  { %v4716_v61 = vld [vmem:[%s8347_s1 + $0x980] sm:$0xf]  ;;  %v5536_v63 = vld [vmem:[%s8347_s1 + $0x98c] sm:$0xf0]  ;;  %v4589_v5 = vor.u32 %v5504_v60, %v4588_v59  ;;  %2606 = vmatpush.bf16.msra.mxu1 %v4733_v57  ;;  %2619 = vmatpush.bf16.msra.mxu2 %v4861_v58 }
  0x50   :  { %v4844_v0 = vld [vmem:[%s8347_s1 + $0xa80] sm:$0xf]  ;;  %v5568_v1 = vld [vmem:[%s8347_s1 + $0xa8c] sm:$0xf0]  ;;  %v4717_v7 = vor.u32 %v5536_v63, %v4716_v61  ;;  %2632 = vmatpush.bf16.msra.mxu3 %v4989_v62  ;;  %v26_v61 = vld [vmem:[%s8348_s0 + $0x28] sm:$0xff] }
  0x51   :  { %v4972_v2 = vld [vmem:[%s8347_s1 + $0xb80] sm:$0xf]  ;;  %v5600_v3 = vld [vmem:[%s8347_s1 + $0xb8c] sm:$0xf0]  ;;  %v4845_v8 = vor.u32 %v5568_v1, %v4844_v0  ;;  %2594 = vmatpush.bf16.msra.mxu0 %v4589_v5  ;;  %v5258_v0 = vld [vmem:[%s8347_s1 + $0xe4] sm:$0xf] }
  0x52   :  { %v4572_v9 = vld [vmem:[%s8347_s1 + $0x860] sm:$0xf]  ;;  %v5500_v10 = vld [vmem:[%s8347_s1 + $0x86c] sm:$0xf0]  ;;  %v4973_v12 = vor.u32 %v5600_v3, %v4972_v2  ;;  %v3614_v2 = vld [vmem:[%s8347_s1 + $0xf0] sm:$0xf0] }
  0x53   :  { %v4700_v11 = vld [vmem:[%s8347_s1 + $0x960] sm:$0xf]  ;;  %v5532_v13 = vld [vmem:[%s8347_s1 + $0x96c] sm:$0xf0]  ;;  %v4573_v18 = vor.u32 %v5500_v10, %v4572_v9  ;;  %2607 = vmatpush.bf16.msra.mxu1 %v4717_v7  ;;  %2620 = vmatpush.bf16.msra.mxu2 %v4845_v8  ;;  %v5290_v3 = vld [vmem:[%s8347_s1 + $0x1e4] sm:$0xf] }
  0x54   :  { %v4828_v14 = vld [vmem:[%s8347_s1 + $0xa60] sm:$0xf]  ;;  %v5564_v15 = vld [vmem:[%s8347_s1 + $0xa6c] sm:$0xf0]  ;;  %v4701_v19 = vor.u32 %v5532_v13, %v4700_v11  ;;  %2633 = vmatpush.bf16.msra.mxu3 %v4973_v12  ;;  %v3742_v5 = vld [vmem:[%s8347_s1 + $0x1f0] sm:$0xf0]  ;;  %v455_v12 = vunpack.c.l.b16 %v26_v61 }
  0x55   :  { %v4956_v16 = vld [vmem:[%s8347_s1 + $0xb60] sm:$0xf]  ;;  %v5596_v17 = vld [vmem:[%s8347_s1 + $0xb6c] sm:$0xf0]  ;;  %v4829_v22 = vor.u32 %v5564_v15, %v4828_v14  ;;  %2595 = vmatpush.bf16.msra.mxu0 %v4573_v18  ;;  %v5322_v10 = vld [vmem:[%s8347_s1 + $0x2e4] sm:$0xf]  ;;  %v3745_v18 = vor.u32 %v5290_v3, %v3742_v5 }
  0x56   :  { %v4556_v23 = vld [vmem:[%s8347_s1 + $0x840] sm:$0xf]  ;;  %v5496_v24 = vld [vmem:[%s8347_s1 + $0x84c] sm:$0xf0]  ;;  %v4957_v26 = vor.u32 %v5596_v17, %v4956_v16  ;;  %v3870_v11 = vld [vmem:[%s8347_s1 + $0x2f0] sm:$0xf0]  ;;  %v456_v16 = vunpack.c.h.b16 %v26_v61  ;;  %v3617_v17 = vor.u32 %v5258_v0, %v3614_v2 }
  0x57   :  { %v4684_v25 = vld [vmem:[%s8347_s1 + $0x940] sm:$0xf]  ;;  %v5528_v27 = vld [vmem:[%s8347_s1 + $0x94c] sm:$0xf0]  ;;  %v4557_v32 = vor.u32 %v5496_v24, %v4556_v23  ;;  %2608 = vmatpush.bf16.msra.mxu1 %v4701_v19  ;;  %2621 = vmatpush.bf16.msra.mxu2 %v4829_v22  ;;  %v5254_v23 = vld [vmem:[%s8347_s1 + $0xc4] sm:$0xf]  ;;  %v3873_v24 = vor.u32 %v5322_v10, %v3870_v11 }
  0x58   :  { %v4812_v28 = vld [vmem:[%s8347_s1 + $0xa40] sm:$0xf]  ;;  %v5560_v29 = vld [vmem:[%s8347_s1 + $0xa4c] sm:$0xf0]  ;;  %v4685_v33 = vor.u32 %v5528_v27, %v4684_v25  ;;  %2634 = vmatpush.bf16.msra.mxu3 %v4957_v26  ;;  %v3598_v26 = vld [vmem:[%s8347_s1 + $0xd0] sm:$0xf0] }
  0x59   :  { %v4940_v30 = vld [vmem:[%s8347_s1 + $0xb40] sm:$0xf]  ;;  %v5592_v31 = vld [vmem:[%s8347_s1 + $0xb4c] sm:$0xf0]  ;;  %v4813_v34 = vor.u32 %v5560_v29, %v4812_v28  ;;  %2596 = vmatpush.bf16.msra.mxu0 %v4557_v32  ;;  %v5286_v27 = vld [vmem:[%s8347_s1 + $0x1c4] sm:$0xf]  ;;  %v6360_v29 = vpack.c.b16 %v455_v12, %v455_v12 }
  0x5a   :  { %v4540_v35 = vld [vmem:[%s8347_s1 + $0x820] sm:$0xf]  ;;  %v5492_v36 = vld [vmem:[%s8347_s1 + $0x82c] sm:$0xf0]  ;;  %v4941_v39 = vor.u32 %v5592_v31, %v4940_v30  ;;  %v3726_v28 = vld [vmem:[%s8347_s1 + $0x1d0] sm:$0xf0] }
  0x5b   :  { %v4668_v37 = vld [vmem:[%s8347_s1 + $0x920] sm:$0xf]  ;;  %v5524_v40 = vld [vmem:[%s8347_s1 + $0x92c] sm:$0xf0]  ;;  %v4541_v49 = vor.u32 %v5492_v36, %v4540_v35  ;;  %2609 = vmatpush.bf16.msra.mxu1 %v4685_v33  ;;  %2622 = vmatpush.bf16.msra.mxu2 %v4813_v34  ;;  %v5318_v31 = vld [vmem:[%s8347_s1 + $0x2c4] sm:$0xf]  ;;  %v6370_v33 = vpack.c.b16 %v456_v16, %v456_v16  ;;  %v3601_v35 = vor.u32 %v5254_v23, %v3598_v26 }
  0x5c   :  { %v4796_v43 = vld [vmem:[%s8347_s1 + $0xa20] sm:$0xf]  ;;  %v5556_v45 = vld [vmem:[%s8347_s1 + $0xa2c] sm:$0xf0]  ;;  %v4669_v53 = vor.u32 %v5524_v40, %v4668_v37  ;;  %2635 = vmatpush.bf16.msra.mxu3 %v4941_v39  ;;  %v3854_v32 = vld [vmem:[%s8347_s1 + $0x2d0] sm:$0xf0]  ;;  %v3729_v36 = vor.u32 %v5286_v27, %v3726_v28 }
  0x5d   :  { %v4924_v46 = vld [vmem:[%s8347_s1 + $0xb20] sm:$0xf]  ;;  %v5588_v47 = vld [vmem:[%s8347_s1 + $0xb2c] sm:$0xf0]  ;;  %v4797_v54 = vor.u32 %v5556_v45, %v4796_v43  ;;  %2597 = vmatpush.bf16.msra.mxu0 %v4541_v49  ;;  %v5250_v40 = vld [vmem:[%s8347_s1 + $0xa4] sm:$0xf]  ;;  %v3857_v43 = vor.u32 %v5318_v31, %v3854_v32 }
  0x5e   :  { %v4524_v48 = vld [vmem:[%s8347_s1 + $0x800] sm:$0xf]  ;;  %v5488_v50 = vld [vmem:[%s8347_s1 + $0x80c] sm:$0xf0]  ;;  %v4925_v58 = vor.u32 %v5588_v47, %v4924_v46  ;;  %v3582_v45 = vld [vmem:[%s8347_s1 + $0xb0] sm:$0xf0] }
  0x5f   :  { %v4652_v51 = vld [vmem:[%s8347_s1 + $0x900] sm:$0xf]  ;;  %v5520_v52 = vld [vmem:[%s8347_s1 + $0x90c] sm:$0xf0]  ;;  %v4525_v1 = vor.u32 %v5488_v50, %v4524_v48  ;;  %2610 = vmatpush.bf16.msra.mxu1 %v4669_v53  ;;  %2623 = vmatpush.bf16.msra.mxu2 %v4797_v54  ;;  %v5282_v46 = vld [vmem:[%s8347_s1 + $0x1a4] sm:$0xf] }
  0x60   :  { %v4780_v55 = vld [vmem:[%s8347_s1 + $0xa00] sm:$0xf]  ;;  %v5552_v56 = vld [vmem:[%s8347_s1 + $0xa0c] sm:$0xf0]  ;;  %v4653_v8 = vor.u32 %v5520_v52, %v4652_v51  ;;  %2636 = vmatpush.bf16.msra.mxu3 %v4925_v58  ;;  %v3710_v47 = vld [vmem:[%s8347_s1 + $0x1b0] sm:$0xf0]  ;;  %v3585_v52 = vor.u32 %v5250_v40, %v3582_v45 }
  0x61   :  { %v25_v57 = vld [vmem:[%s8348_s0 + $0x20] sm:$0xff]  ;;  %v5584_v60 = vld [vmem:[%s8347_s1 + $0xb0c] sm:$0xf0]  ;;  %v4781_v9 = vor.u32 %v5552_v56, %v4780_v55  ;;  %2598 = vmatpush.bf16.msra.mxu0 %v4525_v1  ;;  %v3838_v49 = vld [vmem:[%s8347_s1 + $0x2b0] sm:$0xf0]  ;;  %v3713_v53 = vor.u32 %v5282_v46, %v3710_v47 }
  0x62   :  { %v4908_v59 = vld [vmem:[%s8347_s1 + $0xb00] sm:$0xf]  ;;  %v5628_v63 = vld [vmem:[%s8347_s1 + $0xc6c] sm:$0xf0]  ;;  %v453_v7 = vunpack.c.l.b16 %v25_v57  ;;  %v454_v13 = vunpack.c.h.b16 %v25_v57  ;;  %v5314_v48 = vld [vmem:[%s8347_s1 + $0x2a4] sm:$0xf] }
  0x63   :  { %v5084_v62 = vld [vmem:[%s8347_s1 + $0xc60] sm:$0xf]  ;;  %v4909_v14 = vor.u32 %v5584_v60, %v4908_v59  ;;  %v5624_v22 = vld [vmem:[%s8347_s1 + $0xc4c] sm:$0xf0]  ;;  %2611 = vmatpush.bf16.msra.mxu1 %v4653_v8  ;;  %2624 = vmatpush.bf16.msra.mxu2 %v4781_v9  ;;  %v5246_v55 = vld [vmem:[%s8347_s1 + $0x84] sm:$0xf]  ;;  %v3841_v57 = vor.u32 %v5314_v48, %v3838_v49 }
  0x64   :  { %v5085_v15 = vor.u32 %v5628_v63, %v5084_v62  ;;  %v5068_v19 = vld [vmem:[%s8347_s1 + $0xc40] sm:$0xf]  ;;  %v6349_v25 = vpack.c.b16 %v453_v7, %v453_v7  ;;  %v6362_v30 = vpack.c.b16 %v454_v13, %v454_v13  ;;  %v5620_v39 = vld [vmem:[%s8347_s1 + $0xc2c] sm:$0xf0]  ;;  %v3566_v56 = vld [vmem:[%s8347_s1 + $0x90] sm:$0xf0] }
  0x65   :  { %2637 = vmatpush.bf16.msra.mxu3 %v4909_v14  ;;  %v5069_v34 = vor.u32 %v5624_v22, %v5068_v19  ;;  %v5052_v37 = vld [vmem:[%s8347_s1 + $0xc20] sm:$0xf]  ;;  %v5616_v54 = vld [vmem:[%s8347_s1 + $0xc0c] sm:$0xf0]  ;;  %v5278_v58 = vld [vmem:[%s8347_s1 + $0x184] sm:$0xf]  ;;  %v3569_v2 = vor.u32 %v5246_v55, %v3566_v56 }
  0x66   :  { %2647 = vmatpush.bf16.msrb.mxu0 %v5085_v15  ;;  %2625 = vmatmul.bf16.vlgmr.msra.gmra.mxu2 %v6360_v29  ;;  %v5053_v50 = vor.u32 %v5620_v39, %v5052_v37  ;;  %v5036_v51 = vld [vmem:[%s8347_s1 + $0xc00] sm:$0xf]  ;;  %v3694_v59 = vld [vmem:[%s8347_s1 + $0x190] sm:$0xf0]  ;;  %v5310_v60 = vld [vmem:[%s8347_s1 + $0x284] sm:$0xf] }
  0x67   :  { %2656 = vmatpush.bf16.msrb.mxu1 %v3617_v17  ;;  %2669 = vmatpush.bf16.msrb.mxu2 %v3745_v18  ;;  %v3822_v61 = vld [vmem:[%s8347_s1 + $0x290] sm:$0xf0]  ;;  %v5354_v62 = vld [vmem:[%s8347_s1 + $0x3e4] sm:$0xf]  ;;  %v5037_v0 = vor.u32 %v5616_v54, %v5036_v51  ;;  %v27_v1 = vld [vmem:[%s8348_s0 + $0x30] sm:$0xf]  ;;  %v3697_v3 = vor.u32 %v5278_v58, %v3694_v59 }
  0x68   :  { %2599 = vmatmul.bf16.vlgmr.msra.gmra.mxu0 %v6349_v25  ;;  %2612 = vmatmul.bf16.vlgmr.msra.gmra.mxu1 %v6362_v30  ;;  %v3998_v63 = vld [vmem:[%s8347_s1 + $0x3f0] sm:$0xf0]  ;;  %v5242_v5 = vld [vmem:[%s8347_s1 + $0x64] sm:$0xf]  ;;  %v3825_v8 = vor.u32 %v5310_v60, %v3822_v61  ;;  %v457_v16 = vunpack.c.l.b16 %v27_v1 }
  0x69   :  { %2682 = vmatpush.bf16.msrb.mxu3 %v3873_v24  ;;  %v3550_v7 = vld [vmem:[%s8347_s1 + $0x70] sm:$0xf0]  ;;  %v4001_v9 = vor.u32 %v5354_v62, %v3998_v63  ;;  %v5274_v10 = vld [vmem:[%s8347_s1 + $0x164] sm:$0xf] }
  0x6a   :  { %2638 = vmatmul.bf16.vlgmr.msra.gmra.mxu3 %v6370_v33  ;;  %2648 = vmatpush.bf16.msrb.mxu0 %v5069_v34  ;;  %v3678_v11 = vld [vmem:[%s8347_s1 + $0x170] sm:$0xf0]  ;;  %v5306_v12 = vld [vmem:[%s8347_s1 + $0x264] sm:$0xf]  ;;  %v3553_v17 = vor.u32 %v5242_v5, %v3550_v7  ;;  %v6472_v31 = vpack.c.b16 %v457_v16, %v457_v16 }
  0x6b   :  { %2657 = vmatpush.bf16.msrb.mxu1 %v3601_v35  ;;  %2670 = vmatpush.bf16.msrb.mxu2 %v3729_v36  ;;  %v3806_v13 = vld [vmem:[%s8347_s1 + $0x270] sm:$0xf0]  ;;  %v5350_v14 = vld [vmem:[%s8347_s1 + $0x3c4] sm:$0xf]  ;;  %v3681_v18 = vor.u32 %v5274_v10, %v3678_v11 }
  0x6c   :  { %v3982_v15 = vld [vmem:[%s8347_s1 + $0x3d0] sm:$0xf0]  ;;  %v5238_v19 = vld [vmem:[%s8347_s1 + $0x44] sm:$0xf]  ;;  %v3809_v23 = vor.u32 %v5306_v12, %v3806_v13 }
  0x6d   :  { %2683 = vmatpush.bf16.msrb.mxu3 %v3857_v43  ;;  %v3534_v22 = vld [vmem:[%s8347_s1 + $0x50] sm:$0xf0]  ;;  %v3985_v24 = vor.u32 %v5350_v14, %v3982_v15  ;;  %v5270_v26 = vld [vmem:[%s8347_s1 + $0x144] sm:$0xf] }
  0x6e   :  { %2649 = vmatpush.bf16.msrb.mxu0 %v5053_v50  ;;  %v3662_v27 = vld [vmem:[%s8347_s1 + $0x150] sm:$0xf0]  ;;  %v5302_v28 = vld [vmem:[%s8347_s1 + $0x244] sm:$0xf]  ;;  %v3537_v36 = vor.u32 %v5238_v19, %v3534_v22 }
  0x6f   :  { %2658 = vmatpush.bf16.msrb.mxu1 %v3585_v52  ;;  %2671 = vmatpush.bf16.msrb.mxu2 %v3713_v53  ;;  %v3790_v32 = vld [vmem:[%s8347_s1 + $0x250] sm:$0xf0]  ;;  %v5346_v34 = vld [vmem:[%s8347_s1 + $0x3a4] sm:$0xf]  ;;  %v3665_v37 = vor.u32 %v5270_v26, %v3662_v27 }
  0x70   :  { %v3966_v35 = vld [vmem:[%s8347_s1 + $0x3b0] sm:$0xf0]  ;;  %v5234_v39 = vld [vmem:[%s8347_s1 + $0x24] sm:$0xf]  ;;  %v3793_v43 = vor.u32 %v5302_v28, %v3790_v32 }
  0x71   :  { %2684 = vmatpush.bf16.msrb.mxu3 %v3841_v57  ;;  %v3518_v40 = vld [vmem:[%s8347_s1 + $0x30] sm:$0xf0]  ;;  %v3969_v45 = vor.u32 %v5346_v34, %v3966_v35  ;;  %v5266_v46 = vld [vmem:[%s8347_s1 + $0x124] sm:$0xf] }
  0x72   :  { %2650 = vmatpush.bf16.msrb.mxu0 %v5037_v0  ;;  %v3646_v47 = vld [vmem:[%s8347_s1 + $0x130] sm:$0xf0]  ;;  %v5298_v48 = vld [vmem:[%s8347_s1 + $0x224] sm:$0xf]  ;;  %v3521_v52 = vor.u32 %v5234_v39, %v3518_v40 }
  0x73   :  { %2659 = vmatpush.bf16.msrb.mxu1 %v3569_v2  ;;  %2672 = vmatpush.bf16.msrb.mxu2 %v3697_v3  ;;  %v3774_v49 = vld [vmem:[%s8347_s1 + $0x230] sm:$0xf0]  ;;  %v5342_v50 = vld [vmem:[%s8347_s1 + $0x384] sm:$0xf]  ;;  %v3649_v53 = vor.u32 %v5266_v46, %v3646_v47 }
  0x74   :  { %v3950_v51 = vld [vmem:[%s8347_s1 + $0x390] sm:$0xf0]  ;;  %v5230_v54 = vld [vmem:[%s8347_s1 + $0x4] sm:$0xf]  ;;  %v3777_v57 = vor.u32 %v5298_v48, %v3774_v49 }
  0x75   :  { %2685 = vmatpush.bf16.msrb.mxu3 %v3825_v8  ;;  %v3502_v55 = vld [vmem:[%s8347_s1 + $0x10] sm:$0xf0]  ;;  %v5262_v56 = vld [vmem:[%s8347_s1 + $0x104] sm:$0xf]  ;;  %v3953_v58 = vor.u32 %v5342_v50, %v3950_v51 }
  0x76   :  { %2695 = vmatpush.bf16.msra.mxu0 %v4001_v9  ;;  %v3630_v59 = vld [vmem:[%s8347_s1 + $0x110] sm:$0xf0]  ;;  %v5294_v60 = vld [vmem:[%s8347_s1 + $0x204] sm:$0xf]  ;;  %v3505_v5 = vor.u32 %v5230_v54, %v3502_v55 }
  0x77   :  { %2660 = vmatpush.bf16.msrb.mxu1 %v3553_v17  ;;  %2673 = vmatpush.bf16.msrb.mxu2 %v3681_v18  ;;  %v3758_v61 = vld [vmem:[%s8347_s1 + $0x210] sm:$0xf0]  ;;  %v5338_v62 = vld [vmem:[%s8347_s1 + $0x364] sm:$0xf]  ;;  %v3633_v7 = vor.u32 %v5262_v56, %v3630_v59 }
  0x78   :  { %5098 = vmatmul.msk.bf16.vlgmr.msrb.gmra.mxu0 %vm2483_vm0, %v6472_v31  ;;  %v3934_v63 = vld [vmem:[%s8347_s1 + $0x370] sm:$0xf0]  ;;  %v5386_v0 = vld [vmem:[%s8347_s1 + $0x4e4] sm:$0xf]  ;;  %v3761_v10 = vor.u32 %v5294_v60, %v3758_v61 }
  0x79   :  { %2686 = vmatpush.bf16.msrb.mxu3 %v3809_v23  ;;  %v4126_v1 = vld [vmem:[%s8347_s1 + $0x4f0] sm:$0xf0]  ;;  %v5418_v2 = vld [vmem:[%s8347_s1 + $0x5e4] sm:$0xf]  ;;  %v3937_v11 = vor.u32 %v5338_v62, %v3934_v63 }
  0x7a   :  { %2696 = vmatpush.bf16.msra.mxu0 %v3985_v24  ;;  %v4254_v3 = vld [vmem:[%s8347_s1 + $0x5f0] sm:$0xf0]  ;;  %v5450_v8 = vld [vmem:[%s8347_s1 + $0x6e4] sm:$0xf]  ;;  %v4129_v12 = vor.u32 %v5386_v0, %v4126_v1 }
  0x7b   :  { %2661 = vmatpush.bf16.msrb.mxu1 %v3537_v36  ;;  %2674 = vmatpush.bf16.msrb.mxu2 %v3665_v37  ;;  %v4382_v9 = vld [vmem:[%s8347_s1 + $0x6f0] sm:$0xf0]  ;;  %v4257_v13 = vor.u32 %v5418_v2, %v4254_v3  ;;  %v5334_v14 = vld [vmem:[%s8347_s1 + $0x344] sm:$0xf] }
  0x7c   :  { %v3918_v15 = vld [vmem:[%s8347_s1 + $0x350] sm:$0xf0]  ;;  %v5382_v16 = vld [vmem:[%s8347_s1 + $0x4c4] sm:$0xf]  ;;  %v4385_v17 = vor.u32 %v5450_v8, %v4382_v9 }
  0x7d   :  { %2687 = vmatpush.bf16.msrb.mxu3 %v3793_v43  ;;  %v4110_v18 = vld [vmem:[%s8347_s1 + $0x4d0] sm:$0xf0]  ;;  %v5414_v19 = vld [vmem:[%s8347_s1 + $0x5c4] sm:$0xf]  ;;  %v3921_v26 = vor.u32 %v5334_v14, %v3918_v15 }
  0x7e   :  { %2697 = vmatpush.bf16.msra.mxu0 %v3969_v45  ;;  %v4238_v22 = vld [vmem:[%s8347_s1 + $0x5d0] sm:$0xf0]  ;;  %v5446_v23 = vld [vmem:[%s8347_s1 + $0x6c4] sm:$0xf]  ;;  %v4113_v27 = vor.u32 %v5382_v16, %v4110_v18 }
  0x7f   :  { %2662 = vmatpush.bf16.msrb.mxu1 %v3521_v52  ;;  %2675 = vmatpush.bf16.msrb.mxu2 %v3649_v53  ;;  %v4366_v24 = vld [vmem:[%s8347_s1 + $0x6d0] sm:$0xf0]  ;;  %v4241_v28 = vor.u32 %v5414_v19, %v4238_v22  ;;  %v5330_v32 = vld [vmem:[%s8347_s1 + $0x324] sm:$0xf] }
  0x80   :  { %v3902_v34 = vld [vmem:[%s8347_s1 + $0x330] sm:$0xf0]  ;;  %v5378_v35 = vld [vmem:[%s8347_s1 + $0x4a4] sm:$0xf]  ;;  %v4369_v36 = vor.u32 %v5446_v23, %v4366_v24 }
  0x81   :  { %2688 = vmatpush.bf16.msrb.mxu3 %v3777_v57  ;;  %v4094_v37 = vld [vmem:[%s8347_s1 + $0x4b0] sm:$0xf0]  ;;  %v5410_v39 = vld [vmem:[%s8347_s1 + $0x5a4] sm:$0xf]  ;;  %v3905_v46 = vor.u32 %v5330_v32, %v3902_v34 }
  0x82   :  { %2698 = vmatpush.bf16.msra.mxu0 %v3953_v58  ;;  %v4222_v40 = vld [vmem:[%s8347_s1 + $0x5b0] sm:$0xf0]  ;;  %v5442_v43 = vld [vmem:[%s8347_s1 + $0x6a4] sm:$0xf]  ;;  %v4097_v48 = vor.u32 %v5378_v35, %v4094_v37 }
  0x83   :  { %2663 = vmatpush.bf16.msrb.mxu1 %v3505_v5  ;;  %2676 = vmatpush.bf16.msrb.mxu2 %v3633_v7  ;;  %v4350_v45 = vld [vmem:[%s8347_s1 + $0x6b0] sm:$0xf0]  ;;  %v5326_v47 = vld [vmem:[%s8347_s1 + $0x304] sm:$0xf]  ;;  %v4225_v49 = vor.u32 %v5410_v39, %v4222_v40 }
  0x84   :  { %v3886_v50 = vld [vmem:[%s8347_s1 + $0x310] sm:$0xf0]  ;;  %v5374_v51 = vld [vmem:[%s8347_s1 + $0x484] sm:$0xf]  ;;  %v4353_v53 = vor.u32 %v5442_v43, %v4350_v45 }
  0x85   :  { %2689 = vmatpush.bf16.msrb.mxu3 %v3761_v10  ;;  %v4078_v52 = vld [vmem:[%s8347_s1 + $0x490] sm:$0xf0]  ;;  %v5406_v54 = vld [vmem:[%s8347_s1 + $0x584] sm:$0xf]  ;;  %v3889_v60 = vor.u32 %v5326_v47, %v3886_v50 }
  0x86   :  { %2699 = vmatpush.bf16.msra.mxu0 %v3937_v11  ;;  %2677 = vmatmul.bf16.vlgmr.msrb.gmra.mxu2 %v6000_v21  ;;  %v4206_v55 = vld [vmem:[%s8347_s1 + $0x590] sm:$0xf0]  ;;  %v5438_v56 = vld [vmem:[%s8347_s1 + $0x684] sm:$0xf]  ;;  %v4081_v61 = vor.u32 %v5374_v51, %v4078_v52 }
  0x87   :  { %2708 = vmatpush.bf16.msra.mxu1 %v4129_v12  ;;  %2721 = vmatpush.bf16.msra.mxu2 %v4257_v13  ;;  %v4334_v57 = vld [vmem:[%s8347_s1 + $0x690] sm:$0xf0]  ;;  %v5482_v58 = vld [vmem:[%s8347_s1 + $0x7e4] sm:$0xf]  ;;  %v4209_v62 = vor.u32 %v5406_v54, %v4206_v55 }
  0x88   :  { %2690 = vmatmul.bf16.vlgmr.msrb.gmra.mxu3 %v5965_v4  ;;  %2664 = vmatmul.bf16.vlgmr.msrb.gmra.mxu1 %v5997_v20  ;;  %v4510_v59 = vld [vmem:[%s8347_s1 + $0x7f0] sm:$0xf0]  ;;  %v5370_v63 = vld [vmem:[%s8347_s1 + $0x464] sm:$0xf]  ;;  %v4337_v1 = vor.u32 %v5438_v56, %v4334_v57 }
  0x89   :  { %2734 = vmatpush.bf16.msra.mxu3 %v4385_v17  ;;  %v4062_v0 = vld [vmem:[%s8347_s1 + $0x470] sm:$0xf0]  ;;  %v4513_v2 = vor.u32 %v5482_v58, %v4510_v59  ;;  %v5402_v3 = vld [vmem:[%s8347_s1 + $0x564] sm:$0xf] }
  0x8a   :  { %2700 = vmatpush.bf16.msra.mxu0 %v3921_v26  ;;  %v4190_v5 = vld [vmem:[%s8347_s1 + $0x570] sm:$0xf0]  ;;  %v5434_v7 = vld [vmem:[%s8347_s1 + $0x664] sm:$0xf]  ;;  %v4065_v11 = vor.u32 %v5370_v63, %v4062_v0 }
  0x8b   :  { %2709 = vmatpush.bf16.msra.mxu1 %v4113_v27  ;;  %2722 = vmatpush.bf16.msra.mxu2 %v4241_v28  ;;  %v4318_v8 = vld [vmem:[%s8347_s1 + $0x670] sm:$0xf0]  ;;  %v5478_v9 = vld [vmem:[%s8347_s1 + $0x7c4] sm:$0xf]  ;;  %v4193_v12 = vor.u32 %v5402_v3, %v4190_v5 }
  0x8c   :  { %v4494_v10 = vld [vmem:[%s8347_s1 + $0x7d0] sm:$0xf0]  ;;  %v5366_v13 = vld [vmem:[%s8347_s1 + $0x444] sm:$0xf]  ;;  %v4321_v15 = vor.u32 %v5434_v7, %v4318_v8 }
  0x8d   :  { %2735 = vmatpush.bf16.msra.mxu3 %v4369_v36  ;;  %v4046_v14 = vld [vmem:[%s8347_s1 + $0x450] sm:$0xf0]  ;;  %v4497_v16 = vor.u32 %v5478_v9, %v4494_v10  ;;  %v5398_v17 = vld [vmem:[%s8347_s1 + $0x544] sm:$0xf] }
  0x8e   :  { %2701 = vmatpush.bf16.msra.mxu0 %v3905_v46  ;;  %v4174_v18 = vld [vmem:[%s8347_s1 + $0x550] sm:$0xf0]  ;;  %v5430_v19 = vld [vmem:[%s8347_s1 + $0x644] sm:$0xf]  ;;  %v4049_v26 = vor.u32 %v5366_v13, %v4046_v14 }
  0x8f   :  { %2710 = vmatpush.bf16.msra.mxu1 %v4097_v48  ;;  %2723 = vmatpush.bf16.msra.mxu2 %v4225_v49  ;;  %v4302_v22 = vld [vmem:[%s8347_s1 + $0x650] sm:$0xf0]  ;;  %v5474_v23 = vld [vmem:[%s8347_s1 + $0x7a4] sm:$0xf]  ;;  %v4177_v27 = vor.u32 %v5398_v17, %v4174_v18 }
  0x90   :  { %v4478_v24 = vld [vmem:[%s8347_s1 + $0x7b0] sm:$0xf0]  ;;  %v5362_v28 = vld [vmem:[%s8347_s1 + $0x424] sm:$0xf]  ;;  %v4305_v34 = vor.u32 %v5430_v19, %v4302_v22 }
  0x91   :  { %2736 = vmatpush.bf16.msra.mxu3 %v4353_v53  ;;  %v4030_v32 = vld [vmem:[%s8347_s1 + $0x430] sm:$0xf0]  ;;  %v4481_v35 = vor.u32 %v5474_v23, %v4478_v24  ;;  %v5394_v36 = vld [vmem:[%s8347_s1 + $0x524] sm:$0xf] }
  0x92   :  { %2702 = vmatpush.bf16.msra.mxu0 %v3889_v60  ;;  %v4158_v37 = vld [vmem:[%s8347_s1 + $0x530] sm:$0xf0]  ;;  %v5426_v39 = vld [vmem:[%s8347_s1 + $0x624] sm:$0xf]  ;;  %v4033_v46 = vor.u32 %v5362_v28, %v4030_v32 }
  0x93   :  { %2711 = vmatpush.bf16.msra.mxu1 %v4081_v61  ;;  %2724 = vmatpush.bf16.msra.mxu2 %v4209_v62  ;;  %v4286_v40 = vld [vmem:[%s8347_s1 + $0x630] sm:$0xf0]  ;;  %v5470_v43 = vld [vmem:[%s8347_s1 + $0x784] sm:$0xf]  ;;  %v4161_v47 = vor.u32 %v5394_v36, %v4158_v37 }
  0x94   :  { %v4462_v45 = vld [vmem:[%s8347_s1 + $0x790] sm:$0xf0]  ;;  %v5358_v48 = vld [vmem:[%s8347_s1 + $0x404] sm:$0xf]  ;;  %v4289_v51 = vor.u32 %v5426_v39, %v4286_v40 }
  0x95   :  { %2737 = vmatpush.bf16.msra.mxu3 %v4337_v1  ;;  %2703 = vmatmul.bf16.vlgmr.msra.gmra.mxu0 %v5970_v6  ;;  %v4014_v49 = vld [vmem:[%s8347_s1 + $0x410] sm:$0xf0]  ;;  %v5390_v50 = vld [vmem:[%s8347_s1 + $0x504] sm:$0xf]  ;;  %v4465_v52 = vor.u32 %v5470_v43, %v4462_v45 }
  0x96   :  { %2747 = vmatpush.bf16.msrb.mxu0 %v4513_v2  ;;  %v4142_v53 = vld [vmem:[%s8347_s1 + $0x510] sm:$0xf0]  ;;  %v5422_v54 = vld [vmem:[%s8347_s1 + $0x604] sm:$0xf]  ;;  %v4017_v62 = vor.u32 %v5358_v48, %v4014_v49 }
  0x97   :  { %2712 = vmatpush.bf16.msra.mxu1 %v4065_v11  ;;  %2725 = vmatpush.bf16.msra.mxu2 %v4193_v12  ;;  %v4270_v55 = vld [vmem:[%s8347_s1 + $0x610] sm:$0xf0]  ;;  %v5466_v56 = vld [vmem:[%s8347_s1 + $0x764] sm:$0xf]  ;;  %v4145_v63 = vor.u32 %v5390_v50, %v4142_v53 }
  0x98   :  { %v4446_v57 = vld [vmem:[%s8347_s1 + $0x770] sm:$0xf0]  ;;  %v5514_v58 = vld [vmem:[%s8347_s1 + $0x8e4] sm:$0xf]  ;;  %v4273_v2 = vor.u32 %v5422_v54, %v4270_v55 }
  0x99   :  { %2738 = vmatpush.bf16.msra.mxu3 %v4321_v15  ;;  %v4638_v59 = vld [vmem:[%s8347_s1 + $0x8f0] sm:$0xf0]  ;;  %v5546_v60 = vld [vmem:[%s8347_s1 + $0x9e4] sm:$0xf]  ;;  %v4449_v3 = vor.u32 %v5466_v56, %v4446_v57 }
  0x9a   :  { %2748 = vmatpush.bf16.msrb.mxu0 %v4497_v16  ;;  %v4766_v61 = vld [vmem:[%s8347_s1 + $0x9f0] sm:$0xf0]  ;;  %v5578_v0 = vld [vmem:[%s8347_s1 + $0xae4] sm:$0xf]  ;;  %v4641_v5 = vor.u32 %v5514_v58, %v4638_v59  ;;  %v6837_v59 = vld [vmem:[%s8349_s2] sm:$0xf] }
  0x9b   :  { %2713 = vmatpush.bf16.msra.mxu1 %v4049_v26  ;;  %2726 = vmatpush.bf16.msra.mxu2 %v4177_v27  ;;  %v4894_v1 = vld [vmem:[%s8347_s1 + $0xaf0] sm:$0xf0]  ;;  %v4769_v7 = vor.u32 %v5546_v60, %v4766_v61  ;;  %v5462_v8 = vld [vmem:[%s8347_s1 + $0x744] sm:$0xf] }
  0x9c   :  { %v4430_v9 = vld [vmem:[%s8347_s1 + $0x750] sm:$0xf0]  ;;  %v5510_v10 = vld [vmem:[%s8347_s1 + $0x8c4] sm:$0xf]  ;;  %v4897_v11 = vor.u32 %v5578_v0, %v4894_v1 }
  0x9d   :  { %2739 = vmatpush.bf16.msra.mxu3 %v4305_v34  ;;  %v4622_v12 = vld [vmem:[%s8347_s1 + $0x8d0] sm:$0xf0]  ;;  %v5542_v13 = vld [vmem:[%s8347_s1 + $0x9c4] sm:$0xf]  ;;  %v4433_v17 = vor.u32 %v5462_v8, %v4430_v9 }
  0x9e   :  { %2749 = vmatpush.bf16.msrb.mxu0 %v4481_v35  ;;  %v4750_v14 = vld [vmem:[%s8347_s1 + $0x9d0] sm:$0xf0]  ;;  %v5574_v15 = vld [vmem:[%s8347_s1 + $0xac4] sm:$0xf]  ;;  %v4625_v18 = vor.u32 %v5510_v10, %v4622_v12 }
  0x9f   :  { %2714 = vmatpush.bf16.msra.mxu1 %v4033_v46  ;;  %2727 = vmatpush.bf16.msra.mxu2 %v4161_v47  ;;  %v4878_v16 = vld [vmem:[%s8347_s1 + $0xad0] sm:$0xf0]  ;;  %v4753_v19 = vor.u32 %v5542_v13, %v4750_v14  ;;  %v5458_v22 = vld [vmem:[%s8347_s1 + $0x724] sm:$0xf] }
  0xa0   :  { %v4414_v23 = vld [vmem:[%s8347_s1 + $0x730] sm:$0xf0]  ;;  %v5506_v24 = vld [vmem:[%s8347_s1 + $0x8a4] sm:$0xf]  ;;  %v4881_v26 = vor.u32 %v5574_v15, %v4878_v16 }
  0xa1   :  { %2740 = vmatpush.bf16.msra.mxu3 %v4289_v51  ;;  %v4606_v27 = vld [vmem:[%s8347_s1 + $0x8b0] sm:$0xf0]  ;;  %v5538_v28 = vld [vmem:[%s8347_s1 + $0x9a4] sm:$0xf]  ;;  %v4417_v36 = vor.u32 %v5458_v22, %v4414_v23 }
  0xa2   :  { %2750 = vmatpush.bf16.msrb.mxu0 %v4465_v52  ;;  %v4734_v32 = vld [vmem:[%s8347_s1 + $0x9b0] sm:$0xf0]  ;;  %v5570_v34 = vld [vmem:[%s8347_s1 + $0xaa4] sm:$0xf]  ;;  %v4609_v39 = vor.u32 %v5506_v24, %v4606_v27 }
  0xa3   :  { %2715 = vmatpush.bf16.msra.mxu1 %v4017_v62  ;;  %2728 = vmatpush.bf16.msra.mxu2 %v4145_v63  ;;  %v4862_v35 = vld [vmem:[%s8347_s1 + $0xab0] sm:$0xf0]  ;;  %v5454_v37 = vld [vmem:[%s8347_s1 + $0x704] sm:$0xf]  ;;  %v4737_v40 = vor.u32 %v5538_v28, %v4734_v32 }
  0xa4   :  { %v4398_v43 = vld [vmem:[%s8347_s1 + $0x710] sm:$0xf0]  ;;  %v5502_v45 = vld [vmem:[%s8347_s1 + $0x884] sm:$0xf]  ;;  %v4865_v47 = vor.u32 %v5570_v34, %v4862_v35 }
  0xa5   :  { %2741 = vmatpush.bf16.msra.mxu3 %v4273_v2  ;;  %v4590_v46 = vld [vmem:[%s8347_s1 + $0x890] sm:$0xf0]  ;;  %v5534_v48 = vld [vmem:[%s8347_s1 + $0x984] sm:$0xf]  ;;  %v4401_v54 = vor.u32 %v5454_v37, %v4398_v43 }
  0xa6   :  { %2751 = vmatpush.bf16.msrb.mxu0 %v4449_v3  ;;  %2729 = vmatmul.bf16.vlgmr.msra.gmra.mxu2 %v6160_v44  ;;  %v4718_v49 = vld [vmem:[%s8347_s1 + $0x990] sm:$0xf0]  ;;  %v5566_v50 = vld [vmem:[%s8347_s1 + $0xa84] sm:$0xf]  ;;  %v4593_v55 = vor.u32 %v5502_v45, %v4590_v46 }
  0xa7   :  { %2760 = vmatpush.bf16.msrb.mxu1 %v4641_v5  ;;  %2773 = vmatpush.bf16.msrb.mxu2 %v4769_v7  ;;  %v4846_v51 = vld [vmem:[%s8347_s1 + $0xa90] sm:$0xf0]  ;;  %v5610_v52 = vld [vmem:[%s8347_s1 + $0xbe4] sm:$0xf]  ;;  %v4721_v56 = vor.u32 %v5534_v48, %v4718_v49  ;;  %v430_v5 = vperm.slane %v6837_v59, 0 }
  0xa8   :  { %2742 = vmatmul.bf16.vlgmr.msra.gmra.mxu3 %v6148_v38  ;;  %2716 = vmatmul.bf16.vlgmr.msra.gmra.mxu1 %v6156_v41  ;;  %v5022_v53 = vld [vmem:[%s8347_s1 + $0xbf0] sm:$0xf0]  ;;  %v5498_v57 = vld [vmem:[%s8347_s1 + $0x864] sm:$0xf]  ;;  %v4849_v60 = vor.u32 %v5566_v50, %v4846_v51  ;;  %v2522_v32 = vpop.f32.mrf.mxu2 }
  0xa9   :  { %2786 = vmatpush.bf16.msrb.mxu3 %v4897_v11  ;;  %v4574_v58 = vld [vmem:[%s8347_s1 + $0x870] sm:$0xf0]  ;;  %v5025_v61 = vor.u32 %v5610_v52, %v5022_v53  ;;  %v5530_v62 = vld [vmem:[%s8347_s1 + $0x964] sm:$0xf]  ;;  %v2535_v43 = vpop.f32.mrf.mxu3 }
  0xaa   :  { %2752 = vmatpush.bf16.msrb.mxu0 %v4433_v17  ;;  %v4702_v63 = vld [vmem:[%s8347_s1 + $0x970] sm:$0xf0]  ;;  %v5562_v0 = vld [vmem:[%s8347_s1 + $0xa64] sm:$0xf]  ;;  %v4577_v7 = vor.u32 %v5498_v57, %v4574_v58 }
  0xab   :  { %2761 = vmatpush.bf16.msrb.mxu1 %v4625_v18  ;;  %2774 = vmatpush.bf16.msrb.mxu2 %v4753_v19  ;;  %v4830_v1 = vld [vmem:[%s8347_s1 + $0xa70] sm:$0xf0]  ;;  %v5606_v2 = vld [vmem:[%s8347_s1 + $0xbc4] sm:$0xf]  ;;  %v4705_v8 = vor.u32 %v5530_v62, %v4702_v63 }
  0xac   :  { %v5006_v3 = vld [vmem:[%s8347_s1 + $0xbd0] sm:$0xf0]  ;;  %v5494_v9 = vld [vmem:[%s8347_s1 + $0x844] sm:$0xf]  ;;  %v4833_v11 = vor.u32 %v5562_v0, %v4830_v1 }
  0xad   :  { %2787 = vmatpush.bf16.msrb.mxu3 %v4881_v26  ;;  %v4558_v10 = vld [vmem:[%s8347_s1 + $0x850] sm:$0xf0]  ;;  %v5009_v12 = vor.u32 %v5606_v2, %v5006_v3  ;;  %v5526_v13 = vld [vmem:[%s8347_s1 + $0x944] sm:$0xf]  ;;  %v3620_v2 = vld [vmem:[%s8347_s1 + $0xe8] sm:$0xf] }
  0xae   :  { %2753 = vmatpush.bf16.msrb.mxu0 %v4417_v36  ;;  %v4686_v14 = vld [vmem:[%s8347_s1 + $0x950] sm:$0xf0]  ;;  %v5558_v15 = vld [vmem:[%s8347_s1 + $0xa44] sm:$0xf]  ;;  %v4561_v24 = vor.u32 %v5494_v9, %v4558_v10  ;;  %v5261_v3 = vld [vmem:[%s8347_s1 + $0xf4] sm:$0xf0] }
  0xaf   :  { %2762 = vmatpush.bf16.msrb.mxu1 %v4609_v39  ;;  %2775 = vmatpush.bf16.msrb.mxu2 %v4737_v40  ;;  %v4814_v16 = vld [vmem:[%s8347_s1 + $0xa50] sm:$0xf0]  ;;  %v5602_v17 = vld [vmem:[%s8347_s1 + $0xba4] sm:$0xf]  ;;  %v2496_v19 = vpop.f32.mrf.mxu0  ;;  %v2509_v23 = vpop.f32.mrf.mxu1  ;;  %v4689_v26 = vor.u32 %v5526_v13, %v4686_v14  ;;  %v3748_v9 = vld [vmem:[%s8347_s1 + $0x1e8] sm:$0xf] }
  0xb0   :  { %v4990_v18 = vld [vmem:[%s8347_s1 + $0xbb0] sm:$0xf0]  ;;  %v2497_v22 = vadd.f32 %v2496_v19, %v430_v5  ;;  %v5490_v27 = vld [vmem:[%s8347_s1 + $0x824] sm:$0xf]  ;;  %v4817_v34 = vor.u32 %v5558_v15, %v4814_v16  ;;  %v5293_v10 = vld [vmem:[%s8347_s1 + $0x1f4] sm:$0xf0]  ;;  %v3621_v16 = vor.u32 %v5261_v3, %v3620_v2 }
  0xb1   :  { %2788 = vmatpush.bf16.msrb.mxu3 %v4865_v47  ;;  %v4542_v28 = vld [vmem:[%s8347_s1 + $0x830] sm:$0xf0]  ;;  %v4993_v35 = vor.u32 %v5602_v17, %v4990_v18  ;;  %v5522_v36 = vld [vmem:[%s8347_s1 + $0x924] sm:$0xf]  ;;  %v2537_v14 = vpop.f32.mrf.mxu3  ;;  %v4004_v2 = vld [vmem:[%s8347_s1 + $0x3e8] sm:$0xf] }
  0xb2   :  { %2754 = vmatpush.bf16.msrb.mxu0 %v4401_v54  ;;  %v4670_v37 = vld [vmem:[%s8347_s1 + $0x930] sm:$0xf0]  ;;  %v5554_v39 = vld [vmem:[%s8347_s1 + $0xa24] sm:$0xf]  ;;  %v2510_v40 = vadd.f32 %v2509_v23, %v2497_v22  ;;  %v4545_v49 = vor.u32 %v5490_v27, %v4542_v28  ;;  %v3749_v22 = vor.u32 %v5293_v10, %v3748_v9  ;;  %v3732_v27 = vld [vmem:[%s8347_s1 + $0x1c8] sm:$0xf] }
  0xb3   :  { %2763 = vmatpush.bf16.msrb.mxu1 %v4593_v55  ;;  %2776 = vmatpush.bf16.msrb.mxu2 %v4721_v56  ;;  %v4798_v45 = vld [vmem:[%s8347_s1 + $0xa30] sm:$0xf0]  ;;  %v5598_v46 = vld [vmem:[%s8347_s1 + $0xb84] sm:$0xf]  ;;  %v4673_v50 = vor.u32 %v5522_v36, %v4670_v37  ;;  %v5289_v28 = vld [vmem:[%s8347_s1 + $0x1d4] sm:$0xf0] }
  0xb4   :  { %v4974_v47 = vld [vmem:[%s8347_s1 + $0xb90] sm:$0xf0]  ;;  %v2523_v48 = vadd.f32 %v2522_v32, %v2510_v40  ;;  %v5486_v51 = vld [vmem:[%s8347_s1 + $0x804] sm:$0xf]  ;;  %v4801_v54 = vor.u32 %v5554_v39, %v4798_v45  ;;  %v3733_v40 = vor.u32 %v5289_v28, %v3732_v27  ;;  %v3588_v45 = vld [vmem:[%s8347_s1 + $0xa8] sm:$0xf] }
  0xb5   :  { %2789 = vmatpush.bf16.msrb.mxu3 %v4849_v60  ;;  %2755 = vmatmul.bf16.vlgmr.msrb.gmra.mxu0 %v6158_v42  ;;  %v4526_v52 = vld [vmem:[%s8347_s1 + $0x810] sm:$0xf0]  ;;  %v5518_v53 = vld [vmem:[%s8347_s1 + $0x904] sm:$0xf]  ;;  %v4977_v55 = vor.u32 %v5598_v46, %v4974_v47  ;;  %v5253_v46 = vld [vmem:[%s8347_s1 + $0xb4] sm:$0xf0] }
  0xb6   :  { %2799 = vmatpush.bf16.msra.mxu0 %v5025_v61  ;;  %v4654_v56 = vld [vmem:[%s8347_s1 + $0x910] sm:$0xf0]  ;;  %v5550_v57 = vld [vmem:[%s8347_s1 + $0xa04] sm:$0xf]  ;;  %v6925_v60 = vadd.f32 %v2535_v43, %v2523_v48  ;;  %v3716_v47 = vld [vmem:[%s8347_s1 + $0x1a8] sm:$0xf] }
  0xb7   :  { %2764 = vmatpush.bf16.msrb.mxu1 %v4577_v7  ;;  %2777 = vmatpush.bf16.msrb.mxu2 %v4705_v8  ;;  %v4782_v58 = vld [vmem:[%s8347_s1 + $0xa10] sm:$0xf0]  ;;  %v5594_v61 = vld [vmem:[%s8347_s1 + $0xb64] sm:$0xf]  ;;  %v2498_v0 = vpop.f32.mrf.mxu0  ;;  %v2511_v5 = vpop.f32.mrf.mxu1  ;;  %v4529_v7 = vor.u32 %v5486_v51, %v4526_v52  ;;  %v4657_v8 = vor.u32 %v5518_v53, %v4654_v56  ;;  %v5285_v48 = vld [vmem:[%s8347_s1 + $0x1b4] sm:$0xf0]  ;;  %v3589_v52 = vor.u32 %v5253_v46, %v3588_v45 }
  0xb8   :  { %v4958_v62 = vld [vmem:[%s8347_s1 + $0xb70] sm:$0xf0]  ;;  %v5626_v63 = vld [vmem:[%s8347_s1 + $0xc64] sm:$0xf]  ;;  %v3717_v56 = vor.u32 %v5285_v48, %v3716_v47  ;;  %v5325_v0 = vld [vmem:[%s8347_s1 + $0x2f4] sm:$0xf0] }
  0xb9   :  { %2790 = vmatpush.bf16.msrb.mxu3 %v4833_v11  ;;  %v5086_v1 = vld [vmem:[%s8347_s1 + $0xc70] sm:$0xf0]  ;;  %v2524_v11 = vpop.f32.mrf.mxu2  ;;  %v4961_v13 = vor.u32 %v5594_v61, %v4958_v62  ;;  %v5590_v17 = vld [vmem:[%s8347_s1 + $0xb44] sm:$0xf]  ;;  %v3700_v61 = vld [vmem:[%s8347_s1 + $0x188] sm:$0xf] }
  0xba   :  { %2800 = vmatpush.bf16.msra.mxu0 %v5009_v12  ;;  %v4785_v12 = vor.u32 %v5550_v57, %v4782_v58  ;;  %v5089_v15 = vor.u32 %v5626_v63, %v5086_v1  ;;  %v4942_v18 = vld [vmem:[%s8347_s1 + $0xb50] sm:$0xf0]  ;;  %v5622_v19 = vld [vmem:[%s8347_s1 + $0xc44] sm:$0xf]  ;;  %v3572_v57 = vld [vmem:[%s8347_s1 + $0x88] sm:$0xf] }
  0xbb   :  { %2765 = vmatpush.bf16.msrb.mxu1 %v4561_v24  ;;  %2778 = vmatpush.bf16.msrb.mxu2 %v4689_v26  ;;  %v5070_v23 = vld [vmem:[%s8347_s1 + $0xc50] sm:$0xf0]  ;;  %v3604_v24 = vld [vmem:[%s8347_s1 + $0xc8] sm:$0xf]  ;;  %v5257_v26 = vld [vmem:[%s8347_s1 + $0xd4] sm:$0xf0]  ;;  %v4945_v32 = vor.u32 %v5590_v17, %v4942_v18 }
  0xbc   :  { %v5586_v36 = vld [vmem:[%s8347_s1 + $0xb24] sm:$0xf]  ;;  %v4926_v37 = vld [vmem:[%s8347_s1 + $0xb30] sm:$0xf0]  ;;  %v5249_v58 = vld [vmem:[%s8347_s1 + $0x94] sm:$0xf0] }
  0xbd   :  { %2791 = vmatpush.bf16.msrb.mxu3 %v4817_v34  ;;  %v5073_v34 = vor.u32 %v5622_v19, %v5070_v23  ;;  %v5618_v39 = vld [vmem:[%s8347_s1 + $0xc24] sm:$0xf]  ;;  %v5054_v43 = vld [vmem:[%s8347_s1 + $0xc30] sm:$0xf0]  ;;  %v5281_v62 = vld [vmem:[%s8347_s1 + $0x194] sm:$0xf0] }
  0xbe   :  { %2801 = vmatpush.bf16.msra.mxu0 %v4993_v35  ;;  %v3605_v35 = vor.u32 %v5257_v26, %v3604_v24  ;;  %v5057_v51 = vor.u32 %v5618_v39, %v5054_v43  ;;  %v4910_v53 = vld [vmem:[%s8347_s1 + $0xb10] sm:$0xf0]  ;;  %v3876_v63 = vld [vmem:[%s8347_s1 + $0x2e8] sm:$0xf]  ;;  %v5357_v3 = vld [vmem:[%s8347_s1 + $0x3f4] sm:$0xf0]  ;;  %v3701_v11 = vor.u32 %v5281_v62, %v3700_v61 }
  0xbf   :  { %2766 = vmatpush.bf16.msrb.mxu1 %v4545_v49  ;;  %2779 = vmatpush.bf16.msrb.mxu2 %v4673_v50  ;;  %v4929_v49 = vor.u32 %v5586_v36, %v4926_v37  ;;  %v5582_v50 = vld [vmem:[%s8347_s1 + $0xb04] sm:$0xf]  ;;  %v5245_v14 = vld [vmem:[%s8347_s1 + $0x74] sm:$0xf0]  ;;  %v3860_v17 = vld [vmem:[%s8347_s1 + $0x2c8] sm:$0xf] }
  0xc0   :  { %v4913_v1 = vor.u32 %v5582_v50, %v4910_v53  ;;  %v5321_v18 = vld [vmem:[%s8347_s1 + $0x2d4] sm:$0xf0]  ;;  %v3844_v43 = vld [vmem:[%s8347_s1 + $0x2a8] sm:$0xf] }
  0xc1   :  { %2792 = vmatpush.bf16.msrb.mxu3 %v4801_v54  ;;  %v5614_v54 = vld [vmem:[%s8347_s1 + $0xc04] sm:$0xf]  ;;  %v5353_v23 = vld [vmem:[%s8347_s1 + $0x3d4] sm:$0xf0]  ;;  %v3861_v28 = vor.u32 %v5321_v18, %v3860_v17  ;;  %v3972_v46 = vld [vmem:[%s8347_s1 + $0x3a8] sm:$0xf] }
  0xc2   :  { %2802 = vmatpush.bf16.msra.mxu0 %v4977_v55  ;;  %v5038_v55 = vld [vmem:[%s8347_s1 + $0xc10] sm:$0xf0]  ;;  %v5317_v45 = vld [vmem:[%s8347_s1 + $0x2b4] sm:$0xf0]  ;;  %v3828_v61 = vld [vmem:[%s8347_s1 + $0x288] sm:$0xf] }
  0xc3   :  { %2767 = vmatpush.bf16.msrb.mxu1 %v4529_v7  ;;  %2780 = vmatpush.bf16.msrb.mxu2 %v4657_v8  ;;  %v2548_v5 = vpop.f32.mrf.mxu0  ;;  %v5041_v7 = vor.u32 %v5614_v54, %v5038_v55  ;;  %v3573_v8 = vor.u32 %v5249_v58, %v3572_v57  ;;  %v5349_v47 = vld [vmem:[%s8347_s1 + $0x3b4] sm:$0xf0]  ;;  %v3845_v53 = vor.u32 %v5317_v45, %v3844_v43  ;;  %v3524_v54 = vld [vmem:[%s8347_s1 + $0x28] sm:$0xf] }
  0xc4   :  { %v2549_v9 = vadd.f32 %v2548_v5, %v6925_v60  ;;  %v5277_v60 = vld [vmem:[%s8347_s1 + $0x174] sm:$0xf0]  ;;  %v3973_v57 = vor.u32 %v5349_v47, %v3972_v46 }
  0xc5   :  { %2793 = vmatpush.bf16.msrb.mxu3 %v4785_v12  ;;  %v2561_v10 = vpop.f32.mrf.mxu1  ;;  %v3877_v12 = vor.u32 %v5325_v0, %v3876_v63  ;;  %v5237_v55 = vld [vmem:[%s8347_s1 + $0x34] sm:$0xf0]  ;;  %v3956_v63 = vld [vmem:[%s8347_s1 + $0x388] sm:$0xf] }
  0xc6   :  { %2803 = vmatpush.bf16.msra.mxu0 %v4961_v13  ;;  %2768 = vmatmul.bf16.vlgmr.msrb.gmra.mxu1 %v6349_v25  ;;  %v3556_v13 = vld [vmem:[%s8347_s1 + $0x68] sm:$0xf]  ;;  %v2562_v19 = vadd.f32 %v2561_v10, %v2549_v9  ;;  %v5269_v58 = vld [vmem:[%s8347_s1 + $0x134] sm:$0xf0] }
  0xc7   :  { %2816 = vmatpush.bf16.msra.mxu1 %v5089_v15  ;;  %2825 = vmatpush.bf16.msra.mxu2 %v3621_v16  ;;  %v3684_v15 = vld [vmem:[%s8347_s1 + $0x168] sm:$0xf]  ;;  %v4005_v16 = vor.u32 %v5357_v3, %v4004_v2  ;;  %v3557_v24 = vor.u32 %v5245_v14, %v3556_v13  ;;  %v5313_v62 = vld [vmem:[%s8347_s1 + $0x294] sm:$0xf0] }
  0xc8   :  { %2781 = vmatmul.bf16.vlgmr.msrb.gmra.mxu2 %v6362_v30  ;;  %2794 = vmatmul.bf16.vlgmr.msrb.gmra.mxu3 %v6360_v29  ;;  %v3685_v27 = vor.u32 %v5277_v60, %v3684_v15  ;;  %v5345_v0 = vld [vmem:[%s8347_s1 + $0x394] sm:$0xf0]  ;;  %v3508_v2 = vld [vmem:[%s8347_s1 + $0x8] sm:$0xf] }
  0xc9   :  { %2838 = vmatpush.bf16.msra.mxu3 %v3749_v22  ;;  %v3988_v22 = vld [vmem:[%s8347_s1 + $0x3c8] sm:$0xf]  ;;  %v2574_v26 = vpop.f32.mrf.mxu2  ;;  %v5265_v10 = vld [vmem:[%s8347_s1 + $0x114] sm:$0xf0] }
  0xca   :  { %2804 = vmatpush.bf16.msra.mxu0 %v4945_v32  ;;  %v3540_v32 = vld [vmem:[%s8347_s1 + $0x48] sm:$0xf]  ;;  %v2575_v36 = vadd.f32 %v2574_v26, %v2562_v19  ;;  %v3989_v39 = vor.u32 %v5353_v23, %v3988_v22  ;;  %v5309_v14 = vld [vmem:[%s8347_s1 + $0x274] sm:$0xf0] }
  0xcb   :  { %2817 = vmatpush.bf16.msra.mxu1 %v5073_v34  ;;  %2826 = vmatpush.bf16.msra.mxu2 %v3605_v35  ;;  %v5241_v34 = vld [vmem:[%s8347_s1 + $0x54] sm:$0xf0]  ;;  %v3668_v35 = vld [vmem:[%s8347_s1 + $0x148] sm:$0xf] }
  0xcc   :  { %v2587_v37 = vpop.f32.mrf.mxu3  ;;  %v3541_v50 = vor.u32 %v5241_v34, %v3540_v32  ;;  %v3636_v9 = vld [vmem:[%s8347_s1 + $0x108] sm:$0xf]  ;;  %v5389_v17 = vld [vmem:[%s8347_s1 + $0x4f4] sm:$0xf0] }
  0xcd   :  { %2839 = vmatpush.bf16.msra.mxu3 %v3733_v40  ;;  %v5273_v40 = vld [vmem:[%s8347_s1 + $0x154] sm:$0xf0]  ;;  %v7088_v48 = vadd.f32 %v2587_v37, %v2575_v36  ;;  %v3812_v13 = vld [vmem:[%s8347_s1 + $0x268] sm:$0xf]  ;;  %v3637_v23 = vor.u32 %v5265_v10, %v3636_v9 }
  0xce   :  { %2805 = vmatpush.bf16.msra.mxu0 %v4929_v49  ;;  %v2550_v49 = vpop.f32.mrf.mxu0  ;;  %v3940_v15 = vld [vmem:[%s8347_s1 + $0x368] sm:$0xf]  ;;  %v5421_v22 = vld [vmem:[%s8347_s1 + $0x5f4] sm:$0xf0] }
  0xcf   :  { %2818 = vmatpush.bf16.msra.mxu1 %v5057_v51  ;;  %2827 = vmatpush.bf16.msra.mxu2 %v3589_v52  ;;  %v2563_v51 = vpop.f32.mrf.mxu1  ;;  %v3669_v52 = vor.u32 %v5273_v40, %v3668_v35  ;;  %v4132_v60 = vld [vmem:[%s8347_s1 + $0x4e8] sm:$0xf]  ;;  %v5305_v32 = vld [vmem:[%s8347_s1 + $0x254] sm:$0xf0] }
  0xd0   :  { %v4260_v19 = vld [vmem:[%s8347_s1 + $0x5e8] sm:$0xf]  ;;  %v5337_v36 = vld [vmem:[%s8347_s1 + $0x354] sm:$0xf0] }
  0xd1   :  { %2840 = vmatpush.bf16.msra.mxu3 %v3717_v56  ;;  %v3652_v56 = vld [vmem:[%s8347_s1 + $0x128] sm:$0xf]  ;;  %v2576_v3 = vpop.f32.mrf.mxu2  ;;  %v4261_v35 = vor.u32 %v5421_v22, %v4260_v19  ;;  %v5417_v43 = vld [vmem:[%s8347_s1 + $0x5d4] sm:$0xf0] }
  0xd2   :  { %2806 = vmatpush.bf16.msra.mxu0 %v4913_v1  ;;  %v3525_v1 = vor.u32 %v5237_v55, %v3524_v54  ;;  %v3653_v5 = vor.u32 %v5269_v58, %v3652_v56  ;;  %v3924_v34 = vld [vmem:[%s8347_s1 + $0x348] sm:$0xf]  ;;  %v5381_v55 = vld [vmem:[%s8347_s1 + $0x4b4] sm:$0xf0] }
  0xd3   :  { %2819 = vmatpush.bf16.msra.mxu1 %v5041_v7  ;;  %2828 = vmatpush.bf16.msra.mxu2 %v3573_v8  ;;  %v3829_v7 = vor.u32 %v5313_v62, %v3828_v61  ;;  %v5233_v8 = vld [vmem:[%s8347_s1 + $0x14] sm:$0xf0]  ;;  %v4116_v37 = vld [vmem:[%s8347_s1 + $0x4c8] sm:$0xf]  ;;  %v3925_v46 = vor.u32 %v5337_v36, %v3924_v34 }
  0xd4   :  { %v3509_v18 = vor.u32 %v5233_v8, %v3508_v2  ;;  %v4244_v40 = vld [vmem:[%s8347_s1 + $0x5c8] sm:$0xf]  ;;  %v5329_v2 = vld [vmem:[%s8347_s1 + $0x314] sm:$0xf0] }
  0xd5   :  { %2841 = vmatpush.bf16.msra.mxu3 %v3701_v11  ;;  %2807 = vmatmul.bf16.vlgmr.msra.gmra.mxu0 %v6370_v33  ;;  %v2589_v11 = vpop.f32.mrf.mxu3  ;;  %v3780_v49 = vld [vmem:[%s8347_s1 + $0x228] sm:$0xf]  ;;  %v5409_v10 = vld [vmem:[%s8347_s1 + $0x594] sm:$0xf0] }
  0xd6   :  { %2851 = vmatpush.bf16.msrb.mxu0 %v3877_v12  ;;  %5099 = vmatmul.msk.bf16.vlgmr.msra.gmra.mxu1 %vm2483_vm0, %v6472_v31  ;;  %v3957_v12 = vor.u32 %v5345_v0, %v3956_v63  ;;  %v3908_v51 = vld [vmem:[%s8347_s1 + $0x328] sm:$0xf]  ;;  %v5297_v0 = vld [vmem:[%s8347_s1 + $0x214] sm:$0xf0] }
  0xd7   :  { %2864 = vmatpush.bf16.msrb.mxu1 %v4005_v16  ;;  %2829 = vmatpush.bf16.msra.mxu2 %v3557_v24  ;;  %v5341_v16 = vld [vmem:[%s8347_s1 + $0x374] sm:$0xf0]  ;;  %v3813_v24 = vor.u32 %v5309_v14, %v3812_v13  ;;  %v4100_v54 = vld [vmem:[%s8347_s1 + $0x4a8] sm:$0xf] }
  0xd8   :  { %v3941_v26 = vor.u32 %v5341_v16, %v3940_v15  ;;  %v4228_v56 = vld [vmem:[%s8347_s1 + $0x5a8] sm:$0xf]  ;;  %v4101_v63 = vor.u32 %v5381_v55, %v4100_v54  ;;  %v5449_v34 = vld [vmem:[%s8347_s1 + $0x6d4] sm:$0xf0] }
  0xd9   :  { %2842 = vmatpush.bf16.msra.mxu3 %v3685_v27  ;;  %v4133_v27 = vor.u32 %v5389_v17, %v4132_v60  ;;  %v3764_v61 = vld [vmem:[%s8347_s1 + $0x208] sm:$0xf]  ;;  %v5485_v60 = vld [vmem:[%s8347_s1 + $0x7f4] sm:$0xf0] }
  0xda   :  { %2852 = vmatpush.bf16.msrb.mxu0 %v3861_v28  ;;  %v3796_v28 = vld [vmem:[%s8347_s1 + $0x248] sm:$0xf]  ;;  %v3765_v14 = vor.u32 %v5297_v0, %v3764_v61  ;;  %v5481_v36 = vld [vmem:[%s8347_s1 + $0x7d4] sm:$0xf0] }
  0xdb   :  { %2865 = vmatpush.bf16.msrb.mxu1 %v3989_v39  ;;  %2830 = vmatpush.bf16.msra.mxu2 %v3541_v50  ;;  %v5385_v39 = vld [vmem:[%s8347_s1 + $0x4d4] sm:$0xf0]  ;;  %v3797_v45 = vor.u32 %v5305_v32, %v3796_v28  ;;  %v4212_v8 = vld [vmem:[%s8347_s1 + $0x588] sm:$0xf] }
  0xdc   :  { %v4117_v47 = vor.u32 %v5385_v39, %v4116_v37  ;;  %v5301_v50 = vld [vmem:[%s8347_s1 + $0x234] sm:$0xf0]  ;;  %v4388_v11 = vld [vmem:[%s8347_s1 + $0x6e8] sm:$0xf]  ;;  %v4213_v19 = vor.u32 %v5409_v10, %v4212_v8 }
  0xdd   :  { %2843 = vmatpush.bf16.msra.mxu3 %v3669_v52  ;;  %v4245_v52 = vor.u32 %v5417_v43, %v4244_v40  ;;  %v3781_v58 = vor.u32 %v5301_v50, %v3780_v49  ;;  %v4516_v16 = vld [vmem:[%s8347_s1 + $0x7e8] sm:$0xf]  ;;  %v5405_v28 = vld [vmem:[%s8347_s1 + $0x574] sm:$0xf0] }
  0xde   :  { %2853 = vmatpush.bf16.msrb.mxu0 %v3845_v53  ;;  %v5333_v53 = vld [vmem:[%s8347_s1 + $0x334] sm:$0xf0]  ;;  %v4372_v32 = vld [vmem:[%s8347_s1 + $0x6c8] sm:$0xf] }
  0xdf   :  { %2866 = vmatpush.bf16.msrb.mxu1 %v3973_v57  ;;  %2831 = vmatpush.bf16.msra.mxu2 %v3525_v1  ;;  %v5413_v57 = vld [vmem:[%s8347_s1 + $0x5b4] sm:$0xf0]  ;;  %v3909_v62 = vor.u32 %v5333_v53, %v3908_v51  ;;  %v3892_v1 = vld [vmem:[%s8347_s1 + $0x308] sm:$0xf]  ;;  %v4373_v43 = vor.u32 %v5449_v34, %v4372_v32 }
  0xe0   :  { %v4229_v3 = vor.u32 %v5413_v57, %v4228_v56  ;;  %v3893_v17 = vor.u32 %v5329_v2, %v3892_v1  ;;  %v5401_v53 = vld [vmem:[%s8347_s1 + $0x554] sm:$0xf0]  ;;  %v4356_v54 = vld [vmem:[%s8347_s1 + $0x6a8] sm:$0xf] }
  0xe1   :  { %2844 = vmatpush.bf16.msra.mxu3 %v3653_v5  ;;  %v4084_v5 = vld [vmem:[%s8347_s1 + $0x488] sm:$0xf]  ;;  %v5445_v55 = vld [vmem:[%s8347_s1 + $0x6b4] sm:$0xf0] }
  0xe2   :  { %2854 = vmatpush.bf16.msrb.mxu0 %v3829_v7  ;;  %v5377_v7 = vld [vmem:[%s8347_s1 + $0x494] sm:$0xf0]  ;;  %v4484_v56 = vld [vmem:[%s8347_s1 + $0x7a8] sm:$0xf]  ;;  %v4357_v0 = vor.u32 %v5445_v55, %v4356_v54 }
  0xe3   :  { %2867 = vmatpush.bf16.msrb.mxu1 %v3957_v12  ;;  %2832 = vmatpush.bf16.msra.mxu2 %v3509_v18  ;;  %v5453_v12 = vld [vmem:[%s8347_s1 + $0x6f4] sm:$0xf0]  ;;  %v4085_v18 = vor.u32 %v5377_v7, %v4084_v5  ;;  %v4036_v1 = vld [vmem:[%s8347_s1 + $0x428] sm:$0xf] }
  0xe4   :  { %v5477_v57 = vld [vmem:[%s8347_s1 + $0x7b4] sm:$0xf0]  ;;  %v4340_v8 = vld [vmem:[%s8347_s1 + $0x688] sm:$0xf] }
  0xe5   :  { %2845 = vmatpush.bf16.msra.mxu3 %v3637_v23  ;;  %v2600_v9 = vpop.f32.mrf.mxu0  ;;  %v2613_v15 = vpop.f32.mrf.mxu1  ;;  %v4389_v23 = vor.u32 %v5453_v12, %v4388_v11  ;;  %v5365_v2 = vld [vmem:[%s8347_s1 + $0x434] sm:$0xf0]  ;;  %v4485_v5 = vor.u32 %v5477_v57, %v4484_v56  ;;  %v4468_v10 = vld [vmem:[%s8347_s1 + $0x788] sm:$0xf] }
  0xe6   :  { %2855 = vmatpush.bf16.msrb.mxu0 %v3813_v24  ;;  %2833 = vmatmul.bf16.vlgmr.msra.gmra.mxu2 %v5997_v20  ;;  %v2601_v13 = vadd.f32 %v2600_v9, %v7088_v48  ;;  %v4068_v48 = vld [vmem:[%s8347_s1 + $0x468] sm:$0xf]  ;;  %v5373_v24 = vld [vmem:[%s8347_s1 + $0x474] sm:$0xf0]  ;;  %v4037_v12 = vor.u32 %v5365_v2, %v4036_v1 }
  0xe7   :  { %2868 = vmatpush.bf16.msrb.mxu1 %v3941_v26  ;;  %2877 = vmatpush.bf16.msrb.mxu2 %v4133_v27  ;;  %v4196_v26 = vld [vmem:[%s8347_s1 + $0x568] sm:$0xf]  ;;  %v4517_v27 = vor.u32 %v5485_v60, %v4516_v16  ;;  %v4069_v37 = vor.u32 %v5373_v24, %v4068_v48  ;;  %v5397_v7 = vld [vmem:[%s8347_s1 + $0x534] sm:$0xf0] }
  0xe8   :  { %2846 = vmatmul.bf16.vlgmr.msra.gmra.mxu3 %v6000_v21  ;;  %v2614_v22 = vadd.f32 %v2613_v15, %v2601_v13  ;;  %v4197_v39 = vor.u32 %v5405_v28, %v4196_v26  ;;  %v5441_v9 = vld [vmem:[%s8347_s1 + $0x694] sm:$0xf0]  ;;  %v4020_v13 = vld [vmem:[%s8347_s1 + $0x408] sm:$0xf] }
  0xe9   :  { %2890 = vmatpush.bf16.msrb.mxu3 %v4261_v35  ;;  %v4500_v35 = vld [vmem:[%s8347_s1 + $0x7c8] sm:$0xf]  ;;  %v2626_v40 = vpop.f32.mrf.mxu2  ;;  %v5473_v11 = vld [vmem:[%s8347_s1 + $0x794] sm:$0xf0]  ;;  %v4341_v15 = vor.u32 %v5441_v9, %v4340_v8 }
  0xea   :  { %2856 = vmatpush.bf16.msrb.mxu0 %v3797_v45  ;;  %v4052_v45 = vld [vmem:[%s8347_s1 + $0x448] sm:$0xf]  ;;  %v2627_v49 = vadd.f32 %v2626_v40, %v2614_v22  ;;  %v4501_v50 = vor.u32 %v5481_v36, %v4500_v35  ;;  %v5361_v16 = vld [vmem:[%s8347_s1 + $0x414] sm:$0xf0] }
  0xeb   :  { %2869 = vmatpush.bf16.msrb.mxu1 %v3925_v46  ;;  %2878 = vmatpush.bf16.msrb.mxu2 %v4117_v47  ;;  %v5369_v46 = vld [vmem:[%s8347_s1 + $0x454] sm:$0xf0]  ;;  %v4180_v47 = vld [vmem:[%s8347_s1 + $0x548] sm:$0xf]  ;;  %v4021_v35 = vor.u32 %v5361_v16, %v4020_v13 }
  0xec   :  { %v4148_v60 = vld [vmem:[%s8347_s1 + $0x508] sm:$0xf]  ;;  %v5517_v32 = vld [vmem:[%s8347_s1 + $0x8f4] sm:$0xf0] }
  0xed   :  { %2891 = vmatpush.bf16.msrb.mxu3 %v4245_v52  ;;  %v2602_v51 = vpop.f32.mrf.mxu0  ;;  %v2639_v52 = vpop.f32.mrf.mxu3  ;;  %v4324_v22 = vld [vmem:[%s8347_s1 + $0x668] sm:$0xf]  ;;  %v5545_v55 = vld [vmem:[%s8347_s1 + $0x9d4] sm:$0xf0] }
  0xee   :  { %2857 = vmatpush.bf16.msrb.mxu0 %v3781_v58  ;;  %v2615_v58 = vpop.f32.mrf.mxu1  ;;  %v2640_v61 = vadd.f32 %v2639_v52, %v2627_v49  ;;  %v4452_v48 = vld [vmem:[%s8347_s1 + $0x768] sm:$0xf]  ;;  %v5465_v51 = vld [vmem:[%s8347_s1 + $0x754] sm:$0xf0] }
  0xef   :  { %2870 = vmatpush.bf16.msrb.mxu1 %v3909_v62  ;;  %2879 = vmatpush.bf16.msrb.mxu2 %v4101_v63  ;;  %v4053_v62 = vor.u32 %v5369_v46, %v4052_v45  ;;  %v4181_v63 = vor.u32 %v5401_v53, %v4180_v47  ;;  %v4644_v28 = vld [vmem:[%s8347_s1 + $0x8e8] sm:$0xf]  ;;  %v5433_v47 = vld [vmem:[%s8347_s1 + $0x654] sm:$0xf0] }
  0xf0   :  { %v4772_v36 = vld [vmem:[%s8347_s1 + $0x9e8] sm:$0xf]  ;;  %v4645_v45 = vor.u32 %v5517_v32, %v4644_v28  ;;  %v5513_v53 = vld [vmem:[%s8347_s1 + $0x8d4] sm:$0xf0] }
  0xf1   :  { %2892 = vmatpush.bf16.msrb.mxu3 %v4229_v3  ;;  %v4164_v3 = vld [vmem:[%s8347_s1 + $0x528] sm:$0xf]  ;;  %v5461_v1 = vld [vmem:[%s8347_s1 + $0x734] sm:$0xf0] }
  0xf2   :  { %2858 = vmatpush.bf16.msrb.mxu0 %v3765_v14  ;;  %v4165_v14 = vor.u32 %v5397_v7, %v4164_v3  ;;  %v4308_v46 = vld [vmem:[%s8347_s1 + $0x648] sm:$0xf]  ;;  %v5509_v3 = vld [vmem:[%s8347_s1 + $0x8b4] sm:$0xf0] }
  0xf3   :  { %2871 = vmatpush.bf16.msrb.mxu1 %v3893_v17  ;;  %2880 = vmatpush.bf16.msrb.mxu2 %v4085_v18  ;;  %v5393_v17 = vld [vmem:[%s8347_s1 + $0x514] sm:$0xf0]  ;;  %v2628_v18 = vpop.f32.mrf.mxu2  ;;  %v4436_v49 = vld [vmem:[%s8347_s1 + $0x748] sm:$0xf]  ;;  %v4309_v56 = vor.u32 %v5433_v47, %v4308_v46 }
  0xf4   :  { %v4628_v52 = vld [vmem:[%s8347_s1 + $0x8c8] sm:$0xf]  ;;  %v4437_v57 = vor.u32 %v5465_v51, %v4436_v49  ;;  %v5541_v8 = vld [vmem:[%s8347_s1 + $0x9b4] sm:$0xf0] }
  0xf5   :  { %2893 = vmatpush.bf16.msrb.mxu3 %v4213_v19  ;;  %2859 = vmatmul.bf16.vlgmr.msrb.gmra.mxu0 %v5965_v4  ;;  %v4469_v19 = vor.u32 %v5473_v11, %v4468_v10  ;;  %v2641_v24 = vpop.f32.mrf.mxu3  ;;  %v2652_v26 = vpop.f32.mrf.mxu0  ;;  %v4756_v54 = vld [vmem:[%s8347_s1 + $0x9c8] sm:$0xf]  ;;  %v4629_v58 = vor.u32 %v5513_v53, %v4628_v52  ;;  %v5425_v11 = vld [vmem:[%s8347_s1 + $0x614] sm:$0xf0] }
  0xf6   :  { %2903 = vmatpush.bf16.msra.mxu0 %v4389_v23  ;;  %2872 = vmatmul.bf16.vlgmr.msrb.gmra.mxu1 %v5970_v6  ;;  %v5437_v23 = vld [vmem:[%s8347_s1 + $0x674] sm:$0xf0]  ;;  %v7343_v34 = vadd.f32 %v2652_v26, %v2640_v61  ;;  %v4292_v61 = vld [vmem:[%s8347_s1 + $0x628] sm:$0xf] }
  0xf7   :  { %2916 = vmatpush.bf16.msra.mxu1 %v4517_v27  ;;  %2881 = vmatpush.bf16.msrb.mxu2 %v4069_v37  ;;  %v5469_v27 = vld [vmem:[%s8347_s1 + $0x774] sm:$0xf0]  ;;  %v4325_v40 = vor.u32 %v5437_v23, %v4324_v22  ;;  %v4612_v2 = vld [vmem:[%s8347_s1 + $0x8a8] sm:$0xf] }
  0xf8   :  { %v5549_v37 = vld [vmem:[%s8347_s1 + $0x9f4] sm:$0xf0]  ;;  %v4740_v7 = vld [vmem:[%s8347_s1 + $0x9a8] sm:$0xf]  ;;  %v4613_v13 = vor.u32 %v5509_v3, %v4612_v2 }
  0xf9   :  { %2894 = vmatpush.bf16.msrb.mxu3 %v4197_v39  ;;  %v4149_v39 = vor.u32 %v5393_v17, %v4148_v60  ;;  %v4276_v10 = vld [vmem:[%s8347_s1 + $0x608] sm:$0xf]  ;;  %v4741_v60 = vor.u32 %v5541_v8, %v4740_v7  ;;  %v5505_v17 = vld [vmem:[%s8347_s1 + $0x894] sm:$0xf0] }
  0xfa   :  { %2904 = vmatpush.bf16.msra.mxu0 %v4373_v43  ;;  %v4453_v43 = vor.u32 %v5469_v27, %v4452_v48  ;;  %v4596_v16 = vld [vmem:[%s8347_s1 + $0x888] sm:$0xf]  ;;  %v5537_v22 = vld [vmem:[%s8347_s1 + $0x994] sm:$0xf0]  ;;  %v4277_v24 = vor.u32 %v5425_v11, %v4276_v10 }
  0xfb   :  { %2917 = vmatpush.bf16.msra.mxu1 %v4501_v50  ;;  %2882 = vmatpush.bf16.msrb.mxu2 %v4053_v62  ;;  %v4773_v50 = vor.u32 %v5549_v37, %v4772_v36  ;;  %v5429_v62 = vld [vmem:[%s8347_s1 + $0x634] sm:$0xf0]  ;;  %v4724_v18 = vld [vmem:[%s8347_s1 + $0x988] sm:$0xf]  ;;  %v4597_v32 = vor.u32 %v5505_v17, %v4596_v16 }
  0xfc   :  { %v4293_v9 = vor.u32 %v5429_v62, %v4292_v61  ;;  %v4900_v23 = vld [vmem:[%s8347_s1 + $0xae8] sm:$0xf]  ;;  %v5581_v48 = vld [vmem:[%s8347_s1 + $0xaf4] sm:$0xf0] }
  0xfd   :  { %2895 = vmatpush.bf16.msrb.mxu3 %v4181_v63  ;;  %v4420_v63 = vld [vmem:[%s8347_s1 + $0x728] sm:$0xf]  ;;  %v4901_v36 = vor.u32 %v5581_v48, %v4900_v23  ;;  %v5533_v46 = vld [vmem:[%s8347_s1 + $0x974] sm:$0xf0] }
  0xfe   :  { %2905 = vmatpush.bf16.msra.mxu0 %v4357_v0  ;;  %v4757_v0 = vor.u32 %v5545_v55, %v4756_v54  ;;  %v5028_v26 = vld [vmem:[%s8347_s1 + $0xbe8] sm:$0xf]  ;;  %v5577_v49 = vld [vmem:[%s8347_s1 + $0xad4] sm:$0xf0] }
  0xff   :  { %2918 = vmatpush.bf16.msra.mxu1 %v4485_v5  ;;  %2883 = vmatpush.bf16.msrb.mxu2 %v4037_v12  ;;  %v2654_v5 = vpop.f32.mrf.mxu0  ;;  %v4421_v12 = vor.u32 %v5461_v1, %v4420_v63  ;;  %v4580_v37 = vld [vmem:[%s8347_s1 + $0x868] sm:$0xf]  ;;  %v5609_v51 = vld [vmem:[%s8347_s1 + $0xbd4] sm:$0xf0] }
 0x100   :  { %v4884_v47 = vld [vmem:[%s8347_s1 + $0xac8] sm:$0xf]  ;;  %v5573_v2 = vld [vmem:[%s8347_s1 + $0xab4] sm:$0xf0] }
 0x101   :  { %2896 = vmatpush.bf16.msrb.mxu3 %v4165_v14  ;;  %v4404_v14 = vld [vmem:[%s8347_s1 + $0x708] sm:$0xf]  ;;  %v4885_v55 = vor.u32 %v5577_v49, %v4884_v47  ;;  %v5605_v5 = vld [vmem:[%s8347_s1 + $0xbb4] sm:$0xf0] }
 0x102   :  { %2906 = vmatpush.bf16.msra.mxu0 %v4341_v15  ;;  %v5457_v15 = vld [vmem:[%s8347_s1 + $0x714] sm:$0xf0]  ;;  %v4868_v1 = vld [vmem:[%s8347_s1 + $0xaa8] sm:$0xf] }
 0x103   :  { %2919 = vmatpush.bf16.msra.mxu1 %v4469_v19  ;;  %2884 = vmatpush.bf16.msrb.mxu2 %v4021_v35  ;;  %v431_v19 = vperm.slane %v6837_v59, 1  ;;  %v5613_v59 = vld [vmem:[%s8347_s1 + $0xbf4] sm:$0xf0]  ;;  %v4405_v28 = vor.u32 %v5457_v15, %v4404_v14  ;;  %v4725_v35 = vor.u32 %v5537_v22, %v4724_v18  ;;  %v4996_v3 = vld [vmem:[%s8347_s1 + $0xba8] sm:$0xf]  ;;  %v4869_v11 = vor.u32 %v5573_v2, %v4868_v1 }
 0x104   :  { %v4676_v14 = vld [vmem:[%s8347_s1 + $0x928] sm:$0xf]  ;;  %v4997_v15 = vor.u32 %v5605_v5, %v4996_v3  ;;  %v5525_v16 = vld [vmem:[%s8347_s1 + $0x934] sm:$0xf0]  ;;  %v5255_v2 = vld [vmem:[%s8347_s1 + $0xcc] sm:$0xf] }
 0x105   :  { %2897 = vmatpush.bf16.msrb.mxu3 %v4149_v39  ;;  %v2665_v27 = vpop.f32.mrf.mxu1  ;;  %v5501_v39 = vld [vmem:[%s8347_s1 + $0x874] sm:$0xf0]  ;;  %v4980_v18 = vld [vmem:[%s8347_s1 + $0xb88] sm:$0xf]  ;;  %v3606_v3 = vld [vmem:[%s8347_s1 + $0xd8] sm:$0xf0] }
 0x106   :  { %2907 = vmatpush.bf16.msra.mxu0 %v4325_v40  ;;  %2885 = vmatmul.bf16.vlgmr.msrb.gmra.mxu2 %v6156_v41  ;;  %v4708_v40 = vld [vmem:[%s8347_s1 + $0x968] sm:$0xf]  ;;  %v4581_v52 = vor.u32 %v5501_v39, %v4580_v37  ;;  %v5569_v17 = vld [vmem:[%s8347_s1 + $0xa94] sm:$0xf0] }
 0x107   :  { %2920 = vmatpush.bf16.msra.mxu1 %v4453_v43  ;;  %2929 = vmatpush.bf16.msra.mxu2 %v4645_v45  ;;  %v2666_v43 = vadd.f32 %v2665_v27, %v431_v19  ;;  %v5029_v45 = vor.u32 %v5613_v59, %v5028_v26  ;;  %v4709_v54 = vor.u32 %v5533_v46, %v4708_v40  ;;  %v5601_v19 = vld [vmem:[%s8347_s1 + $0xb94] sm:$0xf0]  ;;  %v4532_v48 = vld [vmem:[%s8347_s1 + $0x808] sm:$0xf] }
 0x108   :  { %2898 = vmatmul.bf16.vlgmr.msrb.gmra.mxu3 %v6160_v44  ;;  %v4677_v59 = vor.u32 %v5525_v16, %v4676_v14  ;;  %v4981_v37 = vor.u32 %v5601_v19, %v4980_v18  ;;  %v4836_v39 = vld [vmem:[%s8347_s1 + $0xa68] sm:$0xf]  ;;  %v5565_v40 = vld [vmem:[%s8347_s1 + $0xa74] sm:$0xf0]  ;;  %v5251_v16 = vld [vmem:[%s8347_s1 + $0xac] sm:$0xf] }
 0x109   :  { %2942 = vmatpush.bf16.msra.mxu3 %v4773_v50  ;;  %v5012_v50 = vld [vmem:[%s8347_s1 + $0xbc8] sm:$0xf]  ;;  %v2678_v53 = vpop.f32.mrf.mxu2  ;;  %v5629_v47 = vld [vmem:[%s8347_s1 + $0xc74] sm:$0xf0] }
 0x10a   :  { %2908 = vmatpush.bf16.msra.mxu0 %v4309_v56  ;;  %v4564_v56 = vld [vmem:[%s8347_s1 + $0x848] sm:$0xf]  ;;  %v2679_v61 = vadd.f32 %v2678_v53, %v2666_v43  ;;  %v5013_v63 = vor.u32 %v5609_v51, %v5012_v50  ;;  %v5259_v50 = vld [vmem:[%s8347_s1 + $0xec] sm:$0xf]  ;;  %v3622_v51 = vld [vmem:[%s8347_s1 + $0xf8] sm:$0xf0]  ;;  %v4837_v53 = vor.u32 %v5565_v40, %v4836_v39 }
 0x10b   :  { %2921 = vmatpush.bf16.msra.mxu1 %v4437_v57  ;;  %2930 = vmatpush.bf16.msra.mxu2 %v4629_v58  ;;  %v5497_v57 = vld [vmem:[%s8347_s1 + $0x854] sm:$0xf0]  ;;  %v4692_v58 = vld [vmem:[%s8347_s1 + $0x948] sm:$0xf]  ;;  %v2691_v62 = vpop.f32.mrf.mxu3  ;;  %v5323_v39 = vld [vmem:[%s8347_s1 + $0x2ec] sm:$0xf] }
 0x10c   :  { %v2692_v7 = vadd.f32 %v2691_v62, %v2679_v61  ;;  %v4964_v43 = vld [vmem:[%s8347_s1 + $0xb68] sm:$0xf]  ;;  %v3625_v61 = vor.u32 %v5259_v50, %v3622_v51  ;;  %v5593_v62 = vld [vmem:[%s8347_s1 + $0xb54] sm:$0xf0] }
 0x10d   :  { %2943 = vmatpush.bf16.msra.mxu3 %v4757_v0  ;;  %v5529_v0 = vld [vmem:[%s8347_s1 + $0x954] sm:$0xf0]  ;;  %v2667_v8 = vpop.f32.mrf.mxu1  ;;  %v5092_v46 = vld [vmem:[%s8347_s1 + $0xc68] sm:$0xf] }
 0x10e   :  { %2909 = vmatpush.bf16.msra.mxu0 %v4293_v9  ;;  %v4565_v9 = vor.u32 %v5497_v57, %v4564_v56  ;;  %v4693_v10 = vor.u32 %v5529_v0, %v4692_v58  ;;  %v4820_v56 = vld [vmem:[%s8347_s1 + $0xa48] sm:$0xf]  ;;  %v5561_v57 = vld [vmem:[%s8347_s1 + $0xa54] sm:$0xf0] }
 0x10f   :  { %2922 = vmatpush.bf16.msra.mxu1 %v4421_v12  ;;  %2931 = vmatpush.bf16.msra.mxu2 %v4613_v13  ;;  %v4548_v12 = vld [vmem:[%s8347_s1 + $0x828] sm:$0xf]  ;;  %v5493_v13 = vld [vmem:[%s8347_s1 + $0x834] sm:$0xf0]  ;;  %v4821_v5 = vor.u32 %v5561_v57, %v4820_v56 }
 0x110   :  { %v4549_v23 = vor.u32 %v5493_v13, %v4548_v12  ;;  %v4948_v58 = vld [vmem:[%s8347_s1 + $0xb48] sm:$0xf]  ;;  %v5625_v0 = vld [vmem:[%s8347_s1 + $0xc54] sm:$0xf0]  ;;  %v3609_v12 = vor.u32 %v5255_v2, %v3606_v3 }
 0x111   :  { %2944 = vmatpush.bf16.msra.mxu3 %v4741_v60  ;;  %v4852_v60 = vld [vmem:[%s8347_s1 + $0xa88] sm:$0xf]  ;;  %v2680_v26 = vpop.f32.mrf.mxu2  ;;  %v5589_v13 = vld [vmem:[%s8347_s1 + $0xb34] sm:$0xf0] }
 0x112   :  { %2910 = vmatpush.bf16.msra.mxu0 %v4277_v24  ;;  %v2704_v22 = vpop.f32.mrf.mxu0  ;;  %v4853_v27 = vor.u32 %v5569_v17, %v4852_v60  ;;  %v5060_v14 = vld [vmem:[%s8347_s1 + $0xc28] sm:$0xf]  ;;  %v3590_v60 = vld [vmem:[%s8347_s1 + $0xb8] sm:$0xf0]  ;;  %v5553_v19 = vld [vmem:[%s8347_s1 + $0xa14] sm:$0xf0] }
 0x113   :  { %2923 = vmatpush.bf16.msra.mxu1 %v4405_v28  ;;  %2932 = vmatpush.bf16.msra.mxu2 %v4597_v32  ;;  %v7515_v24 = vadd.f32 %v2704_v22, %v2692_v7  ;;  %v5489_v28 = vld [vmem:[%s8347_s1 + $0x814] sm:$0xf0]  ;;  %v4660_v32 = vld [vmem:[%s8347_s1 + $0x908] sm:$0xf]  ;;  %v4949_v7 = vor.u32 %v5593_v62, %v4948_v58  ;;  %v5287_v58 = vld [vmem:[%s8347_s1 + $0x1cc] sm:$0xf] }
 0x114   :  { %v4533_v49 = vor.u32 %v5489_v28, %v4532_v48  ;;  %v4788_v18 = vld [vmem:[%s8347_s1 + $0xa08] sm:$0xf]  ;;  %v5585_v26 = vld [vmem:[%s8347_s1 + $0xb14] sm:$0xf0]  ;;  %v3862_v62 = vld [vmem:[%s8347_s1 + $0x2d8] sm:$0xf0] }
 0x115   :  { %2945 = vmatpush.bf16.msra.mxu3 %v4725_v35  ;;  %2911 = vmatmul.bf16.vlgmr.msra.gmra.mxu0 %v6148_v38  ;;  %v5521_v35 = vld [vmem:[%s8347_s1 + $0x914] sm:$0xf0]  ;;  %v4916_v48 = vld [vmem:[%s8347_s1 + $0xb08] sm:$0xf]  ;;  %v4789_v40 = vor.u32 %v5553_v19, %v4788_v18 }
 0x116   :  { %2955 = vmatpush.bf16.msrb.mxu0 %v4901_v36  ;;  %2924 = vmatmul.bf16.vlgmr.msra.gmra.mxu1 %v6158_v42  ;;  %v2693_v36 = vpop.f32.mrf.mxu3  ;;  %v5617_v28 = vld [vmem:[%s8347_s1 + $0xc14] sm:$0xf0] }
 0x117   :  { %2968 = vmatpush.bf16.msrb.mxu1 %v5029_v45  ;;  %2933 = vmatpush.bf16.msra.mxu2 %v4581_v52  ;;  %v5597_v45 = vld [vmem:[%s8347_s1 + $0xb74] sm:$0xf0]  ;;  %v4661_v52 = vor.u32 %v5521_v35, %v4660_v32  ;;  %v5247_v32 = vld [vmem:[%s8347_s1 + $0x8c] sm:$0xf]  ;;  %v3574_v35 = vld [vmem:[%s8347_s1 + $0x98] sm:$0xf0] }
 0x118   :  { %v5291_v36 = vld [vmem:[%s8347_s1 + $0x1ec] sm:$0xf] }
 0x119   :  { %2946 = vmatpush.bf16.msra.mxu3 %v4709_v54  ;;  %v4965_v54 = vor.u32 %v5597_v45, %v4964_v43  ;;  %v3878_v43 = vld [vmem:[%s8347_s1 + $0x2f8] sm:$0xf0]  ;;  %v5355_v45 = vld [vmem:[%s8347_s1 + $0x3ec] sm:$0xf] }
 0x11a   :  { %2956 = vmatpush.bf16.msrb.mxu0 %v4885_v55  ;;  %v5093_v55 = vor.u32 %v5629_v47, %v5092_v46  ;;  %v2706_v1 = vpop.f32.mrf.mxu0  ;;  %v4006_v46 = vld [vmem:[%s8347_s1 + $0x3f8] sm:$0xf0]  ;;  %v3881_v56 = vor.u32 %v5323_v39, %v3878_v43 }
 0x11b   :  { %2969 = vmatpush.bf16.msrb.mxu1 %v5013_v63  ;;  %2934 = vmatpush.bf16.msra.mxu2 %v4565_v9  ;;  %v5076_v63 = vld [vmem:[%s8347_s1 + $0xc48] sm:$0xf]  ;;  %v4009_v57 = vor.u32 %v5355_v45, %v4006_v46  ;;  %v3958_v39 = vld [vmem:[%s8347_s1 + $0x398] sm:$0xf0] }
 0x11c   :  { %v5077_v8 = vor.u32 %v5625_v0, %v5076_v63  ;;  %v4804_v9 = vld [vmem:[%s8347_s1 + $0xa28] sm:$0xf]  ;;  %v5351_v63 = vld [vmem:[%s8347_s1 + $0x3cc] sm:$0xf]  ;;  %v3990_v0 = vld [vmem:[%s8347_s1 + $0x3d8] sm:$0xf0] }
 0x11d   :  { %2947 = vmatpush.bf16.msra.mxu3 %v4693_v10  ;;  %v5557_v10 = vld [vmem:[%s8347_s1 + $0xa34] sm:$0xf0] }
 0x11e   :  { %2957 = vmatpush.bf16.msrb.mxu0 %v4869_v11  ;;  %v4932_v11 = vld [vmem:[%s8347_s1 + $0xb28] sm:$0xf]  ;;  %v4805_v17 = vor.u32 %v5557_v10, %v4804_v9 }
 0x11f   :  { %2970 = vmatpush.bf16.msrb.mxu1 %v4997_v15  ;;  %2935 = vmatpush.bf16.msra.mxu2 %v4549_v23  ;;  %v5621_v15 = vld [vmem:[%s8347_s1 + $0xc34] sm:$0xf0]  ;;  %v4933_v22 = vor.u32 %v5589_v13, %v4932_v11  ;;  %v3993_v11 = vor.u32 %v5351_v63, %v3990_v0  ;;  %v3718_v13 = vld [vmem:[%s8347_s1 + $0x1b8] sm:$0xf0] }
 0x120   :  { %v5061_v23 = vor.u32 %v5621_v15, %v5060_v14  ;;  %v5315_v14 = vld [vmem:[%s8347_s1 + $0x2ac] sm:$0xf]  ;;  %v3846_v15 = vld [vmem:[%s8347_s1 + $0x2b8] sm:$0xf0] }
 0x121   :  { %2948 = vmatpush.bf16.msra.mxu3 %v4677_v59  ;;  %v5044_v59 = vld [vmem:[%s8347_s1 + $0xc08] sm:$0xf] }
 0x122   :  { %2958 = vmatpush.bf16.msrb.mxu0 %v4853_v27  ;;  %v3593_v27 = vor.u32 %v5251_v16, %v3590_v60  ;;  %v5045_v50 = vor.u32 %v5617_v28, %v5044_v59  ;;  %v5347_v16 = vld [vmem:[%s8347_s1 + $0x3ac] sm:$0xf]  ;;  %v3974_v60 = vld [vmem:[%s8347_s1 + $0x3b8] sm:$0xf0] }
 0x123   :  { %2971 = vmatpush.bf16.msrb.mxu1 %v4981_v37  ;;  %2936 = vmatpush.bf16.msra.mxu2 %v4533_v49  ;;  %v3750_v37 = vld [vmem:[%s8347_s1 + $0x1f8] sm:$0xf0]  ;;  %v4917_v49 = vor.u32 %v5585_v26, %v4916_v48  ;;  %v3849_v26 = vor.u32 %v5315_v14, %v3846_v15  ;;  %v3977_v59 = vor.u32 %v5347_v16, %v3974_v60  ;;  %v5267_v60 = vld [vmem:[%s8347_s1 + $0x12c] sm:$0xf] }
 0x124   :  { %v3526_v48 = vld [vmem:[%s8347_s1 + $0x38] sm:$0xf0] }
 0x125   :  { %2949 = vmatpush.bf16.msra.mxu3 %v4661_v52  ;;  %v2717_v47 = vpop.f32.mrf.mxu1  ;;  %v3577_v52 = vor.u32 %v5247_v32, %v3574_v35  ;;  %v3702_v28 = vld [vmem:[%s8347_s1 + $0x198] sm:$0xf0]  ;;  %v5311_v32 = vld [vmem:[%s8347_s1 + $0x28c] sm:$0xf] }
 0x126   :  { %2959 = vmatpush.bf16.msrb.mxu0 %v4837_v53  ;;  %2937 = vmatmul.bf16.vlgmr.msra.gmra.mxu2 %v6349_v25  ;;  %v2718_v51 = vadd.f32 %v2717_v47, %v7515_v24  ;;  %v3753_v53 = vor.u32 %v5291_v36, %v3750_v37  ;;  %v3734_v24 = vld [vmem:[%s8347_s1 + $0x1d8] sm:$0xf0]  ;;  %v5343_v37 = vld [vmem:[%s8347_s1 + $0x38c] sm:$0xf] }
 0x127   :  { %2972 = vmatpush.bf16.msrb.mxu1 %v4965_v54  ;;  %2985 = vmatpush.bf16.msrb.mxu2 %v5093_v55  ;;  %v5243_v54 = vld [vmem:[%s8347_s1 + $0x6c] sm:$0xf]  ;;  %v3558_v55 = vld [vmem:[%s8347_s1 + $0x78] sm:$0xf0]  ;;  %v3737_v3 = vor.u32 %v5287_v58, %v3734_v24 }
 0x128   :  { %2950 = vmatmul.bf16.vlgmr.msra.gmra.mxu3 %v6362_v30  ;;  %v3561_v2 = vor.u32 %v5243_v54, %v3558_v55  ;;  %v3830_v36 = vld [vmem:[%s8347_s1 + $0x298] sm:$0xf0]  ;;  %v5231_v47 = vld [vmem:[%s8347_s1 + $0xc] sm:$0xf] }
 0x129   :  { %2994 = vmatpush.bf16.msrb.mxu3 %v3625_v61  ;;  %v5319_v61 = vld [vmem:[%s8347_s1 + $0x2cc] sm:$0xf]  ;;  %v2730_v1 = vpop.f32.mrf.mxu2  ;;  %v3686_v54 = vld [vmem:[%s8347_s1 + $0x178] sm:$0xf0] }
 0x12a   :  { %2960 = vmatpush.bf16.msrb.mxu0 %v4821_v5  ;;  %v5239_v5 = vld [vmem:[%s8347_s1 + $0x4c] sm:$0xf]  ;;  %v3865_v10 = vor.u32 %v5319_v61, %v3862_v62  ;;  %v3942_v58 = vld [vmem:[%s8347_s1 + $0x378] sm:$0xf0] }
 0x12b   :  { %2973 = vmatpush.bf16.msrb.mxu1 %v4949_v7  ;;  %2986 = vmatpush.bf16.msrb.mxu2 %v5077_v8  ;;  %v3542_v7 = vld [vmem:[%s8347_s1 + $0x58] sm:$0xf0]  ;;  %v2731_v8 = vadd.f32 %v2730_v1, %v2718_v51  ;;  %v2743_v9 = vpop.f32.mrf.mxu3  ;;  %v3833_v51 = vor.u32 %v5311_v32, %v3830_v36  ;;  %v5307_v55 = vld [vmem:[%s8347_s1 + $0x26c] sm:$0xf] }
 0x12c   :  { %v3545_v19 = vor.u32 %v5239_v5, %v3542_v7  ;;  %v5387_v24 = vld [vmem:[%s8347_s1 + $0x4ec] sm:$0xf]  ;;  %v4134_v61 = vld [vmem:[%s8347_s1 + $0x4f8] sm:$0xf0] }
 0x12d   :  { %2995 = vmatpush.bf16.msrb.mxu3 %v3609_v12  ;;  %v5283_v12 = vld [vmem:[%s8347_s1 + $0x1ac] sm:$0xf]  ;;  %v2719_v18 = vpop.f32.mrf.mxu1  ;;  %v4137_v7 = vor.u32 %v5387_v24, %v4134_v61  ;;  %v3638_v32 = vld [vmem:[%s8347_s1 + $0x118] sm:$0xf0] }
 0x12e   :  { %2961 = vmatpush.bf16.msrb.mxu0 %v4805_v17  ;;  %v2744_v17 = vadd.f32 %v2743_v9, %v2731_v8  ;;  %v5303_v5 = vld [vmem:[%s8347_s1 + $0x24c] sm:$0xf]  ;;  %v3798_v8 = vld [vmem:[%s8347_s1 + $0x258] sm:$0xf0] }
 0x12f   :  { %2974 = vmatpush.bf16.msrb.mxu1 %v4933_v22  ;;  %2987 = vmatpush.bf16.msrb.mxu2 %v5061_v23  ;;  %v3721_v22 = vor.u32 %v5283_v12, %v3718_v13  ;;  %v5235_v23 = vld [vmem:[%s8347_s1 + $0x2c] sm:$0xf]  ;;  %v4118_v13 = vld [vmem:[%s8347_s1 + $0x4d8] sm:$0xf0]  ;;  %v3801_v15 = vor.u32 %v5303_v5, %v3798_v8 }
 0x130   :  { %v3529_v45 = vor.u32 %v5235_v23, %v3526_v48  ;;  %v5335_v9 = vld [vmem:[%s8347_s1 + $0x34c] sm:$0xf]  ;;  %v3910_v48 = vld [vmem:[%s8347_s1 + $0x338] sm:$0xf0] }
 0x131   :  { %2996 = vmatpush.bf16.msrb.mxu3 %v3593_v27  ;;  %v5279_v27 = vld [vmem:[%s8347_s1 + $0x18c] sm:$0xf]  ;;  %v2732_v43 = vpop.f32.mrf.mxu2 }
 0x132   :  { %2962 = vmatpush.bf16.msrb.mxu0 %v4789_v40  ;;  %v2756_v35 = vpop.f32.mrf.mxu0  ;;  %v3705_v46 = vor.u32 %v5279_v27, %v3702_v28  ;;  %v5383_v12 = vld [vmem:[%s8347_s1 + $0x4cc] sm:$0xf] }
 0x133   :  { %2975 = vmatpush.bf16.msrb.mxu1 %v4917_v49  ;;  %2988 = vmatpush.bf16.msrb.mxu2 %v5045_v50  ;;  %v7719_v40 = vadd.f32 %v2756_v35, %v2744_v17  ;;  %v3510_v49 = vld [vmem:[%s8347_s1 + $0x18] sm:$0xf0]  ;;  %v2745_v50 = vpop.f32.mrf.mxu3  ;;  %v5299_v18 = vld [vmem:[%s8347_s1 + $0x22c] sm:$0xf] }
 0x134   :  { %v3513_v62 = vor.u32 %v5231_v47, %v3510_v49  ;;  %v3654_v17 = vld [vmem:[%s8347_s1 + $0x138] sm:$0xf0]  ;;  %v5331_v23 = vld [vmem:[%s8347_s1 + $0x32c] sm:$0xf] }
 0x135   :  { %2997 = vmatpush.bf16.msrb.mxu3 %v3577_v52  ;;  %2963 = vmatmul.bf16.vlgmr.msrb.gmra.mxu0 %v6360_v29  ;;  %v3961_v52 = vor.u32 %v5343_v37, %v3958_v39  ;;  %v3657_v27 = vor.u32 %v5267_v60, %v3654_v17  ;;  %v5263_v28 = vld [vmem:[%s8347_s1 + $0x10c] sm:$0xf]  ;;  %v3913_v36 = vor.u32 %v5331_v23, %v3910_v48  ;;  %v4086_v47 = vld [vmem:[%s8347_s1 + $0x498] sm:$0xf0] }
 0x136   :  { %3007 = vmatpush.bf16.msra.mxu0 %v3753_v53  ;;  %2976 = vmatmul.bf16.vlgmr.msrb.gmra.mxu1 %v6370_v33  ;;  %v5275_v53 = vld [vmem:[%s8347_s1 + $0x16c] sm:$0xf]  ;;  %v4358_v48 = vld [vmem:[%s8347_s1 + $0x6b8] sm:$0xf0] }
 0x137   :  { %3020 = vmatpush.bf16.msra.mxu1 %v3881_v56  ;;  %3033 = vmatpush.bf16.msra.mxu2 %v4009_v57  ;;  %v3814_v56 = vld [vmem:[%s8347_s1 + $0x278] sm:$0xf0]  ;;  %v5339_v57 = vld [vmem:[%s8347_s1 + $0x36c] sm:$0xf]  ;;  %v3689_v63 = vor.u32 %v5275_v53, %v3686_v54  ;;  %v3641_v54 = vor.u32 %v5263_v28, %v3638_v32 }
 0x138   :  { %5100 = vmatmul.msk.bf16.vlgmr.msrb.gmra.mxu2 %vm2483_vm0, %v6472_v31  ;;  %v3817_v0 = vor.u32 %v5307_v55, %v3814_v56  ;;  %v3945_v1 = vor.u32 %v5339_v57, %v3942_v58  ;;  %v5295_v37 = vld [vmem:[%s8347_s1 + $0x20c] sm:$0xf]  ;;  %v4390_v55 = vld [vmem:[%s8347_s1 + $0x6f8] sm:$0xf0] }
 0x139   :  { %2998 = vmatpush.bf16.msrb.mxu3 %v3561_v2  ;;  %v5271_v2 = vld [vmem:[%s8347_s1 + $0x14c] sm:$0xf]  ;;  %v4518_v57 = vld [vmem:[%s8347_s1 + $0x7f8] sm:$0xf0] }
 0x13a   :  { %3008 = vmatpush.bf16.msra.mxu0 %v3737_v3  ;;  %v3670_v3 = vld [vmem:[%s8347_s1 + $0x158] sm:$0xf0]  ;;  %v5327_v39 = vld [vmem:[%s8347_s1 + $0x30c] sm:$0xf] }
 0x13b   :  { %3021 = vmatpush.bf16.msra.mxu1 %v3865_v10  ;;  %3034 = vmatpush.bf16.msra.mxu2 %v3993_v11  ;;  %v3926_v10 = vld [vmem:[%s8347_s1 + $0x358] sm:$0xf0]  ;;  %v2758_v11 = vpop.f32.mrf.mxu0  ;;  %v3673_v14 = vor.u32 %v5271_v2, %v3670_v3  ;;  %v5419_v50 = vld [vmem:[%s8347_s1 + $0x5ec] sm:$0xf] }
 0x13c   :  { %v3929_v16 = vor.u32 %v5335_v9, %v3926_v10  ;;  %v5483_v56 = vld [vmem:[%s8347_s1 + $0x7ec] sm:$0xf]  ;;  %v4246_v3 = vld [vmem:[%s8347_s1 + $0x5d8] sm:$0xf0] }
 0x13d   :  { %2999 = vmatpush.bf16.msrb.mxu3 %v3545_v19  ;;  %v4121_v19 = vor.u32 %v5383_v12, %v4118_v13  ;;  %v5415_v2 = vld [vmem:[%s8347_s1 + $0x5cc] sm:$0xf]  ;;  %v4502_v9 = vld [vmem:[%s8347_s1 + $0x7d8] sm:$0xf0] }
 0x13e   :  { %3009 = vmatpush.bf16.msra.mxu0 %v3721_v22  ;;  %v3782_v22 = vld [vmem:[%s8347_s1 + $0x238] sm:$0xf0]  ;;  %v5447_v5 = vld [vmem:[%s8347_s1 + $0x6cc] sm:$0xf]  ;;  %v4249_v12 = vor.u32 %v5415_v2, %v4246_v3 }
 0x13f   :  { %3022 = vmatpush.bf16.msra.mxu1 %v3849_v26  ;;  %3035 = vmatpush.bf16.msra.mxu2 %v3977_v59  ;;  %v5379_v26 = vld [vmem:[%s8347_s1 + $0x4ac] sm:$0xf]  ;;  %v4102_v59 = vld [vmem:[%s8347_s1 + $0x4b8] sm:$0xf0]  ;;  %v3785_v35 = vor.u32 %v5299_v18, %v3782_v22 }
 0x140   :  { %v4105_v43 = vor.u32 %v5379_v26, %v4102_v59  ;;  %v5479_v8 = vld [vmem:[%s8347_s1 + $0x7cc] sm:$0xf]  ;;  %v4230_v22 = vld [vmem:[%s8347_s1 + $0x5b8] sm:$0xf0] }
 0x141   :  { %3000 = vmatpush.bf16.msrb.mxu3 %v3529_v45  ;;  %v3894_v45 = vld [vmem:[%s8347_s1 + $0x318] sm:$0xf0]  ;;  %v4505_v17 = vor.u32 %v5479_v8, %v4502_v9  ;;  %v5443_v23 = vld [vmem:[%s8347_s1 + $0x6ac] sm:$0xf] }
 0x142   :  { %3010 = vmatpush.bf16.msra.mxu0 %v3705_v46  ;;  %v5375_v46 = vld [vmem:[%s8347_s1 + $0x48c] sm:$0xf]  ;;  %v3897_v24 = vor.u32 %v5327_v39, %v3894_v45  ;;  %v4486_v59 = vld [vmem:[%s8347_s1 + $0x7b8] sm:$0xf0] }
 0x143   :  { %3023 = vmatpush.bf16.msra.mxu1 %v3833_v51  ;;  %3036 = vmatpush.bf16.msra.mxu2 %v3961_v52  ;;  %v2769_v49 = vpop.f32.mrf.mxu1  ;;  %v4262_v51 = vld [vmem:[%s8347_s1 + $0x5f8] sm:$0xf0]  ;;  %v5451_v52 = vld [vmem:[%s8347_s1 + $0x6ec] sm:$0xf]  ;;  %v4089_v61 = vor.u32 %v5375_v46, %v4086_v47 }
 0x144   :  { %v2770_v53 = vadd.f32 %v2769_v49, %v7719_v40  ;;  %v4265_v40 = vor.u32 %v5419_v50, %v4262_v51  ;;  %v5475_v26 = vld [vmem:[%s8347_s1 + $0x7ac] sm:$0xf]  ;;  %v4470_v46 = vld [vmem:[%s8347_s1 + $0x798] sm:$0xf0] }
 0x145   :  { %3001 = vmatpush.bf16.msrb.mxu3 %v3513_v62  ;;  %v5371_v62 = vld [vmem:[%s8347_s1 + $0x46c] sm:$0xf] }
 0x146   :  { %3011 = vmatpush.bf16.msra.mxu0 %v3689_v63  ;;  %v4070_v63 = vld [vmem:[%s8347_s1 + $0x478] sm:$0xf0]  ;;  %v5471_v45 = vld [vmem:[%s8347_s1 + $0x78c] sm:$0xf] }
 0x147   :  { %3024 = vmatpush.bf16.msra.mxu1 %v3817_v0  ;;  %3037 = vmatpush.bf16.msra.mxu2 %v3945_v1  ;;  %v4393_v0 = vor.u32 %v5451_v52, %v4390_v55  ;;  %v4521_v1 = vor.u32 %v5483_v56, %v4518_v57  ;;  %v4073_v10 = vor.u32 %v5371_v62, %v4070_v63  ;;  %v5359_v51 = vld [vmem:[%s8347_s1 + $0x40c] sm:$0xf]  ;;  %v4022_v52 = vld [vmem:[%s8347_s1 + $0x418] sm:$0xf0] }
 0x148   :  { %3002 = vmatmul.bf16.vlgmr.msrb.gmra.mxu3 %v5997_v20  ;;  %v3766_v20 = vld [vmem:[%s8347_s1 + $0x218] sm:$0xf0]  ;;  %v4473_v56 = vor.u32 %v5471_v45, %v4470_v46  ;;  %v5403_v57 = vld [vmem:[%s8347_s1 + $0x56c] sm:$0xf]  ;;  %v4025_v3 = vor.u32 %v5359_v51, %v4022_v52 }
 0x149   :  { %3046 = vmatpush.bf16.msra.mxu3 %v4137_v7  ;;  %v3769_v58 = vor.u32 %v5295_v37, %v3766_v20  ;;  %v4374_v7 = vld [vmem:[%s8347_s1 + $0x6d8] sm:$0xf0]  ;;  %v4489_v37 = vor.u32 %v5475_v26, %v4486_v59  ;;  %v5439_v20 = vld [vmem:[%s8347_s1 + $0x68c] sm:$0xf] }
 0x14a   :  { %3012 = vmatpush.bf16.msra.mxu0 %v3673_v14  ;;  %v5367_v14 = vld [vmem:[%s8347_s1 + $0x44c] sm:$0xf]  ;;  %v4377_v60 = vor.u32 %v5447_v5, %v4374_v7  ;;  %v4454_v62 = vld [vmem:[%s8347_s1 + $0x778] sm:$0xf0] }
 0x14b   :  { %3025 = vmatpush.bf16.msra.mxu1 %v3801_v15  ;;  %3038 = vmatpush.bf16.msra.mxu2 %v3929_v16  ;;  %v2782_v11 = vpop.f32.mrf.mxu2  ;;  %v2795_v13 = vpop.f32.mrf.mxu3  ;;  %v4054_v15 = vld [vmem:[%s8347_s1 + $0x458] sm:$0xf0]  ;;  %v5399_v9 = vld [vmem:[%s8347_s1 + $0x54c] sm:$0xf] }
 0x14c   :  { %v2783_v16 = vadd.f32 %v2782_v11, %v2770_v53  ;;  %v2771_v18 = vpop.f32.mrf.mxu1  ;;  %v4057_v28 = vor.u32 %v5367_v14, %v4054_v15  ;;  %v5431_v11 = vld [vmem:[%s8347_s1 + $0x64c] sm:$0xf]  ;;  %v4438_v15 = vld [vmem:[%s8347_s1 + $0x758] sm:$0xf0] }
 0x14d   :  { %3047 = vmatpush.bf16.msra.mxu3 %v4121_v19  ;;  %v5411_v19 = vld [vmem:[%s8347_s1 + $0x5ac] sm:$0xf]  ;;  %v4774_v52 = vld [vmem:[%s8347_s1 + $0x9f8] sm:$0xf0] }
 0x14e   :  { %3013 = vmatpush.bf16.msra.mxu0 %v3657_v27  ;;  %v2796_v27 = vadd.f32 %v2795_v13, %v2783_v16  ;;  %v4233_v32 = vor.u32 %v5411_v19, %v4230_v22  ;;  %v4310_v13 = vld [vmem:[%s8347_s1 + $0x658] sm:$0xf0]  ;;  %v5463_v14 = vld [vmem:[%s8347_s1 + $0x74c] sm:$0xf] }
 0x14f   :  { %3026 = vmatpush.bf16.msra.mxu1 %v3785_v35  ;;  %3039 = vmatpush.bf16.msra.mxu2 %v3913_v36  ;;  %v5363_v35 = vld [vmem:[%s8347_s1 + $0x42c] sm:$0xf]  ;;  %v4038_v36 = vld [vmem:[%s8347_s1 + $0x438] sm:$0xf0]  ;;  %v4313_v19 = vor.u32 %v5431_v11, %v4310_v13  ;;  %v4441_v22 = vor.u32 %v5463_v14, %v4438_v15 }
 0x150   :  { %v4041_v49 = vor.u32 %v5363_v35, %v4038_v36  ;;  %v5427_v26 = vld [vmem:[%s8347_s1 + $0x62c] sm:$0xf]  ;;  %v4614_v36 = vld [vmem:[%s8347_s1 + $0x8b8] sm:$0xf0] }
 0x151   :  { %3048 = vmatpush.bf16.msra.mxu3 %v4105_v43  ;;  %v4342_v43 = vld [vmem:[%s8347_s1 + $0x698] sm:$0xf0]  ;;  %v5507_v35 = vld [vmem:[%s8347_s1 + $0x8ac] sm:$0xf] }
 0x152   :  { %3014 = vmatpush.bf16.msra.mxu0 %v3641_v54  ;;  %v2808_v39 = vpop.f32.mrf.mxu0  ;;  %v4345_v55 = vor.u32 %v5439_v20, %v4342_v43  ;;  %v4278_v43 = vld [vmem:[%s8347_s1 + $0x618] sm:$0xf0]  ;;  %v5455_v45 = vld [vmem:[%s8347_s1 + $0x70c] sm:$0xf]  ;;  %v4617_v46 = vor.u32 %v5507_v35, %v4614_v36 }
 0x153   :  { %3027 = vmatpush.bf16.msra.mxu1 %v3769_v58  ;;  %3040 = vmatpush.bf16.msra.mxu2 %v3897_v24  ;;  %v2809_v47 = vadd.f32 %v2808_v39, %v2796_v27  ;;  %v2797_v53 = vpop.f32.mrf.mxu3  ;;  %v2784_v54 = vpop.f32.mrf.mxu2  ;;  %v4198_v58 = vld [vmem:[%s8347_s1 + $0x578] sm:$0xf0]  ;;  %v5435_v24 = vld [vmem:[%s8347_s1 + $0x66c] sm:$0xf] }
 0x154   :  { %v2821_v63 = vpop.f32.mrf.mxu1  ;;  %v4201_v5 = vor.u32 %v5403_v57, %v4198_v58  ;;  %v4294_v27 = vld [vmem:[%s8347_s1 + $0x638] sm:$0xf0]  ;;  %v5423_v39 = vld [vmem:[%s8347_s1 + $0x60c] sm:$0xf] }
 0x155   :  { %3049 = vmatpush.bf16.msra.mxu3 %v4089_v61  ;;  %3015 = vmatmul.bf16.vlgmr.msra.gmra.mxu0 %v6000_v21  ;;  %v4361_v21 = vor.u32 %v5443_v23, %v4358_v48  ;;  %v4326_v61 = vld [vmem:[%s8347_s1 + $0x678] sm:$0xf0]  ;;  %v7948_v2 = vadd.f32 %v2821_v63, %v2809_v47  ;;  %v5395_v23 = vld [vmem:[%s8347_s1 + $0x52c] sm:$0xf]  ;;  %v4281_v58 = vor.u32 %v5423_v39, %v4278_v43 }
 0x156   :  { %3059 = vmatpush.bf16.msrb.mxu0 %v4265_v40  ;;  %3041 = vmatmul.bf16.vlgmr.msra.gmra.mxu2 %v5970_v6  ;;  %v4214_v6 = vld [vmem:[%s8347_s1 + $0x598] sm:$0xf0]  ;;  %v5467_v40 = vld [vmem:[%s8347_s1 + $0x76c] sm:$0xf]  ;;  %v4329_v7 = vor.u32 %v5435_v24, %v4326_v61 }
 0x157   :  { %3072 = vmatpush.bf16.msrb.mxu1 %v4393_v0  ;;  %3085 = vmatpush.bf16.msrb.mxu2 %v4521_v1  ;;  %v5515_v0 = vld [vmem:[%s8347_s1 + $0x8ec] sm:$0xf]  ;;  %v4646_v1 = vld [vmem:[%s8347_s1 + $0x8f8] sm:$0xf0]  ;;  %v4457_v8 = vor.u32 %v5467_v40, %v4454_v62 }
 0x158   :  { %3028 = vmatmul.bf16.vlgmr.msra.gmra.mxu1 %v5965_v4  ;;  %v5407_v4 = vld [vmem:[%s8347_s1 + $0x58c] sm:$0xf]  ;;  %v4166_v48 = vld [vmem:[%s8347_s1 + $0x538] sm:$0xf0] }
 0x159   :  { %3050 = vmatpush.bf16.msra.mxu3 %v4073_v10  ;;  %v4217_v50 = vor.u32 %v5407_v4, %v4214_v6  ;;  %v4182_v10 = vld [vmem:[%s8347_s1 + $0x558] sm:$0xf0]  ;;  %v5391_v4 = vld [vmem:[%s8347_s1 + $0x50c] sm:$0xf] }
 0x15a   :  { %3060 = vmatpush.bf16.msrb.mxu0 %v4249_v12  ;;  %v4649_v12 = vor.u32 %v5515_v0, %v4646_v1  ;;  %v2810_v16 = vpop.f32.mrf.mxu0  ;;  %v4185_v18 = vor.u32 %v5399_v9, %v4182_v10  ;;  %v4150_v6 = vld [vmem:[%s8347_s1 + $0x518] sm:$0xf0]  ;;  %v5547_v51 = vld [vmem:[%s8347_s1 + $0x9ec] sm:$0xf] }
 0x15b   :  { %3073 = vmatpush.bf16.msrb.mxu1 %v4377_v60  ;;  %3086 = vmatpush.bf16.msrb.mxu2 %v4505_v17  ;;  %v5511_v60 = vld [vmem:[%s8347_s1 + $0x8cc] sm:$0xf]  ;;  %v4630_v17 = vld [vmem:[%s8347_s1 + $0x8d8] sm:$0xf0]  ;;  %v4153_v54 = vor.u32 %v5391_v4, %v4150_v6  ;;  %v4777_v40 = vor.u32 %v5547_v51, %v4774_v52 }
 0x15c   :  { %v4633_v59 = vor.u32 %v5511_v60, %v4630_v17  ;;  %v4406_v47 = vld [vmem:[%s8347_s1 + $0x718] sm:$0xf0]  ;;  %v5579_v53 = vld [vmem:[%s8347_s1 + $0xaec] sm:$0xf] }
 0x15d   :  { %3051 = vmatpush.bf16.msra.mxu3 %v4057_v28  ;;  %v5459_v28 = vld [vmem:[%s8347_s1 + $0x72c] sm:$0xf]  ;;  %v5030_v57 = vld [vmem:[%s8347_s1 + $0xbf8] sm:$0xf0]  ;;  %v4409_v24 = vor.u32 %v5455_v45, %v4406_v47 }
 0x15e   :  { %3061 = vmatpush.bf16.msrb.mxu0 %v4233_v32  ;;  %v4422_v32 = vld [vmem:[%s8347_s1 + $0x738] sm:$0xf0]  ;;  %v5499_v62 = vld [vmem:[%s8347_s1 + $0x86c] sm:$0xf] }
 0x15f   :  { %3074 = vmatpush.bf16.msrb.mxu1 %v4361_v21  ;;  %3087 = vmatpush.bf16.msrb.mxu2 %v4489_v37  ;;  %v2823_v21 = vpop.f32.mrf.mxu1  ;;  %v4169_v37 = vor.u32 %v5395_v23, %v4166_v48  ;;  %v4425_v20 = vor.u32 %v5459_v28, %v4422_v32  ;;  %v4582_v63 = vld [vmem:[%s8347_s1 + $0x878] sm:$0xf0]  ;;  %v5607_v9 = vld [vmem:[%s8347_s1 + $0xbcc] sm:$0xf] }
 0x160   :  { %v5014_v10 = vld [vmem:[%s8347_s1 + $0xbd8] sm:$0xf0]  ;;  %v5495_v14 = vld [vmem:[%s8347_s1 + $0x84c] sm:$0xf] }
 0x161   :  { %3052 = vmatpush.bf16.msra.mxu3 %v4041_v49  ;;  %v5503_v49 = vld [vmem:[%s8347_s1 + $0x88c] sm:$0xf]  ;;  %v4566_v15 = vld [vmem:[%s8347_s1 + $0x858] sm:$0xf0]  ;;  %v5017_v17 = vor.u32 %v5607_v9, %v5014_v10 }
 0x162   :  { %3062 = vmatpush.bf16.msrb.mxu0 %v4217_v50  ;;  %v4598_v50 = vld [vmem:[%s8347_s1 + $0x898] sm:$0xf0]  ;;  %v5603_v48 = vld [vmem:[%s8347_s1 + $0xbac] sm:$0xf] }
 0x163   :  { %3075 = vmatpush.bf16.msrb.mxu1 %v4345_v55  ;;  %3088 = vmatpush.bf16.msrb.mxu2 %v4473_v56  ;;  %v4902_v55 = vld [vmem:[%s8347_s1 + $0xaf8] sm:$0xf0]  ;;  %v5611_v56 = vld [vmem:[%s8347_s1 + $0xbec] sm:$0xf]  ;;  %v4601_v61 = vor.u32 %v5503_v49, %v4598_v50 }
 0x164   :  { %v4905_v0 = vor.u32 %v5579_v53, %v4902_v55  ;;  %v5033_v1 = vor.u32 %v5611_v56, %v5030_v57  ;;  %v4870_v23 = vld [vmem:[%s8347_s1 + $0xab8] sm:$0xf0]  ;;  %v5567_v36 = vld [vmem:[%s8347_s1 + $0xa8c] sm:$0xf] }
 0x165   :  { %3053 = vmatpush.bf16.msra.mxu3 %v4025_v3  ;;  %v5543_v3 = vld [vmem:[%s8347_s1 + $0x9cc] sm:$0xf]  ;;  %v4726_v35 = vld [vmem:[%s8347_s1 + $0x998] sm:$0xf0] }
 0x166   :  { %3063 = vmatpush.bf16.msrb.mxu0 %v4201_v5  ;;  %v4758_v5 = vld [vmem:[%s8347_s1 + $0x9d8] sm:$0xf0]  ;;  %v5487_v45 = vld [vmem:[%s8347_s1 + $0x80c] sm:$0xf] }
 0x167   :  { %3076 = vmatpush.bf16.msrb.mxu1 %v4329_v7  ;;  %3089 = vmatpush.bf16.msrb.mxu2 %v4457_v8  ;;  %v5575_v7 = vld [vmem:[%s8347_s1 + $0xacc] sm:$0xf]  ;;  %v4886_v8 = vld [vmem:[%s8347_s1 + $0xad8] sm:$0xf0]  ;;  %v4761_v13 = vor.u32 %v5543_v3, %v4758_v5 }
 0x168   :  { %3054 = vmatmul.bf16.vlgmr.msra.gmra.mxu3 %v6156_v41  ;;  %v4297_v41 = vor.u32 %v5427_v26, %v4294_v27  ;;  %v4889_v60 = vor.u32 %v5575_v7, %v4886_v8  ;;  %v4998_v26 = vld [vmem:[%s8347_s1 + $0xbb8] sm:$0xf0]  ;;  %v5531_v51 = vld [vmem:[%s8347_s1 + $0x96c] sm:$0xf] }
 0x169   :  { %3098 = vmatpush.bf16.msrb.mxu3 %v4649_v12  ;;  %v8065_v11 = vpop.f32.mrf.mxu2  ;;  %v4585_v12 = vor.u32 %v5499_v62, %v4582_v63  ;;  %v4550_v27 = vld [vmem:[%s8347_s1 + $0x838] sm:$0xf0]  ;;  %v5001_v32 = vor.u32 %v5603_v48, %v4998_v26  ;;  %v5563_v53 = vld [vmem:[%s8347_s1 + $0xa6c] sm:$0xf] }
 0x16a   :  { %3064 = vmatpush.bf16.msrb.mxu0 %v4185_v18  ;;  %v5539_v18 = vld [vmem:[%s8347_s1 + $0x9ac] sm:$0xf]  ;;  %v4854_v21 = vld [vmem:[%s8347_s1 + $0xa98] sm:$0xf0] }
 0x16b   :  { %3077 = vmatpush.bf16.msrb.mxu1 %v4313_v19  ;;  %3090 = vmatpush.bf16.msrb.mxu2 %v4441_v22  ;;  %v8073_v16 = vpop.f32.mrf.mxu3  ;;  %v4742_v19 = vld [vmem:[%s8347_s1 + $0x9b8] sm:$0xf0]  ;;  %v5571_v22 = vld [vmem:[%s8347_s1 + $0xaac] sm:$0xf]  ;;  %v4857_v49 = vor.u32 %v5567_v36, %v4854_v21 }
 0x16c   :  { %v4873_v28 = vor.u32 %v5571_v22, %v4870_v23  ;;  %v4982_v4 = vld [vmem:[%s8347_s1 + $0xb98] sm:$0xf0]  ;;  %v5595_v55 = vld [vmem:[%s8347_s1 + $0xb6c] sm:$0xf] }
 0x16d   :  { %3099 = vmatpush.bf16.msrb.mxu3 %v4633_v59  ;;  %v4569_v59 = vor.u32 %v5495_v14, %v4566_v15  ;;  %v4710_v52 = vld [vmem:[%s8347_s1 + $0x978] sm:$0xf0]  ;;  %v5627_v57 = vld [vmem:[%s8347_s1 + $0xc6c] sm:$0xf] }
 0x16e   :  { %3065 = vmatpush.bf16.msrb.mxu0 %v4169_v37  ;;  %v5599_v37 = vld [vmem:[%s8347_s1 + $0xb8c] sm:$0xf]  ;;  %v4966_v56 = vld [vmem:[%s8347_s1 + $0xb78] sm:$0xf0] }
 0x16f   :  { %3078 = vmatpush.bf16.msrb.mxu1 %v4297_v41  ;;  %3091 = vmatpush.bf16.msrb.mxu2 %v4425_v20  ;;  %v4985_v50 = vor.u32 %v5599_v37, %v4982_v4  ;;  %v4969_v62 = vor.u32 %v5595_v55, %v4966_v56  ;;  %v5527_v63 = vld [vmem:[%s8347_s1 + $0x94c] sm:$0xf]  ;;  %v4822_v5 = vld [vmem:[%s8347_s1 + $0xa58] sm:$0xf0]  ;;  %v8246_v55 = vld [vmem:[%s8349_s2] sm:$0xf] }
 0x170   :  { %v5591_v7 = vld [vmem:[%s8347_s1 + $0xb4c] sm:$0xf]  ;;  %v4950_v8 = vld [vmem:[%s8347_s1 + $0xb58] sm:$0xf0]  ;;  %v432_v56 = vperm.slane %v8246_v55, 2 }
 0x171   :  { %3100 = vmatpush.bf16.msrb.mxu3 %v4617_v46  ;;  %v2836_v20 = vpop.f32.mrf.mxu2  ;;  %v4534_v46 = vld [vmem:[%s8347_s1 + $0x818] sm:$0xf0]  ;;  %v5623_v10 = vld [vmem:[%s8347_s1 + $0xc4c] sm:$0xf] }
 0x172   :  { %3066 = vmatpush.bf16.msrb.mxu0 %v4153_v54  ;;  %v8120_v6 = vpop.f32.mrf.mxu0  ;;  %v4838_v54 = vld [vmem:[%s8347_s1 + $0xa78] sm:$0xf0]  ;;  %v5587_v48 = vld [vmem:[%s8347_s1 + $0xb2c] sm:$0xf] }
 0x173   :  { %3079 = vmatpush.bf16.msrb.mxu1 %v4281_v58  ;;  %3092 = vmatpush.bf16.msrb.mxu2 %v4409_v24  ;;  %v8122_v41 = vpop.f32.mrf.mxu1  ;;  %v2849_v47 = vpop.f32.mrf.mxu3  ;;  %v5094_v58 = vld [vmem:[%s8347_s1 + $0xc78] sm:$0xf0]  ;;  %v4537_v24 = vor.u32 %v5487_v45, %v4534_v46  ;;  %v5583_v21 = vld [vmem:[%s8347_s1 + $0xb0c] sm:$0xf] }
 0x174   :  { %v5097_v3 = vor.u32 %v5627_v57, %v5094_v58  ;;  %v4806_v23 = vld [vmem:[%s8347_s1 + $0xa38] sm:$0xf0]  ;;  %v5615_v20 = vld [vmem:[%s8347_s1 + $0xc0c] sm:$0xf]  ;;  %v5652_v57 = vld [vmem:[%s8350_s3 + $0xb0] sm:$0xff] }
 0x175   :  { %3101 = vmatpush.bf16.msrb.mxu3 %v4601_v61  ;;  %3067 = vmatmul.bf16.vlgmr.msrb.gmra.mxu0 %v6160_v44  ;;  %v4745_v44 = vor.u32 %v5539_v18, %v4742_v19  ;;  %v4713_v61 = vor.u32 %v5531_v51, %v4710_v52  ;;  %v4678_v18 = vld [vmem:[%s8347_s1 + $0x938] sm:$0xf0]  ;;  %v5555_v19 = vld [vmem:[%s8347_s1 + $0xa2c] sm:$0xf]  ;;  %v5636_v52 = vld [vmem:[%s8350_s3 + $0x30] sm:$0xff] }
 0x176   :  { %3111 = vmatpush.bf16.msra.mxu0 %v4777_v40  ;;  %3093 = vmatmul.bf16.vlgmr.msrb.gmra.mxu2 %v6158_v42  ;;  %v5491_v42 = vld [vmem:[%s8347_s1 + $0x82c] sm:$0xf]  ;;  %v4841_v40 = vor.u32 %v5563_v53, %v4838_v54  ;;  %v4934_v26 = vld [vmem:[%s8347_s1 + $0xb38] sm:$0xf0]  ;;  %v5644_v53 = vld [vmem:[%s8350_s3 + $0x70] sm:$0xff] }
 0x177   :  { %3124 = vmatpush.bf16.msra.mxu1 %v4905_v0  ;;  %3137 = vmatpush.bf16.msra.mxu2 %v5033_v1  ;;  %v4553_v39 = vor.u32 %v5491_v42, %v4550_v27  ;;  %v4694_v0 = vld [vmem:[%s8347_s1 + $0x958] sm:$0xf0]  ;;  %v5559_v1 = vld [vmem:[%s8347_s1 + $0xa4c] sm:$0xf]  ;;  %v4809_v27 = vor.u32 %v5555_v19, %v4806_v23  ;;  %v3164_v19 = vmax.f32 %v7948_v2, 0.0  ;;  %v5646_v23 = vld [vmem:[%s8350_s3 + $0x80] sm:$0xff] }
 0x178   :  { %3080 = vmatmul.bf16.vlgmr.msrb.gmra.mxu1 %v6148_v38  ;;  %v5535_v38 = vld [vmem:[%s8347_s1 + $0x98c] sm:$0xf]  ;;  %v4697_v14 = vor.u32 %v5527_v63, %v4694_v0  ;;  %v4825_v15 = vor.u32 %v5559_v1, %v4822_v5  ;;  %v4790_v36 = vld [vmem:[%s8347_s1 + $0xa18] sm:$0xf0]  ;;  %v5650_v0 = vld [vmem:[%s8350_s3 + $0xa0] sm:$0xff] }
 0x179   :  { %3102 = vmatpush.bf16.msrb.mxu3 %v4585_v12  ;;  %v4729_v43 = vor.u32 %v5535_v38, %v4726_v35  ;;  %v5078_v12 = vld [vmem:[%s8347_s1 + $0xc58] sm:$0xf0]  ;;  %v5551_v38 = vld [vmem:[%s8347_s1 + $0xa0c] sm:$0xf] }
 0x17a   :  { %3112 = vmatpush.bf16.msra.mxu0 %v4761_v13  ;;  %v2862_v9 = vpop.f32.mrf.mxu0  ;;  %v5081_v22 = vor.u32 %v5623_v10, %v5078_v12  ;;  %v4918_v37 = vld [vmem:[%s8347_s1 + $0xb18] sm:$0xf0]  ;;  %v5643_v58 = vld [vmem:[%s8350_s3 + $0x68] sm:$0xff]  ;;  %v5640_v10 = vld [vmem:[%s8350_s3 + $0x50] sm:$0xff] }
 0x17b   :  { %3125 = vmatpush.bf16.msra.mxu1 %v4889_v60  ;;  %3138 = vmatpush.bf16.msra.mxu2 %v5017_v17  ;;  %v2875_v13 = vpop.f32.mrf.mxu1  ;;  %v4953_v60 = vor.u32 %v5591_v7, %v4950_v8  ;;  %v5523_v17 = vld [vmem:[%s8347_s1 + $0x92c] sm:$0xf]  ;;  %v4921_v45 = vor.u32 %v5583_v21, %v4918_v37  ;;  %v5637_v46 = vld [vmem:[%s8350_s3 + $0x38] sm:$0xff]  ;;  %v5632_v9 = vld [vmem:[%s8350_s3 + $0x10] sm:$0xff] }
 0x17c   :  { %v4681_v42 = vor.u32 %v5523_v17, %v4678_v18  ;;  %v5645_v47 = vld [vmem:[%s8350_s3 + $0x78] sm:$0xff]  ;;  %v5631_v13 = vld [vmem:[%s8350_s3 + $0x8] sm:$0xff]  ;;  %v5638_v17 = vld [vmem:[%s8350_s3 + $0x40] sm:$0xff]  ;;  %v3163_v18 = vmax.f32 %v7343_v34, 0.0 }
 0x17d   :  { %3103 = vmatpush.bf16.msrb.mxu3 %v4569_v59  ;;  %v5619_v59 = vld [vmem:[%s8347_s1 + $0xc2c] sm:$0xf]  ;;  %v5653_v51 = vld [vmem:[%s8350_s3 + $0xb8] sm:$0xff] }
 0x17e   :  { %3113 = vmatpush.bf16.msra.mxu0 %v4745_v44  ;;  %v5062_v44 = vld [vmem:[%s8347_s1 + $0xc38] sm:$0xf0] }
 0x17f   :  { %3126 = vmatpush.bf16.msra.mxu1 %v4873_v28  ;;  %3139 = vmatpush.bf16.msra.mxu2 %v5001_v32  ;;  %v4937_v28 = vor.u32 %v5587_v48, %v4934_v26  ;;  %v5519_v32 = vld [vmem:[%s8347_s1 + $0x90c] sm:$0xf]  ;;  %v5065_v35 = vor.u32 %v5619_v59, %v5062_v44  ;;  %v5633_v1 = vld [vmem:[%s8350_s3 + $0x18] sm:$0xff]  ;;  %v3167_v48 = vpack.c.bf16 %v3163_v18, %v3163_v18 }
 0x180   :  { %v3168_v26 = vpack.c.bf16 %v3164_v19, %v3164_v19 }
 0x181   :  { %3104 = vmatpush.bf16.msrb.mxu3 %v4553_v39  ;;  %v5046_v39 = vld [vmem:[%s8347_s1 + $0xc18] sm:$0xf0] }
 0x182   :  { %3114 = vmatpush.bf16.msra.mxu0 %v4729_v43  ;;  %v4793_v43 = vor.u32 %v5551_v38, %v4790_v36 }
 0x183   :  { %3127 = vmatpush.bf16.msra.mxu1 %v4857_v49  ;;  %3140 = vmatpush.bf16.msra.mxu2 %v4985_v50  ;;  %v5049_v49 = vor.u32 %v5615_v20, %v5046_v39 }
 0x185   :  { %3105 = vmatpush.bf16.msrb.mxu3 %v4537_v24 }
 0x186   :  { %3115 = vmatpush.bf16.msra.mxu0 %v4713_v61 }
 0x187   :  { %3128 = vmatpush.bf16.msra.mxu1 %v4841_v40  ;;  %3141 = vmatpush.bf16.msra.mxu2 %v4969_v62  ;;  %v5651_v40 = vld [vmem:[%s8350_s3 + $0xa8] sm:$0xff]  ;;  %v5634_v62 = vld [vmem:[%s8350_s3 + $0x20] sm:$0xff] }
 0x188   :  { %3106 = vmatmul.bf16.vlgmr.msrb.gmra.mxu3 %v6349_v25  ;;  %v4662_v25 = vld [vmem:[%s8347_s1 + $0x918] sm:$0xf0] }
 0x189   :  { %3154 = vmatpush.bf16.msra.mxu3 %v5097_v3  ;;  %v4665_v4 = vor.u32 %v5519_v32, %v4662_v25  ;;  %v2886_v50 = vpop.f32.mrf.mxu2  ;;  %v5641_v3 = vld [vmem:[%s8350_s3 + $0x58] sm:$0xff] }
 0x18a   :  { %3116 = vmatpush.bf16.msra.mxu0 %v4697_v14  ;;  %v5639_v14 = vld [vmem:[%s8350_s3 + $0x48] sm:$0xff] }
 0x18b   :  { %3129 = vmatpush.bf16.msra.mxu1 %v4825_v15  ;;  %3142 = vmatpush.bf16.msra.mxu2 %v4953_v60  ;;  %v2899_v54 = vpop.f32.mrf.mxu3  ;;  %v5630_v60 = vld [vmem:[%s8350_s3] sm:$0xff] }
 0x18d   :  { %3155 = vmatpush.bf16.msra.mxu3 %v5081_v22 }
 0x18e   :  { %3117 = vmatpush.bf16.msra.mxu0 %v4681_v42 }
 0x18f   :  { %3130 = vmatpush.bf16.msra.mxu1 %v4809_v27  ;;  %3143 = vmatpush.bf16.msra.mxu2 %v4937_v28 }
 0x191   :  { %3156 = vmatpush.bf16.msra.mxu3 %v5065_v35  ;;  %v2888_v61 = vpop.f32.mrf.mxu2 }
 0x192   :  { %3118 = vmatpush.bf16.msra.mxu0 %v4665_v4 }
 0x193   :  { %3131 = vmatpush.bf16.msra.mxu1 %v4793_v43  ;;  %3144 = vmatpush.bf16.msra.mxu2 %v4921_v45  ;;  %v2925_v24 = vpop.f32.mrf.mxu1  ;;  %v2901_v63 = vpop.f32.mrf.mxu3 }
 0x195   :  { %3157 = vmatpush.bf16.msra.mxu3 %v5049_v49  ;;  %3119 = vmatmul.bf16.vlgmr.msra.gmra.mxu0 %v6362_v30  ;;  %v5635_v30 = vld [vmem:[%s8350_s3 + $0x28] sm:$0xff] }
 0x196   :  { %3431 = vmatpush.bf16.msrb.mxu0 %v5637_v46  ;;  %3132 = vmatmul.bf16.vlgmr.msra.gmra.mxu1 %v6360_v29  ;;  %v2835_v29 = vadd.f32 %v8065_v11, %v432_v56 }
 0x197   :  { %3444 = vmatpush.bf16.msrb.mxu1 %v5645_v47  ;;  %3145 = vmatmul.bf16.vlgmr.msra.gmra.mxu2 %v6370_v33  ;;  %v2912_v33 = vpop.f32.mrf.mxu0 }
 0x198   :  { %3457 = vmatpush.bf16.msrb.mxu2 %v5653_v51  ;;  %5101 = vmatmul.msk.bf16.vlgmr.msra.gmra.mxu3 %vm2483_vm0, %v6472_v31  ;;  %v5642_v31 = vld [vmem:[%s8350_s3 + $0x60] sm:$0xff]  ;;  %v2848_v11 = vadd.f32 %v8073_v16, %v2835_v29  ;;  %v5649_v16 = vld [vmem:[%s8350_s3 + $0x98] sm:$0xff] }
 0x199   :  { %v5661_v51 = vld [vmem:[%s8350_s3 + $0xf8] sm:$0xff] }
 0x19a   :  { %3432 = vmatpush.bf16.msrb.mxu0 %v5636_v52  ;;  %v2861_v5 = vadd.f32 %v8120_v6, %v2848_v11  ;;  %v5648_v6 = vld [vmem:[%s8350_s3 + $0x90] sm:$0xff]  ;;  %3470 = vmatpush.bf16.msrb.mxu3 %v5661_v51 }
 0x19b   :  { %3445 = vmatpush.bf16.msrb.mxu1 %v5644_v53  ;;  %v2927_v8 = vpop.f32.mrf.mxu1  ;;  %v5660_v53 = vld [vmem:[%s8350_s3 + $0xf0] sm:$0xff] }
 0x19c   :  { %3458 = vmatpush.bf16.msrb.mxu2 %v5652_v57  ;;  %v2874_v12 = vadd.f32 %v8122_v41, %v2861_v5  ;;  %v5647_v41 = vld [vmem:[%s8350_s3 + $0x88] sm:$0xff] }
 0x19e   :  { %3433 = vmatpush.bf16.msrb.mxu0 %v5635_v30  ;;  %v2887_v15 = vadd.f32 %v2886_v50, %v2874_v12  ;;  %3471 = vmatpush.bf16.msrb.mxu3 %v5660_v53  ;;  %v5659_v30 = vld [vmem:[%s8350_s3 + $0xe8] sm:$0xff] }
 0x19f   :  { %3446 = vmatpush.bf16.msrb.mxu1 %v5643_v58  ;;  %v2914_v7 = vpop.f32.mrf.mxu0  ;;  %v5658_v58 = vld [vmem:[%s8350_s3 + $0xe0] sm:$0xff] }
 0x1a0   :  { %3459 = vmatpush.bf16.msrb.mxu2 %v5651_v40  ;;  %v2900_v22 = vadd.f32 %v2899_v54, %v2887_v15  ;;  %v5656_v40 = vld [vmem:[%s8350_s3 + $0xd0] sm:$0xff]  ;;  %v5654_v7 = vld [vmem:[%s8350_s3 + $0xc0] sm:$0xff] }
 0x1a2   :  { %3434 = vmatpush.bf16.msrb.mxu0 %v5634_v62  ;;  %v2913_v44 = vadd.f32 %v2912_v33, %v2900_v22  ;;  %3472 = vmatpush.bf16.msrb.mxu3 %v5659_v30  ;;  %v433_v33 = vperm.slane %v8246_v55, 3 }
 0x1a3   :  { %3447 = vmatpush.bf16.msrb.mxu1 %v5642_v31 }
 0x1a4   :  { %3460 = vmatpush.bf16.msrb.mxu2 %v5650_v0  ;;  %v2926_v27 = vadd.f32 %v2925_v24, %v2913_v44  ;;  %v5657_v24 = vld [vmem:[%s8350_s3 + $0xd8] sm:$0xff]  ;;  %v5655_v0 = vld [vmem:[%s8350_s3 + $0xc8] sm:$0xff] }
 0x1a6   :  { %3435 = vmatpush.bf16.msrb.mxu0 %v5633_v1  ;;  %3473 = vmatpush.bf16.msrb.mxu3 %v5658_v58 }
 0x1a7   :  { %3448 = vmatpush.bf16.msrb.mxu1 %v5641_v3 }
 0x1a8   :  { %3461 = vmatpush.bf16.msrb.mxu2 %v5649_v16 }
 0x1a9   :  { %v2938_v59 = vpop.f32.mrf.mxu2 }
 0x1aa   :  { %3436 = vmatpush.bf16.msrb.mxu0 %v5632_v9  ;;  %v2939_v34 = vadd.f32 %v2938_v59, %v2926_v27  ;;  %3474 = vmatpush.bf16.msrb.mxu3 %v5657_v24 }
 0x1ab   :  { %3449 = vmatpush.bf16.msrb.mxu1 %v5640_v10  ;;  %v2951_v42 = vpop.f32.mrf.mxu3 }
 0x1ac   :  { %3462 = vmatpush.bf16.msrb.mxu2 %v5648_v6  ;;  %v2952_v38 = vadd.f32 %v2951_v42, %v2939_v34 }
 0x1ae   :  { %3437 = vmatpush.bf16.msrb.mxu0 %v5631_v13  ;;  %3475 = vmatpush.bf16.msrb.mxu3 %v5656_v40 }
 0x1af   :  { %3450 = vmatpush.bf16.msrb.mxu1 %v5639_v14 }
 0x1b0   :  { %3463 = vmatpush.bf16.msrb.mxu2 %v5647_v41 }
 0x1b1   :  { %v2940_v2 = vpop.f32.mrf.mxu2 }
 0x1b2   :  { %3438 = vmatpush.bf16.msrb.mxu0 %v5630_v60  ;;  %v2964_v28 = vpop.f32.mrf.mxu0  ;;  %3476 = vmatpush.bf16.msrb.mxu3 %v5655_v0 }
 0x1b3   :  { %3451 = vmatpush.bf16.msrb.mxu1 %v5638_v17  ;;  %v2977_v32 = vpop.f32.mrf.mxu1  ;;  %v2953_v25 = vpop.f32.mrf.mxu3  ;;  %v2965_v35 = vadd.f32 %v2964_v28, %v2952_v38  ;;  %v5662_v28 = vld [vmem:[%s8351_s4] ss:$0 sm:$0xff] }
 0x1b4   :  { %3464 = vmatpush.bf16.msrb.mxu2 %v5646_v23 }
 0x1b5   :  { %3439 = vmatmul.bf16.vlgmr.msrb.gmra.mxu0 %v3167_v48  ;;  %v2978_v21 = vadd.f32 %v2977_v32, %v2965_v35 }
 0x1b6   :  { %3452 = vmatmul.bf16.vlgmr.msrb.gmra.mxu1 %v3168_v26  ;;  %3477 = vmatpush.bf16.msrb.mxu3 %v5654_v7 }
 0x1ba   :  { %v2966_v36 = vpop.f32.mrf.mxu0 }
 0x1bb   :  { %v2979_v37 = vpop.f32.mrf.mxu1  ;;  %v2990_v4 = vpop.f32.mrf.mxu2 }
 0x1bc   :  { %v2991_v20 = vadd.f32 %v2990_v4, %v2978_v21 }
 0x1be   :  { %v3165_v39 = vmax.f32 %v2991_v20, 0.0 }
 0x1c0   :  { %v3169_v43 = vpack.c.bf16 %v3165_v39, %v3165_v39 }
 0x1c2   :  { %3465 = vmatmul.bf16.vlgmr.msrb.gmra.mxu2 %v3169_v43 }
 0x1c3   :  { %v2992_v45 = vpop.f32.mrf.mxu2 }
 0x1cb   :  { %v3003_v46 = vpop.f32.mrf.mxu3 }
 0x1cc   :  { %v3004_v62 = vadd.f32 %v3003_v46, %v433_v33 }
 0x1d2   :  { %v3016_v47 = vpop.f32.mrf.mxu0 }
 0x1d3   :  { %v3005_v50 = vpop.f32.mrf.mxu3  ;;  %v3017_v11 = vadd.f32 %v3016_v47, %v3004_v62 }
 0x1d5   :  { %v3029_v49 = vpop.f32.mrf.mxu1 }
 0x1d6   :  { %v3030_v3 = vadd.f32 %v3029_v49, %v3017_v11 }
 0x1d9   :  { %v3042_v52 = vpop.f32.mrf.mxu2 }
 0x1da   :  { %v3018_v54 = vpop.f32.mrf.mxu0  ;;  %v3043_v8 = vadd.f32 %v3042_v52, %v3030_v3 }
 0x1dd   :  { %v3031_v56 = vpop.f32.mrf.mxu1 }
 0x1e1   :  { %v3044_v57 = vpop.f32.mrf.mxu2 }
 0x1eb   :  { %v3055_v29 = vpop.f32.mrf.mxu3 }
 0x1ec   :  { %v3056_v9 = vadd.f32 %v3055_v29, %v3043_v8 }
 0x1f2   :  { %v3068_v61 = vpop.f32.mrf.mxu0 }
 0x1f3   :  { %v3057_v63 = vpop.f32.mrf.mxu3  ;;  %v3069_v10 = vadd.f32 %v3068_v61, %v3056_v9 }
 0x1f5   :  { %v3081_v31 = vpop.f32.mrf.mxu1 }
 0x1f6   :  { %v3082_v6 = vadd.f32 %v3081_v31, %v3069_v10 }
 0x1f9   :  { %v3094_v55 = vpop.f32.mrf.mxu2 }
 0x1fa   :  { %v3070_v1 = vpop.f32.mrf.mxu0  ;;  %v3095_v13 = vadd.f32 %v3094_v55, %v3082_v6 }
 0x1fd   :  { %v3083_v5 = vpop.f32.mrf.mxu1 }
 0x201   :  { %v3096_v16 = vpop.f32.mrf.mxu2 }
 0x20b   :  { %v3107_v12 = vpop.f32.mrf.mxu3 }
 0x20c   :  { %v3108_v14 = vadd.f32 %v3107_v12, %v3095_v13 }
 0x212   :  { %v3120_v15 = vpop.f32.mrf.mxu0 }
 0x213   :  { %v3133_v41 = vpop.f32.mrf.mxu1  ;;  %v3121_v60 = vadd.f32 %v3120_v15, %v3108_v14  ;;  %v3109_v17 = vpop.f32.mrf.mxu3 }
 0x215   :  { %v3134_v18 = vadd.f32 %v3133_v41, %v3121_v60 }
 0x21a   :  { %v3146_v19 = vpop.f32.mrf.mxu2  ;;  %v3122_v23 = vpop.f32.mrf.mxu0 }
 0x21b   :  { %v3147_v22 = vadd.f32 %v3146_v19, %v3134_v18  ;;  %v3135_v48 = vpop.f32.mrf.mxu1  ;;  %v3159_v26 = vpop.f32.mrf.mxu3 }
 0x21d   :  { %v3160_v59 = vadd.f32 %v3159_v26, %v3147_v22 }
 0x21f   :  { %v3166_v44 = vmax.f32 %v3160_v59, 0.0 }
 0x221   :  { %v3170_v42 = vpack.c.bf16 %v3166_v44, %v3166_v44 }
 0x222   :  { %v3148_v27 = vpop.f32.mrf.mxu2 }
 0x223   :  { %3478 = vmatmul.bf16.vlgmr.msrb.gmra.mxu3 %v3170_v42  ;;  %v3161_v34 = vpop.f32.mrf.mxu3 }
 0x232   :  { %v3440_v2 = vpop.f32.mrf.mxu0 }
 0x233   :  { %v3453_v32 = vpop.f32.mrf.mxu1  ;;  %v3441_v25 = vadd.f32 %v5662_v28, %v3440_v2 }
 0x235   :  { %v3454_v38 = vadd.f32 %v3453_v32, %v3441_v25 }
 0x23a   :  { %v3442_v35 = vpop.f32.mrf.mxu0 }
 0x23b   :  { %v3455_v36 = vpop.f32.mrf.mxu1 }
 0x245   :  { %v3466_v21 = vpop.f32.mrf.mxu2 }
 0x246   :  { %v3467_v37 = vadd.f32 %v3466_v21, %v3454_v38 }
 0x24d   :  { %v3468_v4 = vpop.f32.mrf.mxu2 }
 0x2a6   :  { %v3479_v20 = vpop.f32.mrf.mxu3 }
 0x2a7   :  { %v3480_v39 = vadd.f32 %v3479_v20, %v3467_v37 }
 0x2a9   :  { %3483 = vmax.xlane.f32.xlu0 %v3480_v39 }
 0x2ae   :  { %v3481_v43 = vpop.f32.mrf.mxu3 }
 0x31c   :  { %v3484_v45 = vpop.xlane.xlu0 %3483 }
 0x31d   :  { %v3485_v46 = vsub.f32 %v3480_v39, %v3484_v45 }
 0x31f   :  { %v3486_v47 = vmul.f32 1.442695, %v3485_v46 }
 0x321   :  { %5663 = vpow2.f32 %v3486_v47 }
 0x327   :  { %v5664_v49 = vpop.eup %5663 }
 0x328   :  { %3488 = vadd.xlane.f32.xlu0 %v5664_v49 }
 0x39b   :  { %v3489_v50 = vpop.xlane.xlu0 %3488 }
 0x39c   :  { %5665 = vlog2.f32 %v3489_v50 }
 0x3a2   :  { %v5666_v51 = vpop.eup %5665 }
 0x3a3   :  { %v3491_v52 = vmul.f32 0.6931472, %v5666_v51 }
 0x3a5   :  { %v3492_v53 = vsub.f32 %v3485_v46, %v3491_v52 }
 0x3a7   :  { %3493 = vst [vmem:[%s8352_s5] sm:$0xff] %v3492_v53 }

// kernel: cnn_forward.2
= control target key start
LH: loop header
LB: loop body
LE: loop exit
PB: predicated region body
PF: predicated region fallthrough
CT: control target
= control target key end

     0   :  { %s11648_s24 = smov 0   ;;  %s17954_s0 = inlined_call_operand.vmem [shape: f32[2,8,1152], index: 0, kind: input, shape index: {}]   ;;  %s17955_s1 = inlined_call_operand.vmem [shape: f32[32,200], index: 1, kind: input, shape index: {}]   ;;  %s17956_s2 = inlined_call_operand.vmem [shape: f32[32,1], index: 2, kind: input, shape index: {}]   ;;  %s17957_s3 = inlined_call_operand.vmem [shape: bf16[64,800], index: 3, kind: input, shape index: {}]   ;;  %s17958_s4 = inlined_call_operand.vmem [shape: f32[64,1], index: 4, kind: input, shape index: {}]   ;;  %s17959_s5 = inlined_call_operand.vmem [shape: bf16[4,896,256], index: 5, kind: input, shape index: {}]   ;;  %s17960_s6 = inlined_call_operand.vmem [shape: bf16[4,160,128], index: 6, kind: input, shape index: {}]   ;;  %s17961_s7 = inlined_call_operand.vmem [shape: bf16[2,64,128], index: 7, kind: output, shape index: {}]  }
   0x1 LB: > { %s7462_s25 = sadd.s32 4294967295, %s11577_s24   ;;  %p7466_p0 = scmp.ge.s32.totalorder %s11577_s24, 1  ;;  %s11577_s24 = sphi %s11648_s24, %s17_s24  }
   0x2   : > { %p237_p1 = scmp.lt.s32.totalorder %s11577_s24, 3 }
   0x4   : > { %p238_p2 = pnand %p7466_p0, %p237_p1 }
   0x6   : > { %241 = sbr.rel (%p238_p2) target bundleno = 2107 (0x83b), region = 48 }
   0xb   : > { %p269_p3 = scmp.lt.s32.totalorder %s7462_s25, 1  ;;  %s11579_s30 = smov 95   ;;  %vm520_vm0 = vcmask 777216   ;;  %vm18032_vm1 = vcmask 793600   ;;  %vm551_vm2 = vcmask 769024   ;;  %vm582_vm3 = vcmask 760832  }
   0xc   : > { %s11580_s8 = smov 94   ;;  %s11581_s9 = smov 93   ;;  %vm489_vm4 = vcmask 785408   ;;  %vm427_vm5 = vcmask 1022976   ;;  %vm396_vm6 = vcmask 1031168   ;;  %vm18010_vm7 = vcmask 1039360  }
   0xd   : > { %s18358_s25 = smov (!%p269_p3, %s7462_s25), 1  ;;  %s11582_s10 = smov 97   ;;  %vm799_vm8 = vcmask 261120   ;;  %vm768_vm9 = vcmask 490496   ;;  %vm737_vm10 = vcmask 498688   ;;  %vm706_vm11 = vcmask 506880  }
   0xe   : > { %s10534_s26 = smul.u32 72, %s18358_s25  ;;  %s11583_s11 = smov 96   ;;  %vm675_vm12 = vcmask 515072   ;;  %vm18020_vm13 = vcmask 523264   ;;  %vm18021_vm14 = vcmask 752640   ;;  %vm992_vm15 = vcmask 252928  }
   0xf   : > { %s11584_s12 = smov 125   ;;  %s11585_s13 = smov 126  }
  0x10   : > { %s11662_s29 = scalar_lea.vmem %s17954_s0, %s10534_s26  ;;  %s11586_s14 = smov 127  }
  0x11   : > { %v11665_v0 = vld [vmem:[%s11662_s29 + $0x8] sm:$0xff]  ;;  %v11668_v1 = vld [vmem:[%s11662_s29 + $0x10] sm:$0xff]  ;;  %v11681_v3 = vld [vmem:[%s11662_s29 + $0x18] sm:$0xff]  ;;  %s11587_s15 = smov 32   ;;  %s11588_s16 = smov 60  }
  0x12   : > { %v11672_v2 = vpack.i.bf16 %v11668_v1, %v11665_v0  ;;  %v11684_v4 = vld [vmem:[%s11662_s29 + $0x20] sm:$0xff]  ;;  %v11711_v8 = vld [vmem:[%s11662_s29 + $0x28] sm:$0xff]  ;;  %s11589_s17 = smov 63   ;;  %s11590_s18 = smov 61   ;;  %v11739_v11 = vld [vmem:[%s11662_s29 + $0x30] sm:$0xff] }
  0x13   : > { %v10597_v5 = vpack.i.bf16 %v11684_v4, %v11681_v3  ;;  %v11697_v6 = vld [vmem:[%s11662_s29] sm:$0xff]  ;;  %v11715_v9 = vpack.i.bf16 %v11711_v8, %v11684_v4  ;;  %v11743_v12 = vpack.i.bf16 %v11739_v11, %v11711_v8  ;;  %s11591_s19 = smov 62   ;;  %s11592_s20 = smov 64  }
  0x14   : > { %10593 = vrot.lane.b32.xlu2 %v11672_v2, %s11579_s30  ;;  %10583 = vrot.lane.b32.xlu1 %v11672_v2, %s11580_s8  ;;  %v10627_v7 = vpack.i.bf16 %v11697_v6, %v11681_v3  ;;  %v11724_v10 = vpack.i.bf16 %v11681_v3, %v11697_v6  ;;  %s11593_s21 = smov 92   ;;  %s11594_s22 = smov 31  }
  0x15   : > { %10573 = vrot.lane.b32.xlu0 %v11672_v2, %s11581_s9  ;;  %s11595_s23 = smov 124  }
  0x1c   : > { %10598 = vrot.lane.b32.xlu2 %v10597_v5, %s11579_s30  ;;  %10588 = vrot.lane.b32.xlu1 %v10597_v5, %s11580_s8 }
  0x1d   : > { %10578 = vrot.lane.b32.xlu0 %v10597_v5, %s11581_s9 }
  0x24   : > { %10613 = vrot.lane.b32.xlu2 %v11672_v2, %s11582_s10  ;;  %10608 = vrot.lane.b32.xlu1 %v10597_v5, %s11583_s11 }
  0x25   : > { %10603 = vrot.lane.b32.xlu0 %v11672_v2, %s11583_s11 }
  0x2c   : > { %10623 = vrot.lane.b32.xlu1 %v11672_v2, %s11584_s12  ;;  %10628 = vrot.lane.b32.xlu2 %v10627_v7, %s11584_s12 }
  0x2d   : > { %10618 = vrot.lane.b32.xlu0 %v10597_v5, %s11582_s10 }
  0x34   : > { %10638 = vrot.lane.b32.xlu1 %v10627_v7, %s11585_s13  ;;  %10643 = vrot.lane.b32.xlu2 %v11672_v2, %s11586_s14 }
  0x35   : > { %10633 = vrot.lane.b32.xlu0 %v11672_v2, %s11585_s13 }
  0x3c   : > { %10658 = vrot.lane.b32.xlu1 %v11715_v9, %s11585_s13  ;;  %10653 = vrot.lane.b32.xlu2 %v11715_v9, %s11584_s12 }
  0x3d   : > { %10648 = vrot.lane.b32.xlu0 %v10627_v7, %s11586_s14 }
  0x44   : > { %10668 = vrot.lane.b32.xlu1 %v11672_v2, %s11587_s15  ;;  %10693 = vrot.lane.b32.xlu2 %v11724_v10, %s11587_s15 }
  0x45   : > { %10663 = vrot.lane.b32.xlu0 %v11715_v9, %s11586_s14 }
  0x4c   : > { %10673 = vrot.lane.b32.xlu1 %v11672_v2, %s11588_s16  ;;  %10703 = vrot.lane.b32.xlu2 %v11672_v2, %s11589_s17 }
  0x4d   : > { %10678 = vrot.lane.b32.xlu0 %v11672_v2, %s11590_s18 }
  0x54   : > { %10688 = vrot.lane.b32.xlu1 %v11672_v2, %s11591_s19  ;;  %10713 = vrot.lane.b32.xlu2 %v11743_v12, %s11579_s30 }
  0x55   : > { %10683 = vrot.lane.b32.xlu0 %v11743_v12, %s11581_s9 }
  0x5c   : > { %10698 = vrot.lane.b32.xlu1 %v11743_v12, %s11580_s8  ;;  %10728 = vrot.lane.b32.xlu2 %v11743_v12, %s11583_s11 }
  0x5d   : > { %10708 = vrot.lane.b32.xlu0 %v11724_v10, %s11588_s16 }
  0x64   : > { %10723 = vrot.lane.b32.xlu1 %v11724_v10, %s11590_s18 }
  0x65   : > { %10718 = vrot.lane.b32.xlu0 %v11672_v2, %s11592_s20 }
  0x6c   : > { %10738 = vrot.lane.b32.xlu1 %v11724_v10, %s11591_s19 }
  0x6d   : > { %10733 = vrot.lane.b32.xlu0 %v11672_v2, %s11593_s21 }
  0x6e   : > { %v10594_v13 = vpop.permute.xlu2 %10593 }
  0x6f   : > { %v10596_v17 = vunpack.i.h.bf16 %v10594_v13  ;;  %v11767_v18 = vunpack.i.l.bf16 %v10594_v13 }
  0x71   : > { %v11774_v21 = vsel %vm520_vm0, %v11767_v18, %v10596_v17 }
  0x76   : > { %v11765_v14 = vpop.permute.xlu2 %10598 }
  0x77   : > { %v10600_v19 = vunpack.i.l.bf16 %v11765_v14 }
  0x79   : > { %v11779_v22 = vsel %vm520_vm0, %v10596_v17, %v10600_v19 }
  0x7a   : > { %v10757_v25 = vpack.i.bf16 %v11779_v22, %v11774_v21 }
  0x7e   : > { %v10614_v15 = vpop.permute.xlu2 %10613 }
  0x7f   : > { %v10615_v16 = vunpack.i.l.bf16 %v10614_v15  ;;  %v10616_v26 = vunpack.i.h.bf16 %v10614_v15 }
  0x81   : > { %v10742_v20 = vpack.i.bf16 %v11665_v0, %v10615_v16  ;;  %v829_v32 = vsel %vm18032_vm1, %v10615_v16, %v10616_v26 }
  0x83   : > { %10743 = vrot.lane.b32.xlu2 %v10742_v20, %s11594_s22 }
  0x86   : > { %v10584_v23 = vpop.permute.xlu1 %10583  ;;  %v11835_v51 = vpop.permute.xlu2 %10628 }
  0x87   : > { %v10574_v24 = vpop.permute.xlu0 %10573  ;;  %v10586_v27 = vunpack.i.h.bf16 %v10584_v23  ;;  %v11783_v28 = vunpack.i.l.bf16 %v10584_v23  ;;  %v17965_v52 = vunpack.i.l.bf16 %v11835_v51 }
  0x88   : > { %v11786_v29 = vunpack.i.l.bf16 %v10574_v24  ;;  %v10576_v30 = vunpack.i.h.bf16 %v10574_v24 }
  0x89   : > { %v11796_v35 = vsel %vm551_vm2, %v11783_v28, %v10586_v27 }
  0x8a   : > { %v10767_v37 = vpack.i.bf16 %v829_v32, %v11786_v29  ;;  %v11809_v40 = vsel %vm582_vm3, %v11786_v29, %v10576_v30 }
  0x8b   : > { %10758 = vrot.lane.b32.xlu2 %v10757_v25, %s11594_s22  ;;  %v10631_v25 = vunpack.i.h.bf16 %v11835_v51 }
  0x8e   : > { %v11788_v31 = vpop.permute.xlu1 %10588  ;;  %v10644_v63 = vpop.permute.xlu2 %10643 }
  0x8f   : > { %v10590_v33 = vunpack.i.l.bf16 %v11788_v31  ;;  %v11792_v34 = vpop.permute.xlu0 %10578 }
  0x90   : > { %v10580_v36 = vunpack.i.l.bf16 %v11792_v34 }
  0x91   : > { %v11803_v38 = vsel %vm551_vm2, %v10586_v27, %v10590_v33  ;;  %v10645_v27 = vunpack.i.l.bf16 %v10644_v63 }
  0x92   : > { %v10752_v39 = vpack.i.bf16 %v11803_v38, %v11796_v35  ;;  %v11812_v41 = vsel %vm582_vm3, %v10576_v30, %v10580_v36  ;;  %v17963_v30 = vunpack.i.h.bf16 %v11792_v34 }
  0x93   : > { %10768 = vrot.lane.b32.xlu2 %v10767_v37, %s11594_s22  ;;  %v10747_v42 = vpack.i.bf16 %v11812_v41, %v11809_v40 }
  0x94   : > { %10753 = vrot.lane.b32.xlu0 %v10752_v39, %s11594_s22 }
  0x95   : > { %10748 = vrot.lane.b32.xlu1 %v10747_v42, %s11594_s22 }
  0x96   : > { %v11819_v43 = vpop.permute.xlu1 %10608  ;;  %v11881_v39 = vpop.permute.xlu2 %10653 }
  0x97   : > { %v17973_v44 = vunpack.i.l.bf16 %v11819_v43  ;;  %v10604_v45 = vpop.permute.xlu0 %10603 }
  0x98   : > { %v10606_v46 = vunpack.i.h.bf16 %v10604_v45  ;;  %v11822_v47 = vunpack.i.l.bf16 %v10604_v45 }
  0x9a   : > { %v11826_v48 = vsel %vm489_vm4, %v11822_v47, %v10606_v46  ;;  %v11831_v49 = vsel %vm489_vm4, %v10606_v46, %v17973_v44 }
  0x9b   : > { %v10762_v50 = vpack.i.bf16 %v11831_v49, %v11826_v48 }
  0x9d   : > { %10763 = vrot.lane.b32.xlu1 %v10762_v50, %s11594_s22  ;;  %v11893_v50 = vsel %vm582_vm3, %v10580_v36, %v17963_v30 }
  0x9e   : > { %v10624_v53 = vpop.permute.xlu1 %10623  ;;  %18091 = vst [vmem:[#allocation3_spill] sm:$0xff] %v11893_v50 }
  0x9f   : > { %v10626_v54 = vunpack.i.h.bf16 %v10624_v53  ;;  %v10625_v55 = vunpack.i.l.bf16 %v10624_v53  ;;  %v11839_v56 = vpop.permute.xlu0 %10618 }
  0xa0   : > { %v17970_v57 = vunpack.i.l.bf16 %v11839_v56 }
  0xa1   : > { %v11843_v58 = vsel %vm427_vm5, %v10625_v55, %v10626_v54  ;;  %v11848_v59 = vsel %vm427_vm5, %v10626_v54, %v17965_v52  ;;  %v11888_v46 = vsel %vm427_vm5, %v10631_v25, %v10625_v55  ;;  %v10817_v55 = vpack.i.bf16 %v11893_v50, %v11697_v6 }
  0xa2   : > { %v830_v60 = vsel %vm18032_vm1, %v10616_v26, %v17970_v57  ;;  %v10777_v61 = vpack.i.bf16 %v11848_v59, %v11843_v58  ;;  %v10646_v26 = vunpack.i.h.bf16 %v10644_v63 }
  0xa3   : > { %v10772_v62 = vpack.i.bf16 %v11783_v28, %v830_v60  ;;  %v10797_v60 = vpack.i.bf16 %v11888_v46, %v11668_v1 }
  0xa4   : > { %10778 = vrot.lane.b32.xlu2 %v10777_v61, %s11594_s22  ;;  %v11885_v45 = vsel %vm18010_vm7, %v10645_v27, %v10646_v26 }
  0xa5   : > { %10773 = vrot.lane.b32.xlu0 %v10772_v62, %s11594_s22 }
  0xa6   : > { %v11858_v5 = vpop.permute.xlu1 %10638 }
  0xa7   : > { %v10634_v7 = vpop.permute.xlu0 %10633  ;;  %v17968_v13 = vunpack.i.l.bf16 %v11858_v5  ;;  %v10641_v36 = vunpack.i.h.bf16 %v11858_v5 }
  0xa8   : > { %v10636_v15 = vunpack.i.h.bf16 %v10634_v7  ;;  %v10635_v16 = vunpack.i.l.bf16 %v10634_v7 }
  0xaa   : > { %v11862_v17 = vsel %vm396_vm6, %v10635_v16, %v10636_v15  ;;  %v11867_v20 = vsel %vm396_vm6, %v10636_v15, %v17968_v13  ;;  %v11926_v25 = vsel %vm396_vm6, %v10641_v36, %v10635_v16  ;;  %v17976_v13 = vunpack.i.h.bf16 %v11788_v31 }
  0xab   : > { %18090 = vst [vmem:[#allocation2_spill] sm:$0xff] %v11867_v20  ;;  %v10782_v23 = vpack.i.bf16 %v11862_v17, %v11767_v18  ;;  %v10787_v24 = vpack.i.bf16 %v11822_v47, %v11867_v20  ;;  %v18104_v20 = vunpack.i.l.bf16 %v11835_v51 }
  0xac   : > { %18094 = vst [vmem:[#allocation6_spill] sm:$0xff] %v11926_v25 }
  0xad   : > { %10783 = vrot.lane.b32.xlu0 %v10782_v23, %s11594_s22  ;;  %10788 = vrot.lane.b32.xlu2 %v10787_v24, %s11594_s22  ;;  %v11923_v24 = vpop.permute.xlu2 %10693 }
  0xae   : > { %v11877_v32 = vpop.permute.xlu1 %10658 }
  0xaf   : > { %v11879_v37 = vpop.permute.xlu0 %10648 }
  0xb0   : > { %v17964_v42 = vunpack.i.l.bf16 %v11879_v37  ;;  %v10651_v61 = vunpack.i.h.bf16 %v11879_v37  ;;  %v18106_v51 = vunpack.i.l.bf16 %v11879_v37 }
  0xb2   : > { %v11898_v53 = vsel %vm18010_vm7, %v10646_v26, %v17964_v42  ;;  %v11918_v15 = vsel %vm18010_vm7, %v10651_v61, %v10645_v27 }
  0xb3   : > { %18092 = vst [vmem:[#allocation4_spill] sm:$0xff] %v11898_v53  ;;  %v10792_v54 = vpack.i.bf16 %v11898_v53, %v11885_v45  ;;  %v10807_v26 = vpack.i.bf16 %v11918_v15, %v11926_v25 }
  0xb4   : > { %18093 = vst [vmem:[#allocation5_spill] sm:$0xff] %v11918_v15 }
  0xb5   : > { %10793 = vrot.lane.b32.xlu1 %v10792_v54, %s11594_s22  ;;  %10798 = vrot.lane.b32.xlu0 %v10797_v60, %s11594_s22  ;;  %v10695_v54 = vunpack.i.l.bf16 %v11923_v24  ;;  %v11951_v30 = vpop.permute.xlu2 %10703 }
  0xb6   : > { %10818 = vrot.lane.b32.xlu2 %v10817_v55, %s11594_s22  ;;  %v11911_v62 = vpop.permute.xlu1 %10668  ;;  %v17971_v42 = vunpack.i.h.bf16 %v11951_v30  ;;  %v17972_v52 = vunpack.i.l.bf16 %v11951_v30 }
  0xb7   : > { %v11913_v63 = vpop.permute.xlu0 %10663  ;;  %v17962_v1 = vunpack.i.h.bf16 %v11911_v62  ;;  %v10670_v7 = vunpack.i.l.bf16 %v11911_v62 }
  0xb9   : > { %v801_v23 = vsel %vm799_vm8, %v10670_v7, %v17962_v1 }
  0xba   : > { %1190 = vmatpush.msra.mxu2 %v801_v23  ;;  %v800_v23 = vsel %vm799_vm8, %v10695_v54, %v10670_v7  ;;  %v11964_v54 = vld [vmem:[%s11662_s29 + $0x38] sm:$0xff] }
  0xbb   : > { %1132 = vmatpush.msra.mxu0 %v800_v23 }
  0xbd   : > { %10808 = vrot.lane.b32.xlu1 %v10807_v26, %s11594_s22  ;;  %10803 = vrot.lane.b32.xlu0 %v11724_v10, %s11589_s17  ;;  %v11989_v57 = vpop.permute.xlu2 %10713 }
  0xbe   : > { %10823 = vrot.lane.b32.xlu2 %v11724_v10, %s11592_s20  ;;  %v11936_v27 = vpop.permute.xlu1 %10673  ;;  %18095 = vst [vmem:[#allocation7_spill] sm:$0xff] %v11989_v57 }
  0xbf   : > { %v11938_v60 = vpop.permute.xlu0 %10678  ;;  %v17967_v16 = vunpack.i.h.bf16 %v11936_v27  ;;  %v10675_v61 = vunpack.i.l.bf16 %v11936_v27 }
  0xc0   : > { %v17966_v55 = vunpack.i.h.bf16 %v11938_v60  ;;  %v10680_v36 = vunpack.i.l.bf16 %v11938_v60 }
  0xc1   : > { %v770_v26 = vsel %vm768_vm9, %v10675_v61, %v17967_v16  ;;  %v17975_v16 = vunpack.i.h.bf16 %v11765_v14 }
  0xc2   : > { %1191 = vmatpush.msra.mxu2 %v770_v26  ;;  %v739_v1 = vsel %vm737_vm10, %v10680_v36, %v17966_v55 }
  0xc4   : > { %1192 = vmatpush.msra.mxu2 %v739_v1 }
  0xc5   : > { %10813 = vrot.lane.b32.xlu1 %v11743_v12, %s11582_s10  ;;  %10828 = vrot.lane.b32.xlu0 %v11724_v10, %s11593_s21  ;;  %v10832_v12 = vpack.i.bf16 %v11964_v54, %v11697_v6  ;;  %v12039_v53 = vpop.permute.xlu2 %10728 }
  0xc6   : > { %10838 = vrot.lane.b32.xlu2 %v11672_v2, %s11595_s23  ;;  %v11961_v7 = vpop.permute.xlu1 %10688  ;;  %v677_v2 = vsel %vm675_vm12, %v17972_v52, %v17971_v42  ;;  %v12008_v52 = vpack.i.bf16 %v11964_v54, %v11739_v11 }
  0xc7   : > { %v11966_v1 = vpop.permute.xlu0 %10683  ;;  %v17969_v23 = vunpack.i.h.bf16 %v11961_v7  ;;  %v10690_v26 = vunpack.i.l.bf16 %v11961_v7 }
  0xc9   : > { %v708_v55 = vsel %vm706_vm11, %v10690_v26, %v17969_v23 }
  0xca   : > { %1193 = vmatpush.msra.mxu2 %v708_v55  ;;  %v11997_v55 = vsel %vm520_vm0, %v10600_v19, %v17975_v16  ;;  %v17981_v19 = vunpack.i.h.bf16 %v11819_v43 }
  0xcb   : > { %18096 = vst [vmem:[#allocation8_spill] sm:$0xff] %v11997_v55 }
  0xcc   : > { %1194 = vmatpush.msra.mxu2 %v677_v2  ;;  %v12004_v2 = vsel %vm551_vm2, %v10590_v33, %v17976_v13  ;;  %v18098_v13 = vunpack.i.l.bf16 %v11819_v43 }
  0xcd   : > { %10833 = vrot.lane.b32.xlu1 %v10832_v12, %s11581_s9  ;;  %10843 = vrot.lane.b32.xlu0 %v10832_v12, %s11580_s8  ;;  %18097 = vst [vmem:[#allocation9_spill] sm:$0xff] %v12004_v2  ;;  %v10857_v50 = vpack.i.bf16 %v11997_v55, %v12004_v2 }
  0xce   : > { %10853 = vrot.lane.b32.xlu2 %v10832_v12, %s11579_s30  ;;  %v11985_v6 = vpop.permute.xlu1 %10698  ;;  %v12031_v16 = vsel %vm489_vm4, %v18098_v13, %v17981_v19  ;;  %v17991_v19 = vunpack.i.l.bf16 %v11877_v32 }
  0xcf   : > { %v11987_v23 = vpop.permute.xlu0 %10708  ;;  %18099 = vst [vmem:[#allocation10_spill] sm:$0xff] %v12031_v16  ;;  %v10700_v37 = vunpack.i.l.bf16 %v11985_v6 }
  0xd0   : > { %v10710_v42 = vunpack.i.l.bf16 %v11987_v23 }
  0xd2   : > { %v769_v44 = vsel %vm768_vm9, %v10710_v42, %v10675_v61 }
  0xd3   : > { %1133 = vmatpush.msra.mxu0 %v769_v44 }
  0xd5   : > { %10848 = vrot.lane.b32.xlu1 %v12008_v52, %s11584_s12  ;;  %10858 = vrot.lane.b32.xlu0 %v10857_v50, %s11594_s22  ;;  %v18100_v50 = vunpack.i.h.bf16 %v11839_v56 }
  0xd6   : > { %10868 = vrot.lane.b32.xlu2 %v10832_v12, %s11583_s11  ;;  %v12019_v33 = vpop.permute.xlu1 %10723  ;;  %v18101_v12 = vunpack.i.l.bf16 %v11839_v56 }
  0xd7   : > { %v12021_v11 = vpop.permute.xlu0 %10718  ;;  %v10725_v42 = vunpack.i.l.bf16 %v12019_v33 }
  0xd8   : > { %v17982_v44 = vunpack.i.h.bf16 %v12021_v11  ;;  %v17983_v61 = vunpack.i.l.bf16 %v12021_v11  ;;  %v831_v55 = vsel %vm18032_vm1, %v18101_v12, %v18100_v50  ;;  %v18102_v12 = vunpack.i.l.bf16 %v11858_v5 }
  0xd9   : > { %v738_v2 = vsel %vm737_vm10, %v10725_v42, %v10680_v36  ;;  %v10882_v13 = vpack.i.bf16 %v831_v55, %v12031_v16  ;;  %v10655_v42 = vunpack.i.l.bf16 %v11881_v39  ;;  %v17990_v5 = vunpack.i.l.bf16 %v11913_v63 }
  0xda   : > { %v646_v15 = vsel %vm18020_vm13, %v17983_v61, %v17982_v44  ;;  %1134 = vmatpush.msra.mxu0 %v738_v2  ;;  %v12066_v44 = vsel %vm396_vm6, %v18102_v12, %v17991_v19 }
  0xdb   : > { %1195 = vmatpush.msra.mxu2 %v646_v15  ;;  %18103 = vst [vmem:[#allocation11_spill] sm:$0xff] %v12066_v44  ;;  %v12079_v25 = vsel %vm427_vm5, %v18104_v20, %v10655_v42  ;;  %v12096_v20 = vsel %vm18010_vm7, %v18106_v51, %v17990_v5  ;;  %v10715_v51 = vunpack.i.l.bf16 %v11989_v57 }
  0xdc   : > { %18105 = vst [vmem:[#allocation12_spill] sm:$0xff] %v12079_v25 }
  0xdd   : > { %10863 = vrot.lane.b32.xlu1 %v12008_v52, %s11585_s13  ;;  %10873 = vrot.lane.b32.xlu0 %v12008_v52, %s11586_s14  ;;  %v12069_v61 = vpop.permute.xlu2 %10743  ;;  %18107 = vst [vmem:[#allocation13_spill] sm:$0xff] %v12096_v20 }
  0xde   : > { %10883 = vrot.lane.b32.xlu2 %v10882_v13, %s11594_s22  ;;  %v12053_v36 = vpop.permute.xlu1 %10738 }
  0xdf   : > { %v12056_v50 = vpop.permute.xlu0 %10733  ;;  %v10740_v15 = vunpack.i.l.bf16 %v12053_v36 }
  0xe0   : > { %v17987_v55 = vunpack.i.h.bf16 %v12056_v50  ;;  %v17989_v2 = vunpack.i.l.bf16 %v12056_v50 }
  0xe1   : > { %v707_v13 = vsel %vm706_vm11, %v10740_v15, %v10690_v26  ;;  %v10887_v26 = vpack.i.bf16 %v12066_v44, %v12079_v25  ;;  %v18110_v15 = vunpack.i.h.bf16 %v11792_v34  ;;  %v18112_v34 = vunpack.i.h.bf16 %v11819_v43 }
  0xe2   : > { %v615_v16 = vsel %vm18021_vm14, %v17989_v2, %v17987_v55  ;;  %1135 = vmatpush.msra.mxu0 %v707_v13  ;;  %v18002_v25 = vunpack.i.h.bf16 %v11989_v57 }
  0xe3   : > { %1196 = vmatpush.msra.mxu2 %v615_v16 }
  0xe5   : > { %1197 = vmatpush.msra.mxu2 %v11809_v40  ;;  %10878 = vrot.lane.b32.xlu1 %v11724_v10, %s11595_s23  ;;  %v10892_v10 = vpack.i.bf16 %v11681_v3, %v12096_v20  ;;  %v12102_v40 = vpop.permute.xlu2 %10758  ;;  %v17988_v3 = vunpack.i.l.bf16 %v11966_v1  ;;  %v18117_v20 = vunpack.i.h.bf16 %v11985_v6 }
  0xe6   : > { %10888 = vrot.lane.b32.xlu0 %v10887_v26, %s11594_s22  ;;  %10898 = vrot.lane.b32.xlu2 %v11715_v9, %s11587_s15  ;;  %v10730_v26 = vunpack.i.l.bf16 %v12039_v53  ;;  %v10760_v2 = vunpack.i.l.bf16 %v12102_v40 }
  0xe7   : > { %1198 = vmatpush.msra.mxu2 %v11796_v35  ;;  %v340_v35 = vld [vmem:[%s11662_s29 + $0x40] sm:$0xff]  ;;  %v12129_v12 = vsel %vm582_vm3, %v18110_v15, %v17988_v3  ;;  %v12179_v44 = vsel %vm551_vm2, %v10700_v37, %v18117_v20 }
  0xe8   : > { %18111 = vst [vmem:[#allocation15_spill] sm:$0xff] %v12129_v12 }
  0xe9   : > { %1199 = vmatpush.msra.mxu2 %v11774_v21  ;;  %18118 = vst [vmem:[#allocation19_spill] sm:$0xff] %v12179_v44 }
  0xeb   : > { %1200 = vmatpush.msra.mxu2 %v11826_v48  ;;  %v18108_v48 = vunpack.i.h.bf16 %v11788_v31 }
  0xed   : > { %10893 = vrot.lane.b32.xlu1 %v10892_v10, %s11594_s22  ;;  %v12113_v21 = vpop.permute.xlu2 %10768  ;;  %v12122_v16 = vsel %vm551_vm2, %v18108_v48, %v10700_v37  ;;  %v12144_v10 = vsel %vm489_vm4, %v18112_v34, %v10730_v26  ;;  %v18114_v48 = vunpack.i.h.bf16 %v11765_v14  ;;  %v18001_v37 = vunpack.i.h.bf16 %v11877_v32 }
  0xee   : > { %10903 = vrot.lane.b32.xlu0 %v11715_v9, %s11588_s16  ;;  %10913 = vrot.lane.b32.xlu2 %v11715_v9, %s11591_s19  ;;  %18109 = vst [vmem:[#allocation14_spill] sm:$0xff] %v12122_v16  ;;  %v10922_v13 = vpack.i.bf16 %v12122_v16, %v12129_v12  ;;  %v10770_v14 = vunpack.i.l.bf16 %v12113_v21 }
  0xef   : > { %18113 = vst [vmem:[#allocation16_spill] sm:$0xff] %v12144_v10  ;;  %v12149_v15 = vsel %vm520_vm0, %v18114_v48, %v10715_v51 }
  0xf0   : > { %18115 = vst [vmem:[#allocation17_spill] sm:$0xff] %v12149_v15  ;;  %v10937_v55 = vpack.i.bf16 %v12144_v10, %v12149_v15 }
  0xf5   : > { %10908 = vrot.lane.b32.xlu1 %v11715_v9, %s11590_s18 }
  0xf6   : > { %10918 = vrot.lane.b32.xlu0 %v11715_v9, %s11589_s17  ;;  %845 = vrot.lane.b32.xlu2 %v340_v35, %s11581_s9  ;;  %s11600_s9 = smov 114  }
  0xfd   : > { %826 = vrot.lane.b32.xlu1 %v11964_v54, %s11582_s10 }
  0xfe   : > { %10923 = vrot.lane.b32.xlu0 %v10922_v13, %s11594_s22  ;;  %842 = vrot.lane.b32.xlu2 %v340_v35, %s11580_s8  ;;  %v12138_v31 = vpop.permute.xlu2 %10778  ;;  %v17997_v13 = vunpack.i.h.bf16 %v11881_v39  ;;  %s11599_s8 = smov 99  }
 0x105   : > { %10928 = vrot.lane.b32.xlu1 %v11715_v9, %s11592_s20 }
 0x106   : > { %10933 = vrot.lane.b32.xlu0 %v11715_v9, %s11593_s21  ;;  %10938 = vrot.lane.b32.xlu2 %v10937_v55, %s11594_s22  ;;  %v12160_v43 = vpop.permute.xlu0 %10753  ;;  %v12174_v55 = vsel %vm427_vm5, %v10655_v42, %v17997_v13 }
 0x107   : > { %v12163_v34 = vpop.permute.xlu1 %10748  ;;  %v12165_v48 = vpop.permute.xlu2 %10788  ;;  %v10755_v5 = vunpack.i.l.bf16 %v12160_v43  ;;  %18116 = vst [vmem:[#allocation18_spill] sm:$0xff] %v12174_v55  ;;  %v18119_v42 = vunpack.i.h.bf16 %v12160_v43  ;;  %v10947_v20 = vpack.i.bf16 %v12179_v44, %v12174_v55 }
 0x108   : > { %v17999_v19 = vunpack.i.h.bf16 %v12163_v34  ;;  %v10750_v3 = vunpack.i.l.bf16 %v12163_v34 }
 0x109   : > { %v1043_v13 = vsel %vm992_vm15, %v10755_v5, %v18119_v42 }
 0x10a   : > { %v1049_v10 = vsel %vm992_vm15, %v10770_v14, %v10750_v3  ;;  %v1050_v15 = vsel %vm992_vm15, %v10750_v3, %v17999_v19  ;;  %v18003_v14 = vunpack.i.h.bf16 %v12039_v53  ;;  %v18120_v3 = vunpack.i.h.bf16 %v12102_v40 }
 0x10b   : > { %1168 = vmatpush.msra.mxu1 %v1049_v10  ;;  %1226 = vmatpush.msra.mxu3 %v1050_v15 }
 0x10c   : > { %v1036_v10 = vsel %vm992_vm15, %v10760_v2, %v18120_v3  ;;  %v18124_v3 = vunpack.i.h.bf16 %v11913_v63  ;;  %v12230_v44 = vsel %vm489_vm4, %v10730_v26, %v18003_v14  ;;  %v18012_v26 = vunpack.i.h.bf16 %v12138_v31 }
 0x10d   : > { %1227 = vmatpush.msra.mxu3 %v1043_v13  ;;  %839 = vrot.lane.b32.xlu1 %v340_v35, %s11579_s30  ;;  %v18121_v13 = vunpack.i.l.bf16 %v11877_v32  ;;  %18127 = vst [vmem:[#allocation23_spill] sm:$0xff] %v12230_v44  ;;  %v10780_v14 = vunpack.i.l.bf16 %v12138_v31  ;;  %s11598_s30 = smov 112  }
 0x10e   : > { %836 = vrot.lane.b32.xlu0 %v340_v35, %s11583_s11  ;;  %10948 = vrot.lane.b32.xlu2 %v10947_v20, %s11594_s22  ;;  %v12218_v20 = vsel %vm520_vm0, %v10715_v51, %v18002_v25 }
 0x10f   : > { %v12202_v15 = vpop.permute.xlu1 %10763  ;;  %1228 = vmatpush.msra.mxu3 %v1036_v10  ;;  %v12213_v35 = vsel %vm396_vm6, %v18121_v13, %v18001_v37  ;;  %18123 = vst [vmem:[#allocation21_spill] sm:$0xff] %v12218_v20  ;;  %v18125_v10 = vunpack.i.l.bf16 %v11913_v63 }
 0x110   : > { %v10765_v19 = vunpack.i.l.bf16 %v12202_v15  ;;  %v12206_v16 = vpop.permute.xlu2 %10818  ;;  %18122 = vst [vmem:[#allocation20_spill] sm:$0xff] %v12213_v35  ;;  %v18128_v13 = vunpack.i.h.bf16 %v12202_v15  ;;  %v10952_v51 = vpack.i.bf16 %v12218_v20, %v12213_v35 }
 0x111   : > { %v12225_v42 = vsel %vm18010_vm7, %v18125_v10, %v18124_v3  ;;  %v10771_v3 = vunpack.i.h.bf16 %v12113_v21  ;;  %v1015_v21 = vsel %vm992_vm15, %v10780_v14, %v18012_v26  ;;  %vm458_vm7 = vcmask 1014784  }
 0x112   : > { %18126 = vst [vmem:[#allocation22_spill] sm:$0xff] %v12225_v42  ;;  %v1029_v37 = vsel %vm992_vm15, %v10765_v19, %v18128_v13  ;;  %v10962_v25 = vpack.i.bf16 %v12230_v44, %v12225_v42  ;;  %v18014_v42 = vunpack.i.l.bf16 %v12165_v48 }
 0x113   : > { %1229 = vmatpush.msra.mxu3 %v1029_v37 }
 0x116   : > { %10953 = vrot.lane.b32.xlu0 %v10952_v51, %s11594_s22  ;;  %10963 = vrot.lane.b32.xlu2 %v10962_v25, %s11594_s22 }
 0x117   : > { %v12242_v10 = vpop.permute.xlu0 %10773 }
 0x118   : > { %v10776_v37 = vunpack.i.h.bf16 %v12242_v10  ;;  %v18011_v13 = vunpack.i.l.bf16 %v12242_v10  ;;  %v12248_v20 = vpop.permute.xlu2 %10823 }
 0x11a   : > { %v1042_v44 = vsel %vm992_vm15, %v10776_v37, %v10755_v5  ;;  %v1022_v25 = vsel %vm992_vm15, %v10771_v3, %v18011_v13 }
 0x11b   : > { %1169 = vmatpush.msra.mxu1 %v1042_v44  ;;  %1230 = vmatpush.msra.mxu3 %v1022_v25  ;;  %v10745_v44 = vunpack.i.l.bf16 %v12069_v61  ;;  %v10791_v25 = vunpack.i.h.bf16 %v12165_v48 }
 0x11d   : > { %1231 = vmatpush.msra.mxu3 %v1015_v21  ;;  %v1028_v26 = vsel %vm992_vm15, %v10791_v25, %v10765_v19  ;;  %v18016_v19 = vunpack.i.h.bf16 %v12206_v16  ;;  %v10825_v25 = vunpack.i.l.bf16 %v12248_v20 }
 0x11f   : > { %v10784_v51 = vpop.permute.xlu0 %10783 }
 0x120   : > { %v10786_v35 = vunpack.i.h.bf16 %v10784_v51  ;;  %v10785_v55 = vunpack.i.l.bf16 %v10784_v51  ;;  %v12258_v12 = vpop.permute.xlu2 %10838 }
 0x121   : > { %v18015_v5 = vunpack.i.h.bf16 %v12258_v12  ;;  %v10840_v37 = vunpack.i.l.bf16 %v12258_v12 }
 0x122   : > { %v1035_v13 = vsel %vm992_vm15, %v10785_v55, %v10760_v2  ;;  %v1008_v21 = vsel %vm992_vm15, %v10786_v35, %v18014_v42  ;;  %v1021_v2 = vsel %vm992_vm15, %v10745_v44, %v10771_v3 }
 0x123   : > { %1170 = vmatpush.msra.mxu1 %v1035_v13  ;;  %v460_v51 = vsel %vm458_vm7, %v10840_v37, %v18015_v5  ;;  %1232 = vmatpush.msra.mxu3 %v1008_v21 }
 0x124   : > { %1201 = vmatpush.msra.mxu2 %v460_v51 }
 0x125   : > { %1171 = vmatpush.msra.mxu1 %v1028_v26 }
 0x126   : > { %1202 = vmatpush.msra.mxu2 %v11843_v58  ;;  %v10746_v58 = vunpack.i.h.bf16 %v12069_v61  ;;  %v18129_v61 = vunpack.i.h.bf16 %v12163_v34 }
 0x127   : > { %v12276_v55 = vpop.permute.xlu1 %10793  ;;  %v12278_v57 = vpop.permute.xlu0 %10798  ;;  %1172 = vmatpush.msra.mxu1 %v1021_v2 }
 0x128   : > { %v18018_v13 = vunpack.i.h.bf16 %v12276_v55  ;;  %v10795_v42 = vunpack.i.l.bf16 %v12276_v55  ;;  %v10801_v5 = vunpack.i.h.bf16 %v12278_v57  ;;  %v18017_v21 = vunpack.i.l.bf16 %v12278_v57  ;;  %1203 = vmatpush.msra.mxu2 %v11862_v17  ;;  %v12287_v3 = vpop.permute.xlu2 %10853 }
 0x12a   : > { %1204 = vmatpush.msra.mxu2 %v11885_v45  ;;  %v1014_v26 = vsel %vm992_vm15, %v10801_v5, %v10780_v14  ;;  %v1001_v44 = vsel %vm992_vm15, %v10795_v42, %v18018_v13  ;;  %v994_v17 = vsel %vm992_vm15, %v10746_v58, %v18017_v21  ;;  %v1051_v45 = vsel %vm992_vm15, %v18129_v61, %v18016_v19 }
 0x12b   : > { %1173 = vmatpush.msra.mxu1 %v1014_v26  ;;  %1233 = vmatpush.msra.mxu3 %v1001_v44  ;;  %v10820_v44 = vunpack.i.l.bf16 %v12206_v16  ;;  %v18019_v61 = vunpack.i.h.bf16 %v11923_v24  ;;  %v18131_v19 = vunpack.i.l.bf16 %v12021_v11  ;;  %v10711_v13 = vunpack.i.h.bf16 %v11987_v23 }
 0x12c   : > { %1205 = vmatpush.msra.mxu2 %v11665_v0  ;;  %v18130_v0 = vunpack.i.l.bf16 %v11951_v30 }
 0x12d   : > { %1234 = vmatpush.msra.mxu3 %v994_v17 }
 0x12f   : > { %1284 = vmatpush.msrb.mxu3 %v1051_v45  ;;  %v10809_v14 = vpop.permute.xlu1 %10808  ;;  %v12303_v5 = vpop.permute.xlu0 %10803 }
 0x130   : > { %v10811_v51 = vunpack.i.h.bf16 %v10809_v14  ;;  %v10810_v2 = vunpack.i.l.bf16 %v10809_v14  ;;  %v10805_v26 = vunpack.i.l.bf16 %v12303_v5  ;;  %v12313_v45 = vpop.permute.xlu2 %10868  ;;  %v645_v14 = vsel %vm18020_vm13, %v10825_v25, %v18131_v19 }
 0x131   : > { %v18132_v19 = vunpack.i.h.bf16 %v11911_v62  ;;  %v18134_v62 = vunpack.i.l.bf16 %v12056_v50 }
 0x132   : > { %v676_v17 = vsel %vm675_vm12, %v10805_v26, %v18130_v0  ;;  %v1007_v34 = vsel %vm992_vm15, %v10810_v2, %v10786_v35  ;;  %v1000_v21 = vsel %vm992_vm15, %v10811_v51, %v10795_v42  ;;  %v10686_v26 = vunpack.i.h.bf16 %v11966_v1 }
 0x133   : > { %1136 = vmatpush.msra.mxu0 %v676_v17  ;;  %1174 = vmatpush.msra.mxu1 %v1007_v34  ;;  %v993_v35 = vsel %vm992_vm15, %v10820_v44, %v10746_v58  ;;  %v10726_v2 = vunpack.i.h.bf16 %v12019_v33  ;;  %v802_v42 = vsel %vm799_vm8, %v18132_v19, %v18019_v61  ;;  %v10741_v58 = vunpack.i.h.bf16 %v12053_v36 }
 0x134   : > { %v18133_v44 = vunpack.i.h.bf16 %v11936_v27 }
 0x135   : > { %1137 = vmatpush.msra.mxu0 %v645_v14  ;;  %1175 = vmatpush.msra.mxu1 %v1000_v21 }
 0x136   : > { %v771_v34 = vsel %vm768_vm9, %v18133_v44, %v10711_v13  ;;  %v10806_v44 = vunpack.i.h.bf16 %v12303_v5 }
 0x137   : > { %v12323_v0 = vpop.permute.xlu1 %10813  ;;  %v12325_v17 = vpop.permute.xlu0 %10828  ;;  %1176 = vmatpush.msra.mxu1 %v993_v35  ;;  %v18135_v35 = vunpack.i.l.bf16 %v11966_v1 }
 0x138   : > { %v10816_v25 = vunpack.i.h.bf16 %v12323_v0  ;;  %v10815_v21 = vunpack.i.l.bf16 %v12323_v0  ;;  %v10830_v51 = vunpack.i.l.bf16 %v12325_v17 }
 0x139   : > { %1248 = vmatpush.msrb.mxu1 %v802_v42  ;;  %v12349_v19 = vsel %vm582_vm3, %v18135_v35, %v10686_v26  ;;  %v18136_v42 = vunpack.i.h.bf16 %v11839_v56  ;;  %v10826_v56 = vunpack.i.h.bf16 %v12248_v20 }
 0x13a   : > { %v614_v14 = vsel %vm18021_vm14, %v10830_v51, %v18134_v62  ;;  %v833_v27 = vsel %vm18032_vm1, %v10815_v21, %v10816_v25  ;;  %v18137_v51 = vunpack.i.h.bf16 %v11938_v60  ;;  %v12373_v60 = vpop.permute.xlu2 %10883 }
 0x13b   : > { %1249 = vmatpush.msrb.mxu1 %v771_v34  ;;  %v832_v61 = vsel %vm18032_vm1, %v18136_v42, %v10815_v21  ;;  %1138 = vmatpush.msra.mxu0 %v614_v14  ;;  %v10967_v35 = vpack.i.bf16 %v833_v27, %v11684_v4  ;;  %v18138_v21 = vunpack.i.h.bf16 %v11961_v7  ;;  %v18139_v27 = vunpack.i.h.bf16 %v11951_v30 }
 0x13c   : > { %v740_v34 = vsel %vm737_vm10, %v18137_v51, %v10726_v2  ;;  %v10942_v62 = vpack.i.bf16 %v12349_v19, %v832_v61  ;;  %v18028_v61 = vunpack.i.h.bf16 %v12325_v17  ;;  %v18141_v30 = vunpack.i.h.bf16 %v12056_v50 }
 0x13d   : > { %1250 = vmatpush.msrb.mxu1 %v740_v34  ;;  %10968 = vrot.lane.b32.xlu0 %v10967_v35, %s11594_s22  ;;  %v709_v14 = vsel %vm706_vm11, %v18138_v21, %v10741_v58  ;;  %v678_v51 = vsel %vm675_vm12, %v18139_v27, %v10806_v44 }
 0x13e   : > { %10943 = vrot.lane.b32.xlu1 %v10942_v62, %s11594_s22  ;;  %v18140_v62 = vunpack.i.h.bf16 %v12021_v11  ;;  %v616_v27 = vsel %vm18021_vm14, %v18141_v30, %v18028_v61  ;;  %v12403_v11 = vld [vmem:[%s17955_s1 + $0x8] sm:$0xff]  ;;  %vm18149_vm14 = vcmask 1039360   ;;  %v11567_v61 = vld [vmem:[%s11662_s29 + $0x10] sm:$0xff] }
 0x13f   : > { %1251 = vmatpush.msrb.mxu1 %v709_v14  ;;  %v12376_v42 = vpop.permute.xlu1 %10833  ;;  %v12378_v4 = vpop.permute.xlu0 %10843  ;;  %v10855_v14 = vunpack.i.l.bf16 %v12287_v3 }
 0x140   : > { %v10835_v34 = vunpack.i.l.bf16 %v12376_v42  ;;  %v10845_v7 = vunpack.i.l.bf16 %v12378_v4  ;;  %v647_v35 = vsel %vm18020_vm13, %v18140_v62, %v10826_v56  ;;  %vm1119_vm13 = vcmask 588800  }
 0x141   : > { %1252 = vmatpush.msrb.mxu1 %v678_v51  ;;  %v10870_v51 = vunpack.i.l.bf16 %v12313_v45  ;;  %v521_v62 = vsel %vm520_vm0, %v10855_v14, %v11767_v18  ;;  %7474 = vmatmul.msk.f32.vlgmr.msra.gmra.mxu3 %vm1119_vm13, %v12403_v11  ;;  %v10885_v18 = vunpack.i.l.bf16 %v12373_v60  ;;  %v18022_v14 = vunpack.i.h.bf16 %v12373_v60 }
 0x142   : > { %v583_v21 = vsel %vm582_vm3, %v10835_v34, %v11786_v29  ;;  %v552_v29 = vsel %vm551_vm2, %v10845_v7, %v11783_v28  ;;  %7470 = vmatmul.msk.f32.vlgmr.msra.gmra.mxu1 %vm1119_vm13, %v12403_v11 }
 0x143   : > { %1253 = vmatpush.msrb.mxu1 %v647_v35  ;;  %1139 = vmatpush.msra.mxu0 %v583_v21  ;;  %v18142_v35 = vunpack.i.h.bf16 %v12160_v43  ;;  %v18144_v43 = vunpack.i.h.bf16 %v12202_v15  ;;  %v18146_v15 = vunpack.i.h.bf16 %v11877_v32 }
 0x145   : > { %1254 = vmatpush.msrb.mxu1 %v616_v27  ;;  %10983 = vrot.lane.b32.xlu0 %v12008_v52, %s11587_s15  ;;  %v1030_v30 = vsel %vm992_vm15, %v18144_v43, %v10885_v18  ;;  %s11601_s15 = smov 86  }
 0x146   : > { %10958 = vrot.lane.b32.xlu1 %v11715_v9, %s11595_s23  ;;  %1140 = vmatpush.msra.mxu0 %v552_v29  ;;  %v12423_v9 = vpop.permute.xlu2 %10898  ;;  %v18145_v29 = vunpack.i.l.bf16 %v12242_v10  ;;  %v18148_v10 = vunpack.i.h.bf16 %v11913_v63 }
 0x147   : > { %1255 = vmatpush.msrb.mxu1 %v11812_v41  ;;  %v12413_v50 = vpop.permute.xlu1 %10848  ;;  %v12415_v34 = vpop.permute.xlu0 %10858  ;;  %v490_v41 = vsel %vm489_vm4, %v10870_v51, %v11822_v47 }
 0x148   : > { %v10861_v28 = vunpack.i.h.bf16 %v12415_v34  ;;  %v10860_v7 = vunpack.i.l.bf16 %v12415_v34  ;;  %1141 = vmatpush.msra.mxu0 %v521_v62  ;;  %v1023_v62 = vsel %vm992_vm15, %v18145_v29, %v18022_v14 }
 0x149   : > { %1256 = vmatpush.msrb.mxu1 %v11803_v38  ;;  %v18143_v38 = vunpack.i.h.bf16 %v12102_v40 }
 0x14a   : > { %1142 = vmatpush.msra.mxu0 %v490_v41  ;;  %v1044_v21 = vsel %vm992_vm15, %v18142_v35, %v10860_v7 }
 0x14b   : > { %1257 = vmatpush.msrb.mxu1 %v11779_v22  ;;  %1285 = vmatpush.msrb.mxu3 %v1044_v21  ;;  %v1037_v47 = vsel %vm992_vm15, %v18143_v38, %v10861_v28  ;;  %v10850_v22 = vunpack.i.l.bf16 %v12413_v50  ;;  %v18147_v21 = vunpack.i.h.bf16 %v11881_v39 }
 0x14d   : > { %1258 = vmatpush.msrb.mxu1 %v11831_v49  ;;  %10998 = vrot.lane.b32.xlu0 %v12008_v52, %s11591_s19  ;;  %v12477_v38 = vsel %vm427_vm5, %v18147_v21, %v10850_v22  ;;  %v18150_v21 = vunpack.i.h.bf16 %v12258_v12  ;;  %v18030_v12 = vunpack.i.h.bf16 %v12423_v9  ;;  %s11605_s19 = smov 100  }
 0x14e   : > { %1286 = vmatpush.msrb.mxu3 %v1037_v47  ;;  %v12463_v41 = vpop.permute.xlu2 %10913 }
 0x14f   : > { %v12452_v27 = vpop.permute.xlu1 %10863  ;;  %v12454_v49 = vpop.permute.xlu0 %10873  ;;  %v10916_v23 = vunpack.i.h.bf16 %v12463_v41 }
 0x150   : > { %1287 = vmatpush.msrb.mxu3 %v1030_v30  ;;  %v18027_v40 = vunpack.i.l.bf16 %v12452_v27  ;;  %v18023_v51 = vunpack.i.l.bf16 %v12454_v49 }
 0x152   : > { %1288 = vmatpush.msrb.mxu3 %v1023_v62  ;;  %v12470_v35 = vsel %vm396_vm6, %v18146_v15, %v18027_v40  ;;  %v12484_v47 = vsel %vm18149_vm14, %v18148_v10, %v18023_v51  ;;  %v10836_v51 = vunpack.i.h.bf16 %v12376_v42  ;;  %v18159_v40 = vunpack.i.h.bf16 %v11923_v24 }
 0x153   : > { %v10972_v32 = vpack.i.bf16 %v12470_v35, %v12477_v38  ;;  %v10977_v43 = vpack.i.bf16 %v11711_v8, %v12484_v47  ;;  %vm18168_vm14 = vcmask 752640  }
 0x155   : > { %10973 = vrot.lane.b32.xlu1 %v10972_v32, %s11594_s22  ;;  %11013 = vrot.lane.b32.xlu0 %v12008_v52, %s11592_s20  ;;  %v18151_v32 = vunpack.i.h.bf16 %v12138_v31  ;;  %v18152_v31 = vunpack.i.l.bf16 %v12165_v48  ;;  %v12542_v48 = vld [vmem:[%s11662_s29 + $0x30] sm:$0xff]  ;;  %s11606_s20 = smov 98  }
 0x156   : > { %10978 = vrot.lane.b32.xlu2 %v10977_v43, %s11594_s22  ;;  %v12515_v14 = vpop.permute.xlu2 %845 }
 0x157   : > { %v12494_v39 = vpop.permute.xlu1 %10878 }
 0x158   : > { %v18024_v63 = vunpack.i.h.bf16 %v12494_v39  ;;  %v10880_v30 = vunpack.i.l.bf16 %v12494_v39  ;;  %v12498_v29 = vpop.permute.xlu0 %10888 }
 0x159   : > { %v18026_v62 = vunpack.i.l.bf16 %v12498_v29  ;;  %v18025_v15 = vunpack.i.h.bf16 %v12498_v29 }
 0x15a   : > { %v459_v8 = vsel %vm458_vm7, %v10880_v30, %v10840_v37  ;;  %v461_v10 = vsel %vm458_vm7, %v18150_v21, %v18024_v63  ;;  %v10846_v37 = vunpack.i.h.bf16 %v12378_v4 }
 0x15b   : > { %1143 = vmatpush.msra.mxu0 %v459_v8  ;;  %1259 = vmatpush.msrb.mxu1 %v461_v10  ;;  %v1016_v43 = vsel %vm992_vm15, %v18151_v32, %v18026_v62  ;;  %v1009_v30 = vsel %vm992_vm15, %v18152_v31, %v18025_v15  ;;  %v10900_v8 = vunpack.i.l.bf16 %v12423_v9  ;;  %v18153_v10 = vld [vmem:[#allocation6_spill] sm:$0xff]  ;;  %v11002_v31 = vpack.i.bf16 %v11964_v54, %v12542_v48 }
 0x15c   : > { %1289 = vmatpush.msrb.mxu3 %v1016_v43  ;;  %v18155_v43 = vld [vmem:[#allocation5_spill] sm:$0xff]  ;;  %v11566_v62 = vld [vmem:[%s11662_s29] sm:$0xff] }
 0x15d   : > { %10988 = vrot.lane.b32.xlu1 %v12008_v52, %s11588_s16  ;;  %1144 = vmatpush.msra.mxu0 %v11888_v46  ;;  %s11602_s16 = smov 110  }
 0x15e   : > { %10993 = vrot.lane.b32.xlu2 %v12008_v52, %s11590_s18  ;;  %1260 = vmatpush.msrb.mxu1 %v11848_v59  ;;  %v18154_v52 = vld [vmem:[#allocation2_spill] sm:$0xff]  ;;  %v843_v24 = vpop.permute.xlu2 %842  ;;  %s11604_s18 = smov 115  }
 0x15f   : > { %1290 = vmatpush.msrb.mxu3 %v1009_v30  ;;  %v12532_v21 = vpop.permute.xlu1 %10893  ;;  %1145 = vmatpush.msra.mxu0 %v18153_v10  ;;  %v18156_v30 = vunpack.i.h.bf16 %v11985_v6  ;;  %v18157_v6 = vld [vmem:[#allocation4_spill] sm:$0xff]  ;;  %v844_v5 = vsel %vm551_vm2, %v10846_v37, %v843_v24 }
 0x160   : > { %v10895_v46 = vunpack.i.l.bf16 %v12532_v21  ;;  %v12536_v32 = vpop.permute.xlu0 %10903  ;;  %1261 = vmatpush.msrb.mxu1 %v18154_v52  ;;  %v18031_v59 = vunpack.i.h.bf16 %v12532_v21  ;;  %v12558_v52 = vsel %vm582_vm3, %v10686_v26, %v10836_v51  ;;  %v804_v26 = vsel %vm799_vm8, %v10900_v8, %v18030_v12 }
 0x161   : > { %1146 = vmatpush.msra.mxu0 %v18155_v43  ;;  %v12551_v10 = vsel %vm551_vm2, %v18156_v30, %v10846_v37  ;;  %v12563_v43 = vld [vmem:[%s17955_s1 + $0x18] sm:$0xff]  ;;  %v18029_v63 = vunpack.i.h.bf16 %v12536_v32  ;;  %v10905_v15 = vunpack.i.l.bf16 %v12536_v32  ;;  %v18158_v30 = vunpack.i.h.bf16 %v12276_v55 }
 0x162   : > { %1262 = vmatpush.msrb.mxu1 %v18157_v6  ;;  %7475 = vmatmul.msk.f32.gmra.mxu3 %vm1119_vm13, %v12563_v43  ;;  %v803_v6 = vsel %vm799_vm8, %v18159_v40, %v10900_v8  ;;  %v11007_v55 = vpack.i.bf16 %v12551_v10, %v12558_v52  ;;  %v10856_v8 = vunpack.i.h.bf16 %v12287_v3  ;;  %vm18165_vm2 = vcmask 523264   ;;  %v18176_v3 = vld [vmem:[#allocation14_spill] sm:$0xff] }
 0x163   : > { %v1002_v1 = vsel %vm992_vm15, %v18158_v30, %v10895_v46  ;;  %1147 = vmatpush.msra.mxu0 %v11566_v62  ;;  %v10871_v30 = vunpack.i.h.bf16 %v12313_v45  ;;  %v18160_v62 = vunpack.i.l.bf16 %v12278_v57  ;;  %v773_v40 = vsel %vm768_vm9, %v10905_v15, %v18029_v63  ;;  %7471 = vmatmul.msk.f32.gmra.mxu1 %vm1119_vm13, %v12563_v43  ;;  %v18178_v45 = vld [vmem:[#allocation17_spill] sm:$0xff] }
 0x164   : > { %1291 = vmatpush.msrb.mxu3 %v1002_v1  ;;  %1263 = vmatpush.msrb.mxu1 %v11567_v61  ;;  %v772_v61 = vsel %vm768_vm9, %v10711_v13, %v10905_v15  ;;  %v10915_v57 = vunpack.i.l.bf16 %v12463_v41  ;;  %v18161_v13 = vunpack.i.h.bf16 %v12039_v53 }
 0x165   : > { %1306 = vmatpush.msrb.mxu0 %v803_v6  ;;  %11003 = vrot.lane.b32.xlu1 %v11002_v31, %s11589_s17  ;;  %v995_v1 = vsel %vm992_vm15, %v18160_v62, %v18031_v59  ;;  %s11603_s17 = smov 111  }
 0x166   : > { %1364 = vmatpush.msra.mxu1 %v804_v26  ;;  %11008 = vrot.lane.b32.xlu2 %v11007_v55, %s11594_s22  ;;  %v12615_v15 = vsel %vm489_vm4, %v18161_v13, %v10871_v30  ;;  %v18162_v13 = vld [vmem:[#allocation7_spill] sm:$0xff] }
 0x167   : > { %1292 = vmatpush.msrb.mxu3 %v995_v1  ;;  %1307 = vmatpush.msrb.mxu0 %v772_v61  ;;  %v12600_v26 = vpop.permute.xlu1 %10908  ;;  %v12620_v1 = vld [vmem:[%s17955_s1 + $0x28] sm:$0xff]  ;;  %v18163_v12 = vunpack.i.h.bf16 %v18162_v13 }
 0x168   : > { %1365 = vmatpush.msra.mxu1 %v773_v40  ;;  %v10911_v6 = vunpack.i.h.bf16 %v12600_v26  ;;  %v10910_v55 = vunpack.i.l.bf16 %v12600_v26  ;;  %v12605_v62 = vpop.permute.xlu0 %10918 }
 0x169   : > { %v10920_v61 = vunpack.i.l.bf16 %v12605_v62  ;;  %v10921_v53 = vunpack.i.h.bf16 %v12605_v62  ;;  %v12637_v59 = vsel %vm520_vm0, %v18163_v12, %v10856_v8  ;;  %v10851_v12 = vunpack.i.h.bf16 %v12413_v50  ;;  %v12801_v50 = vld [vmem:[%s17955_s1 + $0x30] sm:$0xff] }
 0x16a   : > { %v741_v40 = vsel %vm737_vm10, %v10726_v2, %v10910_v55  ;;  %v742_v63 = vsel %vm737_vm10, %v10910_v55, %v10911_v6  ;;  %7476 = vmatmul.msk.f32.gmra.mxu3 %vm1119_vm13, %v12620_v1  ;;  %v11022_v33 = vpack.i.bf16 %v12615_v15, %v12637_v59  ;;  %v710_v2 = vsel %vm706_vm11, %v10741_v58, %v10915_v57  ;;  %v12647_v55 = vld [vmem:[%s17955_s1] sm:$0xff] }
 0x16b   : > { %1308 = vmatpush.msrb.mxu0 %v741_v40  ;;  %1366 = vmatpush.msra.mxu1 %v742_v63  ;;  %v711_v63 = vsel %vm706_vm11, %v10915_v57, %v10916_v23  ;;  %v679_v36 = vsel %vm675_vm12, %v10806_v44, %v10920_v61  ;;  %v12667_v57 = vld [vmem:[%s17955_s1 + $0x38] sm:$0xff]  ;;  %v12672_v40 = vpop.permute.xlu2 %10938  ;;  %v12694_v0 = vsel %vm427_vm5, %v10850_v22, %v10851_v12  ;;  %v12709_v22 = vld [vmem:[%s17955_s1 + $0x10] sm:$0xff] }
 0x16c   : > { %1206 = vmatmul.f32.vlgmr.msra.gmra.mxu2 %v12647_v55  ;;  %1148 = vmatmul.f32.vlgmr.msra.gmra.mxu0 %v12647_v55  ;;  %v11032_v42 = vpack.i.bf16 %v844_v5, %v12694_v0 }
 0x16d   : > { %11018 = vrot.lane.b32.xlu1 %v11002_v31, %s11593_s21  ;;  %1309 = vmatpush.msrb.mxu0 %v710_v2  ;;  %v680_v31 = vsel %vm675_vm12, %v10920_v61, %v10921_v53  ;;  %v847_v61 = vsel %vm582_vm3, %v10836_v51, %v12515_v14  ;;  %v10940_v14 = vunpack.i.l.bf16 %v12672_v40  ;;  %v18164_v51 = vunpack.i.h.bf16 %v12206_v16  ;;  %vm18166_vm3 = vmmov %vm18165_vm2 }
 0x16e   : > { %11023 = vrot.lane.b32.xlu2 %v11022_v33, %s11594_s22  ;;  %1367 = vmatpush.msra.mxu1 %v711_v63  ;;  %v10941_v33 = vunpack.i.h.bf16 %v12672_v40 }
 0x16f   : > { %v12658_v58 = vpop.permute.xlu1 %826  ;;  %1310 = vmatpush.msrb.mxu0 %v679_v36  ;;  %7472 = vmatmul.msk.f32.gmra.mxu1 %vm1119_vm13, %v12620_v1  ;;  %v1038_v63 = vsel %vm992_vm15, %v10861_v28, %v10940_v14 }
 0x170   : > { %v834_v44 = vsel %vm18032_vm1, %v10816_v25, %v12658_v58  ;;  %v12678_v13 = vpop.permute.xlu0 %10923  ;;  %1368 = vmatpush.msra.mxu1 %v680_v31  ;;  %v1031_v34 = vsel %vm992_vm15, %v10885_v18, %v10941_v33  ;;  %v18167_v18 = vunpack.i.h.bf16 %v12325_v17  ;;  %vm18169_vm1 = vmmov %vm18168_vm14  ;;  %v18171_v17 = vld [vmem:[#allocation15_spill] sm:$0xff] }
 0x171   : > { %v10926_v4 = vunpack.i.h.bf16 %v12678_v13  ;;  %v10925_v37 = vunpack.i.l.bf16 %v12678_v13  ;;  %v11027_v25 = vpack.i.bf16 %v847_v61, %v834_v44 }
 0x172   : > { %7477 = vmatmul.msk.f32.gmra.mxu3 %vm1119_vm13, %v12667_v57 }
 0x173   : > { %v1052_v24 = vsel %vm992_vm15, %v18164_v51, %v10925_v37  ;;  %11028 = vrot.lane.b32.xlu0 %v11027_v25, %s11594_s22  ;;  %v1045_v16 = vsel %vm992_vm15, %v10860_v7, %v10926_v4  ;;  %v10866_v51 = vunpack.i.h.bf16 %v12452_v27 }
 0x174   : > { %1342 = vmatpush.msrb.mxu2 %v1052_v24  ;;  %1151 = vmatmul.f32.gmra.mxu0 %v12709_v22 }
 0x175   : > { %11033 = vrot.lane.b32.xlu1 %v11032_v42, %s11594_s22  ;;  %1209 = vmatmul.f32.gmra.mxu2 %v12709_v22  ;;  %v12760_v42 = vld [vmem:[%s17955_s1 + $0x20] sm:$0xff] }
 0x176   : > { %1343 = vmatpush.msrb.mxu2 %v1045_v16  ;;  %v18170_v16 = vld [vmem:[#allocation3_spill] sm:$0xff] }
 0x177   : > { %v12718_v2 = vpop.permute.xlu1 %10928  ;;  %7473 = vmatmul.msk.f32.gmra.mxu1 %vm1119_vm13, %v12667_v57 }
 0x178   : > { %v10931_v36 = vunpack.i.h.bf16 %v12718_v2  ;;  %v10930_v31 = vunpack.i.l.bf16 %v12718_v2  ;;  %v12728_v5 = vpop.permute.xlu0 %10933  ;;  %1344 = vmatpush.msrb.mxu2 %v1038_v63  ;;  %v18172_v63 = vunpack.i.l.bf16 %v12452_v27 }
 0x179   : > { %v10936_v7 = vunpack.i.h.bf16 %v12728_v5  ;;  %v10935_v44 = vunpack.i.l.bf16 %v12728_v5  ;;  %v18198_v5 = vld [vmem:[#allocation19_spill] sm:$0xff] }
 0x17a   : > { %1345 = vmatpush.msrb.mxu2 %v1031_v34  ;;  %v648_v28 = vsel %vm18165_vm2, %v10826_v56, %v10930_v31  ;;  %v649_v61 = vsel %vm18166_vm3, %v10930_v31, %v10931_v36  ;;  %7478 = vmatmul.msk.f32.vlgmr.msrb.gmra.mxu3 %vm1119_vm13, %v12403_v11  ;;  %v10876_v56 = vunpack.i.h.bf16 %v12454_v49  ;;  %v12768_v31 = vsel %vm396_vm6, %v18172_v63, %v10866_v51 }
 0x17b   : > { %1311 = vmatpush.msrb.mxu0 %v648_v28  ;;  %1369 = vmatpush.msra.mxu1 %v649_v61  ;;  %v617_v25 = vsel %vm18168_vm14, %v18167_v18, %v10935_v44  ;;  %v618_v20 = vsel %vm18169_vm1, %v10935_v44, %v10936_v7  ;;  %v18173_v61 = vunpack.i.l.bf16 %v12454_v49  ;;  %vm18174_vm1 = vcmask 1039360   ;;  %v18177_v49 = vld [vmem:[#allocation8_spill] sm:$0xff] }
 0x17c   : > { %454 = vrot.lane.b32.xlu0 %v12542_v48, %s11595_s23  ;;  %1154 = vmatmul.f32.gmra.mxu0 %v12760_v42  ;;  %vm18236_vm3 = vmmov %vm18174_vm1 }
 0x17d   : > { %1312 = vmatpush.msrb.mxu0 %v617_v25  ;;  %1370 = vmatpush.msra.mxu1 %v618_v20  ;;  %v12779_v18 = vsel %vm18174_vm1, %v18173_v61, %v10876_v56  ;;  %v18175_v25 = vld [vmem:[#allocation9_spill] sm:$0xff]  ;;  %v11052_v20 = vpack.i.bf16 %v10866_v51, %v10851_v12  ;;  %v18180_v12 = vld [vmem:[#allocation16_spill] sm:$0xff]  ;;  %v11047_v51 = vpack.i.bf16 %v12658_v58, %v12542_v48  ;;  %v12820_v58 = vpop.permute.xlu2 %10948 }
 0x17e   : > { %1212 = vmatmul.f32.gmra.mxu2 %v12760_v42 }
 0x17f   : > { %v840_v24 = vpop.permute.xlu1 %839  ;;  %1313 = vmatpush.msrb.mxu0 %v18170_v16  ;;  %1371 = vmatpush.msra.mxu1 %v18171_v17 }
 0x180   : > { %v841_v44 = vsel %vm520_vm0, %v10856_v8, %v840_v24  ;;  %v837_v34 = vpop.permute.xlu0 %836  ;;  %1264 = vmatmul.f32.vlgmr.msrb.gmra.mxu1 %v12647_v55  ;;  %v11057_v24 = vpack.i.bf16 %v11964_v54, %v10876_v56  ;;  %vm18194_vm0 = vmmov %vm18165_vm2  ;;  %vm5791_vm2 = vcmask 703488  }
 0x181   : > { %v11037_v28 = vpack.i.bf16 %v841_v44, %v12768_v31  ;;  %v838_v27 = vsel %vm489_vm4, %v10871_v30, %v837_v34  ;;  %1314 = vmatpush.msrb.mxu0 %v18175_v25  ;;  %1372 = vmatpush.msra.mxu1 %v18176_v3  ;;  %v18179_v30 = vld [vmem:[#allocation10_spill] sm:$0xff]  ;;  %v10950_v44 = vunpack.i.l.bf16 %v12820_v58  ;;  %v18181_v25 = vunpack.i.h.bf16 %v12373_v60 }
 0x182   : > { %v11042_v8 = vpack.i.bf16 %v838_v27, %v12779_v18  ;;  %7479 = vmatmul.msk.f32.gmra.mxu3 %vm1119_vm13, %v12563_v43 }
 0x183   : > { %11038 = vrot.lane.b32.xlu2 %v11037_v28, %s11594_s22  ;;  %1315 = vmatpush.msrb.mxu0 %v18177_v49  ;;  %v10951_v28 = vunpack.i.h.bf16 %v12820_v58 }
 0x184   : > { %11053 = vrot.lane.b32.xlu0 %v11052_v20, %s11594_s22  ;;  %11043 = vrot.lane.b32.xlu1 %v11042_v8, %s11594_s22 }
 0x185   : > { %1373 = vmatpush.msra.mxu1 %v18178_v45  ;;  %1316 = vmatpush.msrb.mxu0 %v18179_v30  ;;  %v12822_v16 = vpop.permute.xlu2 %10963  ;;  %v18182_v30 = vunpack.i.l.bf16 %v12498_v29 }
 0x186   : > { %1215 = vmatmul.f32.gmra.mxu2 %v12801_v50  ;;  %1157 = vmatmul.f32.gmra.mxu0 %v12801_v50  ;;  %v10966_v49 = vunpack.i.h.bf16 %v12822_v16  ;;  %v10965_v45 = vunpack.i.l.bf16 %v12822_v16 }
 0x187   : > { %1374 = vmatpush.msra.mxu1 %v18180_v12  ;;  %v1017_v60 = vsel %vm992_vm15, %v18182_v30, %v10950_v44  ;;  %v1046_v12 = vsel %vm992_vm15, %v10926_v4, %v10951_v28  ;;  %v18184_v30 = vunpack.i.h.bf16 %v12494_v39 }
 0x188   : > { %1267 = vmatmul.f32.gmra.mxu1 %v12709_v22  ;;  %v12824_v17 = vpop.permute.xlu0 %10953 }
 0x189   : > { %v10956_v61 = vunpack.i.h.bf16 %v12824_v17  ;;  %v10955_v27 = vunpack.i.l.bf16 %v12824_v17 }
 0x18a   : > { %7480 = vmatmul.msk.f32.gmra.mxu3 %vm1119_vm13, %v12620_v1 }
 0x18b   : > { %11048 = vrot.lane.b32.xlu2 %v11047_v51, %s11594_s22  ;;  %v18183_v51 = vunpack.i.h.bf16 %v12498_v29  ;;  %v1003_v29 = vsel %vm992_vm15, %v10895_v46, %v10965_v45 }
 0x18c   : > { %456 = vrot.lane.b32.xlu1 %v11964_v54, %s11595_s23 }
 0x190   : > { %1270 = vmatmul.f32.gmra.mxu1 %v12760_v42 }
 0x192   : > { %7481 = vmatmul.msk.f32.gmra.mxu3 %vm1119_vm13, %v12667_v57 }
 0x193   : > { %11058 = vrot.lane.b32.xlu2 %v11057_v24, %s11594_s22  ;;  %v1010_v24 = vsel %vm992_vm15, %v18183_v51, %v10955_v27  ;;  %s11597_s22 = smov 113  }
 0x198   : > { %1273 = vmatmul.f32.gmra.mxu1 %v12801_v50 }
 0x1af   : > { %v12838_v20 = vpop.permute.xlu0 %10968 }
 0x1b0   : > { %v10944_v63 = vpop.permute.xlu1 %10943  ;;  %v12827_v56 = vpop.permute.xlu2 %10978  ;;  %v10971_v13 = vunpack.i.h.bf16 %v12838_v20 }
 0x1b1   : > { %v10946_v34 = vunpack.i.h.bf16 %v10944_v63  ;;  %v10945_v54 = vunpack.i.l.bf16 %v10944_v63  ;;  %v1039_v63 = vsel %vm992_vm15, %v10940_v14, %v10956_v61  ;;  %v1032_v14 = vsel %vm992_vm15, %v10941_v33, %v10966_v49  ;;  %v18186_v33 = vld [vmem:[#allocation12_spill] sm:$0xff] }
 0x1b3   : > { %v1024_v3 = vsel %vm992_vm15, %v18181_v25, %v10945_v54  ;;  %v1053_v8 = vsel %vm992_vm15, %v10925_v37, %v10946_v34  ;;  %v10970_v37 = vunpack.i.l.bf16 %v12838_v20  ;;  %v1025_v40 = vsel %vm992_vm15, %v10945_v54, %v10971_v13 }
 0x1b4   : > { %1346 = vmatpush.msrb.mxu2 %v1024_v3  ;;  %1400 = vmatpush.msra.mxu3 %v1053_v8 }
 0x1b6   : > { %1347 = vmatpush.msrb.mxu2 %v1017_v60  ;;  %1401 = vmatpush.msra.mxu3 %v1046_v12  ;;  %v18185_v12 = vunpack.i.h.bf16 %v12532_v21  ;;  %v18187_v21 = vld [vmem:[#allocation18_spill] sm:$0xff] }
 0x1b7   : > { %v10984_v39 = vpop.permute.xlu0 %10983 }
 0x1b8   : > { %v12862_v25 = vpop.permute.xlu1 %10958  ;;  %1348 = vmatpush.msrb.mxu2 %v1010_v24  ;;  %1402 = vmatpush.msra.mxu3 %v1039_v63  ;;  %v12866_v8 = vpop.permute.xlu2 %10993  ;;  %v996_v51 = vsel %vm992_vm15, %v18185_v12, %v10970_v37  ;;  %v18188_v24 = vld [vmem:[#allocation11_spill] sm:$0xff]  ;;  %v10986_v63 = vunpack.i.h.bf16 %v10984_v39  ;;  %v18191_v12 = vld [vmem:[#allocation22_spill] sm:$0xff] }
 0x1b9   : > { %v10961_v4 = vunpack.i.h.bf16 %v12862_v25  ;;  %v10960_v3 = vunpack.i.l.bf16 %v12862_v25  ;;  %v10996_v17 = vunpack.i.h.bf16 %v12866_v8  ;;  %v10028_v25 = vld [vmem:[%s17959_s5 + $0x74] sm:$0xf0] }
 0x1ba   : > { %1349 = vmatpush.msrb.mxu2 %v1003_v29  ;;  %1403 = vmatpush.msra.mxu3 %v1032_v14  ;;  %v18189_v14 = vld [vmem:[#allocation20_spill] sm:$0xff] }
 0x1bb   : > { %v462_v60 = vsel %vm458_vm7, %v18184_v30, %v10960_v3  ;;  %v463_v46 = vsel %vm458_vm7, %v10960_v3, %v10961_v4  ;;  %v10985_v3 = vunpack.i.l.bf16 %v10984_v39 }
 0x1bc   : > { %1317 = vmatpush.msrb.mxu0 %v462_v60  ;;  %1350 = vmatpush.msrb.mxu2 %v996_v51  ;;  %v18190_v60 = vld [vmem:[#allocation13_spill] sm:$0xff] }
 0x1bd   : > { %1375 = vmatpush.msra.mxu1 %v463_v46  ;;  %1404 = vmatpush.msra.mxu3 %v1025_v40  ;;  %v11568_v51 = vld [vmem:[%s11662_s29 + $0x18] sm:$0xff]  ;;  %v18192_v40 = vunpack.i.h.bf16 %v12423_v9 }
 0x1be   : > { %1318 = vmatpush.msrb.mxu0 %v18186_v33  ;;  %7482 = vmatmul.msk.f32.vlgmr.msrb.gmra.mxu2 %vm1119_vm13, %v12403_v11  ;;  %v806_v33 = vsel %vm799_vm8, %v10985_v3, %v10986_v63 }
 0x1bf   : > { %1376 = vmatpush.msra.mxu1 %v18187_v21  ;;  %v805_v39 = vsel %vm799_vm8, %v18192_v40, %v10985_v3  ;;  %v10980_v3 = vunpack.i.l.bf16 %v12827_v56  ;;  %v10981_v40 = vunpack.i.h.bf16 %v12827_v56  ;;  %v10024_v56 = vld [vmem:[%s17959_s5 + $0x54] sm:$0xf0] }
 0x1c0   : > { %1319 = vmatpush.msrb.mxu0 %v18188_v24  ;;  %v12897_v29 = vpop.permute.xlu2 %11008  ;;  %v11569_v24 = vld [vmem:[%s11662_s29 + $0x20] sm:$0xff] }
 0x1c1   : > { %1377 = vmatpush.msra.mxu1 %v18189_v14  ;;  %v11011_v54 = vunpack.i.h.bf16 %v12897_v29  ;;  %v11010_v30 = vunpack.i.l.bf16 %v12897_v29 }
 0x1c2   : > { %1320 = vmatpush.msrb.mxu0 %v18190_v60 }
 0x1c3   : > { %1378 = vmatpush.msra.mxu1 %v18191_v12  ;;  %v1054_v46 = vsel %vm992_vm15, %v10946_v34, %v11010_v30  ;;  %v1047_v21 = vsel %vm992_vm15, %v10951_v28, %v11011_v54 }
 0x1c4   : > { %1321 = vmatpush.msrb.mxu0 %v11568_v51  ;;  %1458 = vmatpush.msra.mxu2 %v1054_v46  ;;  %v10999_v51 = vpop.permute.xlu0 %10998 }
 0x1c5   : > { %1322 = vmatmul.f32.vlgmr.msrb.gmra.mxu0 %v12647_v55  ;;  %1379 = vmatpush.msra.mxu1 %v11569_v24  ;;  %v11001_v24 = vunpack.i.h.bf16 %v10999_v51  ;;  %v11000_v16 = vunpack.i.l.bf16 %v10999_v51 }
 0x1c6   : > { %1422 = vmatpush.msra.mxu0 %v805_v39  ;;  %7483 = vmatmul.msk.f32.gmra.mxu2 %vm1119_vm13, %v12563_v43  ;;  %v10995_v39 = vunpack.i.l.bf16 %v12866_v8 }
 0x1c7   : > { %1459 = vmatpush.msra.mxu2 %v1047_v21  ;;  %v12919_v34 = vpop.permute.xlu1 %10973  ;;  %1480 = vmatpush.msrb.mxu1 %v806_v33 }
 0x1c8   : > { %v10976_v9 = vunpack.i.h.bf16 %v12919_v34  ;;  %v10975_v14 = vunpack.i.l.bf16 %v12919_v34  ;;  %v12923_v60 = vpop.permute.xlu2 %11023  ;;  %1380 = vmatmul.f32.vlgmr.msra.gmra.mxu1 %v12647_v55 }
 0x1c9   : > { %v11026_v63 = vunpack.i.h.bf16 %v12923_v60  ;;  %v11025_v28 = vunpack.i.l.bf16 %v12923_v60 }
 0x1ca   : > { %v1018_v12 = vsel %vm992_vm15, %v10950_v44, %v10975_v14  ;;  %v1011_v58 = vsel %vm992_vm15, %v10955_v27, %v10976_v9 }
 0x1cb   : > { %1405 = vmatpush.msra.mxu3 %v1018_v12  ;;  %v1040_v46 = vsel %vm992_vm15, %v10956_v61, %v11025_v28  ;;  %v1033_v44 = vsel %vm992_vm15, %v10966_v49, %v11026_v63  ;;  %v1004_v61 = vsel %vm992_vm15, %v10965_v45, %v10980_v3  ;;  %v997_v49 = vsel %vm992_vm15, %v10970_v37, %v10981_v40 }
 0x1cc   : > { %1460 = vmatpush.msra.mxu2 %v1040_v46  ;;  %v18193_v45 = vunpack.i.h.bf16 %v12536_v32  ;;  %v744_v46 = vsel %vm737_vm10, %v10995_v39, %v10996_v17  ;;  %v743_v37 = vsel %vm737_vm10, %v10911_v6, %v10995_v39  ;;  %v11014_v51 = vpop.permute.xlu0 %11013  ;;  %v713_v32 = vsel %vm706_vm11, %v11000_v16, %v11001_v24  ;;  %vm18196_vm10 = vmmov %vm18168_vm14 }
 0x1cd   : > { %1325 = vmatmul.f32.gmra.mxu0 %v12709_v22  ;;  %1406 = vmatpush.msra.mxu3 %v1011_v58  ;;  %v11016_v58 = vunpack.i.h.bf16 %v11014_v51  ;;  %v11015_v17 = vunpack.i.l.bf16 %v11014_v51  ;;  %vm18238_vm14 = vmmov %vm18174_vm1  ;;  %vm5619_vm1 = vcmask 900096  }
 0x1ce   : > { %7484 = vmatmul.msk.f32.gmra.mxu2 %vm1119_vm13, %v12620_v1 }
 0x1cf   : > { %1461 = vmatpush.msra.mxu2 %v1033_v44  ;;  %v10989_v27 = vpop.permute.xlu1 %10988  ;;  %1407 = vmatpush.msra.mxu3 %v1004_v61  ;;  %v712_v44 = vsel %vm706_vm11, %v10916_v23, %v11000_v16  ;;  %v651_v23 = vsel %vm18194_vm0, %v11015_v17, %v11016_v58  ;;  %vm18197_vm11 = vmmov %vm18196_vm10 }
 0x1d0   : > { %v10991_v33 = vunpack.i.h.bf16 %v10989_v27  ;;  %v10990_v21 = vunpack.i.l.bf16 %v10989_v27  ;;  %1383 = vmatmul.f32.gmra.mxu1 %v12709_v22 }
 0x1d1   : > { %1408 = vmatpush.msra.mxu3 %v997_v49 }
 0x1d2   : > { %7486 = vmatmul.msk.f32.vlgmr.msra.gmra.mxu3 %vm1119_vm13, %v12403_v11  ;;  %v774_v8 = vsel %vm768_vm9, %v18193_v45, %v10990_v21  ;;  %v775_v12 = vsel %vm768_vm9, %v10990_v21, %v10991_v33  ;;  %vm18195_vm9 = vmmov %vm18194_vm0  ;;  %vm5590_vm0 = vcmask 908288  }
 0x1d3   : > { %1423 = vmatpush.msra.mxu0 %v774_v8  ;;  %1481 = vmatpush.msrb.mxu1 %v775_v12  ;;  %v650_v39 = vsel %vm18195_vm9, %v10931_v36, %v11015_v17  ;;  %v13016_v8 = vpop.f32.mrf.mxu1  ;;  %vm5648_vm9 = vcmask 818176  }
 0x1d5   : > { %1328 = vmatmul.f32.gmra.mxu0 %v12760_v42  ;;  %1482 = vmatpush.msrb.mxu1 %v744_v46  ;;  %v18199_v46 = vld [vmem:[#allocation21_spill] sm:$0xff] }
 0x1d6   : > { %1424 = vmatpush.msra.mxu0 %v743_v37  ;;  %7485 = vmatmul.msk.f32.gmra.mxu2 %vm1119_vm13, %v12667_v57 }
 0x1d7   : > { %v11004_v61 = vpop.permute.xlu1 %11003  ;;  %1483 = vmatpush.msrb.mxu1 %v713_v32 }
 0x1d8   : > { %1425 = vmatpush.msra.mxu0 %v712_v44  ;;  %v11006_v27 = vunpack.i.h.bf16 %v11004_v61  ;;  %v11005_v26 = vunpack.i.l.bf16 %v11004_v61  ;;  %1386 = vmatmul.f32.gmra.mxu1 %v12760_v42 }
 0x1da   : > { %7487 = vmatmul.msk.f32.gmra.mxu3 %vm1119_vm13, %v12563_v43  ;;  %v681_v6 = vsel %vm675_vm12, %v10921_v53, %v11005_v26  ;;  %v682_v41 = vsel %vm675_vm12, %v11005_v26, %v11006_v27  ;;  %v7620_v27 = vld [vmem:[%s17959_s5 + $0xf0] sm:$0xf]  ;;  %v10044_v26 = vld [vmem:[%s17959_s5 + $0xf4] sm:$0xf0]  ;;  %vm5561_vm12 = vcmask 916480  }
 0x1db   : > { %1426 = vmatpush.msra.mxu0 %v681_v6  ;;  %1484 = vmatpush.msrb.mxu1 %v682_v41  ;;  %v10026_v6 = vld [vmem:[%s17959_s5 + $0x64] sm:$0xf0] }
 0x1dd   : > { %1331 = vmatmul.f32.gmra.mxu0 %v12801_v50  ;;  %1485 = vmatpush.msrb.mxu1 %v651_v23  ;;  %v13004_v2 = vpop.permute.xlu2 %11038 }
 0x1de   : > { %1427 = vmatpush.msra.mxu0 %v650_v39  ;;  %v11040_v12 = vunpack.i.l.bf16 %v13004_v2  ;;  %v11041_v51 = vunpack.i.h.bf16 %v13004_v2  ;;  %v10022_v2 = vld [vmem:[%s17959_s5 + $0x44] sm:$0xf0] }
 0x1df   : > { %v11019_v33 = vpop.permute.xlu1 %11018 }
 0x1e0   : > { %v11021_v21 = vunpack.i.h.bf16 %v11019_v33  ;;  %v11020_v49 = vunpack.i.l.bf16 %v11019_v33  ;;  %1389 = vmatmul.f32.gmra.mxu1 %v12801_v50  ;;  %v1041_v29 = vsel %vm992_vm15, %v11025_v28, %v11041_v51  ;;  %v13058_v34 = vpop.f32.mrf.mxu1  ;;  %v7621_v33 = vor.u32 %v10044_v26, %v7620_v27  ;;  %v10036_v27 = vld [vmem:[%s17959_s5 + $0xb4] sm:$0xf0]  ;;  %v7516_v26 = vld [vmem:[%s17959_s5 + $0x20] sm:$0xf] }
 0x1e2   : > { %7488 = vmatmul.msk.f32.gmra.mxu3 %vm1119_vm13, %v12620_v1  ;;  %v619_v62 = vsel %vm18196_vm10, %v10936_v7, %v11020_v49  ;;  %v620_v53 = vsel %vm18197_vm11, %v11020_v49, %v11021_v21  ;;  %v7612_v21 = vld [vmem:[%s17959_s5 + $0xe0] sm:$0xf]  ;;  %vm18248_vm10 = vcmask 793600  }
 0x1e3   : > { %1428 = vmatpush.msra.mxu0 %v619_v62  ;;  %1486 = vmatpush.msrb.mxu1 %v620_v53  ;;  %vm18250_vm11 = vmmov %vm18248_vm10 }
 0x1e5   : > { %1429 = vmatpush.msra.mxu0 %v12349_v19  ;;  %1487 = vmatpush.msrb.mxu1 %v12558_v52  ;;  %v13006_v36 = vpop.permute.xlu0 %11028  ;;  %v13018_v52 = vpop.f32.mrf.mxu3 }
 0x1e6   : > { %v11031_v24 = vunpack.i.h.bf16 %v13006_v36  ;;  %v11030_v16 = vunpack.i.l.bf16 %v13006_v36 }
 0x1e7   : > { %v13010_v45 = vpop.permute.xlu1 %11033  ;;  %1430 = vmatpush.msra.mxu0 %v18198_v5  ;;  %1488 = vmatpush.msrb.mxu1 %v12551_v10 }
 0x1e8   : > { %v11036_v7 = vunpack.i.h.bf16 %v13010_v45  ;;  %v11035_v19 = vunpack.i.l.bf16 %v13010_v45  ;;  %v1026_v37 = vsel %vm992_vm15, %v10971_v13, %v11030_v16  ;;  %v1055_v10 = vsel %vm992_vm15, %v11010_v30, %v11031_v24  ;;  %v7540_v24 = vld [vmem:[%s17959_s5 + $0x50] sm:$0xf]  ;;  %v10040_v45 = vld [vmem:[%s17959_s5 + $0xd4] sm:$0xf0] }
 0x1e9   : > { %1431 = vmatpush.msra.mxu0 %v18199_v46  ;;  %1489 = vmatpush.msrb.mxu1 %v12637_v59  ;;  %v18200_v59 = vld [vmem:[#allocation23_spill] sm:$0xff]  ;;  %v1012_v13 = vsel %vm992_vm15, %v10976_v9, %v11040_v12  ;;  %v7541_v46 = vor.u32 %v10024_v56, %v7540_v24  ;;  %v7572_v24 = vld [vmem:[%s17959_s5 + $0x90] sm:$0xf] }
 0x1ea   : > { %1462 = vmatpush.msra.mxu2 %v1026_v37  ;;  %1516 = vmatpush.msrb.mxu3 %v1055_v10  ;;  %v1019_v32 = vsel %vm992_vm15, %v10975_v14, %v11035_v19  ;;  %v1048_v20 = vsel %vm992_vm15, %v11011_v54, %v11036_v7  ;;  %v7556_v14 = vld [vmem:[%s17959_s5 + $0x70] sm:$0xf] }
 0x1eb   : > { %7489 = vmatmul.msk.f32.gmra.mxu3 %vm1119_vm13, %v12667_v57  ;;  %1432 = vmatpush.msra.mxu0 %v18200_v59  ;;  %v13137_v59 = vpop.f32.mrf.mxu0 }
 0x1ec   : > { %1463 = vmatpush.msra.mxu2 %v1019_v32  ;;  %1490 = vmatpush.msrb.mxu1 %v12615_v15  ;;  %v13055_v15 = vpop.permute.xlu2 %11048 }
 0x1ed   : > { %1517 = vmatpush.msrb.mxu3 %v1048_v20  ;;  %v13060_v9 = vpop.f32.mrf.mxu3  ;;  %v11051_v58 = vunpack.i.h.bf16 %v13055_v15  ;;  %v11050_v44 = vunpack.i.l.bf16 %v13055_v15  ;;  %v7604_v20 = vld [vmem:[%s17959_s5 + $0xd0] sm:$0xf]  ;;  %v7596_v15 = vld [vmem:[%s17959_s5 + $0xc0] sm:$0xf] }
 0x1ee   : > { %v455_v30 = vpop.permute.xlu0 %454  ;;  %1464 = vmatpush.msra.mxu2 %v1012_v13 }
 0x1ef   : > { %1518 = vmatpush.msrb.mxu3 %v1041_v29  ;;  %v464_v54 = vsel %vm458_vm7, %v10961_v4, %v455_v30  ;;  %v998_v53 = vsel %vm992_vm15, %v10981_v40, %v11050_v44  ;;  %v1027_v60 = vsel %vm992_vm15, %v11030_v16, %v11051_v58  ;;  %v13110_v40 = vpop.f32.mrf.mxu1  ;;  %v7684_v29 = vld [vmem:[%s17959_s5 + $0x170] sm:$0xf] }
 0x1f0   : > { %1433 = vmatpush.msra.mxu0 %v464_v54  ;;  %v10060_v54 = vld [vmem:[%s17959_s5 + $0x174] sm:$0xf0] }
 0x1f2   : > { %1434 = vmatpush.msra.mxu0 %v12477_v38  ;;  %v7557_v38 = vor.u32 %v10028_v25, %v7556_v14  ;;  %v7524_v25 = vld [vmem:[%s17959_s5 + $0x30] sm:$0xf] }
 0x1f4   : > { %1435 = vmatpush.msra.mxu0 %v12470_v35  ;;  %v11570_v35 = vld [vmem:[%s11662_s29 + $0x28] sm:$0xff]  ;;  %v11059_v49 = vpop.permute.xlu2 %11058 }
 0x1f5   : > { %v13112_v36 = vpop.f32.mrf.mxu3  ;;  %v11061_v37 = vunpack.i.h.bf16 %v11059_v49  ;;  %v11060_v10 = vunpack.i.l.bf16 %v11059_v49  ;;  %v10016_v49 = vld [vmem:[%s17959_s5 + $0x14] sm:$0xf0] }
 0x1f6   : > { %v11054_v4 = vpop.permute.xlu0 %11053  ;;  %v11044_v28 = vpop.permute.xlu1 %11043  ;;  %1436 = vmatpush.msra.mxu0 %v12484_v47  ;;  %v7548_v47 = vld [vmem:[%s17959_s5 + $0x60] sm:$0xf] }
 0x1f7   : > { %v11046_v61 = vunpack.i.h.bf16 %v11044_v28  ;;  %v11045_v17 = vunpack.i.l.bf16 %v11044_v28  ;;  %v11055_v41 = vunpack.i.l.bf16 %v11054_v4  ;;  %v11056_v62 = vunpack.i.h.bf16 %v11054_v4  ;;  %v10020_v4 = vld [vmem:[%s17959_s5 + $0x34] sm:$0xf0] }
 0x1f8   : > { %1437 = vmatpush.msra.mxu0 %v11570_v35  ;;  %v999_v13 = vsel %vm992_vm15, %v11050_v44, %v11061_v37  ;;  %v7685_v28 = vor.u32 %v10060_v54, %v7684_v29  ;;  %v10018_v35 = vld [vmem:[%s17959_s5 + $0x24] sm:$0xf0]  ;;  %v10032_v37 = vld [vmem:[%s17959_s5 + $0x94] sm:$0xf0]  ;;  %v7564_v29 = vld [vmem:[%s17959_s5 + $0x80] sm:$0xf] }
 0x1f9   : > { %v1005_v23 = vsel %vm992_vm15, %v10980_v3, %v11045_v17  ;;  %v1034_v39 = vsel %vm992_vm15, %v11026_v63, %v11046_v61  ;;  %1438 = vmatmul.f32.vlgmr.msra.gmra.mxu0 %v12647_v55  ;;  %v10042_v63 = vld [vmem:[%s17959_s5 + $0xe4] sm:$0xf0]  ;;  %v7549_v3 = vor.u32 %v10026_v6, %v7548_v47  ;;  %v1020_v16 = vsel %vm992_vm15, %v11035_v19, %v11055_v41  ;;  %v7532_v19 = vld [vmem:[%s17959_s5 + $0x40] sm:$0xf]  ;;  %v7668_v6 = vld [vmem:[%s17959_s5 + $0x150] sm:$0xf] }
 0x1fa   : > { %1465 = vmatpush.msra.mxu2 %v1005_v23  ;;  %1519 = vmatpush.msrb.mxu3 %v1034_v39  ;;  %v7613_v7 = vor.u32 %v10042_v63, %v7612_v21  ;;  %v1013_v32 = vsel %vm992_vm15, %v11040_v12, %v11056_v62  ;;  %v1006_v12 = vsel %vm992_vm15, %v11045_v17, %v11060_v10  ;;  %v7676_v61 = vld [vmem:[%s17959_s5 + $0x160] sm:$0xf]  ;;  %v10058_v17 = vld [vmem:[%s17959_s5 + $0x164] sm:$0xf0]  ;;  %v10056_v41 = vld [vmem:[%s17959_s5 + $0x154] sm:$0xf0]  ;;  %v1152_v39 = vpop.f32.mrf.mxu0 }
 0x1fb   : > { %2224 = vmatpush.bf16.msrb.mxu0 %v7557_v38  ;;  %v7533_v14 = vor.u32 %v10022_v2, %v7532_v19  ;;  %v13167_v38 = vpop.f32.mrf.mxu1  ;;  %v7677_v47 = vor.u32 %v10058_v17, %v7676_v61  ;;  %v7580_v23 = vld [vmem:[%s17959_s5 + $0xa0] sm:$0xf]  ;;  %v7508_v21 = vld [vmem:[%s17959_s5 + $0x10] sm:$0xf]  ;;  %v1179_v19 = vadd.f32 %v13016_v8, %v13137_v59  ;;  %v1182_v2 = vadd.f32 %v13058_v34, %v1152_v39  ;;  %v10030_v34 = vld [vmem:[%s17959_s5 + $0x84] sm:$0xf0] }
 0x1fc   : > { %1466 = vmatpush.msra.mxu2 %v998_v53  ;;  %1520 = vmatpush.msrb.mxu3 %v1027_v60  ;;  %v7660_v62 = vld [vmem:[%s17959_s5 + $0x140] sm:$0xf]  ;;  %v7669_v53 = vor.u32 %v10056_v41, %v7668_v6  ;;  %v10054_v60 = vld [vmem:[%s17959_s5 + $0x144] sm:$0xf0]  ;;  %v7748_v63 = vld [vmem:[%s17959_s5 + $0x1f0] sm:$0xf] }
 0x1fd   : > { %7490 = vmatmul.msk.f32.vlgmr.msra.gmra.mxu2 %vm1119_vm13, %v12403_v11  ;;  %v13169_v58 = vpop.f32.mrf.mxu3  ;;  %v7732_v59 = vld [vmem:[%s17959_s5 + $0x1d0] sm:$0xf]  ;;  %v10072_v54 = vld [vmem:[%s17959_s5 + $0x1d4] sm:$0xf0]  ;;  %v10070_v61 = vld [vmem:[%s17959_s5 + $0x1c4] sm:$0xf0] }
 0x1fe   : > { %v457_v5 = vpop.permute.xlu1 %456  ;;  %1521 = vmatpush.msrb.mxu3 %v1020_v16  ;;  %2243 = vmatpush.bf16.msrb.mxu2 %v7621_v33  ;;  %v10034_v33 = vld [vmem:[%s17959_s5 + $0xa4] sm:$0xf0]  ;;  %v7509_v16 = vor.u32 %v10016_v49, %v7508_v21  ;;  %v7628_v41 = vld [vmem:[%s17959_s5 + $0x100] sm:$0xf]  ;;  %vm5503_vm15 = vcmask 932864  }
 0x1ff   : > { %v465_v51 = vsel %vm458_vm7, %v455_v30, %v457_v5  ;;  %2225 = vmatpush.bf16.msrb.mxu0 %v7549_v3  ;;  %v7605_v30 = vor.u32 %v10040_v45, %v7604_v20  ;;  %v10076_v3 = vld [vmem:[%s17959_s5 + $0x1f4] sm:$0xf0]  ;;  %v10014_v20 = vld [vmem:[%s17959_s5 + $0x4] sm:$0xf0]  ;;  %v7661_v45 = vor.u32 %v10054_v60, %v7660_v62 }
 0x200   : > { %1491 = vmatpush.msrb.mxu1 %v465_v51  ;;  %1522 = vmatpush.msrb.mxu3 %v1013_v32  ;;  %v7749_v5 = vor.u32 %v10076_v3, %v7748_v63  ;;  %v7500_v32 = vld [vmem:[%s17959_s5] sm:$0xf]  ;;  %v10066_v60 = vld [vmem:[%s17959_s5 + $0x1a4] sm:$0xf0]  ;;  %v7812_v63 = vld [vmem:[%s17959_s5 + $0x270] sm:$0xf] }
 0x201   : > { %1441 = vmatmul.f32.gmra.mxu0 %v12709_v22  ;;  %v7501_v8 = vor.u32 %v10014_v20, %v7500_v32 }
 0x202   : > { %1492 = vmatpush.msrb.mxu1 %v12694_v0  ;;  %1523 = vmatpush.msrb.mxu3 %v1006_v12  ;;  %v10038_v0 = vld [vmem:[%s17959_s5 + $0xc4] sm:$0xf0] }
 0x203   : > { %2244 = vmatpush.bf16.msrb.mxu2 %v7613_v7  ;;  %2226 = vmatpush.bf16.msrb.mxu0 %v7541_v46  ;;  %v7597_v44 = vor.u32 %v10038_v0, %v7596_v15  ;;  %v7740_v7 = vld [vmem:[%s17959_s5 + $0x1e0] sm:$0xf]  ;;  %v10074_v46 = vld [vmem:[%s17959_s5 + $0x1e4] sm:$0xf0]  ;;  %v13238_v10 = vpop.f32.mrf.mxu1 }
 0x204   : > { %1493 = vmatpush.msrb.mxu1 %v12768_v31  ;;  %1524 = vmatpush.msrb.mxu3 %v999_v13  ;;  %v13164_v31 = vpop.f32.mrf.mxu2  ;;  %v7741_v12 = vor.u32 %v10074_v46, %v7740_v7  ;;  %v7573_v13 = vor.u32 %v10032_v37, %v7572_v24  ;;  %v10090_v7 = vld [vmem:[%s17959_s5 + $0x264] sm:$0xf0] }
 0x205   : > { %7491 = vmatmul.msk.f32.gmra.mxu2 %vm1119_vm13, %v12563_v43  ;;  %7494 = vmatmul.msk.f32.vlgmr.msrb.gmra.mxu3 %vm1119_vm13, %v12403_v11  ;;  %v7588_v11 = vld [vmem:[%s17959_s5 + $0xb0] sm:$0xf]  ;;  %v1294_v51 = vpop.f32.mrf.mxu3  ;;  %v1237_v15 = vadd.f32 %v13018_v52, %v13164_v31  ;;  %v7644_v52 = vld [vmem:[%s17959_s5 + $0x120] sm:$0xf]  ;;  %v10050_v31 = vld [vmem:[%s17959_s5 + $0x124] sm:$0xf0] }
 0x206   : > { %1494 = vmatpush.msrb.mxu1 %v12779_v18  ;;  %v7525_v18 = vor.u32 %v10020_v4, %v7524_v25  ;;  %2281 = vmatpush.bf16.msra.mxu3 %v7749_v5  ;;  %v13276_v4 = vpack.c.bf16 %v1182_v2, %v1179_v19  ;;  %v7804_v5 = vld [vmem:[%s17959_s5 + $0x260] sm:$0xf] }
 0x207   : > { %2245 = vmatpush.bf16.msrb.mxu2 %v7605_v30  ;;  %2227 = vmatpush.bf16.msrb.mxu0 %v7533_v14  ;;  %v7652_v30 = vld [vmem:[%s17959_s5 + $0x130] sm:$0xf]  ;;  %v1155_v14 = vpop.f32.mrf.mxu0  ;;  %v7805_v20 = vor.u32 %v10090_v7, %v7804_v5  ;;  %v7692_v19 = vld [vmem:[%s17959_s5 + $0x180] sm:$0xf]  ;;  %v7614_v5 = vld [vmem:[%s17959_s5 + $0xe8] sm:$0xf0] }
 0x208   : > { %1495 = vmatpush.msrb.mxu1 %v12542_v48  ;;  %v7589_v48 = vor.u32 %v10036_v27, %v7588_v11  ;;  %v7645_v11 = vor.u32 %v10050_v31, %v7644_v52  ;;  %v1185_v49 = vadd.f32 %v13110_v40, %v1155_v14  ;;  %v10092_v40 = vld [vmem:[%s17959_s5 + $0x274] sm:$0xf0]  ;;  %v10025_v52 = vld [vmem:[%s17959_s5 + $0x64] sm:$0xf] }
 0x209   : > { %1496 = vmatmul.f32.vlgmr.msrb.gmra.mxu1 %v12647_v55  ;;  %1444 = vmatmul.f32.gmra.mxu0 %v12760_v42  ;;  %v7517_v55 = vor.u32 %v10018_v35, %v7516_v26  ;;  %v10048_v26 = vld [vmem:[%s17959_s5 + $0x114] sm:$0xf0]  ;;  %v10013_v7 = vld [vmem:[%s17959_s5 + $0x4] sm:$0xf] }
 0x20a   : > { %2262 = vmatpush.bf16.msra.mxu1 %v7685_v28  ;;  %2282 = vmatpush.bf16.msra.mxu3 %v7741_v12  ;;  %v7565_v28 = vor.u32 %v10030_v34, %v7564_v29  ;;  %v10088_v12 = vld [vmem:[%s17959_s5 + $0x254] sm:$0xf0]  ;;  %v7788_v29 = vld [vmem:[%s17959_s5 + $0x240] sm:$0xf]  ;;  %v10027_v34 = vld [vmem:[%s17959_s5 + $0x74] sm:$0xf] }
 0x20b   : > { %2246 = vmatpush.bf16.msrb.mxu2 %v7597_v44  ;;  %2228 = vmatpush.bf16.msrb.mxu0 %v7525_v18  ;;  %v1268_v18 = vpop.f32.mrf.mxu1 }
 0x20c   : > { %v1210_v56 = vpop.f32.mrf.mxu2 }
 0x20d   : > { %7492 = vmatmul.msk.f32.gmra.mxu2 %vm1119_vm13, %v12620_v1  ;;  %7495 = vmatmul.msk.f32.gmra.mxu3 %vm1119_vm13, %v12563_v43  ;;  %v7581_v43 = vor.u32 %v10034_v33, %v7580_v23  ;;  %v1240_v0 = vadd.f32 %v13060_v9, %v1210_v56  ;;  %v7724_v9 = vld [vmem:[%s17959_s5 + $0x1c0] sm:$0xf]  ;;  %v1297_v27 = vpop.f32.mrf.mxu3  ;;  %v10046_v23 = vld [vmem:[%s17959_s5 + $0x104] sm:$0xf0]  ;;  %v1295_v33 = vadd.f32 %v1294_v51, %v13238_v10 }
 0x20e   : > { %2263 = vmatpush.bf16.msra.mxu1 %v7677_v47  ;;  %v7725_v35 = vor.u32 %v10070_v61, %v7724_v9  ;;  %v7716_v47 = vld [vmem:[%s17959_s5 + $0x1b0] sm:$0xf]  ;;  %v7629_v21 = vor.u32 %v10046_v23, %v7628_v41  ;;  %v7813_v56 = vor.u32 %v10092_v40, %v7812_v63  ;;  %v7772_v61 = vld [vmem:[%s17959_s5 + $0x220] sm:$0xf]  ;;  %v7534_v41 = vld [vmem:[%s17959_s5 + $0x48] sm:$0xf0] }
 0x20f   : > { %2247 = vmatpush.bf16.msrb.mxu2 %v7589_v48  ;;  %2229 = vmatpush.bf16.msrb.mxu0 %v7517_v55  ;;  %v13291_v17 = vpack.c.bf16 %v1240_v0, %v1237_v15  ;;  %v10068_v48 = vld [vmem:[%s17959_s5 + $0x1b4] sm:$0xf0]  ;;  %v1158_v55 = vpop.f32.mrf.mxu0  ;;  %v7518_v63 = vld [vmem:[%s17959_s5 + $0x28] sm:$0xf0]  ;;  %v7622_v40 = vld [vmem:[%s17959_s5 + $0xf8] sm:$0xf0] }
 0x210   : > { %v7717_v39 = vor.u32 %v10068_v48, %v7716_v47  ;;  %v1188_v62 = vadd.f32 %v13167_v38, %v1158_v55  ;;  %v7700_v38 = vld [vmem:[%s17959_s5 + $0x190] sm:$0xf]  ;;  %v10080_v47 = vld [vmem:[%s17959_s5 + $0x214] sm:$0xf0]  ;;  %v10021_v48 = vld [vmem:[%s17959_s5 + $0x44] sm:$0xf] }
 0x211   : > { %1499 = vmatmul.f32.gmra.mxu1 %v12709_v22  ;;  %1447 = vmatmul.f32.gmra.mxu0 %v12801_v50  ;;  %v10052_v22 = vld [vmem:[%s17959_s5 + $0x134] sm:$0xf0]  ;;  %v7537_v23 = vor.u32 %v10021_v48, %v7534_v41  ;;  %v7756_v55 = vld [vmem:[%s17959_s5 + $0x200] sm:$0xf] }
 0x212   : > { %2264 = vmatpush.bf16.msra.mxu1 %v7669_v53  ;;  %v7653_v25 = vor.u32 %v10052_v22, %v7652_v30  ;;  %v7708_v53 = vld [vmem:[%s17959_s5 + $0x1a0] sm:$0xf]  ;;  %v13347_v51 = vpack.c.bf16 %v1188_v62, %v1185_v49  ;;  %v10124_v41 = vld [vmem:[%s17959_s5 + $0x374] sm:$0xf0] }
 0x213   : > { %2248 = vmatpush.bf16.msrb.mxu2 %v7581_v43  ;;  %2230 = vmatpush.bf16.msrb.mxu0 %v7509_v16  ;;  %v7709_v3 = vor.u32 %v10066_v60, %v7708_v53  ;;  %v1271_v43 = vpop.f32.mrf.mxu1  ;;  %v10064_v16 = vld [vmem:[%s17959_s5 + $0x194] sm:$0xf0]  ;;  %v10017_v60 = vld [vmem:[%s17959_s5 + $0x24] sm:$0xf] }
 0x214   : > { %v1213_v44 = vpop.f32.mrf.mxu2  ;;  %v7701_v32 = vor.u32 %v10064_v16, %v7700_v38 }
 0x215   : > { %7493 = vmatmul.msk.f32.gmra.mxu2 %vm1119_vm13, %v12667_v57  ;;  %7496 = vmatmul.msk.f32.gmra.mxu3 %vm1119_vm13, %v12620_v1  ;;  %v7733_v1 = vor.u32 %v10072_v54, %v7732_v59  ;;  %v1300_v24 = vpop.f32.mrf.mxu3  ;;  %v1243_v37 = vadd.f32 %v13112_v36, %v1213_v44  ;;  %v10062_v36 = vld [vmem:[%s17959_s5 + $0x184] sm:$0xf0]  ;;  %v7558_v54 = vld [vmem:[%s17959_s5 + $0x78] sm:$0xf0] }
 0x216   : > { %2265 = vmatpush.bf16.msra.mxu1 %v7661_v45  ;;  %v7693_v2 = vor.u32 %v10062_v36, %v7692_v19  ;;  %v7561_v15 = vor.u32 %v10027_v34, %v7558_v54  ;;  %v1301_v14 = vadd.f32 %v1300_v24, %v1271_v43  ;;  %v10015_v43 = vld [vmem:[%s17959_s5 + $0x14] sm:$0xf]  ;;  %v7510_v24 = vld [vmem:[%s17959_s5 + $0x18] sm:$0xf0]  ;;  %v7598_v54 = vld [vmem:[%s17959_s5 + $0xc8] sm:$0xf0] }
 0x217   : > { %2249 = vmatpush.bf16.msrb.mxu2 %v7573_v13  ;;  %2231 = vmatpush.bf16.msrb.mxu0 %v7501_v8  ;;  %v10086_v8 = vld [vmem:[%s17959_s5 + $0x244] sm:$0xf0]  ;;  %v7513_v16 = vor.u32 %v10015_v43, %v7510_v24  ;;  %v10039_v19 = vld [vmem:[%s17959_s5 + $0xd4] sm:$0xf]  ;;  %v7606_v36 = vld [vmem:[%s17959_s5 + $0xd8] sm:$0xf0] }
 0x218   : > { %2283 = vmatpush.bf16.msra.mxu3 %v7733_v1  ;;  %v7789_v59 = vor.u32 %v10086_v8, %v7788_v29  ;;  %v7550_v1 = vld [vmem:[%s17959_s5 + $0x68] sm:$0xf0]  ;;  %v10108_v29 = vld [vmem:[%s17959_s5 + $0x2f4] sm:$0xf0] }
 0x219   : > { %1502 = vmatmul.f32.gmra.mxu1 %v12760_v42  ;;  %v7636_v42 = vld [vmem:[%s17959_s5 + $0x110] sm:$0xf]  ;;  %v7553_v44 = vor.u32 %v10025_v52, %v7550_v1  ;;  %v7868_v52 = vld [vmem:[%s17959_s5 + $0x2e0] sm:$0xf] }
 0x21a   : > { %2266 = vmatpush.bf16.msra.mxu1 %v7653_v25  ;;  %2232 = vmatmul.bf16.vlgmr.msrb.gmra.mxu0 %v13276_v4  ;;  %v7637_v6 = vor.u32 %v10048_v26, %v7636_v42  ;;  %v7780_v25 = vld [vmem:[%s17959_s5 + $0x230] sm:$0xf]  ;;  %v7542_v42 = vld [vmem:[%s17959_s5 + $0x58] sm:$0xf0] }
 0x21b   : > { %2250 = vmatpush.bf16.msrb.mxu2 %v7565_v28  ;;  %2300 = vmatpush.bf16.msra.mxu0 %v7813_v56  ;;  %v1274_v30 = vpop.f32.mrf.mxu1  ;;  %v10084_v28 = vld [vmem:[%s17959_s5 + $0x234] sm:$0xf0]  ;;  %v10041_v56 = vld [vmem:[%s17959_s5 + $0xe4] sm:$0xf] }
 0x21c   : > { %2284 = vmatpush.bf16.msra.mxu3 %v7725_v35  ;;  %v7781_v31 = vor.u32 %v10084_v28, %v7780_v25  ;;  %v7764_v35 = vld [vmem:[%s17959_s5 + $0x210] sm:$0xf] }
 0x21d   : > { %7497 = vmatmul.msk.f32.gmra.mxu3 %vm1119_vm13, %v12667_v57  ;;  %v1298_v57 = vadd.f32 %v1297_v27, %v1268_v18  ;;  %v1303_v22 = vpop.f32.mrf.mxu3  ;;  %v10023_v18 = vld [vmem:[%s17959_s5 + $0x54] sm:$0xf]  ;;  %vm5532_vm13 = vcmask 924672  }
 0x21e   : > { %2267 = vmatpush.bf16.msra.mxu1 %v7645_v11  ;;  %2251 = vmatmul.bf16.vlgmr.msrb.gmra.mxu2 %v13291_v17  ;;  %v1304_v0 = vadd.f32 %v1303_v22, %v1274_v30  ;;  %v10082_v11 = vld [vmem:[%s17959_s5 + $0x224] sm:$0xf0]  ;;  %v7545_v26 = vor.u32 %v10023_v18, %v7542_v42  ;;  %v7876_v22 = vld [vmem:[%s17959_s5 + $0x2f0] sm:$0xf]  ;;  %v10089_v18 = vld [vmem:[%s17959_s5 + $0x264] sm:$0xf] }
 0x21f   : > { %v13343_v46 = vpack.c.bf16 %v1298_v57, %v1295_v33  ;;  %2301 = vmatpush.bf16.msra.mxu0 %v7805_v20  ;;  %v7773_v27 = vor.u32 %v10082_v11, %v7772_v61  ;;  %v10019_v33 = vld [vmem:[%s17959_s5 + $0x34] sm:$0xf]  ;;  %v7502_v20 = vld [vmem:[%s17959_s5 + $0x8] sm:$0xf0]  ;;  %v7877_v8 = vor.u32 %v10108_v29, %v7876_v22  ;;  %v7590_v11 = vld [vmem:[%s17959_s5 + $0xb8] sm:$0xf0] }
 0x220   : > { %2285 = vmatpush.bf16.msra.mxu3 %v7717_v39  ;;  %v13390_v9 = vpack.c.bf16 %v1304_v0, %v1301_v14  ;;  %v10078_v39 = vld [vmem:[%s17959_s5 + $0x204] sm:$0xf0]  ;;  %v7814_v0 = vld [vmem:[%s17959_s5 + $0x278] sm:$0xf0]  ;;  %v10035_v61 = vld [vmem:[%s17959_s5 + $0xb4] sm:$0xf] }
 0x221   : > { %1505 = vmatmul.f32.gmra.mxu1 %v12801_v50  ;;  %v1216_v50 = vpop.f32.mrf.mxu2  ;;  %v7757_v57 = vor.u32 %v10078_v39, %v7756_v55  ;;  %2319 = vmatpush.bf16.msra.mxu2 %v7877_v8  ;;  %v7806_v42 = vld [vmem:[%s17959_s5 + $0x268] sm:$0xf0] }
 0x222   : > { %2268 = vmatpush.bf16.msra.mxu1 %v7637_v6  ;;  %v1246_v10 = vadd.f32 %v13169_v58, %v1216_v50  ;;  %v7796_v58 = vld [vmem:[%s17959_s5 + $0x250] sm:$0xf]  ;;  %v7765_v6 = vor.u32 %v10080_v47, %v7764_v35  ;;  %v10043_v50 = vld [vmem:[%s17959_s5 + $0xf4] sm:$0xf]  ;;  %v10104_v35 = vld [vmem:[%s17959_s5 + $0x2d4] sm:$0xf0]  ;;  %v7809_v47 = vor.u32 %v10089_v18, %v7806_v42 }
 0x223   : > { %v7797_v13 = vor.u32 %v10088_v12, %v7796_v58  ;;  %v7625_v38 = vor.u32 %v10043_v50, %v7622_v40  ;;  %v7609_v12 = vor.u32 %v10039_v19, %v7606_v36  ;;  %v10031_v40 = vld [vmem:[%s17959_s5 + $0x94] sm:$0xf]  ;;  %v10120_v19 = vld [vmem:[%s17959_s5 + $0x354] sm:$0xf0]  ;;  %v7774_v42 = vld [vmem:[%s17959_s5 + $0x228] sm:$0xf0] }
 0x224   : > { %2286 = vmatpush.bf16.msra.mxu3 %v7709_v3  ;;  %v13350_v45 = vpack.c.bf16 %v1246_v10, %v1243_v37  ;;  %v7521_v3 = vor.u32 %v10017_v60, %v7518_v63  ;;  %v10102_v60 = vld [vmem:[%s17959_s5 + $0x2c4] sm:$0xf0]  ;;  %v7932_v63 = vld [vmem:[%s17959_s5 + $0x360] sm:$0xf] }
 0x225   : > { %2302 = vmatpush.bf16.msra.mxu0 %v7797_v13  ;;  %v7505_v13 = vor.u32 %v10013_v7, %v7502_v20  ;;  %v7790_v7 = vld [vmem:[%s17959_s5 + $0x248] sm:$0xf0]  ;;  %v7924_v20 = vld [vmem:[%s17959_s5 + $0x350] sm:$0xf] }
 0x226   : > { %2269 = vmatpush.bf16.msra.mxu1 %v7629_v21  ;;  %v7526_v21 = vld [vmem:[%s17959_s5 + $0x38] sm:$0xf0]  ;;  %v7925_v29 = vor.u32 %v10120_v19, %v7924_v20  ;;  %v7892_v20 = vld [vmem:[%s17959_s5 + $0x310] sm:$0xf]  ;;  %v10112_v19 = vld [vmem:[%s17959_s5 + $0x314] sm:$0xf0] }
 0x227   : > { %v7529_v62 = vor.u32 %v10019_v33, %v7526_v21  ;;  %v7582_v33 = vld [vmem:[%s17959_s5 + $0xa8] sm:$0xf0]  ;;  %v7798_v21 = vld [vmem:[%s17959_s5 + $0x258] sm:$0xf0] }
 0x228   : > { %2287 = vmatpush.bf16.msra.mxu3 %v7701_v32  ;;  %v7617_v32 = vor.u32 %v10041_v56, %v7614_v5  ;;  %v10085_v5 = vld [vmem:[%s17959_s5 + $0x244] sm:$0xf] }
 0x229   : > { %2270 = vmatmul.bf16.vlgmr.msra.gmra.mxu1 %v13343_v46  ;;  %2303 = vmatpush.bf16.msra.mxu0 %v7789_v59  ;;  %v10037_v59 = vld [vmem:[%s17959_s5 + $0xc4] sm:$0xf] }
 0x22a   : > { %2237 = vmatmul.bf16.gmra.mxu0 %v13347_v51  ;;  %v7601_v14 = vor.u32 %v10037_v59, %v7598_v54  ;;  %v10029_v54 = vld [vmem:[%s17959_s5 + $0x84] sm:$0xf] }
 0x22c   : > { %2288 = vmatpush.bf16.msra.mxu3 %v7693_v2 }
 0x22d   : > { %2304 = vmatpush.bf16.msra.mxu0 %v7781_v31  ;;  %v10106_v31 = vld [vmem:[%s17959_s5 + $0x2e4] sm:$0xf0] }
 0x22e   : > { %2256 = vmatmul.bf16.gmra.mxu2 %v13350_v45 }
 0x230   : > { %2357 = vmatpush.bf16.msrb.mxu3 %v7561_v15  ;;  %v10091_v15 = vld [vmem:[%s17959_s5 + $0x274] sm:$0xf] }
 0x231   : > { %2305 = vmatpush.bf16.msra.mxu0 %v7773_v27  ;;  %v7817_v28 = vor.u32 %v10091_v15, %v7814_v0  ;;  %v7593_v27 = vor.u32 %v10035_v61, %v7590_v11  ;;  %v7566_v15 = vld [vmem:[%s17959_s5 + $0x88] sm:$0xf0]  ;;  %v7782_v0 = vld [vmem:[%s17959_s5 + $0x238] sm:$0xf0]  ;;  %v10118_v61 = vld [vmem:[%s17959_s5 + $0x344] sm:$0xf0] }
 0x234   : > { %2358 = vmatpush.bf16.msrb.mxu3 %v7553_v44  ;;  %v7869_v44 = vor.u32 %v10106_v31, %v7868_v52  ;;  %v7836_v52 = vld [vmem:[%s17959_s5 + $0x2a0] sm:$0xf]  ;;  %v10098_v31 = vld [vmem:[%s17959_s5 + $0x2a4] sm:$0xf0] }
 0x235   : > { %2306 = vmatpush.bf16.msra.mxu0 %v7765_v6  ;;  %v7940_v6 = vld [vmem:[%s17959_s5 + $0x370] sm:$0xf] }
 0x236   : > { %2320 = vmatpush.bf16.msra.mxu2 %v7869_v44  ;;  %v7941_v39 = vor.u32 %v10124_v41, %v7940_v6  ;;  %v7837_v44 = vor.u32 %v10098_v31, %v7836_v52  ;;  %v7828_v6 = vld [vmem:[%s17959_s5 + $0x290] sm:$0xf]  ;;  %v10096_v41 = vld [vmem:[%s17959_s5 + $0x294] sm:$0xf0]  ;;  %v10110_v52 = vld [vmem:[%s17959_s5 + $0x304] sm:$0xf0] }
 0x237   : > { %v10057_v31 = vld [vmem:[%s17959_s5 + $0x164] sm:$0xf] }
 0x238   : > { %2359 = vmatpush.bf16.msrb.mxu3 %v7545_v26  ;;  %v7860_v26 = vld [vmem:[%s17959_s5 + $0x2d0] sm:$0xf]  ;;  %2338 = vmatpush.bf16.msrb.mxu1 %v7941_v39  ;;  %v7829_v39 = vor.u32 %v10096_v41, %v7828_v6  ;;  %v7670_v6 = vld [vmem:[%s17959_s5 + $0x158] sm:$0xf0]  ;;  %v10075_v41 = vld [vmem:[%s17959_s5 + $0x1f4] sm:$0xf] }
 0x239   : > { %2275 = vmatmul.bf16.gmra.mxu1 %v13390_v9  ;;  %2307 = vmatpush.bf16.msra.mxu0 %v7757_v57  ;;  %v7861_v48 = vor.u32 %v10104_v35, %v7860_v26  ;;  %v10087_v57 = vld [vmem:[%s17959_s5 + $0x254] sm:$0xf] }
 0x23a   : > { %v10107_v26 = vld [vmem:[%s17959_s5 + $0x2f4] sm:$0xf] }
 0x23b   : > { %2321 = vmatpush.bf16.msra.mxu2 %v7861_v48 }
 0x23c   : > { %2360 = vmatpush.bf16.msrb.mxu3 %v7537_v23  ;;  %v10033_v23 = vld [vmem:[%s17959_s5 + $0xa4] sm:$0xf] }
 0x23d   : > { %2376 = vmatpush.bf16.msrb.mxu0 %v7625_v38  ;;  %v7574_v38 = vld [vmem:[%s17959_s5 + $0x98] sm:$0xf0] }
 0x240   : > { %2361 = vmatpush.bf16.msrb.mxu3 %v7529_v62  ;;  %v7801_v62 = vor.u32 %v10087_v57, %v7798_v21  ;;  %v10079_v21 = vld [vmem:[%s17959_s5 + $0x214] sm:$0xf] }
 0x241   : > { %v1352_v49 = vpop.f32.mrf.mxu2  ;;  %2377 = vmatpush.bf16.msrb.mxu0 %v7617_v32  ;;  %v10100_v32 = vld [vmem:[%s17959_s5 + $0x2b4] sm:$0xf0] }
 0x242   : > { %v1323_v53 = vpop.f32.mrf.mxu0 }
 0x243   : > { %v1353_v37 = vadd.f32 %v1352_v49, %v1323_v53  ;;  %v7585_v49 = vor.u32 %v10033_v23, %v7582_v33  ;;  %v7852_v53 = vld [vmem:[%s17959_s5 + $0x2c0] sm:$0xf]  ;;  %v7908_v23 = vld [vmem:[%s17959_s5 + $0x330] sm:$0xf]  ;;  %v10116_v33 = vld [vmem:[%s17959_s5 + $0x334] sm:$0xf0] }
 0x244   : > { %2362 = vmatpush.bf16.msrb.mxu3 %v7521_v3  ;;  %v7853_v50 = vor.u32 %v10102_v60, %v7852_v53  ;;  %v10122_v3 = vld [vmem:[%s17959_s5 + $0x364] sm:$0xf0]  ;;  %v7909_v57 = vor.u32 %v10116_v33, %v7908_v23  ;;  %v7870_v60 = vld [vmem:[%s17959_s5 + $0x2e8] sm:$0xf0]  ;;  %v10097_v33 = vld [vmem:[%s17959_s5 + $0x2a4] sm:$0xf] }
 0x245   : > { %v13474_v34 = vpop.f32.mrf.mxu1  ;;  %2378 = vmatpush.bf16.msrb.mxu0 %v7609_v12 }
 0x246   : > { %2322 = vmatpush.bf16.msra.mxu2 %v7853_v50  ;;  %v7820_v50 = vld [vmem:[%s17959_s5 + $0x280] sm:$0xf] }
 0x248   : > { %2363 = vmatpush.bf16.msrb.mxu3 %v7513_v16  ;;  %v7933_v16 = vor.u32 %v10122_v3, %v7932_v63  ;;  %v10094_v3 = vld [vmem:[%s17959_s5 + $0x284] sm:$0xf0] }
 0x249   : > { %v1355_v10 = vpop.f32.mrf.mxu2  ;;  %2379 = vmatpush.bf16.msrb.mxu0 %v7601_v14  ;;  %v7569_v14 = vor.u32 %v10029_v54, %v7566_v15  ;;  %v8180_v54 = vld [vmem:[%s17959_s5 + $0x470] sm:$0xf] }
 0x24a   : > { %v1326_v58 = vpop.f32.mrf.mxu0  ;;  %2339 = vmatpush.bf16.msrb.mxu1 %v7933_v16  ;;  %v7758_v16 = vld [vmem:[%s17959_s5 + $0x208] sm:$0xf0] }
 0x24b   : > { %v1356_v2 = vadd.f32 %v1355_v10, %v1326_v58  ;;  %v7577_v58 = vor.u32 %v10031_v40, %v7574_v38  ;;  %v7900_v40 = vld [vmem:[%s17959_s5 + $0x320] sm:$0xf]  ;;  %v7821_v38 = vor.u32 %v10094_v3, %v7820_v50  ;;  %v7662_v50 = vld [vmem:[%s17959_s5 + $0x148] sm:$0xf0]  ;;  %v10073_v3 = vld [vmem:[%s17959_s5 + $0x1e4] sm:$0xf] }
 0x24c   : > { %2364 = vmatpush.bf16.msrb.mxu3 %v7505_v13 }
 0x24d   : > { %v13465_v30 = vpack.c.bf16 %v1356_v2, %v1353_v37  ;;  %2380 = vmatpush.bf16.msrb.mxu0 %v7593_v27  ;;  %v1384_v56 = vpop.f32.mrf.mxu1  ;;  %v7844_v37 = vld [vmem:[%s17959_s5 + $0x2b0] sm:$0xf]  ;;  %v7793_v2 = vor.u32 %v10085_v5, %v7790_v7  ;;  %v10081_v27 = vld [vmem:[%s17959_s5 + $0x224] sm:$0xf]  ;;  %v10103_v5 = vld [vmem:[%s17959_s5 + $0x2d4] sm:$0xf] }
 0x24e   : > { %v7845_v12 = vor.u32 %v10100_v32, %v7844_v37  ;;  %2340 = vmatpush.bf16.msrb.mxu1 %v7925_v29  ;;  %v7777_v35 = vor.u32 %v10081_v27, %v7774_v42  ;;  %v7862_v37 = vld [vmem:[%s17959_s5 + $0x2d8] sm:$0xf0]  ;;  %v8172_v42 = vld [vmem:[%s17959_s5 + $0x460] sm:$0xf] }
 0x24f   : > { %2289 = vmatmul.bf16.vlgmr.msra.gmra.mxu3 %v13465_v30  ;;  %v7865_v32 = vor.u32 %v10103_v5, %v7862_v37  ;;  %v7846_v27 = vld [vmem:[%s17959_s5 + $0x2b8] sm:$0xf0] }
 0x250   : > { %2433 = vmatpush.bf16.msra.mxu3 %v7817_v28  ;;  %2323 = vmatpush.bf16.msra.mxu2 %v7845_v12  ;;  %v7686_v12 = vld [vmem:[%s17959_s5 + $0x178] sm:$0xf0] }
 0x251   : > { %v1358_v25 = vpop.f32.mrf.mxu2  ;;  %2381 = vmatpush.bf16.msrb.mxu0 %v7585_v49  ;;  %v7766_v49 = vld [vmem:[%s17959_s5 + $0x218] sm:$0xf0] }
 0x252   : > { %v1329_v1 = vpop.f32.mrf.mxu0  ;;  %v7769_v53 = vor.u32 %v10079_v21, %v7766_v49  ;;  %v8164_v21 = vld [vmem:[%s17959_s5 + $0x450] sm:$0xf] }
 0x253   : > { %v1359_v43 = vadd.f32 %v1358_v25, %v1329_v1  ;;  %v7916_v1 = vld [vmem:[%s17959_s5 + $0x340] sm:$0xf] }
 0x254   : > { %2434 = vmatpush.bf16.msra.mxu3 %v7809_v47  ;;  %v7917_v18 = vor.u32 %v10118_v61, %v7916_v1  ;;  %v7878_v47 = vld [vmem:[%s17959_s5 + $0x2f8] sm:$0xf0]  ;;  %2324 = vmatpush.bf16.msra.mxu2 %v7837_v44  ;;  %v7678_v61 = vld [vmem:[%s17959_s5 + $0x168] sm:$0xf0] }
 0x255   : > { %v1410_v55 = vpop.f32.mrf.mxu3  ;;  %2382 = vmatpush.bf16.msrb.mxu0 %v7577_v58  ;;  %v1387_v11 = vpop.f32.mrf.mxu1  ;;  %v7881_v48 = vor.u32 %v10107_v26, %v7878_v47 }
 0x256   : > { %v1411_v13 = vadd.f32 %v1410_v55, %v13474_v34  ;;  %v10083_v34 = vld [vmem:[%s17959_s5 + $0x234] sm:$0xf]  ;;  %2341 = vmatpush.bf16.msrb.mxu1 %v7917_v18 }
 0x257   : > { %v7785_v28 = vor.u32 %v10083_v34, %v7782_v0  ;;  %v10099_v18 = vld [vmem:[%s17959_s5 + $0x2b4] sm:$0xf] }
 0x258   : > { %2435 = vmatpush.bf16.msra.mxu3 %v7801_v62  ;;  %v10105_v62 = vld [vmem:[%s17959_s5 + $0x2e4] sm:$0xf]  ;;  %2325 = vmatpush.bf16.msra.mxu2 %v7829_v39  ;;  %v7849_v26 = vor.u32 %v10099_v18, %v7846_v27  ;;  %v10172_v27 = vld [vmem:[%s17959_s5 + $0x4f4] sm:$0xf0] }
 0x259   : > { %v1361_v24 = vpop.f32.mrf.mxu2  ;;  %2383 = vmatpush.bf16.msrb.mxu0 %v7569_v14  ;;  %v7873_v63 = vor.u32 %v10105_v62, %v7870_v60  ;;  %v10156_v14 = vld [vmem:[%s17959_s5 + $0x474] sm:$0xf0] }
 0x25a   : > { %v1332_v10 = vpop.f32.mrf.mxu0  ;;  %2342 = vmatpush.bf16.msrb.mxu1 %v7909_v57  ;;  %v8181_v0 = vor.u32 %v10156_v14, %v8180_v54  ;;  %v7838_v57 = vld [vmem:[%s17959_s5 + $0x2a8] sm:$0xf0]  ;;  %v10069_v14 = vld [vmem:[%s17959_s5 + $0x1c4] sm:$0xf] }
 0x25b   : > { %v1362_v36 = vadd.f32 %v1361_v24, %v1332_v10  ;;  %v7841_v62 = vor.u32 %v10097_v33, %v7838_v57  ;;  %v8236_v33 = vld [vmem:[%s17959_s5 + $0x4e0] sm:$0xf] }
 0x25c   : > { %2436 = vmatpush.bf16.msra.mxu3 %v7793_v2  ;;  %2326 = vmatpush.bf16.msra.mxu2 %v7821_v38  ;;  %v7893_v2 = vor.u32 %v10112_v19, %v7892_v20  ;;  %v7742_v38 = vld [vmem:[%s17959_s5 + $0x1e8] sm:$0xf0]  ;;  %v10071_v20 = vld [vmem:[%s17959_s5 + $0x1d4] sm:$0xf] }
 0x25d   : > { %v13567_v22 = vpack.c.bf16 %v1362_v36, %v1359_v43  ;;  %v1413_v8 = vpop.f32.mrf.mxu3  ;;  %v10114_v43 = vld [vmem:[%s17959_s5 + $0x324] sm:$0xf0]  ;;  %v1390_v10 = vpop.f32.mrf.mxu1  ;;  %v10059_v36 = vld [vmem:[%s17959_s5 + $0x174] sm:$0xf] }
 0x25e   : > { %v1414_v59 = vadd.f32 %v1413_v8, %v1384_v56  ;;  %v7901_v24 = vor.u32 %v10114_v43, %v7900_v40  ;;  %v10077_v56 = vld [vmem:[%s17959_s5 + $0x204] sm:$0xf]  ;;  %v7689_v29 = vor.u32 %v10059_v36, %v7686_v12  ;;  %v7745_v43 = vor.u32 %v10073_v3, %v7742_v38  ;;  %v7734_v36 = vld [vmem:[%s17959_s5 + $0x1d8] sm:$0xf0]  ;;  %v7822_v12 = vld [vmem:[%s17959_s5 + $0x288] sm:$0xf0] }
 0x25f   : > { %2294 = vmatmul.bf16.gmra.mxu3 %v13567_v22  ;;  %v7761_v7 = vor.u32 %v10077_v56, %v7758_v16  ;;  %v10101_v8 = vld [vmem:[%s17959_s5 + $0x2c4] sm:$0xf]  ;;  %v7830_v56 = vld [vmem:[%s17959_s5 + $0x298] sm:$0xf0]  ;;  %v8156_v16 = vld [vmem:[%s17959_s5 + $0x440] sm:$0xf] }
 0x260   : > { %v13582_v25 = vpack.c.bf16 %v1414_v59, %v1411_v13  ;;  %2437 = vmatpush.bf16.msra.mxu3 %v7785_v28  ;;  %2343 = vmatpush.bf16.msrb.mxu1 %v7901_v24  ;;  %v7854_v59 = vld [vmem:[%s17959_s5 + $0x2c8] sm:$0xf0]  ;;  %v7884_v28 = vld [vmem:[%s17959_s5 + $0x300] sm:$0xf]  ;;  %v10095_v24 = vld [vmem:[%s17959_s5 + $0x294] sm:$0xf] }
 0x261   : > { %v7857_v34 = vor.u32 %v10101_v8, %v7854_v59  ;;  %2395 = vmatpush.bf16.msrb.mxu2 %v7689_v29  ;;  %v7885_v44 = vor.u32 %v10110_v52, %v7884_v28  ;;  %v7833_v5 = vor.u32 %v10095_v24, %v7830_v56  ;;  %v10148_v8 = vld [vmem:[%s17959_s5 + $0x434] sm:$0xf0]  ;;  %v7726_v52 = vld [vmem:[%s17959_s5 + $0x1c8] sm:$0xf0]  ;;  %v10065_v3 = vld [vmem:[%s17959_s5 + $0x1a4] sm:$0xf] }
 0x262   : > { %2308 = vmatmul.bf16.vlgmr.msra.gmra.mxu0 %v13582_v25  ;;  %v7710_v24 = vld [vmem:[%s17959_s5 + $0x1a8] sm:$0xf0] }
 0x263   : > { %2452 = vmatpush.bf16.msra.mxu0 %v7881_v48  ;;  %v10055_v48 = vld [vmem:[%s17959_s5 + $0x154] sm:$0xf]  ;;  %v7713_v56 = vor.u32 %v10065_v3, %v7710_v24  ;;  %v8420_v3 = vld [vmem:[%s17959_s5 + $0x650] sm:$0xf] }
 0x264   : > { %2438 = vmatpush.bf16.msra.mxu3 %v7777_v35  ;;  %2344 = vmatpush.bf16.msrb.mxu1 %v7893_v2  ;;  %v10154_v35 = vld [vmem:[%s17959_s5 + $0x464] sm:$0xf0]  ;;  %v7673_v23 = vor.u32 %v10055_v48, %v7670_v6  ;;  %v10093_v2 = vld [vmem:[%s17959_s5 + $0x284] sm:$0xf]  ;;  %v7718_v6 = vld [vmem:[%s17959_s5 + $0x1b8] sm:$0xf0] }
 0x265   : > { %v1416_v55 = vpop.f32.mrf.mxu3  ;;  %v8173_v47 = vor.u32 %v10154_v35, %v8172_v42  ;;  %v7825_v29 = vor.u32 %v10093_v2, %v7822_v12  ;;  %v7638_v35 = vld [vmem:[%s17959_s5 + $0x118] sm:$0xf0] }
 0x266   : > { %v1417_v58 = vadd.f32 %v1416_v55, %v1387_v11  ;;  %v7681_v11 = vor.u32 %v10057_v31, %v7678_v61  ;;  %v7750_v55 = vld [vmem:[%s17959_s5 + $0x1f8] sm:$0xf0]  ;;  %v7729_v31 = vor.u32 %v10069_v14, %v7726_v52  ;;  %v10146_v61 = vld [vmem:[%s17959_s5 + $0x424] sm:$0xf0]  ;;  %v10061_v52 = vld [vmem:[%s17959_s5 + $0x184] sm:$0xf] }
 0x267   : > { %2453 = vmatpush.bf16.msra.mxu0 %v7873_v63  ;;  %v7753_v39 = vor.u32 %v10075_v41, %v7750_v55  ;;  %v10053_v63 = vld [vmem:[%s17959_s5 + $0x144] sm:$0xf]  ;;  %v8132_v55 = vld [vmem:[%s17959_s5 + $0x410] sm:$0xf]  ;;  %v7942_v12 = vld [vmem:[%s17959_s5 + $0x378] sm:$0xf0] }
 0x268   : > { %2439 = vmatpush.bf16.msra.mxu3 %v7769_v53  ;;  %2345 = vmatpush.bf16.msrb.mxu1 %v7885_v44  ;;  %v10152_v53 = vld [vmem:[%s17959_s5 + $0x454] sm:$0xf0]  ;;  %v7665_v40 = vor.u32 %v10053_v63, %v7662_v50  ;;  %v8140_v44 = vld [vmem:[%s17959_s5 + $0x420] sm:$0xf]  ;;  %v10045_v63 = vld [vmem:[%s17959_s5 + $0x104] sm:$0xf] }
 0x269   : > { %2396 = vmatpush.bf16.msrb.mxu2 %v7681_v11  ;;  %v8165_v60 = vor.u32 %v10152_v53, %v8164_v21  ;;  %v8244_v11 = vld [vmem:[%s17959_s5 + $0x4f0] sm:$0xf]  ;;  %v8141_v18 = vor.u32 %v10146_v61, %v8140_v44  ;;  %v10170_v21 = vld [vmem:[%s17959_s5 + $0x4e4] sm:$0xf0]  ;;  %v7630_v50 = vld [vmem:[%s17959_s5 + $0x108] sm:$0xf0] }
 0x26a   : > { %v8245_v42 = vor.u32 %v10172_v27, %v8244_v11  ;;  %v10121_v44 = vld [vmem:[%s17959_s5 + $0x364] sm:$0xf]  ;;  %v7934_v27 = vld [vmem:[%s17959_s5 + $0x368] sm:$0xf0] }
 0x26b   : > { %2454 = vmatpush.bf16.msra.mxu0 %v7865_v32  ;;  %v7654_v32 = vld [vmem:[%s17959_s5 + $0x138] sm:$0xf0] }
 0x26c   : > { %2440 = vmatpush.bf16.msra.mxu3 %v7761_v7  ;;  %2414 = vmatpush.bf16.msra.mxu1 %v7753_v39  ;;  %v10150_v7 = vld [vmem:[%s17959_s5 + $0x444] sm:$0xf0]  ;;  %v10144_v39 = vld [vmem:[%s17959_s5 + $0x414] sm:$0xf0] }
 0x26d   : > { %2397 = vmatpush.bf16.msrb.mxu2 %v7673_v23  ;;  %v8157_v37 = vor.u32 %v10150_v7, %v8156_v16  ;;  %v8133_v57 = vor.u32 %v10144_v39, %v8132_v55  ;;  %v8124_v16 = vld [vmem:[%s17959_s5 + $0x400] sm:$0xf]  ;;  %v10119_v55 = vld [vmem:[%s17959_s5 + $0x354] sm:$0xf]  ;;  %v7926_v39 = vld [vmem:[%s17959_s5 + $0x358] sm:$0xf0] }
 0x26e   : > { %v1419_v13 = vpop.f32.mrf.mxu3 }
 0x26f   : > { %2365 = vmatmul.bf16.vlgmr.msrb.gmra.mxu3 %v13276_v4  ;;  %v1420_v15 = vadd.f32 %v1419_v13, %v1390_v10  ;;  %2455 = vmatpush.bf16.msra.mxu0 %v7857_v34  ;;  %v10051_v10 = vld [vmem:[%s17959_s5 + $0x134] sm:$0xf]  ;;  %v8148_v13 = vld [vmem:[%s17959_s5 + $0x430] sm:$0xf]  ;;  %v7646_v34 = vld [vmem:[%s17959_s5 + $0x128] sm:$0xf0] }
 0x270   : > { %3182 = vmatpush.bf16.msrb.mxu3 %v8181_v0  ;;  %2415 = vmatpush.bf16.msra.mxu1 %v7745_v43  ;;  %v7657_v19 = vor.u32 %v10051_v10, %v7654_v32  ;;  %v8149_v54 = vor.u32 %v10148_v8, %v8148_v13  ;;  %v7633_v43 = vor.u32 %v10045_v63, %v7630_v50  ;;  %v10168_v32 = vld [vmem:[%s17959_s5 + $0x4d4] sm:$0xf0]  ;;  %v8220_v8 = vld [vmem:[%s17959_s5 + $0x4c0] sm:$0xf]  ;;  %v10162_v50 = vld [vmem:[%s17959_s5 + $0x4a4] sm:$0xf0] }
 0x271   : > { %v13691_v1 = vpack.c.bf16 %v1420_v15, %v1417_v58  ;;  %2398 = vmatpush.bf16.msrb.mxu2 %v7665_v40  ;;  %v7737_v58 = vor.u32 %v10071_v20, %v7734_v36  ;;  %v10049_v15 = vld [vmem:[%s17959_s5 + $0x124] sm:$0xf]  ;;  %v7702_v36 = vld [vmem:[%s17959_s5 + $0x198] sm:$0xf0]  ;;  %v8204_v63 = vld [vmem:[%s17959_s5 + $0x4a0] sm:$0xf] }
 0x272   : > { %v7649_v28 = vor.u32 %v10049_v15, %v7646_v34  ;;  %v10220_v34 = vld [vmem:[%s17959_s5 + $0x674] sm:$0xf0] }
 0x273   : > { %2313 = vmatmul.bf16.gmra.mxu0 %v13691_v1 }
 0x274   : > { %2456 = vmatpush.bf16.msra.mxu0 %v7849_v26  ;;  %3183 = vmatpush.bf16.msrb.mxu3 %v8173_v47  ;;  %v10047_v26 = vld [vmem:[%s17959_s5 + $0x114] sm:$0xf] }
 0x275   : > { %2399 = vmatpush.bf16.msrb.mxu2 %v7657_v19  ;;  %2416 = vmatpush.bf16.msra.mxu1 %v7737_v58  ;;  %v10067_v47 = vld [vmem:[%s17959_s5 + $0x1b4] sm:$0xf]  ;;  %v7641_v48 = vor.u32 %v10047_v26, %v7638_v35  ;;  %v8212_v26 = vld [vmem:[%s17959_s5 + $0x4b0] sm:$0xf]  ;;  %v10164_v35 = vld [vmem:[%s17959_s5 + $0x4b4] sm:$0xf0] }
 0x276   : > { %v13730_v49 = vpop.f32.mrf.mxu0  ;;  %v7721_v23 = vor.u32 %v10067_v47, %v7718_v6  ;;  %v10063_v19 = vld [vmem:[%s17959_s5 + $0x194] sm:$0xf]  ;;  %v8428_v47 = vld [vmem:[%s17959_s5 + $0x660] sm:$0xf]  ;;  %v8213_v6 = vor.u32 %v10164_v35, %v8212_v26 }
 0x277   : > { %v10123_v58 = vld [vmem:[%s17959_s5 + $0x374] sm:$0xf]  ;;  %v7705_v2 = vor.u32 %v10063_v19, %v7702_v36  ;;  %v10138_v19 = vld [vmem:[%s17959_s5 + $0x3e4] sm:$0xf0] }
 0x278   : > { %2457 = vmatpush.bf16.msra.mxu0 %v7841_v62  ;;  %3184 = vmatpush.bf16.msrb.mxu3 %v8165_v60  ;;  %v8237_v60 = vor.u32 %v10170_v21, %v8236_v33  ;;  %v8116_v33 = vld [vmem:[%s17959_s5 + $0x3f0] sm:$0xf]  ;;  %v7929_v21 = vor.u32 %v10119_v55, %v7926_v39 }
 0x279   : > { %2400 = vmatpush.bf16.msrb.mxu2 %v7649_v28  ;;  %2417 = vmatpush.bf16.msra.mxu1 %v7729_v31  ;;  %v7694_v31 = vld [vmem:[%s17959_s5 + $0x188] sm:$0xf0] }
 0x27c   : > { %2458 = vmatpush.bf16.msra.mxu0 %v7833_v5  ;;  %3185 = vmatpush.bf16.msrb.mxu3 %v8157_v37  ;;  %v10142_v5 = vld [vmem:[%s17959_s5 + $0x404] sm:$0xf0] }
 0x27d   : > { %2401 = vmatpush.bf16.msrb.mxu2 %v7641_v48  ;;  %2418 = vmatpush.bf16.msra.mxu1 %v7721_v23  ;;  %v8125_v10 = vor.u32 %v10142_v5, %v8124_v16  ;;  %v10117_v16 = vld [vmem:[%s17959_s5 + $0x344] sm:$0xf]  ;;  %v7918_v5 = vld [vmem:[%s17959_s5 + $0x348] sm:$0xf0] }
 0x27e   : > { %v1442_v0 = vpop.f32.mrf.mxu0 }
 0x27f   : > { %2370 = vmatmul.bf16.gmra.mxu3 %v13347_v51 }
 0x280   : > { %v1468_v59 = vpop.f32.mrf.mxu2  ;;  %2459 = vmatpush.bf16.msra.mxu0 %v7825_v29  ;;  %3186 = vmatpush.bf16.msrb.mxu3 %v8149_v54  ;;  %v7945_v29 = vor.u32 %v10123_v58, %v7942_v12  ;;  %v8436_v54 = vld [vmem:[%s17959_s5 + $0x670] sm:$0xf] }
 0x281   : > { %v1469_v40 = vadd.f32 %v1468_v59, %v13730_v49  ;;  %v8228_v49 = vld [vmem:[%s17959_s5 + $0x4d0] sm:$0xf]  ;;  %2402 = vmatpush.bf16.msrb.mxu2 %v7633_v43  ;;  %2419 = vmatpush.bf16.msra.mxu1 %v7713_v56  ;;  %v10166_v59 = vld [vmem:[%s17959_s5 + $0x4c4] sm:$0xf0]  ;;  %v8437_v28 = vor.u32 %v10220_v34, %v8436_v54  ;;  %v7910_v54 = vld [vmem:[%s17959_s5 + $0x338] sm:$0xf0] }
 0x282   : > { %v8229_v20 = vor.u32 %v10168_v32, %v8228_v49  ;;  %v8221_v15 = vor.u32 %v10166_v59, %v8220_v8  ;;  %v8108_v49 = vld [vmem:[%s17959_s5 + $0x3e0] sm:$0xf]  ;;  %v8196_v58 = vld [vmem:[%s17959_s5 + $0x490] sm:$0xf]  ;;  %v10115_v59 = vld [vmem:[%s17959_s5 + $0x334] sm:$0xf] }
 0x283   : > { %2384 = vmatmul.bf16.vlgmr.msrb.gmra.mxu0 %v13291_v17  ;;  %v8109_v36 = vor.u32 %v10138_v19, %v8108_v49  ;;  %v10109_v19 = vld [vmem:[%s17959_s5 + $0x304] sm:$0xf] }
 0x284   : > { %3201 = vmatpush.bf16.msrb.mxu0 %v8245_v42  ;;  %3187 = vmatpush.bf16.msrb.mxu3 %v8141_v18  ;;  %v7697_v18 = vor.u32 %v10061_v52, %v7694_v31  ;;  %v7937_v42 = vor.u32 %v10121_v44, %v7934_v27  ;;  %v8188_v31 = vld [vmem:[%s17959_s5 + $0x480] sm:$0xf]  ;;  %v10158_v44 = vld [vmem:[%s17959_s5 + $0x484] sm:$0xf0]  ;;  %v10113_v27 = vld [vmem:[%s17959_s5 + $0x324] sm:$0xf] }
 0x285   : > { %2420 = vmatpush.bf16.msra.mxu1 %v7705_v2  ;;  %v10160_v2 = vld [vmem:[%s17959_s5 + $0x494] sm:$0xf0] }
 0x286   : > { %v1497_v41 = vpop.f32.mrf.mxu1  ;;  %v13857_v37 = vpop.f32.mrf.mxu0 }
 0x288   : > { %v1471_v62 = vpop.f32.mrf.mxu2  ;;  %v1526_v53 = vpop.f32.mrf.mxu3  ;;  %3202 = vmatpush.bf16.msrb.mxu0 %v8237_v60  ;;  %3188 = vmatpush.bf16.msrb.mxu3 %v8133_v57 }
 0x289   : > { %v1472_v38 = vadd.f32 %v1471_v62, %v1442_v0  ;;  %v1527_v61 = vadd.f32 %v1526_v53, %v1497_v41  ;;  %v10218_v41 = vld [vmem:[%s17959_s5 + $0x664] sm:$0xf0]  ;;  %2421 = vmatpush.bf16.msra.mxu1 %v7697_v18  ;;  %v10140_v62 = vld [vmem:[%s17959_s5 + $0x3f4] sm:$0xf0] }
 0x28a   : > { %v8429_v23 = vor.u32 %v10218_v41, %v8428_v47  ;;  %v8117_v60 = vor.u32 %v10140_v62, %v8116_v33  ;;  %v10212_v18 = vld [vmem:[%s17959_s5 + $0x634] sm:$0xf0]  ;;  %v10134_v41 = vld [vmem:[%s17959_s5 + $0x3c4] sm:$0xf0] }
 0x28b   : > { %v13855_v7 = vpack.c.bf16 %v1472_v38, %v1469_v40  ;;  %v8205_v40 = vor.u32 %v10162_v50, %v8204_v63  ;;  %v10216_v38 = vld [vmem:[%s17959_s5 + $0x654] sm:$0xf0]  ;;  %v10210_v62 = vld [vmem:[%s17959_s5 + $0x624] sm:$0xf0] }
 0x28c   : > { %3203 = vmatpush.bf16.msrb.mxu0 %v8229_v20  ;;  %3189 = vmatpush.bf16.msrb.mxu3 %v8125_v10  ;;  %v8421_v56 = vor.u32 %v10216_v38, %v8420_v3  ;;  %v7921_v20 = vor.u32 %v10117_v16, %v7918_v5  ;;  %v10236_v50 = vld [vmem:[%s17959_s5 + $0x6f4] sm:$0xf0]  ;;  %v7894_v38 = vld [vmem:[%s17959_s5 + $0x318] sm:$0xf0]  ;;  %v8388_v16 = vld [vmem:[%s17959_s5 + $0x610] sm:$0xf] }
 0x28d   : > { %2327 = vmatmul.bf16.vlgmr.msra.gmra.mxu2 %v13855_v7  ;;  %v10208_v5 = vld [vmem:[%s17959_s5 + $0x614] sm:$0xf0] }
 0x28e   : > { %v1500_v13 = vpop.f32.mrf.mxu1  ;;  %2471 = vmatpush.bf16.msra.mxu2 %v7945_v29  ;;  %v1448_v57 = vpop.f32.mrf.mxu0  ;;  %v10214_v29 = vld [vmem:[%s17959_s5 + $0x644] sm:$0xf0] }
 0x28f   : > { %2441 = vmatmul.bf16.vlgmr.msra.gmra.mxu3 %v13582_v25 }
 0x290   : > { %v1474_v14 = vpop.f32.mrf.mxu2  ;;  %v1529_v0 = vpop.f32.mrf.mxu3  ;;  %3204 = vmatpush.bf16.msrb.mxu0 %v8221_v15  ;;  %3258 = vmatpush.bf16.msra.mxu3 %v8437_v28  ;;  %v8100_v15 = vld [vmem:[%s17959_s5 + $0x3d0] sm:$0xf] }
 0x291   : > { %v1530_v11 = vadd.f32 %v1529_v0, %v1500_v13  ;;  %v1475_v10 = vadd.f32 %v1474_v14, %v13857_v37  ;;  %v8412_v37 = vld [vmem:[%s17959_s5 + $0x640] sm:$0xf]  ;;  %v8197_v13 = vor.u32 %v10160_v2, %v8196_v58  ;;  %v7913_v14 = vor.u32 %v10115_v59, %v7910_v54  ;;  %v10136_v0 = vld [vmem:[%s17959_s5 + $0x3d4] sm:$0xf0] }
 0x292   : > { %2472 = vmatpush.bf16.msra.mxu2 %v7937_v42  ;;  %v8413_v8 = vor.u32 %v10214_v29, %v8412_v37  ;;  %v8101_v52 = vor.u32 %v10136_v0, %v8100_v15  ;;  %v7902_v42 = vld [vmem:[%s17959_s5 + $0x328] sm:$0xf0]  ;;  %v8389_v2 = vor.u32 %v10208_v5, %v8388_v16  ;;  %v8076_v29 = vld [vmem:[%s17959_s5 + $0x3a0] sm:$0xf]  ;;  %v8292_v5 = vld [vmem:[%s17959_s5 + $0x550] sm:$0xf] }
 0x293   : > { %v13909_v48 = vpack.c.bf16 %v1530_v11, %v1527_v61  ;;  %2389 = vmatmul.bf16.gmra.mxu0 %v13350_v45  ;;  %v8404_v61 = vld [vmem:[%s17959_s5 + $0x630] sm:$0xf]  ;;  %v8189_v11 = vor.u32 %v10158_v44, %v8188_v31  ;;  %v7905_v47 = vor.u32 %v10113_v27, %v7902_v42  ;;  %v8380_v15 = vld [vmem:[%s17959_s5 + $0x600] sm:$0xf]  ;;  %v10188_v27 = vld [vmem:[%s17959_s5 + $0x574] sm:$0xf0] }
 0x294   : > { %3205 = vmatpush.bf16.msrb.mxu0 %v8213_v6  ;;  %3259 = vmatpush.bf16.msra.mxu3 %v8429_v23  ;;  %v8405_v35 = vor.u32 %v10212_v18, %v8404_v61  ;;  %v8092_v6 = vld [vmem:[%s17959_s5 + $0x3c0] sm:$0xf]  ;;  %v8068_v44 = vld [vmem:[%s17959_s5 + $0x390] sm:$0xf]  ;;  %v10128_v61 = vld [vmem:[%s17959_s5 + $0x394] sm:$0xf0] }
 0x295   : > { %2346 = vmatmul.bf16.vlgmr.msrb.gmra.mxu1 %v13909_v48  ;;  %v8093_v33 = vor.u32 %v10134_v41, %v8092_v6  ;;  %v8069_v18 = vor.u32 %v10128_v61, %v8068_v44  ;;  %v10171_v6 = vld [vmem:[%s17959_s5 + $0x4f4] sm:$0xf]  ;;  %v8452_v61 = vld [vmem:[%s17959_s5 + $0x690] sm:$0xf] }
 0x296   : > { %v1503_v53 = vpop.f32.mrf.mxu1  ;;  %2473 = vmatpush.bf16.msra.mxu2 %v7929_v21  ;;  %3163 = vmatpush.bf16.msrb.mxu1 %v8117_v60  ;;  %v8396_v21 = vld [vmem:[%s17959_s5 + $0x620] sm:$0xf]  ;;  %v8500_v60 = vld [vmem:[%s17959_s5 + $0x6f0] sm:$0xf] }
 0x297   : > { %v2233_v34 = vpop.f32.mrf.mxu0  ;;  %v8501_v3 = vor.u32 %v10236_v50, %v8500_v60 }
 0x298   : > { %v1477_v43 = vpop.f32.mrf.mxu2  ;;  %v1532_v24 = vpop.f32.mrf.mxu3  ;;  %3206 = vmatpush.bf16.msrb.mxu0 %v8205_v40  ;;  %3260 = vmatpush.bf16.msra.mxu3 %v8421_v56  ;;  %v10111_v40 = vld [vmem:[%s17959_s5 + $0x314] sm:$0xf]  ;;  %v10132_v56 = vld [vmem:[%s17959_s5 + $0x3b4] sm:$0xf0] }
 0x299   : > { %v1478_v32 = vadd.f32 %v1477_v43, %v1448_v57  ;;  %v1533_v23 = vadd.f32 %v1532_v24, %v1503_v53  ;;  %v8397_v53 = vor.u32 %v10210_v62, %v8396_v21  ;;  %v8084_v43 = vld [vmem:[%s17959_s5 + $0x3b0] sm:$0xf]  ;;  %v7897_v24 = vor.u32 %v10111_v40, %v7894_v38  ;;  %v10228_v38 = vld [vmem:[%s17959_s5 + $0x6b4] sm:$0xf0] }
 0x29a   : > { %2474 = vmatpush.bf16.msra.mxu2 %v7921_v20  ;;  %3164 = vmatpush.bf16.msrb.mxu1 %v8109_v36  ;;  %v10234_v20 = vld [vmem:[%s17959_s5 + $0x6e4] sm:$0xf0]  ;;  %v8468_v40 = vld [vmem:[%s17959_s5 + $0x6b0] sm:$0xf] }
 0x29b   : > { %v13962_v12 = vpack.c.bf16 %v1478_v32, %v1475_v10  ;;  %v8085_v10 = vor.u32 %v10132_v56, %v8084_v43  ;;  %v8492_v32 = vld [vmem:[%s17959_s5 + $0x6e0] sm:$0xf]  ;;  %v10169_v43 = vld [vmem:[%s17959_s5 + $0x4e4] sm:$0xf]  ;;  %v8238_v56 = vld [vmem:[%s17959_s5 + $0x4e8] sm:$0xf0] }
 0x29c   : > { %3207 = vmatpush.bf16.msrb.mxu0 %v8197_v13  ;;  %3261 = vmatpush.bf16.msra.mxu3 %v8413_v8  ;;  %v8493_v37 = vor.u32 %v10234_v20, %v8492_v32  ;;  %v7886_v13 = vld [vmem:[%s17959_s5 + $0x308] sm:$0xf0]  ;;  %v10130_v8 = vld [vmem:[%s17959_s5 + $0x3a4] sm:$0xf0]  ;;  %v8241_v16 = vor.u32 %v10169_v43, %v8238_v56  ;;  %v10204_v20 = vld [vmem:[%s17959_s5 + $0x5f4] sm:$0xf0] }
 0x29d   : > { %2332 = vmatmul.bf16.gmra.mxu2 %v13962_v12  ;;  %v7889_v59 = vor.u32 %v10109_v19, %v7886_v13  ;;  %v8077_v54 = vor.u32 %v10130_v8, %v8076_v29  ;;  %v8460_v19 = vld [vmem:[%s17959_s5 + $0x6a0] sm:$0xf]  ;;  %v10167_v8 = vld [vmem:[%s17959_s5 + $0x4d4] sm:$0xf]  ;;  %v10198_v43 = vld [vmem:[%s17959_s5 + $0x5c4] sm:$0xf0] }
 0x29e   : > { %v1506_v28 = vpop.f32.mrf.mxu1  ;;  %2475 = vmatpush.bf16.msra.mxu2 %v7913_v14  ;;  %3165 = vmatpush.bf16.msrb.mxu1 %v8101_v52  ;;  %v8484_v14 = vld [vmem:[%s17959_s5 + $0x6d0] sm:$0xf]  ;;  %v10161_v56 = vld [vmem:[%s17959_s5 + $0x4a4] sm:$0xf] }
 0x29f   : > { %2446 = vmatmul.bf16.gmra.mxu3 %v13691_v1  ;;  %v14050_v58 = vpop.f32.mrf.mxu0 }
 0x2a0   : > { %v1535_v26 = vpop.f32.mrf.mxu3  ;;  %3208 = vmatpush.bf16.msrb.mxu0 %v8189_v11  ;;  %3262 = vmatpush.bf16.msra.mxu3 %v8405_v35  ;;  %v8308_v11 = vld [vmem:[%s17959_s5 + $0x570] sm:$0xf]  ;;  %v8476_v35 = vld [vmem:[%s17959_s5 + $0x6c0] sm:$0xf] }
 0x2a1   : > { %v1536_v55 = vadd.f32 %v1535_v26, %v1506_v28  ;;  %v2252_v39 = vpop.f32.mrf.mxu2  ;;  %v10232_v28 = vld [vmem:[%s17959_s5 + $0x6d4] sm:$0xf0]  ;;  %v8309_v26 = vor.u32 %v10188_v27, %v8308_v11 }
 0x2a2   : > { %v2253_v57 = vadd.f32 %v2252_v39, %v2233_v34  ;;  %2476 = vmatpush.bf16.msra.mxu2 %v7905_v47  ;;  %3166 = vmatpush.bf16.msrb.mxu1 %v8093_v33  ;;  %v10206_v34 = vld [vmem:[%s17959_s5 + $0x604] sm:$0xf0]  ;;  %v8485_v52 = vor.u32 %v10232_v28, %v8484_v14  ;;  %v8060_v39 = vld [vmem:[%s17959_s5 + $0x380] sm:$0xf]  ;;  %v10224_v11 = vld [vmem:[%s17959_s5 + $0x694] sm:$0xf0] }
 0x2a3   : > { %v14014_v63 = vpack.c.bf16 %v1536_v55, %v1533_v23  ;;  %2460 = vmatmul.bf16.vlgmr.msra.gmra.mxu0 %v13855_v7  ;;  %v8381_v31 = vor.u32 %v10206_v34, %v8380_v15  ;;  %v10230_v47 = vld [vmem:[%s17959_s5 + $0x6c4] sm:$0xf0]  ;;  %v8246_v23 = vld [vmem:[%s17959_s5 + $0x4f8] sm:$0xf0]  ;;  %v8284_v34 = vld [vmem:[%s17959_s5 + $0x540] sm:$0xf]  ;;  %v8453_v27 = vor.u32 %v10224_v11, %v8452_v61 }
 0x2a4   : > { %3277 = vmatpush.bf16.msra.mxu0 %v8501_v3  ;;  %3263 = vmatpush.bf16.msra.mxu3 %v8397_v53  ;;  %v8477_v41 = vor.u32 %v10230_v47, %v8476_v35  ;;  %v8249_v55 = vor.u32 %v10171_v6, %v8246_v23  ;;  %v10126_v33 = vld [vmem:[%s17959_s5 + $0x384] sm:$0xf0]  ;;  %v8364_v28 = vld [vmem:[%s17959_s5 + $0x5e0] sm:$0xf]  ;;  %v8276_v47 = vld [vmem:[%s17959_s5 + $0x530] sm:$0xf] }
 0x2a5   : > { %2351 = vmatmul.bf16.gmra.mxu1 %v14014_v63  ;;  %v8061_v60 = vor.u32 %v10126_v33, %v8060_v39  ;;  %v10186_v53 = vld [vmem:[%s17959_s5 + $0x564] sm:$0xf0]  ;;  %v10180_v6 = vld [vmem:[%s17959_s5 + $0x534] sm:$0xf0]  ;;  %v8444_v33 = vld [vmem:[%s17959_s5 + $0x680] sm:$0xf] }
 0x2a6   : > { %v2271_v49 = vpop.f32.mrf.mxu1  ;;  %2477 = vmatpush.bf16.msra.mxu2 %v7897_v24  ;;  %3167 = vmatpush.bf16.msrb.mxu1 %v8085_v10  ;;  %v8469_v24 = vor.u32 %v10228_v38, %v8468_v40  ;;  %v8372_v10 = vld [vmem:[%s17959_s5 + $0x5f0] sm:$0xf]  ;;  %v10182_v14 = vld [vmem:[%s17959_s5 + $0x544] sm:$0xf0]  ;;  %v8277_v23 = vor.u32 %v10180_v6, %v8276_v47  ;;  %v8348_v40 = vld [vmem:[%s17959_s5 + $0x5c0] sm:$0xf] }
 0x2a7   : > { %v14048_v36 = vadd.f32 %v2271_v49, %v2253_v57  ;;  %v8300_v57 = vld [vmem:[%s17959_s5 + $0x560] sm:$0xf]  ;;  %v2238_v21 = vpop.f32.mrf.mxu0  ;;  %v10184_v49 = vld [vmem:[%s17959_s5 + $0x554] sm:$0xf0]  ;;  %v8373_v13 = vor.u32 %v10204_v20, %v8372_v10  ;;  %v8310_v10 = vld [vmem:[%s17959_s5 + $0x578] sm:$0xf0] }
 0x2a8   : > { %3278 = vmatpush.bf16.msra.mxu0 %v8493_v37  ;;  %3264 = vmatpush.bf16.msra.mxu3 %v8389_v2  ;;  %v8301_v3 = vor.u32 %v10186_v53, %v8300_v57  ;;  %v8293_v32 = vor.u32 %v10184_v49, %v8292_v5  ;;  %v10226_v2 = vld [vmem:[%s17959_s5 + $0x6a4] sm:$0xf0]  ;;  %v10187_v5 = vld [vmem:[%s17959_s5 + $0x574] sm:$0xf]  ;;  %v8260_v20 = vld [vmem:[%s17959_s5 + $0x510] sm:$0xf] }
 0x2a9   : > { %v14070_v0 = vpop.f32.mrf.mxu2  ;;  %v8461_v29 = vor.u32 %v10226_v2, %v8460_v19  ;;  %v10222_v57 = vld [vmem:[%s17959_s5 + $0x684] sm:$0xf0]  ;;  %v10176_v19 = vld [vmem:[%s17959_s5 + $0x514] sm:$0xf0]  ;;  %v8340_v2 = vld [vmem:[%s17959_s5 + $0x5b0] sm:$0xf] }
 0x2aa   : > { %2478 = vmatpush.bf16.msra.mxu2 %v7889_v59  ;;  %3168 = vmatpush.bf16.msrb.mxu1 %v8077_v54  ;;  %v8230_v59 = vld [vmem:[%s17959_s5 + $0x4d8] sm:$0xf0]  ;;  %v10194_v11 = vld [vmem:[%s17959_s5 + $0x5a4] sm:$0xf0] }
 0x2ab   : > { %v8233_v15 = vor.u32 %v10167_v8, %v8230_v59  ;;  %v10159_v8 = vld [vmem:[%s17959_s5 + $0x494] sm:$0xf]  ;;  %v8198_v59 = vld [vmem:[%s17959_s5 + $0x498] sm:$0xf0] }
 0x2ac   : > { %3279 = vmatpush.bf16.msra.mxu0 %v8485_v52  ;;  %3265 = vmatpush.bf16.msra.mxu3 %v8381_v31  ;;  %v8285_v52 = vor.u32 %v10182_v14, %v8284_v34  ;;  %v10202_v31 = vld [vmem:[%s17959_s5 + $0x5e4] sm:$0xf0]  ;;  %v8201_v34 = vor.u32 %v10159_v8, %v8198_v59  ;;  %v8302_v14 = vld [vmem:[%s17959_s5 + $0x568] sm:$0xf0]  ;;  %v8294_v6 = vld [vmem:[%s17959_s5 + $0x558] sm:$0xf0] }
 0x2ad   : > { %2403 = vmatmul.bf16.vlgmr.msrb.gmra.mxu2 %v13343_v46  ;;  %v8365_v44 = vor.u32 %v10202_v31, %v8364_v28  ;;  %v10174_v31 = vld [vmem:[%s17959_s5 + $0x504] sm:$0xf0]  ;;  %v10155_v8 = vld [vmem:[%s17959_s5 + $0x474] sm:$0xf] }
 0x2ae   : > { %v14088_v42 = vpop.f32.mrf.mxu1  ;;  %3169 = vmatpush.bf16.msrb.mxu1 %v8069_v18  ;;  %3220 = vmatpush.bf16.msrb.mxu2 %v8309_v26  ;;  %v10165_v18 = vld [vmem:[%s17959_s5 + $0x4c4] sm:$0xf]  ;;  %v8222_v26 = vld [vmem:[%s17959_s5 + $0x4c8] sm:$0xf0] }
 0x2af   : > { %3190 = vmatmul.bf16.vlgmr.msrb.gmra.mxu3 %v13291_v17  ;;  %v8225_v35 = vor.u32 %v10165_v18, %v8222_v26  ;;  %v8190_v26 = vld [vmem:[%s17959_s5 + $0x488] sm:$0xf0] }
 0x2b0   : > { %3280 = vmatpush.bf16.msra.mxu0 %v8477_v41  ;;  %3334 = vmatpush.bf16.msrb.mxu3 %v8249_v55  ;;  %v8356_v41 = vld [vmem:[%s17959_s5 + $0x5d0] sm:$0xf]  ;;  %v10200_v55 = vld [vmem:[%s17959_s5 + $0x5d4] sm:$0xf0] }
 0x2b1   : > { %v2257_v62 = vpop.f32.mrf.mxu2  ;;  %v8357_v39 = vor.u32 %v10200_v55, %v8356_v41  ;;  %v10192_v55 = vld [vmem:[%s17959_s5 + $0x594] sm:$0xf0] }
 0x2b2   : > { %v2258_v50 = vadd.f32 %v2257_v62, %v2238_v21  ;;  %3170 = vmatpush.bf16.msrb.mxu1 %v8061_v60  ;;  %3221 = vmatpush.bf16.msrb.mxu2 %v8301_v3  ;;  %v10163_v21 = vld [vmem:[%s17959_s5 + $0x4b4] sm:$0xf]  ;;  %v8445_v62 = vor.u32 %v10222_v57, %v8444_v33  ;;  %v8214_v60 = vld [vmem:[%s17959_s5 + $0x4b8] sm:$0xf0]  ;;  %v10178_v3 = vld [vmem:[%s17959_s5 + $0x524] sm:$0xf0] }
 0x2b3   : > { %2465 = vmatmul.bf16.gmra.mxu0 %v13962_v12  ;;  %v8217_v53 = vor.u32 %v10163_v21, %v8214_v60  ;;  %v8118_v57 = vld [vmem:[%s17959_s5 + $0x3f8] sm:$0xf0]  ;;  %v8286_v60 = vld [vmem:[%s17959_s5 + $0x548] sm:$0xf0] }
 0x2b4   : > { %3281 = vmatpush.bf16.msra.mxu0 %v8469_v24  ;;  %3335 = vmatpush.bf16.msrb.mxu3 %v8241_v16  ;;  %v8349_v24 = vor.u32 %v10198_v43, %v8348_v40  ;;  %v8206_v16 = vld [vmem:[%s17959_s5 + $0x4a8] sm:$0xf0]  ;;  %v10190_v43 = vld [vmem:[%s17959_s5 + $0x584] sm:$0xf0] }
 0x2b5   : > { %2422 = vmatmul.bf16.vlgmr.msra.gmra.mxu1 %v13465_v30  ;;  %v8209_v49 = vor.u32 %v10161_v56, %v8206_v16 }
 0x2b6   : > { %v2276_v37 = vpop.f32.mrf.mxu1  ;;  %3222 = vmatpush.bf16.msrb.mxu2 %v8293_v32  ;;  %3239 = vmatpush.bf16.msra.mxu1 %v8373_v13  ;;  %v8313_v32 = vor.u32 %v10187_v5, %v8310_v10  ;;  %v10196_v13 = vld [vmem:[%s17959_s5 + $0x5b4] sm:$0xf0]  ;;  %v8110_v5 = vld [vmem:[%s17959_s5 + $0x3e8] sm:$0xf0] }
 0x2b7   : > { %v14153_v54 = vadd.f32 %v2276_v37, %v2258_v50  ;;  %v8268_v50 = vld [vmem:[%s17959_s5 + $0x520] sm:$0xf]  ;;  %v8261_v37 = vor.u32 %v10176_v19, %v8260_v20  ;;  %v8278_v20 = vld [vmem:[%s17959_s5 + $0x538] sm:$0xf0]  ;;  %v10233_v19 = vld [vmem:[%s17959_s5 + $0x6e4] sm:$0xf] }
 0x2b8   : > { %3282 = vmatpush.bf16.msra.mxu0 %v8461_v29  ;;  %3336 = vmatpush.bf16.msrb.mxu3 %v8233_v15  ;;  %v8269_v38 = vor.u32 %v10178_v3, %v8268_v50  ;;  %v8341_v29 = vor.u32 %v10196_v13, %v8340_v2  ;;  %v10185_v15 = vld [vmem:[%s17959_s5 + $0x564] sm:$0xf]  ;;  %v8502_v3 = vld [vmem:[%s17959_s5 + $0x6f8] sm:$0xf0]  ;;  %v10135_v13 = vld [vmem:[%s17959_s5 + $0x3d4] sm:$0xf] }
 0x2b9   : > { %v8305_v28 = vor.u32 %v10185_v15, %v8302_v14  ;;  %v8182_v15 = vld [vmem:[%s17959_s5 + $0x478] sm:$0xf0]  ;;  %v10177_v14 = vld [vmem:[%s17959_s5 + $0x524] sm:$0xf] }
 0x2ba   : > { %3223 = vmatpush.bf16.msrb.mxu2 %v8285_v52  ;;  %3240 = vmatpush.bf16.msra.mxu1 %v8365_v44  ;;  %v8252_v52 = vld [vmem:[%s17959_s5 + $0x500] sm:$0xf] }
 0x2bb   : > { %v8332_v44 = vld [vmem:[%s17959_s5 + $0x5a0] sm:$0xf]  ;;  %v8253_v61 = vor.u32 %v10174_v31, %v8252_v52  ;;  %v10231_v52 = vld [vmem:[%s17959_s5 + $0x6d4] sm:$0xf]  ;;  %v14355_v31 = vpop.f32.mrf.mxu0 }
 0x2bc   : > { %3283 = vmatpush.bf16.msra.mxu0 %v8453_v27  ;;  %3337 = vmatpush.bf16.msrb.mxu3 %v8225_v35  ;;  %v8333_v18 = vor.u32 %v10194_v11, %v8332_v44  ;;  %v10157_v27 = vld [vmem:[%s17959_s5 + $0x484] sm:$0xf]  ;;  %v10183_v35 = vld [vmem:[%s17959_s5 + $0x554] sm:$0xf] }
 0x2bd   : > { %2408 = vmatmul.bf16.gmra.mxu2 %v13390_v9  ;;  %v8193_v47 = vor.u32 %v10157_v27, %v8190_v26  ;;  %v8297_v41 = vor.u32 %v10183_v35, %v8294_v6  ;;  %v8094_v27 = vld [vmem:[%s17959_s5 + $0x3c8] sm:$0xf0]  ;;  %v10153_v26 = vld [vmem:[%s17959_s5 + $0x464] sm:$0xf] }
 0x2be   : > { %3224 = vmatpush.bf16.msrb.mxu2 %v8277_v23  ;;  %3241 = vmatpush.bf16.msra.mxu1 %v8357_v39  ;;  %v8324_v23 = vld [vmem:[%s17959_s5 + $0x590] sm:$0xf]  ;;  %v10139_v39 = vld [vmem:[%s17959_s5 + $0x3f4] sm:$0xf]  ;;  %v8174_v6 = vld [vmem:[%s17959_s5 + $0x468] sm:$0xf0] }
 0x2bf   : > { %3195 = vmatmul.bf16.gmra.mxu3 %v13350_v45  ;;  %v8325_v33 = vor.u32 %v10192_v55, %v8324_v23  ;;  %v8121_v21 = vor.u32 %v10139_v39, %v8118_v57  ;;  %v8262_v23 = vld [vmem:[%s17959_s5 + $0x518] sm:$0xf0]  ;;  %v8177_v55 = vor.u32 %v10153_v26, %v8174_v6  ;;  %v8478_v57 = vld [vmem:[%s17959_s5 + $0x6c8] sm:$0xf0] }
 0x2c0   : > { %3284 = vmatpush.bf16.msra.mxu0 %v8445_v62  ;;  %3338 = vmatpush.bf16.msrb.mxu3 %v8217_v53  ;;  %v10181_v62 = vld [vmem:[%s17959_s5 + $0x544] sm:$0xf]  ;;  %v10235_v53 = vld [vmem:[%s17959_s5 + $0x6f4] sm:$0xf]  ;;  %v8454_v26 = vld [vmem:[%s17959_s5 + $0x698] sm:$0xf0] }
 0x2c1   : > { %v8289_v50 = vor.u32 %v10181_v62, %v8286_v60  ;;  %v8505_v40 = vor.u32 %v10235_v53, %v8502_v3  ;;  %v10131_v62 = vld [vmem:[%s17959_s5 + $0x3b4] sm:$0xf]  ;;  %v8086_v60 = vld [vmem:[%s17959_s5 + $0x3b8] sm:$0xf0] }
 0x2c2   : > { %3225 = vmatpush.bf16.msrb.mxu2 %v8269_v38  ;;  %3242 = vmatpush.bf16.msra.mxu1 %v8349_v24  ;;  %v8316_v38 = vld [vmem:[%s17959_s5 + $0x580] sm:$0xf]  ;;  %v10137_v24 = vld [vmem:[%s17959_s5 + $0x3e4] sm:$0xf]  ;;  %v10151_v53 = vld [vmem:[%s17959_s5 + $0x454] sm:$0xf] }
 0x2c3   : > { %3209 = vmatmul.bf16.vlgmr.msrb.gmra.mxu0 %v13343_v46  ;;  %v8317_v16 = vor.u32 %v10190_v43, %v8316_v38  ;;  %v8113_v10 = vor.u32 %v10137_v24, %v8110_v5  ;;  %v8166_v3 = vld [vmem:[%s17959_s5 + $0x458] sm:$0xf0]  ;;  %v10173_v38 = vld [vmem:[%s17959_s5 + $0x504] sm:$0xf]  ;;  %v8254_v43 = vld [vmem:[%s17959_s5 + $0x508] sm:$0xf0] }
 0x2c4   : > { %3353 = vmatpush.bf16.msrb.mxu0 %v8313_v32  ;;  %3339 = vmatpush.bf16.msrb.mxu3 %v8209_v49  ;;  %v10179_v32 = vld [vmem:[%s17959_s5 + $0x534] sm:$0xf]  ;;  %v8470_v5 = vld [vmem:[%s17959_s5 + $0x6b8] sm:$0xf0] }
 0x2c5   : > { %2427 = vmatmul.bf16.gmra.mxu1 %v13567_v22  ;;  %v8281_v2 = vor.u32 %v10179_v32, %v8278_v20  ;;  %v10227_v24 = vld [vmem:[%s17959_s5 + $0x6b4] sm:$0xf]  ;;  %v10129_v20 = vld [vmem:[%s17959_s5 + $0x3a4] sm:$0xf] }
 0x2c6   : > { %3226 = vmatpush.bf16.msrb.mxu2 %v8261_v37  ;;  %3243 = vmatpush.bf16.msra.mxu1 %v8341_v29  ;;  %v8102_v29 = vld [vmem:[%s17959_s5 + $0x3d8] sm:$0xf0]  ;;  %v8473_v32 = vor.u32 %v10227_v24, %v8470_v5  ;;  %v10203_v5 = vld [vmem:[%s17959_s5 + $0x5f4] sm:$0xf] }
 0x2c7   : > { %v8105_v59 = vor.u32 %v10135_v13, %v8102_v29  ;;  %v2255_v13 = vadd.f32 %v14070_v0, %v14050_v58  ;;  %v10252_v0 = vld [vmem:[%s17959_s5 + $0x774] sm:$0xf0] }
 0x2c8   : > { %3354 = vmatpush.bf16.msrb.mxu0 %v8305_v28  ;;  %3340 = vmatpush.bf16.msrb.mxu3 %v8201_v34  ;;  %v8185_v34 = vor.u32 %v10155_v8, %v8182_v15  ;;  %v8270_v28 = vld [vmem:[%s17959_s5 + $0x528] sm:$0xf0] }
 0x2c9   : > { %v8273_v44 = vor.u32 %v10177_v14, %v8270_v28  ;;  %v8462_v15 = vld [vmem:[%s17959_s5 + $0x6a8] sm:$0xf0]  ;;  %v10127_v28 = vld [vmem:[%s17959_s5 + $0x394] sm:$0xf] }
 0x2ca   : > { %3227 = vmatpush.bf16.msrb.mxu2 %v8253_v61  ;;  %3244 = vmatpush.bf16.msra.mxu1 %v8333_v18  ;;  %v8486_v61 = vld [vmem:[%s17959_s5 + $0x6d8] sm:$0xf0]  ;;  %v10133_v18 = vld [vmem:[%s17959_s5 + $0x3c4] sm:$0xf] }
 0x2cb   : > { %v8489_v11 = vor.u32 %v10231_v52, %v8486_v61  ;;  %v8070_v52 = vld [vmem:[%s17959_s5 + $0x398] sm:$0xf0] }
 0x2cc   : > { %3355 = vmatpush.bf16.msrb.mxu0 %v8297_v41  ;;  %3341 = vmatpush.bf16.msrb.mxu3 %v8193_v47  ;;  %v8097_v47 = vor.u32 %v10133_v18, %v8094_v27  ;;  %v10175_v41 = vld [vmem:[%s17959_s5 + $0x514] sm:$0xf]  ;;  %v8073_v61 = vor.u32 %v10127_v28, %v8070_v52  ;;  %v8366_v52 = vld [vmem:[%s17959_s5 + $0x5e8] sm:$0xf0] }
 0x2cd   : > { %2479 = vmatmul.bf16.vlgmr.msra.gmra.mxu2 %v13909_v48  ;;  %v8265_v39 = vor.u32 %v10175_v41, %v8262_v23  ;;  %v10223_v27 = vld [vmem:[%s17959_s5 + $0x694] sm:$0xf] }
 0x2ce   : > { %3245 = vmatpush.bf16.msra.mxu1 %v8325_v33  ;;  %3296 = vmatpush.bf16.msra.mxu2 %v8121_v21  ;;  %v10229_v33 = vld [vmem:[%s17959_s5 + $0x6c4] sm:$0xf]  ;;  %v8457_v41 = vor.u32 %v10223_v27, %v8454_v26  ;;  %v10298_v26 = vld [vmem:[%s17959_s5 + $0x8e4] sm:$0xf0] }
 0x2cf   : > { %3266 = vmatmul.bf16.vlgmr.msra.gmra.mxu3 %v13855_v7  ;;  %v8481_v21 = vor.u32 %v10229_v33, %v8478_v57  ;;  %v8062_v33 = vld [vmem:[%s17959_s5 + $0x388] sm:$0xf0]  ;;  %v10145_v57 = vld [vmem:[%s17959_s5 + $0x424] sm:$0xf] }
 0x2d0   : > { %3356 = vmatpush.bf16.msrb.mxu0 %v8289_v50  ;;  %3410 = vmatpush.bf16.msra.mxu3 %v8505_v40  ;;  %v8089_v50 = vor.u32 %v10131_v62, %v8086_v60  ;;  %v8169_v40 = vor.u32 %v10151_v53, %v8166_v3  ;;  %v8142_v60 = vld [vmem:[%s17959_s5 + $0x428] sm:$0xf0]  ;;  %v10221_v53 = vld [vmem:[%s17959_s5 + $0x684] sm:$0xf] }
 0x2d1   : > { %v8145_v3 = vor.u32 %v10145_v57, %v8142_v60  ;;  %v8636_v57 = vld [vmem:[%s17959_s5 + $0x720] sm:$0xf]  ;;  %v8852_v60 = vld [vmem:[%s17959_s5 + $0x8d0] sm:$0xf] }
 0x2d2   : > { %v2290_v56 = vpop.f32.mrf.mxu3  ;;  %3246 = vmatpush.bf16.msra.mxu1 %v8317_v16  ;;  %3297 = vmatpush.bf16.msra.mxu2 %v8113_v10  ;;  %v8257_v16 = vor.u32 %v10173_v38, %v8254_v43  ;;  %v10248_v38 = vld [vmem:[%s17959_s5 + $0x754] sm:$0xf0] }
 0x2d3   : > { %v14318_v49 = vadd.f32 %v2290_v56, %v14048_v36  ;;  %3214 = vmatmul.bf16.gmra.mxu0 %v13390_v9  ;;  %v8494_v36 = vld [vmem:[%s17959_s5 + $0x6e8] sm:$0xf0] }
 0x2d4   : > { %v8497_v37 = vor.u32 %v10233_v19, %v8494_v36  ;;  %3357 = vmatpush.bf16.msrb.mxu0 %v8281_v2  ;;  %v8078_v19 = vld [vmem:[%s17959_s5 + $0x3a8] sm:$0xf0]  ;;  %v10149_v2 = vld [vmem:[%s17959_s5 + $0x444] sm:$0xf] }
 0x2d5   : > { %3171 = vmatmul.bf16.vlgmr.msrb.gmra.mxu1 %v13276_v4 }
 0x2d6   : > { %3411 = vmatpush.bf16.msra.mxu3 %v8497_v37  ;;  %3298 = vmatpush.bf16.msra.mxu2 %v8105_v59  ;;  %v8081_v37 = vor.u32 %v10129_v20, %v8078_v19  ;;  %v10225_v59 = vld [vmem:[%s17959_s5 + $0x6a4] sm:$0xf]  ;;  %v8374_v20 = vld [vmem:[%s17959_s5 + $0x5f8] sm:$0xf0] }
 0x2d7   : > { %3315 = vmatpush.bf16.msrb.mxu1 %v8185_v34  ;;  %v8676_v34 = vld [vmem:[%s17959_s5 + $0x770] sm:$0xf]  ;;  %v8465_v58 = vor.u32 %v10225_v59, %v8462_v15  ;;  %v8377_v19 = vor.u32 %v10203_v5, %v8374_v20 }
 0x2d8   : > { %3358 = vmatpush.bf16.msrb.mxu0 %v8273_v44  ;;  %v8677_v14 = vor.u32 %v10252_v0, %v8676_v34  ;;  %v10147_v44 = vld [vmem:[%s17959_s5 + $0x434] sm:$0xf]  ;;  %v10141_v34 = vld [vmem:[%s17959_s5 + $0x404] sm:$0xf] }
 0x2d9   : > { %v10201_v0 = vld [vmem:[%s17959_s5 + $0x5e4] sm:$0xf] }
 0x2da   : > { %v2292_v35 = vpop.f32.mrf.mxu3  ;;  %3412 = vmatpush.bf16.msra.mxu3 %v8489_v11  ;;  %3299 = vmatpush.bf16.msra.mxu2 %v8097_v47  ;;  %v8668_v47 = vld [vmem:[%s17959_s5 + $0x760] sm:$0xf] }
 0x2db   : > { %3316 = vmatpush.bf16.msrb.mxu1 %v8177_v55 }
 0x2dc   : > { %3359 = vmatpush.bf16.msrb.mxu0 %v8265_v39  ;;  %v10125_v39 = vld [vmem:[%s17959_s5 + $0x384] sm:$0xf] }
 0x2dd   : > { %2484 = vmatmul.bf16.gmra.mxu2 %v14014_v63  ;;  %v8065_v62 = vor.u32 %v10125_v39, %v8062_v33  ;;  %v8438_v39 = vld [vmem:[%s17959_s5 + $0x678] sm:$0xf0] }
 0x2de   : > { %3413 = vmatpush.bf16.msra.mxu3 %v8481_v21  ;;  %3300 = vmatpush.bf16.msra.mxu2 %v8089_v50  ;;  %v8446_v50 = vld [vmem:[%s17959_s5 + $0x688] sm:$0xf0] }
 0x2df   : > { %3271 = vmatmul.bf16.gmra.mxu3 %v13962_v12  ;;  %v2309_v56 = vpop.f32.mrf.mxu0  ;;  %3317 = vmatpush.bf16.msrb.mxu1 %v8169_v40  ;;  %v8660_v40 = vld [vmem:[%s17959_s5 + $0x750] sm:$0xf]  ;;  %v8449_v43 = vor.u32 %v10221_v53, %v8446_v50 }
 0x2e0   : > { %v14411_v10 = vadd.f32 %v2309_v56, %v14318_v49  ;;  %v8158_v49 = vld [vmem:[%s17959_s5 + $0x448] sm:$0xf0]  ;;  %3360 = vmatpush.bf16.msrb.mxu0 %v8257_v16  ;;  %v8661_v24 = vor.u32 %v10248_v38, %v8660_v40  ;;  %v10143_v56 = vld [vmem:[%s17959_s5 + $0x414] sm:$0xf]  ;;  %v8134_v16 = vld [vmem:[%s17959_s5 + $0x418] sm:$0xf0] }
 0x2e1   : > { %v8161_v8 = vor.u32 %v10149_v2, %v8158_v49  ;;  %v8652_v2 = vld [vmem:[%s17959_s5 + $0x740] sm:$0xf] }
 0x2e2   : > { %v2295_v36 = vpop.f32.mrf.mxu3  ;;  %3414 = vmatpush.bf16.msra.mxu3 %v8473_v32  ;;  %3301 = vmatpush.bf16.msra.mxu2 %v8081_v37  ;;  %v8137_v32 = vor.u32 %v10143_v56, %v8134_v16  ;;  %v8868_v37 = vld [vmem:[%s17959_s5 + $0x8f0] sm:$0xf] }
 0x2e3   : > { %v14428_v29 = vadd.f32 %v2295_v36, %v14153_v54  ;;  %3285 = vmatmul.bf16.vlgmr.msra.gmra.mxu0 %v13909_v48  ;;  %v2274_v54 = vadd.f32 %v14088_v42, %v2255_v13  ;;  %3318 = vmatpush.bf16.msrb.mxu1 %v8161_v8  ;;  %v8150_v42 = vld [vmem:[%s17959_s5 + $0x438] sm:$0xf0]  ;;  %v10246_v36 = vld [vmem:[%s17959_s5 + $0x744] sm:$0xf0]  ;;  %v10300_v13 = vld [vmem:[%s17959_s5 + $0x8f4] sm:$0xf0]  ;;  %v2259_v8 = vpop.f32.mrf.mxu2 }
 0x2e4   : > { %4102 = vmatpush.bf16.msra.mxu0 %v8677_v14  ;;  %v8153_v18 = vor.u32 %v10147_v44, %v8150_v42  ;;  %v8653_v49 = vor.u32 %v10246_v36, %v8652_v2  ;;  %v8869_v15 = vor.u32 %v10300_v13, %v8868_v37  ;;  %v2278_v44 = vpop.f32.mrf.mxu1  ;;  %v8644_v42 = vld [vmem:[%s17959_s5 + $0x730] sm:$0xf]  ;;  %v10240_v2 = vld [vmem:[%s17959_s5 + $0x714] sm:$0xf0]  ;;  %v8844_v36 = vld [vmem:[%s17959_s5 + $0x8c0] sm:$0xf] }
 0x2e5   : > { %3176 = vmatmul.bf16.gmra.mxu1 %v13347_v51  ;;  %v2293_v11 = vadd.f32 %v2292_v35, %v2274_v54  ;;  %v10250_v35 = vld [vmem:[%s17959_s5 + $0x764] sm:$0xf0] }
 0x2e6   : > { %3415 = vmatpush.bf16.msra.mxu3 %v8465_v58  ;;  %3302 = vmatpush.bf16.msra.mxu2 %v8073_v61  ;;  %v8669_v55 = vor.u32 %v10250_v35, %v8668_v47  ;;  %v8126_v58 = vld [vmem:[%s17959_s5 + $0x408] sm:$0xf0]  ;;  %v8369_v61 = vor.u32 %v10201_v0, %v8366_v52  ;;  %v10238_v52 = vld [vmem:[%s17959_s5 + $0x704] sm:$0xf0] }
 0x2e7   : > { %v2311_v6 = vpop.f32.mrf.mxu0  ;;  %3319 = vmatpush.bf16.msrb.mxu1 %v8153_v18  ;;  %v8129_v28 = vor.u32 %v10141_v34, %v8126_v58  ;;  %v2260_v18 = vadd.f32 %v2259_v8, %v14355_v31  ;;  %v10219_v31 = vld [vmem:[%s17959_s5 + $0x674] sm:$0xf]  ;;  %v8422_v58 = vld [vmem:[%s17959_s5 + $0x658] sm:$0xf0] }
 0x2e8   : > { %v14469_v23 = vadd.f32 %v2311_v6, %v2293_v11  ;;  %4103 = vmatpush.bf16.msra.mxu0 %v8669_v55  ;;  %v8860_v11 = vld [vmem:[%s17959_s5 + $0x8e0] sm:$0xf]  ;;  %v10199_v6 = vld [vmem:[%s17959_s5 + $0x5d4] sm:$0xf]  ;;  %v8441_v33 = vor.u32 %v10219_v31, %v8438_v39  ;;  %v8414_v31 = vld [vmem:[%s17959_s5 + $0x648] sm:$0xf0] }
 0x2e9   : > { %v8861_v47 = vor.u32 %v10298_v26, %v8860_v11  ;;  %v2279_v35 = vadd.f32 %v2278_v44, %v2260_v18  ;;  %v10195_v8 = vld [vmem:[%s17959_s5 + $0x5b4] sm:$0xf]  ;;  %v8836_v44 = vld [vmem:[%s17959_s5 + $0x8b0] sm:$0xf]  ;;  %v10193_v18 = vld [vmem:[%s17959_s5 + $0x5a4] sm:$0xf] }
 0x2ea   : > { %v14480_v21 = vpop.f32.mrf.mxu3  ;;  %3416 = vmatpush.bf16.msra.mxu3 %v8457_v41  ;;  %3303 = vmatpush.bf16.msra.mxu2 %v8065_v62  ;;  %v8358_v41 = vld [vmem:[%s17959_s5 + $0x5d8] sm:$0xf0]  ;;  %v10242_v62 = vld [vmem:[%s17959_s5 + $0x724] sm:$0xf0]  ;;  %v10213_v26 = vld [vmem:[%s17959_s5 + $0x644] sm:$0xf] }
 0x2eb   : > { %3320 = vmatpush.bf16.msrb.mxu1 %v8145_v3  ;;  %v8361_v55 = vor.u32 %v10199_v6, %v8358_v41  ;;  %v2298_v53 = vadd.f32 %v14480_v21, %v2279_v35  ;;  %v8637_v50 = vor.u32 %v10242_v62, %v8636_v57  ;;  %v10296_v3 = vld [vmem:[%s17959_s5 + $0x8d4] sm:$0xf0]  ;;  %v10217_v21 = vld [vmem:[%s17959_s5 + $0x664] sm:$0xf]  ;;  %v8417_v35 = vor.u32 %v10213_v26, %v8414_v31  ;;  %v10290_v39 = vld [vmem:[%s17959_s5 + $0x8a4] sm:$0xf0] }
 0x2ec   : > { %4104 = vmatpush.bf16.msra.mxu0 %v8661_v24  ;;  %v8853_v38 = vor.u32 %v10296_v3, %v8852_v60  ;;  %v8350_v24 = vld [vmem:[%s17959_s5 + $0x5c8] sm:$0xf0]  ;;  %v10316_v57 = vld [vmem:[%s17959_s5 + $0x974] sm:$0xf0]  ;;  %v10191_v60 = vld [vmem:[%s17959_s5 + $0x594] sm:$0xf] }
 0x2ed   : > { %3228 = vmatmul.bf16.vlgmr.msrb.gmra.mxu2 %v13465_v30  ;;  %v10310_v26 = vld [vmem:[%s17959_s5 + $0x944] sm:$0xf0] }
 0x2ee   : > { %3417 = vmatpush.bf16.msra.mxu3 %v8449_v43  ;;  %3372 = vmatpush.bf16.msrb.mxu2 %v8377_v19  ;;  %v10197_v43 = vld [vmem:[%s17959_s5 + $0x5c4] sm:$0xf]  ;;  %v8628_v19 = vld [vmem:[%s17959_s5 + $0x710] sm:$0xf] }
 0x2ef   : > { %3342 = vmatmul.bf16.vlgmr.msrb.gmra.mxu3 %v13343_v46  ;;  %3321 = vmatpush.bf16.msrb.mxu1 %v8137_v32  ;;  %v8353_v5 = vor.u32 %v10197_v43, %v8350_v24  ;;  %v8430_v32 = vld [vmem:[%s17959_s5 + $0x668] sm:$0xf0]  ;;  %v8629_v37 = vor.u32 %v10240_v2, %v8628_v19  ;;  %v8820_v43 = vld [vmem:[%s17959_s5 + $0x890] sm:$0xf]  ;;  %v10288_v24 = vld [vmem:[%s17959_s5 + $0x894] sm:$0xf0] }
 0x2f0   : > { %v2314_v59 = vpop.f32.mrf.mxu0  ;;  %4105 = vmatpush.bf16.msra.mxu0 %v8653_v49  ;;  %v8433_v20 = vor.u32 %v10217_v21, %v8430_v32  ;;  %v10294_v49 = vld [vmem:[%s17959_s5 + $0x8c4] sm:$0xf0]  ;;  %v8924_v21 = vld [vmem:[%s17959_s5 + $0x960] sm:$0xf]  ;;  %v10189_v2 = vld [vmem:[%s17959_s5 + $0x584] sm:$0xf] }
 0x2f1   : > { %v14533_v54 = vadd.f32 %v2314_v59, %v14428_v29  ;;  %v10244_v29 = vld [vmem:[%s17959_s5 + $0x734] sm:$0xf0]  ;;  %v8845_v13 = vor.u32 %v10294_v49, %v8844_v36  ;;  %v8342_v59 = vld [vmem:[%s17959_s5 + $0x5b8] sm:$0xf0]  ;;  %v10314_v32 = vld [vmem:[%s17959_s5 + $0x964] sm:$0xf0] }
 0x2f2   : > { %v14535_v14 = vpop.f32.mrf.mxu3  ;;  %4159 = vmatpush.bf16.msrb.mxu3 %v8869_v15  ;;  %v8645_v27 = vor.u32 %v10244_v29, %v8644_v42  ;;  %3373 = vmatpush.bf16.msrb.mxu2 %v8369_v61  ;;  %v10215_v15 = vld [vmem:[%s17959_s5 + $0x654] sm:$0xf]  ;;  %v8345_v34 = vor.u32 %v10195_v8, %v8342_v59  ;;  %v10292_v42 = vld [vmem:[%s17959_s5 + $0x8b4] sm:$0xf0]  ;;  %v8925_v19 = vor.u32 %v10314_v32, %v8924_v21  ;;  %v8318_v36 = vld [vmem:[%s17959_s5 + $0x588] sm:$0xf0] }
 0x2f3   : > { %3290 = vmatmul.bf16.gmra.mxu0 %v14014_v63  ;;  %3322 = vmatpush.bf16.msrb.mxu1 %v8129_v28  ;;  %v8425_v0 = vor.u32 %v10215_v15, %v8422_v58  ;;  %v8620_v28 = vld [vmem:[%s17959_s5 + $0x700] sm:$0xf]  ;;  %v8837_v11 = vor.u32 %v10292_v42, %v8836_v44  ;;  %v8321_v8 = vor.u32 %v10189_v2, %v8318_v36  ;;  %v8398_v59 = vld [vmem:[%s17959_s5 + $0x628] sm:$0xf0]  ;;  %v10286_v58 = vld [vmem:[%s17959_s5 + $0x884] sm:$0xf0] }
 0x2f4   : > { %4106 = vmatpush.bf16.msra.mxu0 %v8645_v27  ;;  %v8621_v61 = vor.u32 %v10238_v52, %v8620_v28  ;;  %v8334_v27 = vld [vmem:[%s17959_s5 + $0x5a8] sm:$0xf0]  ;;  %v10312_v28 = vld [vmem:[%s17959_s5 + $0x954] sm:$0xf0]  ;;  %v10207_v44 = vld [vmem:[%s17959_s5 + $0x614] sm:$0xf] }
 0x2f5   : > { %3247 = vmatmul.bf16.vlgmr.msra.gmra.mxu1 %v13582_v25  ;;  %v8337_v41 = vor.u32 %v10193_v18, %v8334_v27  ;;  %v8740_v42 = vld [vmem:[%s17959_s5 + $0x7f0] sm:$0xf]  ;;  %v8908_v27 = vld [vmem:[%s17959_s5 + $0x940] sm:$0xf]  ;;  %v8670_v32 = vld [vmem:[%s17959_s5 + $0x768] sm:$0xf0] }
 0x2f6   : > { %4160 = vmatpush.bf16.msrb.mxu3 %v8861_v47  ;;  %3374 = vmatpush.bf16.msrb.mxu2 %v8361_v55  ;;  %v8828_v55 = vld [vmem:[%s17959_s5 + $0x8a0] sm:$0xf]  ;;  %v8909_v31 = vor.u32 %v10310_v26, %v8908_v27  ;;  %v10264_v2 = vld [vmem:[%s17959_s5 + $0x7d4] sm:$0xf0]  ;;  %v8804_v36 = vld [vmem:[%s17959_s5 + $0x870] sm:$0xf] }
 0x2f7   : > { %3391 = vmatpush.bf16.msra.mxu1 %v8441_v33  ;;  %v8829_v33 = vor.u32 %v10290_v39, %v8828_v55 }
 0x2f8   : > { %v2316_v40 = vpop.f32.mrf.mxu0  ;;  %4107 = vmatpush.bf16.msra.mxu0 %v8637_v50  ;;  %v10211_v50 = vld [vmem:[%s17959_s5 + $0x634] sm:$0xf] }
 0x2f9   : > { %v14589_v56 = vadd.f32 %v2316_v40, %v2298_v53  ;;  %v8326_v53 = vld [vmem:[%s17959_s5 + $0x598] sm:$0xf0] }
 0x2fa   : > { %v14591_v16 = vpop.f32.mrf.mxu3  ;;  %4161 = vmatpush.bf16.msrb.mxu3 %v8853_v38  ;;  %3375 = vmatpush.bf16.msrb.mxu2 %v8353_v5  ;;  %v8329_v3 = vor.u32 %v10191_v60, %v8326_v53  ;;  %v8406_v40 = vld [vmem:[%s17959_s5 + $0x638] sm:$0xf0]  ;;  %v8821_v5 = vor.u32 %v10288_v24, %v8820_v43  ;;  %v8900_v24 = vld [vmem:[%s17959_s5 + $0x930] sm:$0xf] }
 0x2fb   : > { %3392 = vmatpush.bf16.msra.mxu1 %v8433_v20  ;;  %v8409_v38 = vor.u32 %v10211_v50, %v8406_v40  ;;  %v10266_v40 = vld [vmem:[%s17959_s5 + $0x7e4] sm:$0xf0] }
 0x2fc   : > { %4108 = vmatpush.bf16.msra.mxu0 %v8629_v37  ;;  %v10209_v37 = vld [vmem:[%s17959_s5 + $0x624] sm:$0xf] }
 0x2fd   : > { %3233 = vmatmul.bf16.gmra.mxu2 %v13567_v22  ;;  %v8401_v15 = vor.u32 %v10209_v37, %v8398_v59 }
 0x2fe   : > { %4162 = vmatpush.bf16.msrb.mxu3 %v8845_v13  ;;  %3376 = vmatpush.bf16.msrb.mxu2 %v8345_v34  ;;  %v8812_v34 = vld [vmem:[%s17959_s5 + $0x880] sm:$0xf] }
 0x2ff   : > { %3347 = vmatmul.bf16.gmra.mxu3 %v13390_v9  ;;  %3393 = vmatpush.bf16.msra.mxu1 %v8425_v0  ;;  %v8813_v0 = vor.u32 %v10286_v58, %v8812_v34  ;;  %v10306_v34 = vld [vmem:[%s17959_s5 + $0x924] sm:$0xf0]  ;;  %v10247_v58 = vld [vmem:[%s17959_s5 + $0x754] sm:$0xf] }
 0x300   : > { %v2385_v29 = vpop.f32.mrf.mxu0  ;;  %4109 = vmatpush.bf16.msra.mxu0 %v8621_v61  ;;  %v8390_v61 = vld [vmem:[%s17959_s5 + $0x618] sm:$0xf0] }
 0x301   : > { %v14644_v47 = vadd.f32 %v2385_v29, %v14535_v14  ;;  %v8932_v14 = vld [vmem:[%s17959_s5 + $0x970] sm:$0xf]  ;;  %v8393_v29 = vor.u32 %v10207_v44, %v8390_v61  ;;  %v8716_v61 = vld [vmem:[%s17959_s5 + $0x7c0] sm:$0xf] }
 0x302   : > { %v14646_v6 = vpop.f32.mrf.mxu3  ;;  %4163 = vmatpush.bf16.msrb.mxu3 %v8837_v11  ;;  %3377 = vmatpush.bf16.msrb.mxu2 %v8337_v41  ;;  %v8933_v62 = vor.u32 %v10316_v57, %v8932_v14  ;;  %v10268_v11 = vld [vmem:[%s17959_s5 + $0x7f4] sm:$0xf0]  ;;  %v10251_v41 = vld [vmem:[%s17959_s5 + $0x774] sm:$0xf]  ;;  %v8382_v57 = vld [vmem:[%s17959_s5 + $0x608] sm:$0xf0] }
 0x303   : > { %3361 = vmatmul.bf16.vlgmr.msrb.gmra.mxu0 %v13465_v30  ;;  %3394 = vmatpush.bf16.msra.mxu1 %v8417_v35  ;;  %v8741_v18 = vor.u32 %v10268_v11, %v8740_v42  ;;  %v8678_v35 = vld [vmem:[%s17959_s5 + $0x778] sm:$0xf0]  ;;  %v10262_v42 = vld [vmem:[%s17959_s5 + $0x7c4] sm:$0xf0] }
 0x304   : > { %4178 = vmatpush.bf16.msrb.mxu0 %v8933_v62  ;;  %v8681_v14 = vor.u32 %v10251_v41, %v8678_v35  ;;  %v8732_v62 = vld [vmem:[%s17959_s5 + $0x7e0] sm:$0xf]  ;;  %v8717_v26 = vor.u32 %v10262_v42, %v8716_v61  ;;  %v10282_v41 = vld [vmem:[%s17959_s5 + $0x864] sm:$0xf0]  ;;  %v8742_v42 = vld [vmem:[%s17959_s5 + $0x7f8] sm:$0xf0] }
 0x305   : > { %3252 = vmatmul.bf16.gmra.mxu1 %v13691_v1  ;;  %v8733_v43 = vor.u32 %v10266_v40, %v8732_v62  ;;  %v8708_v62 = vld [vmem:[%s17959_s5 + $0x7b0] sm:$0xf] }
 0x306   : > { %4164 = vmatpush.bf16.msrb.mxu3 %v8829_v33  ;;  %3378 = vmatpush.bf16.msrb.mxu2 %v8329_v3  ;;  %v10205_v33 = vld [vmem:[%s17959_s5 + $0x604] sm:$0xf] }
 0x307   : > { %3395 = vmatpush.bf16.msra.mxu1 %v8409_v38  ;;  %v8385_v3 = vor.u32 %v10205_v33, %v8382_v57  ;;  %v8654_v33 = vld [vmem:[%s17959_s5 + $0x748] sm:$0xf0] }
 0x308   : > { %v2387_v20 = vpop.f32.mrf.mxu0  ;;  %4179 = vmatpush.bf16.msrb.mxu0 %v8925_v19  ;;  %v8724_v19 = vld [vmem:[%s17959_s5 + $0x7d0] sm:$0xf] }
 0x309   : > { %v14699_v49 = vadd.f32 %v2387_v20, %v14591_v16  ;;  %v8916_v16 = vld [vmem:[%s17959_s5 + $0x950] sm:$0xf]  ;;  %v8725_v37 = vor.u32 %v10264_v2, %v8724_v19 }
 0x30a   : > { %v14701_v13 = vpop.f32.mrf.mxu3  ;;  %4165 = vmatpush.bf16.msrb.mxu3 %v8821_v5  ;;  %3379 = vmatpush.bf16.msrb.mxu2 %v8321_v8  ;;  %v8917_v52 = vor.u32 %v10312_v28, %v8916_v16  ;;  %v10284_v8 = vld [vmem:[%s17959_s5 + $0x874] sm:$0xf0] }
 0x30b   : > { %3396 = vmatpush.bf16.msra.mxu1 %v8401_v15  ;;  %v8805_v59 = vor.u32 %v10284_v8, %v8804_v36  ;;  %v8892_v15 = vld [vmem:[%s17959_s5 + $0x920] sm:$0xf] }
 0x30c   : > { %4180 = vmatpush.bf16.msrb.mxu0 %v8917_v52  ;;  %v8893_v16 = vor.u32 %v10306_v34, %v8892_v15  ;;  %v8700_v36 = vld [vmem:[%s17959_s5 + $0x7a0] sm:$0xf] }
 0x30d   : > { %3304 = vmatmul.bf16.vlgmr.msra.gmra.mxu2 %v13276_v4  ;;  %v8780_v8 = vld [vmem:[%s17959_s5 + $0x840] sm:$0xf] }
 0x30e   : > { %4166 = vmatpush.bf16.msrb.mxu3 %v8813_v0  ;;  %4121 = vmatpush.bf16.msra.mxu2 %v8741_v18  ;;  %v8662_v0 = vld [vmem:[%s17959_s5 + $0x758] sm:$0xf0] }
 0x30f   : > { %3418 = vmatmul.bf16.vlgmr.msra.gmra.mxu3 %v13909_v48  ;;  %3397 = vmatpush.bf16.msra.mxu1 %v8393_v29  ;;  %v8665_v44 = vor.u32 %v10247_v58, %v8662_v0  ;;  %v8796_v29 = vld [vmem:[%s17959_s5 + $0x860] sm:$0xf]  ;;  %v10278_v58 = vld [vmem:[%s17959_s5 + $0x844] sm:$0xf0] }
 0x310   : > { %v2328_v55 = vpop.f32.mrf.mxu2  ;;  %v2390_v39 = vpop.f32.mrf.mxu0  ;;  %4181 = vmatpush.bf16.msrb.mxu0 %v8909_v31  ;;  %v8797_v35 = vor.u32 %v10282_v41, %v8796_v29  ;;  %v8781_v0 = vor.u32 %v10278_v58, %v8780_v8  ;;  %v8772_v41 = vld [vmem:[%s17959_s5 + $0x830] sm:$0xf] }
 0x311   : > { %v2329_v60 = vadd.f32 %v2328_v55, %v14411_v10  ;;  %v14755_v53 = vadd.f32 %v2390_v39, %v14646_v6  ;;  %v10308_v10 = vld [vmem:[%s17959_s5 + $0x934] sm:$0xf0]  ;;  %v10249_v6 = vld [vmem:[%s17959_s5 + $0x764] sm:$0xf]  ;;  %v8884_v55 = vld [vmem:[%s17959_s5 + $0x910] sm:$0xf] }
 0x312   : > { %v14757_v50 = vpop.f32.mrf.mxu3  ;;  %v2347_v38 = vpop.f32.mrf.mxu1  ;;  %4235 = vmatpush.bf16.msra.mxu3 %v8681_v14  ;;  %v8901_v5 = vor.u32 %v10308_v10, %v8900_v24  ;;  %4122 = vmatpush.bf16.msra.mxu2 %v8733_v43  ;;  %v8673_v20 = vor.u32 %v10249_v6, %v8670_v32  ;;  %v8876_v24 = vld [vmem:[%s17959_s5 + $0x900] sm:$0xf]  ;;  %v10302_v10 = vld [vmem:[%s17959_s5 + $0x904] sm:$0xf0]  ;;  %v10243_v6 = vld [vmem:[%s17959_s5 + $0x734] sm:$0xf] }
 0x313   : > { %v14771_v21 = vadd.f32 %v2347_v38, %v2329_v60  ;;  %3366 = vmatmul.bf16.gmra.mxu0 %v13567_v22  ;;  %3398 = vmatpush.bf16.msra.mxu1 %v8385_v3  ;;  %v10260_v60 = vld [vmem:[%s17959_s5 + $0x7b4] sm:$0xf0]  ;;  %v8788_v3 = vld [vmem:[%s17959_s5 + $0x850] sm:$0xf]  ;;  %v8646_v32 = vld [vmem:[%s17959_s5 + $0x738] sm:$0xf0] }
 0x314   : > { %4182 = vmatpush.bf16.msrb.mxu0 %v8901_v5  ;;  %v8709_v40 = vor.u32 %v10260_v60, %v8708_v62  ;;  %v10280_v38 = vld [vmem:[%s17959_s5 + $0x854] sm:$0xf0]  ;;  %v8877_v5 = vor.u32 %v10302_v10, %v8876_v24  ;;  %v8649_v2 = vor.u32 %v10243_v6, %v8646_v32  ;;  %v8756_v58 = vld [vmem:[%s17959_s5 + $0x810] sm:$0xf] }
 0x315   : > { %3323 = vmatmul.bf16.vlgmr.msrb.gmra.mxu1 %v13291_v17  ;;  %v8789_v43 = vor.u32 %v10280_v38, %v8788_v3  ;;  %v10254_v38 = vld [vmem:[%s17959_s5 + $0x784] sm:$0xf0] }
 0x316   : > { %4236 = vmatpush.bf16.msra.mxu3 %v8673_v20  ;;  %4123 = vmatpush.bf16.msra.mxu2 %v8725_v37  ;;  %v10258_v37 = vld [vmem:[%s17959_s5 + $0x7a4] sm:$0xf0] }
 0x317   : > { %4140 = vmatpush.bf16.msrb.mxu1 %v8805_v59  ;;  %v8701_v34 = vor.u32 %v10258_v37, %v8700_v36  ;;  %v8622_v36 = vld [vmem:[%s17959_s5 + $0x708] sm:$0xf0] }
 0x318   : > { %v2330_v28 = vpop.f32.mrf.mxu2  ;;  %v2392_v52 = vpop.f32.mrf.mxu0  ;;  %4183 = vmatpush.bf16.msrb.mxu0 %v8893_v16 }
 0x319   : > { %v2331_v11 = vadd.f32 %v2330_v28, %v14469_v23  ;;  %v14813_v18 = vadd.f32 %v2392_v52, %v14701_v13  ;;  %v10304_v23 = vld [vmem:[%s17959_s5 + $0x914] sm:$0xf0]  ;;  %v10245_v13 = vld [vmem:[%s17959_s5 + $0x744] sm:$0xf]  ;;  %v8638_v52 = vld [vmem:[%s17959_s5 + $0x728] sm:$0xf0] }
 0x31a   : > { %v14815_v27 = vpop.f32.mrf.mxu3  ;;  %v2349_v31 = vpop.f32.mrf.mxu1  ;;  %4237 = vmatpush.bf16.msra.mxu3 %v8665_v44  ;;  %v8885_v14 = vor.u32 %v10304_v23, %v8884_v55  ;;  %4124 = vmatpush.bf16.msra.mxu2 %v8717_v26  ;;  %v8657_v57 = vor.u32 %v10245_v13, %v8654_v33  ;;  %v10241_v28 = vld [vmem:[%s17959_s5 + $0x724] sm:$0xf]  ;;  %v10256_v26 = vld [vmem:[%s17959_s5 + $0x794] sm:$0xf0]  ;;  %v10239_v23 = vld [vmem:[%s17959_s5 + $0x714] sm:$0xf] }
 0x31b   : > { %v14829_v39 = vadd.f32 %v2349_v31, %v2331_v11  ;;  %4141 = vmatpush.bf16.msrb.mxu1 %v8797_v35  ;;  %v8641_v61 = vor.u32 %v10241_v28, %v8638_v52  ;;  %v8692_v11 = vld [vmem:[%s17959_s5 + $0x790] sm:$0xf]  ;;  %v10276_v35 = vld [vmem:[%s17959_s5 + $0x834] sm:$0xf0]  ;;  %v8630_v13 = vld [vmem:[%s17959_s5 + $0x718] sm:$0xf0] }
 0x31c   : > { %4184 = vmatpush.bf16.msrb.mxu0 %v8885_v14  ;;  %v8693_v31 = vor.u32 %v10256_v26, %v8692_v11  ;;  %v8773_v55 = vor.u32 %v10276_v35, %v8772_v41  ;;  %v10265_v14 = vld [vmem:[%s17959_s5 + $0x7e4] sm:$0xf]  ;;  %v8633_v33 = vor.u32 %v10239_v23, %v8630_v13  ;;  %v10332_v52 = vld [vmem:[%s17959_s5 + $0x9f4] sm:$0xf0]  ;;  %v8934_v26 = vld [vmem:[%s17959_s5 + $0x978] sm:$0xf0] }
 0x31d   : > { %3309 = vmatmul.bf16.gmra.mxu2 %v13347_v51  ;;  %v10270_v23 = vld [vmem:[%s17959_s5 + $0x804] sm:$0xf0]  ;;  %v8988_v13 = vld [vmem:[%s17959_s5 + $0x9e0] sm:$0xf] }
 0x31e   : > { %4238 = vmatpush.bf16.msra.mxu3 %v8657_v57  ;;  %4125 = vmatpush.bf16.msra.mxu2 %v8709_v40  ;;  %v8734_v57 = vld [vmem:[%s17959_s5 + $0x7e8] sm:$0xf0]  ;;  %v8684_v40 = vld [vmem:[%s17959_s5 + $0x780] sm:$0xf] }
 0x31f   : > { %3423 = vmatmul.bf16.gmra.mxu3 %v14014_v63  ;;  %4142 = vmatpush.bf16.msrb.mxu1 %v8789_v43  ;;  %v8737_v3 = vor.u32 %v10265_v14, %v8734_v57  ;;  %v8764_v43 = vld [vmem:[%s17959_s5 + $0x820] sm:$0xf]  ;;  %v8685_v6 = vor.u32 %v10254_v38, %v8684_v40  ;;  %v10259_v38 = vld [vmem:[%s17959_s5 + $0x7b4] sm:$0xf] }
 0x320   : > { %v2333_v20 = vpop.f32.mrf.mxu2  ;;  %v14860_v19 = vpop.f32.mrf.mxu0  ;;  %4185 = vmatpush.bf16.msrb.mxu0 %v8877_v5  ;;  %v10274_v5 = vld [vmem:[%s17959_s5 + $0x824] sm:$0xf0] }
 0x321   : > { %v2334_v59 = vadd.f32 %v2333_v20, %v14533_v54  ;;  %v10267_v54 = vld [vmem:[%s17959_s5 + $0x7f4] sm:$0xf]  ;;  %v8765_v20 = vor.u32 %v10274_v5, %v8764_v43  ;;  %v8710_v43 = vld [vmem:[%s17959_s5 + $0x7b8] sm:$0xf0]  ;;  %v8926_v5 = vld [vmem:[%s17959_s5 + $0x968] sm:$0xf0] }
 0x322   : > { %v14872_v15 = vpop.f32.mrf.mxu3  ;;  %v2352_v16 = vpop.f32.mrf.mxu1  ;;  %4239 = vmatpush.bf16.msra.mxu3 %v8649_v2  ;;  %4126 = vmatpush.bf16.msra.mxu2 %v8701_v34  ;;  %v8745_v29 = vor.u32 %v10267_v54, %v8742_v42  ;;  %v10237_v2 = vld [vmem:[%s17959_s5 + $0x704] sm:$0xf]  ;;  %v8718_v42 = vld [vmem:[%s17959_s5 + $0x7c8] sm:$0xf0] }
 0x323   : > { %v14886_v44 = vadd.f32 %v2352_v16, %v2334_v59  ;;  %4110 = vmatmul.bf16.vlgmr.msra.gmra.mxu0 %v13276_v4  ;;  %4143 = vmatpush.bf16.msrb.mxu1 %v8781_v0  ;;  %v8625_v8 = vor.u32 %v10237_v2, %v8622_v36  ;;  %v8726_v59 = vld [vmem:[%s17959_s5 + $0x7d8] sm:$0xf0]  ;;  %v10272_v16 = vld [vmem:[%s17959_s5 + $0x814] sm:$0xf0]  ;;  %v8996_v0 = vld [vmem:[%s17959_s5 + $0x9f0] sm:$0xf] }
 0x324   : > { %4254 = vmatpush.bf16.msra.mxu0 %v8745_v29  ;;  %v8757_v28 = vor.u32 %v10272_v16, %v8756_v58  ;;  %v8997_v54 = vor.u32 %v10332_v52, %v8996_v0  ;;  %v10315_v29 = vld [vmem:[%s17959_s5 + $0x974] sm:$0xf]  ;;  %v10328_v2 = vld [vmem:[%s17959_s5 + $0x9d4] sm:$0xf0]  ;;  %v9060_v36 = vld [vmem:[%s17959_s5 + $0xa70] sm:$0xf] }
 0x325   : > { %3328 = vmatmul.bf16.gmra.mxu1 %v13350_v45  ;;  %v8937_v35 = vor.u32 %v10315_v29, %v8934_v26  ;;  %v10257_v58 = vld [vmem:[%s17959_s5 + $0x7a4] sm:$0xf]  ;;  %v8702_v16 = vld [vmem:[%s17959_s5 + $0x7a8] sm:$0xf0]  ;;  %v8918_v52 = vld [vmem:[%s17959_s5 + $0x958] sm:$0xf0] }
 0x326   : > { %4240 = vmatpush.bf16.msra.mxu3 %v8641_v61  ;;  %4127 = vmatpush.bf16.msra.mxu2 %v8693_v31  ;;  %v10261_v61 = vld [vmem:[%s17959_s5 + $0x7c4] sm:$0xf]  ;;  %v8972_v29 = vld [vmem:[%s17959_s5 + $0x9c0] sm:$0xf] }
 0x327   : > { %4144 = vmatpush.bf16.msrb.mxu1 %v8773_v55  ;;  %v8721_v11 = vor.u32 %v10261_v61, %v8718_v42  ;;  %v8748_v55 = vld [vmem:[%s17959_s5 + $0x800] sm:$0xf] }
 0x328   : > { %v2335_v62 = vpop.f32.mrf.mxu2  ;;  %v14917_v60 = vpop.f32.mrf.mxu0  ;;  %4255 = vmatpush.bf16.msra.mxu0 %v8737_v3  ;;  %v8749_v57 = vor.u32 %v10270_v23, %v8748_v55  ;;  %v10346_v55 = vld [vmem:[%s17959_s5 + $0xa64] sm:$0xf0] }
 0x329   : > { %v2336_v24 = vadd.f32 %v2335_v62, %v14589_v56  ;;  %v10263_v56 = vld [vmem:[%s17959_s5 + $0x7d4] sm:$0xf]  ;;  %v10330_v62 = vld [vmem:[%s17959_s5 + $0x9e4] sm:$0xf0] }
 0x32a   : > { %v14929_v10 = vpop.f32.mrf.mxu3  ;;  %v2354_v32 = vpop.f32.mrf.mxu1  ;;  %4241 = vmatpush.bf16.msra.mxu3 %v8633_v33  ;;  %4128 = vmatpush.bf16.msra.mxu2 %v8685_v6  ;;  %v8729_v34 = vor.u32 %v10263_v56, %v8726_v59  ;;  %v8989_v40 = vor.u32 %v10330_v62, %v8988_v13  ;;  %v8713_v6 = vor.u32 %v10259_v38, %v8710_v43  ;;  %v10348_v59 = vld [vmem:[%s17959_s5 + $0xa74] sm:$0xf0]  ;;  %v8964_v43 = vld [vmem:[%s17959_s5 + $0x9b0] sm:$0xf] }
 0x32b   : > { %v14943_v37 = vadd.f32 %v2354_v32, %v2336_v24  ;;  %4145 = vmatpush.bf16.msrb.mxu1 %v8765_v20  ;;  %v8980_v20 = vld [vmem:[%s17959_s5 + $0x9d0] sm:$0xf] }
 0x32c   : > { %4256 = vmatpush.bf16.msra.mxu0 %v8729_v34  ;;  %v9061_v34 = vor.u32 %v10348_v59, %v9060_v36  ;;  %v8686_v36 = vld [vmem:[%s17959_s5 + $0x788] sm:$0xf0]  ;;  %v8902_v59 = vld [vmem:[%s17959_s5 + $0x938] sm:$0xf0] }
 0x32d   : > { %3380 = vmatmul.bf16.vlgmr.msrb.gmra.mxu2 %v13582_v25 }
 0x32e   : > { %4242 = vmatpush.bf16.msra.mxu3 %v8625_v8  ;;  %4197 = vmatpush.bf16.msrb.mxu2 %v8997_v54  ;;  %v8981_v8 = vor.u32 %v10328_v2, %v8980_v20  ;;  %v10253_v2 = vld [vmem:[%s17959_s5 + $0x784] sm:$0xf] }
 0x32f   : > { %4167 = vmatmul.bf16.vlgmr.msrb.gmra.mxu3 %v13465_v30  ;;  %4146 = vmatpush.bf16.msrb.mxu1 %v8757_v28  ;;  %v8705_v28 = vor.u32 %v10257_v58, %v8702_v16 }
 0x330   : > { %v2404_v41 = vpop.f32.mrf.mxu2  ;;  %v14974_v31 = vpop.f32.mrf.mxu0  ;;  %4257 = vmatpush.bf16.msra.mxu0 %v8721_v11  ;;  %v9052_v11 = vld [vmem:[%s17959_s5 + $0xa60] sm:$0xf] }
 0x331   : > { %v2405_v14 = vadd.f32 %v2404_v41, %v14644_v47  ;;  %v10313_v47 = vld [vmem:[%s17959_s5 + $0x964] sm:$0xf]  ;;  %v9053_v13 = vor.u32 %v10346_v55, %v9052_v11 }
 0x332   : > { %v14986_v33 = vpop.f32.mrf.mxu3  ;;  %v2423_v3 = vpop.f32.mrf.mxu1  ;;  %4311 = vmatpush.bf16.msrb.mxu3 %v8937_v35  ;;  %4198 = vmatpush.bf16.msrb.mxu2 %v8989_v40  ;;  %v8929_v32 = vor.u32 %v10313_v47, %v8926_v5  ;;  %v8910_v40 = vld [vmem:[%s17959_s5 + $0x948] sm:$0xf0]  ;;  %v10324_v47 = vld [vmem:[%s17959_s5 + $0x9b4] sm:$0xf0] }
 0x333   : > { %v2424_v24 = vadd.f32 %v2423_v3, %v2405_v14  ;;  %4115 = vmatmul.bf16.gmra.mxu0 %v13347_v51  ;;  %4147 = vmatpush.bf16.msrb.mxu1 %v8749_v57  ;;  %v10255_v14 = vld [vmem:[%s17959_s5 + $0x794] sm:$0xf]  ;;  %v8694_v57 = vld [vmem:[%s17959_s5 + $0x798] sm:$0xf0]  ;;  %v8965_v5 = vor.u32 %v10324_v47, %v8964_v43 }
 0x334   : > { %4258 = vmatpush.bf16.msra.mxu0 %v8713_v6  ;;  %v8697_v3 = vor.u32 %v10255_v14, %v8694_v57  ;;  %v8948_v57 = vld [vmem:[%s17959_s5 + $0x990] sm:$0xf]  ;;  %v10303_v47 = vld [vmem:[%s17959_s5 + $0x914] sm:$0xf] }
 0x335   : > { %v2443_v56 = vadd.f32 %v14757_v50, %v2424_v24  ;;  %3399 = vmatmul.bf16.vlgmr.msra.gmra.mxu1 %v13855_v7  ;;  %v10311_v50 = vld [vmem:[%s17959_s5 + $0x954] sm:$0xf]  ;;  %v9044_v24 = vld [vmem:[%s17959_s5 + $0xa50] sm:$0xf] }
 0x336   : > { %4312 = vmatpush.bf16.msrb.mxu3 %v8929_v32  ;;  %4199 = vmatpush.bf16.msrb.mxu2 %v8981_v8  ;;  %v8921_v42 = vor.u32 %v10311_v50, %v8918_v52  ;;  %v10344_v32 = vld [vmem:[%s17959_s5 + $0xa54] sm:$0xf0]  ;;  %v8689_v8 = vor.u32 %v10253_v2, %v8686_v36  ;;  %v8956_v50 = vld [vmem:[%s17959_s5 + $0x9a0] sm:$0xf] }
 0x337   : > { %v15028_v0 = vadd.f32 %v14860_v19, %v2443_v56  ;;  %4216 = vmatpush.bf16.msra.mxu1 %v9061_v34  ;;  %v10326_v19 = vld [vmem:[%s17959_s5 + $0x9c4] sm:$0xf0]  ;;  %v9045_v20 = vor.u32 %v10344_v32, %v9044_v24  ;;  %v8886_v24 = vld [vmem:[%s17959_s5 + $0x918] sm:$0xf0]  ;;  %v8990_v32 = vld [vmem:[%s17959_s5 + $0x9e8] sm:$0xf0] }
 0x338   : > { %v2406_v54 = vpop.f32.mrf.mxu2  ;;  %v15033_v61 = vpop.f32.mrf.mxu0  ;;  %v8973_v35 = vor.u32 %v10326_v19, %v8972_v29  ;;  %4259 = vmatpush.bf16.msra.mxu0 %v8705_v28  ;;  %v9036_v28 = vld [vmem:[%s17959_s5 + $0xa40] sm:$0xf]  ;;  %v10342_v29 = vld [vmem:[%s17959_s5 + $0xa44] sm:$0xf0] }
 0x339   : > { %v2407_v26 = vadd.f32 %v2406_v54, %v14699_v49  ;;  %v10309_v49 = vld [vmem:[%s17959_s5 + $0x944] sm:$0xf]  ;;  %v9037_v11 = vor.u32 %v10342_v29, %v9036_v28 }
 0x33a   : > { %v15045_v41 = vpop.f32.mrf.mxu3  ;;  %v2425_v23 = vpop.f32.mrf.mxu1  ;;  %4313 = vmatpush.bf16.msrb.mxu3 %v8921_v42  ;;  %4200 = vmatpush.bf16.msrb.mxu2 %v8973_v35  ;;  %v8913_v38 = vor.u32 %v10309_v49, %v8910_v40  ;;  %v8894_v35 = vld [vmem:[%s17959_s5 + $0x928] sm:$0xf0]  ;;  %v10320_v49 = vld [vmem:[%s17959_s5 + $0x994] sm:$0xf0] }
 0x33b   : > { %v2426_v62 = vadd.f32 %v2425_v23, %v2407_v26  ;;  %4217 = vmatpush.bf16.msra.mxu1 %v9053_v13  ;;  %v10305_v26 = vld [vmem:[%s17959_s5 + $0x924] sm:$0xf]  ;;  %v8998_v13 = vld [vmem:[%s17959_s5 + $0x9f8] sm:$0xf0]  ;;  %v8949_v40 = vor.u32 %v10320_v49, %v8948_v57 }
 0x33c   : > { %4260 = vmatpush.bf16.msra.mxu0 %v8697_v3  ;;  %v8897_v23 = vor.u32 %v10305_v26, %v8894_v35  ;;  %v9012_v35 = vld [vmem:[%s17959_s5 + $0xa10] sm:$0xf]  ;;  %v10325_v49 = vld [vmem:[%s17959_s5 + $0x9c4] sm:$0xf] }
 0x33d   : > { %v2445_v6 = vadd.f32 %v14815_v27, %v2426_v62  ;;  %3385 = vmatmul.bf16.gmra.mxu2 %v13691_v1  ;;  %v10307_v27 = vld [vmem:[%s17959_s5 + $0x934] sm:$0xf]  ;;  %v9028_v62 = vld [vmem:[%s17959_s5 + $0xa30] sm:$0xf] }
 0x33e   : > { %4314 = vmatpush.bf16.msrb.mxu3 %v8913_v38  ;;  %4201 = vmatpush.bf16.msrb.mxu2 %v8965_v5  ;;  %v8905_v16 = vor.u32 %v10307_v27, %v8902_v59  ;;  %v10340_v38 = vld [vmem:[%s17959_s5 + $0xa34] sm:$0xf0]  ;;  %v8889_v5 = vor.u32 %v10303_v47, %v8886_v24  ;;  %v8940_v27 = vld [vmem:[%s17959_s5 + $0x980] sm:$0xf] }
 0x33f   : > { %4172 = vmatmul.bf16.gmra.mxu3 %v13567_v22  ;;  %v15087_v56 = vadd.f32 %v14917_v60, %v2445_v6  ;;  %4218 = vmatpush.bf16.msra.mxu1 %v9045_v20  ;;  %v10322_v60 = vld [vmem:[%s17959_s5 + $0x9a4] sm:$0xf0]  ;;  %v9029_v43 = vor.u32 %v10340_v38, %v9028_v62  ;;  %v8974_v62 = vld [vmem:[%s17959_s5 + $0x9c8] sm:$0xf0]  ;;  %v10380_v38 = vld [vmem:[%s17959_s5 + $0xb74] sm:$0xf0] }
 0x340   : > { %v2409_v34 = vpop.f32.mrf.mxu2  ;;  %v15092_v58 = vpop.f32.mrf.mxu0  ;;  %v8957_v42 = vor.u32 %v10322_v60, %v8956_v50  ;;  %4261 = vmatpush.bf16.msra.mxu0 %v8689_v8  ;;  %v9020_v8 = vld [vmem:[%s17959_s5 + $0xa20] sm:$0xf]  ;;  %v10338_v50 = vld [vmem:[%s17959_s5 + $0xa24] sm:$0xf0] }
 0x341   : > { %v2410_v52 = vadd.f32 %v2409_v34, %v14755_v53  ;;  %v10331_v53 = vld [vmem:[%s17959_s5 + $0x9f4] sm:$0xf]  ;;  %v9021_v28 = vor.u32 %v10338_v50, %v9020_v8 }
 0x342   : > { %v15104_v54 = vpop.f32.mrf.mxu3  ;;  %v2428_v19 = vpop.f32.mrf.mxu1  ;;  %4315 = vmatpush.bf16.msrb.mxu3 %v8905_v16  ;;  %4202 = vmatpush.bf16.msrb.mxu2 %v8957_v42  ;;  %v9001_v14 = vor.u32 %v10331_v53, %v8998_v13  ;;  %v8878_v42 = vld [vmem:[%s17959_s5 + $0x908] sm:$0xf0]  ;;  %v10336_v53 = vld [vmem:[%s17959_s5 + $0xa14] sm:$0xf0] }
 0x343   : > { %v2429_v55 = vadd.f32 %v2428_v19, %v2410_v52  ;;  %4186 = vmatmul.bf16.vlgmr.msrb.gmra.mxu0 %v13582_v25  ;;  %4219 = vmatpush.bf16.msra.mxu1 %v9037_v11  ;;  %v10301_v52 = vld [vmem:[%s17959_s5 + $0x904] sm:$0xf]  ;;  %v8982_v11 = vld [vmem:[%s17959_s5 + $0x9d8] sm:$0xf0]  ;;  %v9013_v13 = vor.u32 %v10336_v53, %v9012_v35  ;;  %v8958_v53 = vld [vmem:[%s17959_s5 + $0x9a8] sm:$0xf0] }
 0x344   : > { %4330 = vmatpush.bf16.msrb.mxu0 %v9001_v14  ;;  %v8881_v19 = vor.u32 %v10301_v52, %v8878_v42  ;;  %v8806_v14 = vld [vmem:[%s17959_s5 + $0x878] sm:$0xf0]  ;;  %v10279_v42 = vld [vmem:[%s17959_s5 + $0x854] sm:$0xf]  ;;  %v10321_v35 = vld [vmem:[%s17959_s5 + $0x9a4] sm:$0xf] }
 0x345   : > { %v2448_v3 = vadd.f32 %v14872_v15, %v2429_v55  ;;  %3404 = vmatmul.bf16.gmra.mxu1 %v13962_v12  ;;  %v10329_v15 = vld [vmem:[%s17959_s5 + $0x9e4] sm:$0xf]  ;;  %v10283_v55 = vld [vmem:[%s17959_s5 + $0x874] sm:$0xf] }
 0x346   : > { %4316 = vmatpush.bf16.msrb.mxu3 %v8897_v23  ;;  %4203 = vmatpush.bf16.msrb.mxu2 %v8949_v40  ;;  %v8993_v36 = vor.u32 %v10329_v15, %v8990_v32  ;;  %v8809_v57 = vor.u32 %v10283_v55, %v8806_v14  ;;  %v8977_v40 = vor.u32 %v10325_v49, %v8974_v62  ;;  %v9004_v15 = vld [vmem:[%s17959_s5 + $0xa00] sm:$0xf]  ;;  %v10277_v49 = vld [vmem:[%s17959_s5 + $0x844] sm:$0xf]  ;;  %v8782_v62 = vld [vmem:[%s17959_s5 + $0x848] sm:$0xf0] }
 0x347   : > { %v15146_v6 = vadd.f32 %v14974_v31, %v2448_v3  ;;  %4220 = vmatpush.bf16.msra.mxu1 %v9029_v43  ;;  %v10318_v31 = vld [vmem:[%s17959_s5 + $0x984] sm:$0xf0]  ;;  %v8961_v55 = vor.u32 %v10321_v35, %v8958_v53  ;;  %v10273_v53 = vld [vmem:[%s17959_s5 + $0x824] sm:$0xf] }
 0x348   : > { %v2411_v20 = vpop.f32.mrf.mxu2  ;;  %v15151_v2 = vpop.f32.mrf.mxu0  ;;  %v8941_v16 = vor.u32 %v10318_v31, %v8940_v27  ;;  %4331 = vmatpush.bf16.msrb.mxu0 %v8993_v36  ;;  %v8798_v27 = vld [vmem:[%s17959_s5 + $0x868] sm:$0xf0] }
 0x349   : > { %v2412_v59 = vadd.f32 %v2411_v20, %v14813_v18  ;;  %v10327_v18 = vld [vmem:[%s17959_s5 + $0x9d4] sm:$0xf] }
 0x34a   : > { %v15163_v34 = vpop.f32.mrf.mxu3  ;;  %v2430_v60 = vpop.f32.mrf.mxu1  ;;  %4317 = vmatpush.bf16.msrb.mxu3 %v8889_v5  ;;  %4204 = vmatpush.bf16.msrb.mxu2 %v8941_v16  ;;  %v8985_v26 = vor.u32 %v10327_v18, %v8982_v11  ;;  %v10281_v5 = vld [vmem:[%s17959_s5 + $0x864] sm:$0xf]  ;;  %v9292_v16 = vld [vmem:[%s17959_s5 + $0xb60] sm:$0xf]  ;;  %v8790_v18 = vld [vmem:[%s17959_s5 + $0x858] sm:$0xf0] }
 0x34b   : > { %v2431_v29 = vadd.f32 %v2430_v60, %v2412_v59  ;;  %4221 = vmatpush.bf16.msra.mxu1 %v9021_v28  ;;  %v8801_v8 = vor.u32 %v10281_v5, %v8798_v27  ;;  %v10323_v59 = vld [vmem:[%s17959_s5 + $0x9b4] sm:$0xf]  ;;  %v10378_v28 = vld [vmem:[%s17959_s5 + $0xb64] sm:$0xf0]  ;;  %v8870_v11 = vld [vmem:[%s17959_s5 + $0x8f8] sm:$0xf0] }
 0x34c   : > { %4332 = vmatpush.bf16.msrb.mxu0 %v8985_v26  ;;  %v9293_v52 = vor.u32 %v10378_v28, %v9292_v16  ;;  %v10319_v5 = vld [vmem:[%s17959_s5 + $0x994] sm:$0xf]  ;;  %v8774_v16 = vld [vmem:[%s17959_s5 + $0x838] sm:$0xf0] }
 0x34d   : > { %v2450_v23 = vadd.f32 %v14929_v10, %v2431_v29  ;;  %4129 = vmatmul.bf16.vlgmr.msra.gmra.mxu2 %v13291_v17  ;;  %v9300_v10 = vld [vmem:[%s17959_s5 + $0xb70] sm:$0xf]  ;;  %v8854_v28 = vld [vmem:[%s17959_s5 + $0x8d8] sm:$0xf0] }
 0x34e   : > { %4318 = vmatpush.bf16.msrb.mxu3 %v8881_v19  ;;  %4273 = vmatpush.bf16.msra.mxu2 %v8809_v57  ;;  %v9301_v24 = vor.u32 %v10380_v38, %v9300_v10  ;;  %v8793_v19 = vor.u32 %v10279_v42, %v8790_v18  ;;  %v10297_v10 = vld [vmem:[%s17959_s5 + $0x8e4] sm:$0xf]  ;;  %v8942_v18 = vld [vmem:[%s17959_s5 + $0x988] sm:$0xf0] }
 0x34f   : > { %4243 = vmatmul.bf16.vlgmr.msra.gmra.mxu3 %v13276_v4  ;;  %v15205_v3 = vadd.f32 %v15033_v61, %v2450_v23  ;;  %4222 = vmatpush.bf16.msra.mxu1 %v9013_v13  ;;  %v10334_v61 = vld [vmem:[%s17959_s5 + $0xa04] sm:$0xf0]  ;;  %v10376_v23 = vld [vmem:[%s17959_s5 + $0xb54] sm:$0xf0]  ;;  %v10317_v42 = vld [vmem:[%s17959_s5 + $0x984] sm:$0xf] }
 0x350   : > { %v2480_v43 = vpop.f32.mrf.mxu2  ;;  %v15210_v47 = vpop.f32.mrf.mxu0  ;;  %v9005_v36 = vor.u32 %v10334_v61, %v9004_v15  ;;  %4333 = vmatpush.bf16.msrb.mxu0 %v8977_v40 }
 0x351   : > { %v15222_v32 = vadd.f32 %v2480_v43, %v15028_v0  ;;  %v8966_v0 = vld [vmem:[%s17959_s5 + $0x9b8] sm:$0xf0]  ;;  %v8785_v43 = vor.u32 %v10277_v49, %v8782_v62  ;;  %v8846_v49 = vld [vmem:[%s17959_s5 + $0x8c8] sm:$0xf0] }
 0x352   : > { %v15224_v20 = vpop.f32.mrf.mxu3  ;;  %v3172_v31 = vpop.f32.mrf.mxu1  ;;  %5060 = vmatpush.bf16.msra.mxu3 %v9301_v24  ;;  %v8969_v60 = vor.u32 %v10323_v59, %v8966_v0  ;;  %4274 = vmatpush.bf16.msra.mxu2 %v8801_v8  ;;  %v8862_v24 = vld [vmem:[%s17959_s5 + $0x8e8] sm:$0xf0]  ;;  %v10374_v8 = vld [vmem:[%s17959_s5 + $0xb44] sm:$0xf0]  ;;  %v10275_v0 = vld [vmem:[%s17959_s5 + $0x834] sm:$0xf] }
 0x353   : > { %v3192_v50 = vadd.f32 %v14986_v33, %v3172_v31  ;;  %4191 = vmatmul.bf16.gmra.mxu0 %v13691_v1  ;;  %4223 = vmatpush.bf16.msra.mxu1 %v9005_v36  ;;  %v10299_v33 = vld [vmem:[%s17959_s5 + $0x8f4] sm:$0xf]  ;;  %v8865_v61 = vor.u32 %v10297_v10, %v8862_v24  ;;  %v9276_v36 = vld [vmem:[%s17959_s5 + $0xb40] sm:$0xf]  ;;  %v10370_v24 = vld [vmem:[%s17959_s5 + $0xb24] sm:$0xf0] }
 0x354   : > { %4334 = vmatpush.bf16.msrb.mxu0 %v8969_v60  ;;  %v8873_v26 = vor.u32 %v10299_v33, %v8870_v11  ;;  %v9277_v59 = vor.u32 %v10374_v8, %v9276_v36  ;;  %v8777_v60 = vor.u32 %v10275_v0, %v8774_v16  ;;  %v8945_v33 = vor.u32 %v10317_v42, %v8942_v18  ;;  %v10271_v36 = vld [vmem:[%s17959_s5 + $0x814] sm:$0xf]  ;;  %v9252_v16 = vld [vmem:[%s17959_s5 + $0xb10] sm:$0xf] }
 0x355   : > { %4148 = vmatmul.bf16.vlgmr.msrb.gmra.mxu1 %v13343_v46  ;;  %v15254_v29 = vadd.f32 %v15092_v58, %v3192_v50  ;;  %v9284_v58 = vld [vmem:[%s17959_s5 + $0xb50] sm:$0xf] }
 0x356   : > { %5061 = vmatpush.bf16.msra.mxu3 %v9293_v52  ;;  %4275 = vmatpush.bf16.msra.mxu2 %v8793_v19  ;;  %v9285_v57 = vor.u32 %v10376_v23, %v9284_v58  ;;  %v10372_v19 = vld [vmem:[%s17959_s5 + $0xb34] sm:$0xf0]  ;;  %v8766_v58 = vld [vmem:[%s17959_s5 + $0x828] sm:$0xf0] }
 0x357   : > { %4292 = vmatpush.bf16.msrb.mxu1 %v8873_v26 }
 0x358   : > { %v2482_v13 = vpop.f32.mrf.mxu2  ;;  %v15271_v14 = vpop.f32.mrf.mxu0  ;;  %4335 = vmatpush.bf16.msrb.mxu0 %v8961_v55  ;;  %v10293_v55 = vld [vmem:[%s17959_s5 + $0x8c4] sm:$0xf] }
 0x359   : > { %v15283_v40 = vadd.f32 %v2482_v13, %v15087_v56  ;;  %v8950_v56 = vld [vmem:[%s17959_s5 + $0x998] sm:$0xf0]  ;;  %v8849_v10 = vor.u32 %v10293_v55, %v8846_v49  ;;  %v9244_v49 = vld [vmem:[%s17959_s5 + $0xb00] sm:$0xf] }
 0x35a   : > { %v15285_v38 = vpop.f32.mrf.mxu3  ;;  %v3174_v15 = vpop.f32.mrf.mxu1  ;;  %5062 = vmatpush.bf16.msra.mxu3 %v9285_v57  ;;  %v8953_v31 = vor.u32 %v10319_v5, %v8950_v56  ;;  %4276 = vmatpush.bf16.msra.mxu2 %v8785_v43  ;;  %v8769_v57 = vor.u32 %v10273_v53, %v8766_v58  ;;  %v9260_v43 = vld [vmem:[%s17959_s5 + $0xb20] sm:$0xf]  ;;  %v10396_v5 = vld [vmem:[%s17959_s5 + $0xbf4] sm:$0xf0]  ;;  %v8830_v58 = vld [vmem:[%s17959_s5 + $0x8a8] sm:$0xf0] }
 0x35b   : > { %v3194_v27 = vadd.f32 %v15045_v41, %v3174_v15  ;;  %4293 = vmatpush.bf16.msrb.mxu1 %v8865_v61  ;;  %v10295_v41 = vld [vmem:[%s17959_s5 + $0x8d4] sm:$0xf]  ;;  %v9261_v61 = vor.u32 %v10370_v24, %v9260_v43  ;;  %v10392_v24 = vld [vmem:[%s17959_s5 + $0xbd4] sm:$0xf0] }
 0x35c   : > { %4336 = vmatpush.bf16.msrb.mxu0 %v8953_v31  ;;  %v8857_v52 = vor.u32 %v10295_v41, %v8854_v28  ;;  %v10368_v41 = vld [vmem:[%s17959_s5 + $0xb14] sm:$0xf0]  ;;  %v10394_v28 = vld [vmem:[%s17959_s5 + $0xbe4] sm:$0xf0] }
 0x35d   : > { %4134 = vmatmul.bf16.gmra.mxu2 %v13350_v45  ;;  %v15314_v50 = vadd.f32 %v15151_v2, %v3194_v27  ;;  %v9268_v2 = vld [vmem:[%s17959_s5 + $0xb30] sm:$0xf]  ;;  %v8758_v27 = vld [vmem:[%s17959_s5 + $0x818] sm:$0xf0] }
 0x35e   : > { %5063 = vmatpush.bf16.msra.mxu3 %v9277_v59  ;;  %4277 = vmatpush.bf16.msra.mxu2 %v8777_v60  ;;  %v9269_v35 = vor.u32 %v10372_v19, %v9268_v2  ;;  %v8761_v8 = vor.u32 %v10271_v36, %v8758_v27  ;;  %v8838_v59 = vld [vmem:[%s17959_s5 + $0x8b8] sm:$0xf0]  ;;  %v9253_v60 = vor.u32 %v10368_v41, %v9252_v16  ;;  %v10269_v2 = vld [vmem:[%s17959_s5 + $0x804] sm:$0xf] }
 0x35f   : > { %4248 = vmatmul.bf16.gmra.mxu3 %v13347_v51  ;;  %4294 = vmatpush.bf16.msrb.mxu1 %v8857_v52  ;;  %v10289_v19 = vld [vmem:[%s17959_s5 + $0x8a4] sm:$0xf]  ;;  %v9062_v36 = vld [vmem:[%s17959_s5 + $0xa78] sm:$0xf0] }
 0x360   : > { %v2485_v11 = vpop.f32.mrf.mxu2  ;;  %v15332_v26 = vpop.f32.mrf.mxu0  ;;  %4337 = vmatpush.bf16.msrb.mxu0 %v8945_v33  ;;  %v8750_v33 = vld [vmem:[%s17959_s5 + $0x808] sm:$0xf0] }
 0x361   : > { %v15344_v23 = vadd.f32 %v2485_v11, %v15146_v6  ;;  %v9364_v6 = vld [vmem:[%s17959_s5 + $0xbf0] sm:$0xf]  ;;  %v8753_v53 = vor.u32 %v10269_v2, %v8750_v33 }
 0x362   : > { %v15346_v13 = vpop.f32.mrf.mxu3  ;;  %v3177_v62 = vpop.f32.mrf.mxu1  ;;  %5064 = vmatpush.bf16.msra.mxu3 %v9269_v35  ;;  %4278 = vmatpush.bf16.msra.mxu2 %v8769_v57  ;;  %v9365_v56 = vor.u32 %v10396_v5, %v9364_v6  ;;  %v8833_v57 = vor.u32 %v10289_v19, %v8830_v58  ;;  %v9054_v19 = vld [vmem:[%s17959_s5 + $0xa68] sm:$0xf0] }
 0x363   : > { %18201 = vst [vmem:[#allocation6_spill] sm:$0xff] %v15344_v23  ;;  %v3197_v15 = vadd.f32 %v15104_v54, %v3177_v62  ;;  %4262 = vmatmul.bf16.vlgmr.msra.gmra.mxu0 %v13291_v17  ;;  %4295 = vmatpush.bf16.msrb.mxu1 %v8849_v10  ;;  %v10291_v54 = vld [vmem:[%s17959_s5 + $0x8b4] sm:$0xf]  ;;  %v10366_v62 = vld [vmem:[%s17959_s5 + $0xb04] sm:$0xf0] }
 0x364   : > { %5079 = vmatpush.bf16.msra.mxu0 %v9365_v56  ;;  %v8841_v0 = vor.u32 %v10291_v54, %v8838_v59  ;;  %v9245_v43 = vor.u32 %v10366_v62, %v9244_v49  ;;  %v9340_v54 = vld [vmem:[%s17959_s5 + $0xbc0] sm:$0xf] }
 0x365   : > { %4153 = vmatmul.bf16.gmra.mxu1 %v13390_v9  ;;  %v15376_v31 = vadd.f32 %v15210_v47, %v3197_v15  ;;  %v9356_v47 = vld [vmem:[%s17959_s5 + $0xbe0] sm:$0xf]  ;;  %v10287_v15 = vld [vmem:[%s17959_s5 + $0x894] sm:$0xf] }
 0x366   : > { %5065 = vmatpush.bf16.msra.mxu3 %v9261_v61  ;;  %4279 = vmatpush.bf16.msra.mxu2 %v8761_v8  ;;  %v9357_v18 = vor.u32 %v10394_v28, %v9356_v47  ;;  %v8822_v61 = vld [vmem:[%s17959_s5 + $0x898] sm:$0xf0]  ;;  %v10390_v8 = vld [vmem:[%s17959_s5 + $0xbc4] sm:$0xf0]  ;;  %v8814_v28 = vld [vmem:[%s17959_s5 + $0x888] sm:$0xf0] }
 0x367   : > { %4296 = vmatpush.bf16.msrb.mxu1 %v8841_v0  ;;  %v8825_v56 = vor.u32 %v10287_v15, %v8822_v61  ;;  %v9341_v59 = vor.u32 %v10390_v8, %v9340_v54  ;;  %v10444_v0 = vld [vmem:[%s17959_s5 + $0xd74] sm:$0xf0] }
 0x368   : > { %v2487_v52 = vpop.f32.mrf.mxu2  ;;  %v15393_v42 = vpop.f32.mrf.mxu0  ;;  %5080 = vmatpush.bf16.msra.mxu0 %v9357_v18 }
 0x369   : > { %v15405_v11 = vadd.f32 %v2487_v52, %v15205_v3  ;;  %v9348_v3 = vld [vmem:[%s17959_s5 + $0xbd0] sm:$0xf]  ;;  %v10345_v52 = vld [vmem:[%s17959_s5 + $0xa64] sm:$0xf] }
 0x36a   : > { %v15407_v35 = vpop.f32.mrf.mxu3  ;;  %v3179_v55 = vpop.f32.mrf.mxu1  ;;  %5066 = vmatpush.bf16.msra.mxu3 %v9253_v60  ;;  %4280 = vmatpush.bf16.msra.mxu2 %v8753_v53  ;;  %v9349_v6 = vor.u32 %v10392_v24, %v9348_v3  ;;  %v10285_v60 = vld [vmem:[%s17959_s5 + $0x884] sm:$0xf]  ;;  %v9057_v58 = vor.u32 %v10345_v52, %v9054_v19  ;;  %v10442_v3 = vld [vmem:[%s17959_s5 + $0xd64] sm:$0xf0]  ;;  %v9046_v24 = vld [vmem:[%s17959_s5 + $0xa58] sm:$0xf0] }
 0x36b   : > { %18202 = vst [vmem:[#allocation2_spill] sm:$0xff] %v15405_v11  ;;  %v3199_v10 = vadd.f32 %v15163_v34, %v3179_v55  ;;  %4297 = vmatpush.bf16.msrb.mxu1 %v8833_v57  ;;  %v10347_v34 = vld [vmem:[%s17959_s5 + $0xa74] sm:$0xf]  ;;  %v8817_v33 = vor.u32 %v10285_v60, %v8814_v28  ;;  %v9332_v55 = vld [vmem:[%s17959_s5 + $0xbb0] sm:$0xf] }
 0x36c   : > { %5081 = vmatpush.bf16.msra.mxu0 %v9349_v6  ;;  %v9065_v27 = vor.u32 %v10347_v34, %v9062_v36  ;;  %v10388_v57 = vld [vmem:[%s17959_s5 + $0xbb4] sm:$0xf0]  ;;  %v9236_v6 = vld [vmem:[%s17959_s5 + $0xaf0] sm:$0xf]  ;;  %v9324_v36 = vld [vmem:[%s17959_s5 + $0xba0] sm:$0xf] }
 0x36d   : > { %4205 = vmatmul.bf16.vlgmr.msrb.gmra.mxu2 %v13855_v7  ;;  %v15436_v5 = vadd.f32 %v15271_v14, %v3199_v10  ;;  %v9556_v14 = vld [vmem:[%s17959_s5 + $0xd70] sm:$0xf]  ;;  %v9333_v62 = vor.u32 %v10388_v57, %v9332_v55  ;;  %v10364_v34 = vld [vmem:[%s17959_s5 + $0xaf4] sm:$0xf0]  ;;  %v9228_v60 = vld [vmem:[%s17959_s5 + $0xae0] sm:$0xf] }
 0x36e   : > { %5067 = vmatpush.bf16.msra.mxu3 %v9245_v43  ;;  %4349 = vmatpush.bf16.msrb.mxu2 %v9065_v27  ;;  %v9557_v47 = vor.u32 %v10444_v0, %v9556_v14  ;;  %v10343_v43 = vld [vmem:[%s17959_s5 + $0xa54] sm:$0xf]  ;;  %v10386_v27 = vld [vmem:[%s17959_s5 + $0xba4] sm:$0xf0]  ;;  %v10440_v14 = vld [vmem:[%s17959_s5 + $0xd54] sm:$0xf0] }
 0x36f   : > { %4319 = vmatmul.bf16.vlgmr.msrb.gmra.mxu3 %v13582_v25  ;;  %4298 = vmatpush.bf16.msrb.mxu1 %v8825_v56  ;;  %v9049_v61 = vor.u32 %v10343_v43, %v9046_v24  ;;  %v9237_v56 = vor.u32 %v10364_v34, %v9236_v6  ;;  %v9325_v8 = vor.u32 %v10386_v27, %v9324_v36  ;;  %v9316_v55 = vld [vmem:[%s17959_s5 + $0xb90] sm:$0xf]  ;;  %v9532_v57 = vld [vmem:[%s17959_s5 + $0xd40] sm:$0xf]  ;;  %v9030_v43 = vld [vmem:[%s17959_s5 + $0xa38] sm:$0xf0] }
 0x370   : > { %v3229_v16 = vpop.f32.mrf.mxu2  ;;  %v15454_v41 = vpop.f32.mrf.mxu0  ;;  %5082 = vmatpush.bf16.msra.mxu0 %v9341_v59  ;;  %v9220_v24 = vld [vmem:[%s17959_s5 + $0xad0] sm:$0xf]  ;;  %v10382_v36 = vld [vmem:[%s17959_s5 + $0xb84] sm:$0xf0] }
 0x371   : > { %v3230_v18 = vadd.f32 %v3229_v16, %v15254_v29  ;;  %v9548_v29 = vld [vmem:[%s17959_s5 + $0xd60] sm:$0xf] }
 0x372   : > { %v15466_v2 = vpop.f32.mrf.mxu3  ;;  %v3248_v53 = vpop.f32.mrf.mxu1  ;;  %5136 = vmatpush.bf16.msrb.mxu3 %v9557_v47  ;;  %4350 = vmatpush.bf16.msrb.mxu2 %v9057_v58  ;;  %v9549_v10 = vor.u32 %v10442_v3, %v9548_v29  ;;  %v10341_v47 = vld [vmem:[%s17959_s5 + $0xa44] sm:$0xf] }
 0x373   : > { %v3249_v49 = vadd.f32 %v3248_v53, %v3230_v18  ;;  %4267 = vmatmul.bf16.gmra.mxu0 %v13350_v45  ;;  %4299 = vmatpush.bf16.msrb.mxu1 %v8817_v33  ;;  %v10362_v33 = vld [vmem:[%s17959_s5 + $0xae4] sm:$0xf0] }
 0x374   : > { %5083 = vmatpush.bf16.msra.mxu0 %v9333_v62  ;;  %v9229_v58 = vor.u32 %v10362_v33, %v9228_v60  ;;  %v10438_v62 = vld [vmem:[%s17959_s5 + $0xd44] sm:$0xf0] }
 0x375   : > { %v3268_v15 = vadd.f32 %v15224_v20, %v3249_v49  ;;  %4224 = vmatmul.bf16.vlgmr.msra.gmra.mxu1 %v13909_v48  ;;  %v9540_v20 = vld [vmem:[%s17959_s5 + $0xd50] sm:$0xf]  ;;  %v9533_v3 = vor.u32 %v10438_v62, %v9532_v57  ;;  %v10358_v33 = vld [vmem:[%s17959_s5 + $0xac4] sm:$0xf0]  ;;  %v10460_v62 = vld [vmem:[%s17959_s5 + $0xdf4] sm:$0xf0] }
 0x376   : > { %5137 = vmatpush.bf16.msrb.mxu3 %v9549_v10  ;;  %4351 = vmatpush.bf16.msrb.mxu2 %v9049_v61  ;;  %v9541_v16 = vor.u32 %v10440_v14, %v9540_v20  ;;  %v10339_v10 = vld [vmem:[%s17959_s5 + $0xa34] sm:$0xf]  ;;  %v10360_v61 = vld [vmem:[%s17959_s5 + $0xad4] sm:$0xf0]  ;;  %v9620_v57 = vld [vmem:[%s17959_s5 + $0xdf0] sm:$0xf] }
 0x377   : > { %v15508_v54 = vadd.f32 %v15332_v26, %v3268_v15  ;;  %5041 = vmatpush.bf16.msra.mxu1 %v9237_v56  ;;  %v9038_v26 = vld [vmem:[%s17959_s5 + $0xa48] sm:$0xf0]  ;;  %v9033_v15 = vor.u32 %v10339_v10, %v9030_v43  ;;  %v9221_v34 = vor.u32 %v10360_v61, %v9220_v24  ;;  %v9308_v56 = vld [vmem:[%s17959_s5 + $0xb80] sm:$0xf]  ;;  %v10335_v10 = vld [vmem:[%s17959_s5 + $0xa14] sm:$0xf] }
 0x378   : > { %v3231_v59 = vpop.f32.mrf.mxu2  ;;  %v15513_v0 = vpop.f32.mrf.mxu0  ;;  %v9041_v18 = vor.u32 %v10341_v47, %v9038_v26  ;;  %5084 = vmatpush.bf16.msra.mxu0 %v9325_v8  ;;  %v9309_v20 = vor.u32 %v10382_v36, %v9308_v56  ;;  %v10436_v8 = vld [vmem:[%s17959_s5 + $0xd34] sm:$0xf0]  ;;  %v10337_v47 = vld [vmem:[%s17959_s5 + $0xa24] sm:$0xf]  ;;  %v9212_v26 = vld [vmem:[%s17959_s5 + $0xac0] sm:$0xf] }
 0x379   : > { %v3232_v28 = vadd.f32 %v3231_v59, %v15314_v50  ;;  %v10384_v50 = vld [vmem:[%s17959_s5 + $0xb94] sm:$0xf0]  ;;  %v9014_v43 = vld [vmem:[%s17959_s5 + $0xa18] sm:$0xf0]  ;;  %v9204_v24 = vld [vmem:[%s17959_s5 + $0xab0] sm:$0xf] }
 0x37a   : > { %v15525_v52 = vpop.f32.mrf.mxu3  ;;  %v3250_v53 = vpop.f32.mrf.mxu1  ;;  %5138 = vmatpush.bf16.msrb.mxu3 %v9541_v16  ;;  %v9317_v49 = vor.u32 %v10384_v50, %v9316_v55  ;;  %4352 = vmatpush.bf16.msrb.mxu2 %v9041_v18  ;;  %v9213_v55 = vor.u32 %v10358_v33, %v9212_v26  ;;  %v9516_v50 = vld [vmem:[%s17959_s5 + $0xd20] sm:$0xf]  ;;  %v10356_v61 = vld [vmem:[%s17959_s5 + $0xab4] sm:$0xf0]  ;;  %v9508_v56 = vld [vmem:[%s17959_s5 + $0xd10] sm:$0xf] }
 0x37b   : > { %v3251_v29 = vadd.f32 %v3250_v53, %v3232_v28  ;;  %5042 = vmatpush.bf16.msra.mxu1 %v9229_v58  ;;  %v10432_v36 = vld [vmem:[%s17959_s5 + $0xd14] sm:$0xf0]  ;;  %v9196_v26 = vld [vmem:[%s17959_s5 + $0xaa0] sm:$0xf] }
 0x37c   : > { %5085 = vmatpush.bf16.msra.mxu0 %v9317_v49 }
 0x37d   : > { %v3270_v6 = vadd.f32 %v15285_v38, %v3251_v29  ;;  %4210 = vmatmul.bf16.gmra.mxu2 %v13962_v12  ;;  %v9524_v38 = vld [vmem:[%s17959_s5 + $0xd30] sm:$0xf] }
 0x37e   : > { %5139 = vmatpush.bf16.msrb.mxu3 %v9533_v3  ;;  %4353 = vmatpush.bf16.msrb.mxu2 %v9033_v15  ;;  %v9525_v16 = vor.u32 %v10436_v8, %v9524_v38  ;;  %v9621_v3 = vor.u32 %v10460_v62, %v9620_v57  ;;  %v9017_v15 = vor.u32 %v10335_v10, %v9014_v43  ;;  %v10458_v8 = vld [vmem:[%s17959_s5 + $0xde4] sm:$0xf0]  ;;  %v9500_v57 = vld [vmem:[%s17959_s5 + $0xd00] sm:$0xf]  ;;  %v9188_v43 = vld [vmem:[%s17959_s5 + $0xa90] sm:$0xf] }
 0x37f   : > { %4324 = vmatmul.bf16.gmra.mxu3 %v13691_v1  ;;  %v15569_v27 = vadd.f32 %v15393_v42, %v3270_v6  ;;  %5043 = vmatpush.bf16.msra.mxu1 %v9221_v34  ;;  %v9022_v42 = vld [vmem:[%s17959_s5 + $0xa28] sm:$0xf0]  ;;  %v9205_v34 = vor.u32 %v10356_v61, %v9204_v24  ;;  %v10352_v24 = vld [vmem:[%s17959_s5 + $0xa94] sm:$0xf0] }
 0x380   : > { %v3234_v14 = vpop.f32.mrf.mxu2  ;;  %v15574_v59 = vpop.f32.mrf.mxu0  ;;  %v9025_v18 = vor.u32 %v10337_v47, %v9022_v42  ;;  %5086 = vmatpush.bf16.msra.mxu0 %v9309_v20  ;;  %v9509_v20 = vor.u32 %v10432_v36, %v9508_v56  ;;  %v10333_v42 = vld [vmem:[%s17959_s5 + $0xa04] sm:$0xf]  ;;  %v9189_v61 = vor.u32 %v10352_v24, %v9188_v43  ;;  %v9596_v36 = vld [vmem:[%s17959_s5 + $0xdc0] sm:$0xf]  ;;  %v9358_v43 = vld [vmem:[%s17959_s5 + $0xbe8] sm:$0xf0] }
 0x381   : > { %v3235_v60 = vadd.f32 %v3234_v14, %v15376_v31  ;;  %v10434_v31 = vld [vmem:[%s17959_s5 + $0xd24] sm:$0xf0] }
 0x382   : > { %v15586_v28 = vpop.f32.mrf.mxu3  ;;  %v3253_v58 = vpop.f32.mrf.mxu1  ;;  %5140 = vmatpush.bf16.msrb.mxu3 %v9525_v16  ;;  %v9517_v49 = vor.u32 %v10434_v31, %v9516_v50  ;;  %4354 = vmatpush.bf16.msrb.mxu2 %v9025_v18 }
 0x383   : > { %v3254_v29 = vadd.f32 %v3253_v58, %v3235_v60  ;;  %4338 = vmatmul.bf16.vlgmr.msrb.gmra.mxu0 %v13855_v7  ;;  %5044 = vmatpush.bf16.msra.mxu1 %v9213_v55  ;;  %v10354_v58 = vld [vmem:[%s17959_s5 + $0xaa4] sm:$0xf0] }
 0x384   : > { %5155 = vmatpush.bf16.msrb.mxu0 %v9621_v3  ;;  %v9197_v31 = vor.u32 %v10354_v58, %v9196_v26  ;;  %v10456_v3 = vld [vmem:[%s17959_s5 + $0xdd4] sm:$0xf0]  ;;  %v9180_v26 = vld [vmem:[%s17959_s5 + $0xa80] sm:$0xf] }
 0x385   : > { %v3273_v6 = vadd.f32 %v15346_v13, %v3254_v29  ;;  %4229 = vmatmul.bf16.gmra.mxu1 %v14014_v63  ;;  %v9612_v13 = vld [vmem:[%s17959_s5 + $0xde0] sm:$0xf]  ;;  %v9604_v29 = vld [vmem:[%s17959_s5 + $0xdd0] sm:$0xf] }
 0x386   : > { %5141 = vmatpush.bf16.msrb.mxu3 %v9517_v49  ;;  %4355 = vmatpush.bf16.msrb.mxu2 %v9017_v15  ;;  %v9613_v47 = vor.u32 %v10458_v8, %v9612_v13  ;;  %v9605_v10 = vor.u32 %v10456_v3, %v9604_v29  ;;  %v10454_v13 = vld [vmem:[%s17959_s5 + $0xdc4] sm:$0xf0]  ;;  %v9588_v29 = vld [vmem:[%s17959_s5 + $0xdb0] sm:$0xf] }
 0x387   : > { %v15630_v38 = vadd.f32 %v15454_v41, %v3273_v6  ;;  %5045 = vmatpush.bf16.msra.mxu1 %v9205_v34  ;;  %v9006_v41 = vld [vmem:[%s17959_s5 + $0xa08] sm:$0xf0]  ;;  %v9428_v6 = vld [vmem:[%s17959_s5 + $0xc70] sm:$0xf]  ;;  %v10412_v34 = vld [vmem:[%s17959_s5 + $0xc74] sm:$0xf0]  ;;  %v9597_v8 = vor.u32 %v10454_v13, %v9596_v36 }
 0x388   : > { %v3236_v14 = vpop.f32.mrf.mxu2  ;;  %v15635_v16 = vpop.f32.mrf.mxu0  ;;  %v9009_v33 = vor.u32 %v10333_v42, %v9006_v41  ;;  %5156 = vmatpush.bf16.msrb.mxu0 %v9613_v47  ;;  %v9429_v56 = vor.u32 %v10412_v34, %v9428_v6  ;;  %v9412_v6 = vld [vmem:[%s17959_s5 + $0xc50] sm:$0xf]  ;;  %v10428_v36 = vld [vmem:[%s17959_s5 + $0xcf4] sm:$0xf0] }
 0x389   : > { %v3237_v60 = vadd.f32 %v3236_v14, %v15436_v5  ;;  %v10430_v5 = vld [vmem:[%s17959_s5 + $0xd04] sm:$0xf0]  ;;  %v9366_v14 = vld [vmem:[%s17959_s5 + $0xbf8] sm:$0xf0] }
 0x38a   : > { %v15647_v18 = vpop.f32.mrf.mxu3  ;;  %v3255_v50 = vpop.f32.mrf.mxu1  ;;  %5142 = vmatpush.bf16.msrb.mxu3 %v9509_v20  ;;  %v9501_v62 = vor.u32 %v10430_v5, %v9500_v57  ;;  %4356 = vmatpush.bf16.msrb.mxu2 %v9009_v33 }
 0x38b   : > { %v3256_v49 = vadd.f32 %v3255_v50, %v3237_v60  ;;  %5046 = vmatpush.bf16.msra.mxu1 %v9197_v31  ;;  %v9420_v60 = vld [vmem:[%s17959_s5 + $0xc60] sm:$0xf]  ;;  %v10410_v31 = vld [vmem:[%s17959_s5 + $0xc64] sm:$0xf0] }
 0x38c   : > { %5157 = vmatpush.bf16.msrb.mxu0 %v9605_v10  ;;  %v9421_v5 = vor.u32 %v10410_v31, %v9420_v60  ;;  %v9484_v31 = vld [vmem:[%s17959_s5 + $0xce0] sm:$0xf] }
 0x38d   : > { %v3275_v15 = vadd.f32 %v15407_v35, %v3256_v49  ;;  %4281 = vmatmul.bf16.vlgmr.msra.gmra.mxu2 %v13343_v46  ;;  %v10395_v35 = vld [vmem:[%s17959_s5 + $0xbf4] sm:$0xf]  ;;  %v10452_v49 = vld [vmem:[%s17959_s5 + $0xdb4] sm:$0xf0] }
 0x38e   : > { %5143 = vmatpush.bf16.msrb.mxu3 %v9501_v62  ;;  %5098 = vmatpush.bf16.msra.mxu2 %v9429_v56  ;;  %v9369_v41 = vor.u32 %v10395_v35, %v9366_v14  ;;  %v10393_v62 = vld [vmem:[%s17959_s5 + $0xbe4] sm:$0xf]  ;;  %v9589_v10 = vor.u32 %v10452_v49, %v9588_v29  ;;  %v9580_v35 = vld [vmem:[%s17959_s5 + $0xda0] sm:$0xf]  ;;  %v10426_v29 = vld [vmem:[%s17959_s5 + $0xce4] sm:$0xf0] }
 0x38f   : > { %5068 = vmatmul.bf16.vlgmr.msra.gmra.mxu3 %v13291_v17  ;;  %v15691_v20 = vadd.f32 %v15513_v0, %v3275_v15  ;;  %5047 = vmatpush.bf16.msra.mxu1 %v9189_v61  ;;  %v10350_v0 = vld [vmem:[%s17959_s5 + $0xa84] sm:$0xf0]  ;;  %v9361_v24 = vor.u32 %v10393_v62, %v9358_v43  ;;  %v10408_v15 = vld [vmem:[%s17959_s5 + $0xc54] sm:$0xf0]  ;;  %v9492_v61 = vld [vmem:[%s17959_s5 + $0xcf0] sm:$0xf]  ;;  %v9485_v62 = vor.u32 %v10426_v29, %v9484_v31 }
 0x390   : > { %v3305_v47 = vpop.f32.mrf.mxu2  ;;  %v15696_v42 = vpop.f32.mrf.mxu0  ;;  %v9181_v50 = vor.u32 %v10350_v0, %v9180_v26  ;;  %5158 = vmatpush.bf16.msrb.mxu0 %v9597_v8  ;;  %v9413_v56 = vor.u32 %v10408_v15, %v9412_v6  ;;  %v9493_v13 = vor.u32 %v10428_v36, %v9492_v61  ;;  %v10450_v8 = vld [vmem:[%s17959_s5 + $0xda4] sm:$0xf0]  ;;  %v10389_v43 = vld [vmem:[%s17959_s5 + $0xbc4] sm:$0xf]  ;;  %v9342_v15 = vld [vmem:[%s17959_s5 + $0xbc8] sm:$0xf0] }
 0x391   : > { %v9345_v61 = vor.u32 %v10389_v43, %v9342_v15  ;;  %v9476_v36 = vld [vmem:[%s17959_s5 + $0xcd0] sm:$0xf]  ;;  %v9388_v29 = vld [vmem:[%s17959_s5 + $0xc20] sm:$0xf]  ;;  %v9326_v15 = vld [vmem:[%s17959_s5 + $0xba8] sm:$0xf0] }
 0x392   : > { %v15709_v58 = vpop.f32.mrf.mxu3  ;;  %v3324_v57 = vpop.f32.mrf.mxu1  ;;  %5212 = vmatpush.bf16.msra.mxu3 %v9369_v41  ;;  %5099 = vmatpush.bf16.msra.mxu2 %v9421_v5  ;;  %v9350_v41 = vld [vmem:[%s17959_s5 + $0xbd8] sm:$0xf0] }
 0x393   : > { %v3325_v3 = vadd.f32 %v3324_v57, %v3305_v47  ;;  %4343 = vmatmul.bf16.gmra.mxu0 %v13962_v12  ;;  %5048 = vmatpush.bf16.msra.mxu1 %v9181_v50  ;;  %v9581_v47 = vor.u32 %v10450_v8, %v9580_v35  ;;  %v9404_v50 = vld [vmem:[%s17959_s5 + $0xc40] sm:$0xf]  ;;  %v10424_v8 = vld [vmem:[%s17959_s5 + $0xcd4] sm:$0xf0] }
 0x394   : > { %5159 = vmatpush.bf16.msrb.mxu0 %v9589_v10  ;;  %v10448_v10 = vld [vmem:[%s17959_s5 + $0xd94] sm:$0xf0] }
 0x395   : > { %v3344_v34 = vadd.f32 %v15466_v2, %v3325_v3  ;;  %4300 = vmatmul.bf16.vlgmr.msrb.gmra.mxu1 %v13465_v30  ;;  %v10391_v2 = vld [vmem:[%s17959_s5 + $0xbd4] sm:$0xf]  ;;  %v9572_v3 = vld [vmem:[%s17959_s5 + $0xd90] sm:$0xf] }
 0x396   : > { %5213 = vmatpush.bf16.msra.mxu3 %v9361_v24  ;;  %5100 = vmatpush.bf16.msra.mxu2 %v9413_v56  ;;  %v9353_v60 = vor.u32 %v10391_v2, %v9350_v41  ;;  %v9573_v6 = vor.u32 %v10448_v10, %v9572_v3  ;;  %v10404_v56 = vld [vmem:[%s17959_s5 + $0xc34] sm:$0xf0]  ;;  %v9477_v2 = vor.u32 %v10424_v8, %v9476_v36  ;;  %v10446_v41 = vld [vmem:[%s17959_s5 + $0xd84] sm:$0xf0]  ;;  %v9430_v36 = vld [vmem:[%s17959_s5 + $0xc78] sm:$0xf0] }
 0x397   : > { %v15751_v14 = vadd.f32 %v15574_v59, %v3344_v34  ;;  %5117 = vmatpush.bf16.msrb.mxu1 %v9493_v13  ;;  %v10406_v59 = vld [vmem:[%s17959_s5 + $0xc44] sm:$0xf0]  ;;  %v9396_v34 = vld [vmem:[%s17959_s5 + $0xc30] sm:$0xf]  ;;  %v10400_v8 = vld [vmem:[%s17959_s5 + $0xc14] sm:$0xf0] }
 0x398   : > { %v3307_v26 = vpop.f32.mrf.mxu2  ;;  %v15756_v0 = vpop.f32.mrf.mxu0  ;;  %v9405_v5 = vor.u32 %v10406_v59, %v9404_v50  ;;  %5160 = vmatpush.bf16.msrb.mxu0 %v9581_v47  ;;  %v9397_v35 = vor.u32 %v10404_v56, %v9396_v34  ;;  %v9564_v47 = vld [vmem:[%s17959_s5 + $0xd80] sm:$0xf]  ;;  %v9334_v50 = vld [vmem:[%s17959_s5 + $0xbb8] sm:$0xf0]  ;;  %v10422_v10 = vld [vmem:[%s17959_s5 + $0xcc4] sm:$0xf0] }
 0x39a   : > { %v15767_v57 = vpop.f32.mrf.mxu3  ;;  %v3326_v49 = vpop.f32.mrf.mxu1  ;;  %5214 = vmatpush.bf16.msra.mxu3 %v9353_v60  ;;  %5101 = vmatpush.bf16.msra.mxu2 %v9405_v5  ;;  %v9565_v60 = vor.u32 %v10446_v41, %v9564_v47 }
 0x39b   : > { %v3327_v24 = vadd.f32 %v3326_v49, %v3307_v26  ;;  %5118 = vmatpush.bf16.msrb.mxu1 %v9485_v62  ;;  %v9468_v49 = vld [vmem:[%s17959_s5 + $0xcc0] sm:$0xf] }
 0x39c   : > { %5161 = vmatpush.bf16.msrb.mxu0 %v9573_v6  ;;  %v10385_v6 = vld [vmem:[%s17959_s5 + $0xba4] sm:$0xf] }
 0x39d   : > { %v3346_v13 = vadd.f32 %v15525_v52, %v3327_v24  ;;  %4286 = vmatmul.bf16.gmra.mxu2 %v13390_v9  ;;  %v10387_v52 = vld [vmem:[%s17959_s5 + $0xbb4] sm:$0xf]  ;;  %v9469_v24 = vor.u32 %v10422_v10, %v9468_v49  ;;  %v9329_v56 = vor.u32 %v10385_v6, %v9326_v15 }
 0x39e   : > { %5215 = vmatpush.bf16.msra.mxu3 %v9345_v61  ;;  %5102 = vmatpush.bf16.msra.mxu2 %v9397_v35  ;;  %v9337_v5 = vor.u32 %v10387_v52, %v9334_v50  ;;  %v10411_v61 = vld [vmem:[%s17959_s5 + $0xc74] sm:$0xf]  ;;  %v9380_v35 = vld [vmem:[%s17959_s5 + $0xc10] sm:$0xf]  ;;  %v10420_v52 = vld [vmem:[%s17959_s5 + $0xcb4] sm:$0xf0] }
 0x39f   : > { %5073 = vmatmul.bf16.gmra.mxu3 %v13350_v45  ;;  %v15809_v26 = vadd.f32 %v15635_v16, %v3346_v13  ;;  %5119 = vmatpush.bf16.msrb.mxu1 %v9477_v2  ;;  %v10402_v16 = vld [vmem:[%s17959_s5 + $0xc24] sm:$0xf0]  ;;  %v9433_v13 = vor.u32 %v10411_v61, %v9430_v36  ;;  %v9460_v2 = vld [vmem:[%s17959_s5 + $0xcb0] sm:$0xf]  ;;  %v9381_v41 = vor.u32 %v10400_v8, %v9380_v35  ;;  %v10383_v50 = vld [vmem:[%s17959_s5 + $0xb94] sm:$0xf] }
 0x3a0   : > { %v3310_v59 = vpop.f32.mrf.mxu2  ;;  %v15814_v31 = vpop.f32.mrf.mxu0  ;;  %v9389_v3 = vor.u32 %v10402_v16, %v9388_v29  ;;  %5162 = vmatpush.bf16.msrb.mxu0 %v9565_v60  ;;  %v9461_v60 = vor.u32 %v10420_v52, %v9460_v2  ;;  %v9422_v16 = vld [vmem:[%s17959_s5 + $0xc68] sm:$0xf0]  ;;  %v10418_v61 = vld [vmem:[%s17959_s5 + $0xca4] sm:$0xf0]  ;;  %v10381_v36 = vld [vmem:[%s17959_s5 + $0xb84] sm:$0xf] }
 0x3a1   : > { %v10407_v35 = vld [vmem:[%s17959_s5 + $0xc54] sm:$0xf]  ;;  %v9444_v52 = vld [vmem:[%s17959_s5 + $0xc90] sm:$0xf] }
 0x3a2   : > { %v15825_v62 = vpop.f32.mrf.mxu3  ;;  %v3329_v43 = vpop.f32.mrf.mxu1  ;;  %5216 = vmatpush.bf16.msra.mxu3 %v9337_v5  ;;  %5103 = vmatpush.bf16.msra.mxu2 %v9389_v3 }
 0x3a3   : > { %v3330_v34 = vadd.f32 %v3329_v43, %v3310_v59  ;;  %5087 = vmatmul.bf16.vlgmr.msra.gmra.mxu0 %v13343_v46  ;;  %5120 = vmatpush.bf16.msrb.mxu1 %v9469_v24  ;;  %v9318_v59 = vld [vmem:[%s17959_s5 + $0xb98] sm:$0xf0]  ;;  %v9372_v43 = vld [vmem:[%s17959_s5 + $0xc00] sm:$0xf] }
 0x3a4   : > { %5231 = vmatpush.bf16.msra.mxu0 %v9433_v13  ;;  %v9321_v29 = vor.u32 %v10383_v50, %v9318_v59  ;;  %v9452_v24 = vld [vmem:[%s17959_s5 + $0xca0] sm:$0xf]  ;;  %v9310_v13 = vld [vmem:[%s17959_s5 + $0xb88] sm:$0xf0]  ;;  %v10363_v50 = vld [vmem:[%s17959_s5 + $0xaf4] sm:$0xf] }
 0x3a5   : > { %v3349_v47 = vadd.f32 %v15586_v28, %v3330_v34  ;;  %4305 = vmatmul.bf16.gmra.mxu1 %v13567_v22  ;;  %v10409_v28 = vld [vmem:[%s17959_s5 + $0xc64] sm:$0xf]  ;;  %v9313_v2 = vor.u32 %v10381_v36, %v9310_v13 }
 0x3a6   : > { %5217 = vmatpush.bf16.msra.mxu3 %v9329_v56  ;;  %5104 = vmatpush.bf16.msra.mxu2 %v9381_v41  ;;  %v9425_v10 = vor.u32 %v10409_v28, %v9422_v16  ;;  %v9453_v56 = vor.u32 %v10418_v61, %v9452_v24  ;;  %v9622_v24 = vld [vmem:[%s17959_s5 + $0xdf8] sm:$0xf0]  ;;  %v10361_v36 = vld [vmem:[%s17959_s5 + $0xae4] sm:$0xf] }
 0x3a7   : > { %v15867_v5 = vadd.f32 %v15696_v42, %v3349_v47  ;;  %5121 = vmatpush.bf16.msrb.mxu1 %v9461_v60  ;;  %v10398_v42 = vld [vmem:[%s17959_s5 + $0xc04] sm:$0xf0]  ;;  %v9414_v47 = vld [vmem:[%s17959_s5 + $0xc58] sm:$0xf0]  ;;  %v10416_v60 = vld [vmem:[%s17959_s5 + $0xc94] sm:$0xf0] }
 0x3a8   : > { %v3312_v49 = vpop.f32.mrf.mxu2  ;;  %v15872_v3 = vpop.f32.mrf.mxu0  ;;  %v9373_v15 = vor.u32 %v10398_v42, %v9372_v43  ;;  %5232 = vmatpush.bf16.msra.mxu0 %v9425_v10  ;;  %v9417_v41 = vor.u32 %v10407_v35, %v9414_v47  ;;  %v9445_v28 = vor.u32 %v10416_v60, %v9444_v52  ;;  %v9406_v10 = vld [vmem:[%s17959_s5 + $0xc48] sm:$0xf0]  ;;  %v10403_v52 = vld [vmem:[%s17959_s5 + $0xc34] sm:$0xf]  ;;  %v9398_v60 = vld [vmem:[%s17959_s5 + $0xc38] sm:$0xf0] }
 0x3aa   : > { %v15883_v6 = vpop.f32.mrf.mxu3  ;;  %v3331_v34 = vpop.f32.mrf.mxu1  ;;  %5218 = vmatpush.bf16.msra.mxu3 %v9321_v29  ;;  %5105 = vmatpush.bf16.msra.mxu2 %v9373_v15  ;;  %v9238_v29 = vld [vmem:[%s17959_s5 + $0xaf8] sm:$0xf0] }
 0x3ab   : > { %v3332_v8 = vadd.f32 %v3331_v34, %v3312_v49  ;;  %5122 = vmatpush.bf16.msrb.mxu1 %v9453_v56  ;;  %v9241_v16 = vor.u32 %v10363_v50, %v9238_v29  ;;  %v10405_v49 = vld [vmem:[%s17959_s5 + $0xc44] sm:$0xf]  ;;  %v9436_v56 = vld [vmem:[%s17959_s5 + $0xc80] sm:$0xf] }
 0x3ac   : > { %5233 = vmatpush.bf16.msra.mxu0 %v9417_v41  ;;  %v9409_v42 = vor.u32 %v10405_v49, %v9406_v10  ;;  %v9222_v49 = vld [vmem:[%s17959_s5 + $0xad8] sm:$0xf0]  ;;  %v10379_v10 = vld [vmem:[%s17959_s5 + $0xb74] sm:$0xf] }
 0x3ad   : > { %v3351_v59 = vadd.f32 %v15647_v18, %v3332_v8  ;;  %4357 = vmatmul.bf16.vlgmr.msrb.gmra.mxu2 %v13909_v48  ;;  %v10459_v18 = vld [vmem:[%s17959_s5 + $0xdf4] sm:$0xf] }
 0x3ae   : > { %5219 = vmatpush.bf16.msra.mxu3 %v9313_v2  ;;  %5174 = vmatpush.bf16.msrb.mxu2 %v9241_v16  ;;  %v9625_v34 = vor.u32 %v10459_v18, %v9622_v24  ;;  %v9230_v2 = vld [vmem:[%s17959_s5 + $0xae8] sm:$0xf0]  ;;  %v10359_v16 = vld [vmem:[%s17959_s5 + $0xad4] sm:$0xf]  ;;  %v9302_v24 = vld [vmem:[%s17959_s5 + $0xb78] sm:$0xf0] }
 0x3af   : > { %5144 = vmatmul.bf16.vlgmr.msrb.gmra.mxu3 %v13855_v7  ;;  %v15925_v43 = vadd.f32 %v15756_v0, %v3351_v59  ;;  %5123 = vmatpush.bf16.msrb.mxu1 %v9445_v28  ;;  %v10414_v0 = vld [vmem:[%s17959_s5 + $0xc84] sm:$0xf0]  ;;  %v9233_v41 = vor.u32 %v10361_v36, %v9230_v2  ;;  %v9401_v59 = vor.u32 %v10403_v52, %v9398_v60  ;;  %v9614_v28 = vld [vmem:[%s17959_s5 + $0xde8] sm:$0xf0]  ;;  %v10377_v60 = vld [vmem:[%s17959_s5 + $0xb64] sm:$0xf] }
 0x3b0   : > { %v3381_v15 = vpop.f32.mrf.mxu2  ;;  %v15930_v61 = vpop.f32.mrf.mxu0  ;;  %v9437_v8 = vor.u32 %v10414_v0, %v9436_v56  ;;  %5234 = vmatpush.bf16.msra.mxu0 %v9409_v42  ;;  %v9225_v42 = vor.u32 %v10359_v16, %v9222_v49  ;;  %v9390_v56 = vld [vmem:[%s17959_s5 + $0xc28] sm:$0xf0]  ;;  %v10399_v49 = vld [vmem:[%s17959_s5 + $0xc14] sm:$0xf] }
 0x3b1   : > { %v3382_v13 = vadd.f32 %v3381_v15, %v15751_v14  ;;  %v10457_v14 = vld [vmem:[%s17959_s5 + $0xde4] sm:$0xf]  ;;  %v9305_v15 = vor.u32 %v10379_v10, %v9302_v24  ;;  %v9214_v52 = vld [vmem:[%s17959_s5 + $0xac8] sm:$0xf0]  ;;  %v9382_v10 = vld [vmem:[%s17959_s5 + $0xc18] sm:$0xf0] }
 0x3b2   : > { %v15942_v35 = vpop.f32.mrf.mxu3  ;;  %v3400_v47 = vpop.f32.mrf.mxu1  ;;  %5288 = vmatpush.bf16.msrb.mxu3 %v9625_v34  ;;  %5175 = vmatpush.bf16.msrb.mxu2 %v9233_v41  ;;  %v9617_v29 = vor.u32 %v10457_v14, %v9614_v28  ;;  %v10401_v34 = vld [vmem:[%s17959_s5 + $0xc24] sm:$0xf]  ;;  %v9294_v28 = vld [vmem:[%s17959_s5 + $0xb68] sm:$0xf0]  ;;  %v9385_v24 = vor.u32 %v10399_v49, %v9382_v10 }
 0x3b3   : > { %v3401_v50 = vadd.f32 %v3400_v47, %v3382_v13  ;;  %5092 = vmatmul.bf16.gmra.mxu0 %v13390_v9  ;;  %5124 = vmatpush.bf16.msrb.mxu1 %v9437_v8  ;;  %v9393_v36 = vor.u32 %v10401_v34, %v9390_v56  ;;  %v9606_v13 = vld [vmem:[%s17959_s5 + $0xdd8] sm:$0xf0]  ;;  %v10357_v41 = vld [vmem:[%s17959_s5 + $0xac4] sm:$0xf]  ;;  %v9297_v16 = vor.u32 %v10377_v60, %v9294_v28  ;;  %v10355_v56 = vld [vmem:[%s17959_s5 + $0xab4] sm:$0xf] }
 0x3b4   : > { %5235 = vmatpush.bf16.msra.mxu0 %v9401_v59  ;;  %v9217_v59 = vor.u32 %v10357_v41, %v9214_v52  ;;  %v10397_v52 = vld [vmem:[%s17959_s5 + $0xc04] sm:$0xf]  ;;  %v10451_v60 = vld [vmem:[%s17959_s5 + $0xdb4] sm:$0xf]  ;;  %v9590_v28 = vld [vmem:[%s17959_s5 + $0xdb8] sm:$0xf0] }
 0x3b5   : > { %v15970_v18 = vadd.f32 %v15709_v58, %v3401_v50  ;;  %5049 = vmatmul.bf16.vlgmr.msra.gmra.mxu1 %v13276_v4  ;;  %v10455_v58 = vld [vmem:[%s17959_s5 + $0xdd4] sm:$0xf]  ;;  %v9593_v49 = vor.u32 %v10451_v60, %v9590_v28  ;;  %v10353_v10 = vld [vmem:[%s17959_s5 + $0xaa4] sm:$0xf] }
 0x3b6   : > { %5289 = vmatpush.bf16.msrb.mxu3 %v9617_v29  ;;  %5176 = vmatpush.bf16.msrb.mxu2 %v9225_v42  ;;  %v9609_v47 = vor.u32 %v10455_v58, %v9606_v13  ;;  %v9206_v58 = vld [vmem:[%s17959_s5 + $0xab8] sm:$0xf0]  ;;  %v10371_v60 = vld [vmem:[%s17959_s5 + $0xb34] sm:$0xf] }
 0x3b7   : > { %5193 = vmatpush.bf16.msra.mxu1 %v9305_v15  ;;  %v9598_v15 = vld [vmem:[%s17959_s5 + $0xdc8] sm:$0xf0] }
 0x3b8   : > { %v3383_v8 = vpop.f32.mrf.mxu2  ;;  %v15990_v2 = vpop.f32.mrf.mxu0  ;;  %5236 = vmatpush.bf16.msra.mxu0 %v9393_v36  ;;  %v10375_v36 = vld [vmem:[%s17959_s5 + $0xb54] sm:$0xf] }
 0x3b9   : > { %v3384_v14 = vadd.f32 %v3383_v8, %v15809_v26  ;;  %v10453_v26 = vld [vmem:[%s17959_s5 + $0xdc4] sm:$0xf]  ;;  %v9209_v8 = vor.u32 %v10355_v56, %v9206_v58  ;;  %v9278_v56 = vld [vmem:[%s17959_s5 + $0xb48] sm:$0xf0] }
 0x3ba   : > { %v16002_v50 = vpop.f32.mrf.mxu3  ;;  %v3402_v29 = vpop.f32.mrf.mxu1  ;;  %5290 = vmatpush.bf16.msrb.mxu3 %v9609_v47  ;;  %5177 = vmatpush.bf16.msrb.mxu2 %v9217_v59  ;;  %v9601_v34 = vor.u32 %v10453_v26, %v9598_v15  ;;  %v9286_v47 = vld [vmem:[%s17959_s5 + $0xb58] sm:$0xf0]  ;;  %v9198_v26 = vld [vmem:[%s17959_s5 + $0xaa8] sm:$0xf0] }
 0x3bb   : > { %v3403_v42 = vadd.f32 %v3402_v29, %v3384_v14  ;;  %5194 = vmatpush.bf16.msra.mxu1 %v9297_v16  ;;  %v9289_v41 = vor.u32 %v10375_v36, %v9286_v47  ;;  %v9582_v47 = vld [vmem:[%s17959_s5 + $0xda8] sm:$0xf0] }
 0x3bc   : > { %5237 = vmatpush.bf16.msra.mxu0 %v9385_v24 }
 0x3bd   : > { %v16029_v13 = vadd.f32 %v15767_v57, %v3403_v42  ;;  %4362 = vmatmul.bf16.gmra.mxu2 %v14014_v63  ;;  %v9374_v57 = vld [vmem:[%s17959_s5 + $0xc08] sm:$0xf0]  ;;  %v10373_v42 = vld [vmem:[%s17959_s5 + $0xb44] sm:$0xf] }
 0x3be   : > { %5291 = vmatpush.bf16.msrb.mxu3 %v9601_v34  ;;  %v9377_v59 = vor.u32 %v10397_v52, %v9374_v57  ;;  %5178 = vmatpush.bf16.msrb.mxu2 %v9209_v8  ;;  %v9201_v34 = vor.u32 %v10353_v10, %v9198_v26  ;;  %v9281_v36 = vor.u32 %v10373_v42, %v9278_v56  ;;  %v10449_v8 = vld [vmem:[%s17959_s5 + $0xda4] sm:$0xf]  ;;  %v10351_v52 = vld [vmem:[%s17959_s5 + $0xa94] sm:$0xf]  ;;  %v9190_v57 = vld [vmem:[%s17959_s5 + $0xa98] sm:$0xf0] }
 0x3bf   : > { %5149 = vmatmul.bf16.gmra.mxu3 %v13962_v12  ;;  %5195 = vmatpush.bf16.msra.mxu1 %v9289_v41  ;;  %v9193_v28 = vor.u32 %v10351_v52, %v9190_v57  ;;  %v10447_v10 = vld [vmem:[%s17959_s5 + $0xd94] sm:$0xf]  ;;  %v9574_v26 = vld [vmem:[%s17959_s5 + $0xd98] sm:$0xf0]  ;;  %v10349_v56 = vld [vmem:[%s17959_s5 + $0xa84] sm:$0xf] }
 0x3c0   : > { %v3386_v29 = vpop.f32.mrf.mxu2  ;;  %v16050_v16 = vpop.f32.mrf.mxu0  ;;  %5238 = vmatpush.bf16.msra.mxu0 %v9377_v59  ;;  %v9577_v42 = vor.u32 %v10447_v10, %v9574_v26  ;;  %v9262_v52 = vld [vmem:[%s17959_s5 + $0xb28] sm:$0xf0]  ;;  %v10367_v26 = vld [vmem:[%s17959_s5 + $0xb14] sm:$0xf] }
 0x3c1   : > { %v3387_v24 = vadd.f32 %v3386_v29, %v15867_v5  ;;  %v9585_v5 = vor.u32 %v10449_v8, %v9582_v47  ;;  %v9270_v29 = vld [vmem:[%s17959_s5 + $0xb38] sm:$0xf0] }
 0x3c2   : > { %v16062_v15 = vpop.f32.mrf.mxu3  ;;  %v3405_v58 = vpop.f32.mrf.mxu1  ;;  %5292 = vmatpush.bf16.msrb.mxu3 %v9593_v49  ;;  %5179 = vmatpush.bf16.msrb.mxu2 %v9201_v34  ;;  %v9273_v49 = vor.u32 %v10371_v60, %v9270_v29  ;;  %v11596_v60 = vmov 0   ;;  %v10445_v29 = vld [vmem:[%s17959_s5 + $0xd84] sm:$0xf] }
 0x3c3   : > { %v3406_v41 = vadd.f32 %v3405_v58, %v3387_v24  ;;  %5163 = vmatmul.bf16.vlgmr.msrb.gmra.mxu0 %v13909_v48  ;;  %5196 = vmatpush.bf16.msra.mxu1 %v9281_v36  ;;  %v9182_v58 = vld [vmem:[%s17959_s5 + $0xa88] sm:$0xf0]  ;;  %v10369_v36 = vld [vmem:[%s17959_s5 + $0xb24] sm:$0xf] }
 0x3c4   : > { %11063 = vset.pattern.permute.xlu1 %v11596_v60  ;;  %11062 = vset.pattern.permute.xlu0 %v11596_v60 }
 0x3c5   : > { %v16084_v59 = vadd.f32 %v15825_v62, %v3406_v41  ;;  %5054 = vmatmul.bf16.gmra.mxu1 %v13347_v51  ;;  %v291_v41 = vld [vmem:[%s17956_s2 + $0x18] sm:$0xff]  ;;  %11064 = vset.pattern.permute.xlu2 %v11596_v60 }
 0x3c6   : > { %5293 = vmatpush.bf16.msrb.mxu3 %v9585_v5  ;;  %5180 = vmatpush.bf16.msrb.mxu2 %v9193_v28  ;;  %v9185_v5 = vor.u32 %v10349_v56, %v9182_v58  ;;  %v9265_v28 = vor.u32 %v10369_v36, %v9262_v52  ;;  %v10427_v56 = vld [vmem:[%s17959_s5 + $0xcf4] sm:$0xf]  ;;  %v9494_v36 = vld [vmem:[%s17959_s5 + $0xcf8] sm:$0xf0] }
 0x3c7   : > { %18203 = vst [vmem:[#allocation5_spill] sm:$0xff] %v16084_v59  ;;  %5197 = vmatpush.bf16.msra.mxu1 %v9273_v49  ;;  %5348 = vperm.xlu1 %11063, %v291_v41  }
 0x3c8   : > { %v3388_v24 = vpop.f32.mrf.mxu2  ;;  %v16098_v34 = vpop.f32.mrf.mxu0 }
 0x3c9   : > { %v3389_v8 = vadd.f32 %v3388_v24, %v15925_v43  ;;  %v9566_v43 = vld [vmem:[%s17959_s5 + $0xd88] sm:$0xf0]  ;;  %v9254_v24 = vld [vmem:[%s17959_s5 + $0xb18] sm:$0xf0] }
 0x3ca   : > { %v16110_v47 = vpop.f32.mrf.mxu3  ;;  %v3407_v57 = vpop.f32.mrf.mxu1  ;;  %5294 = vmatpush.bf16.msrb.mxu3 %v9577_v42  ;;  %v9569_v10 = vor.u32 %v10445_v29, %v9566_v43  ;;  %5181 = vmatpush.bf16.msrb.mxu2 %v9185_v5  ;;  %v9257_v42 = vor.u32 %v10367_v26, %v9254_v24  ;;  %v289_v29 = vld [vmem:[%s17956_s2 + $0x8] sm:$0xff] }
 0x3cb   : > { %v3408_v49 = vadd.f32 %v3407_v57, %v3389_v8  ;;  %5198 = vmatpush.bf16.msra.mxu1 %v9265_v28  ;;  %v9497_v8 = vor.u32 %v10427_v56, %v9494_v36  ;;  %v9246_v57 = vld [vmem:[%s17959_s5 + $0xb08] sm:$0xf0]  ;;  %v9478_v56 = vld [vmem:[%s17959_s5 + $0xcd8] sm:$0xf0] }
 0x3cd   : > { %v16134_v58 = vadd.f32 %v15883_v6, %v3408_v49  ;;  %5106 = vmatmul.bf16.vlgmr.msra.gmra.mxu2 %v13465_v30  ;;  %v10365_v6 = vld [vmem:[%s17959_s5 + $0xb04] sm:$0xf]  ;;  %v9486_v49 = vld [vmem:[%s17959_s5 + $0xce8] sm:$0xf0] }
 0x3ce   : > { %5295 = vmatpush.bf16.msrb.mxu3 %v9569_v10  ;;  %5250 = vmatpush.bf16.msra.mxu2 %v9497_v8  ;;  %v9249_v43 = vor.u32 %v10365_v6, %v9246_v57 }
 0x3cf   : > { %18204 = vst [vmem:[#allocation4_spill] sm:$0xff] %v16134_v58  ;;  %5220 = vmatmul.bf16.vlgmr.msra.gmra.mxu3 %v13343_v46  ;;  %5199 = vmatpush.bf16.msra.mxu1 %v9257_v42  ;;  %v10425_v46 = vld [vmem:[%s17959_s5 + $0xce4] sm:$0xf]  ;;  %v10443_v42 = vld [vmem:[%s17959_s5 + $0xd74] sm:$0xf] }
 0x3d0   : > { %v4130_v5 = vpop.f32.mrf.mxu2  ;;  %v16143_v52 = vpop.f32.mrf.mxu0  ;;  %v9489_v26 = vor.u32 %v10425_v46, %v9486_v49  ;;  %5338 = vperm.xlu1 %11063, %v289_v29   ;;  %v9470_v29 = vld [vmem:[%s17959_s5 + $0xcc8] sm:$0xf0] }
 0x3d1   : > { %v4131_v60 = vadd.f32 %v4130_v5, %v15814_v31  ;;  %v10423_v31 = vld [vmem:[%s17959_s5 + $0xcd4] sm:$0xf]  ;;  %v9558_v5 = vld [vmem:[%s17959_s5 + $0xd78] sm:$0xf0] }
 0x3d2   : > { %v4244_v28 = vpop.f32.mrf.mxu3  ;;  %v4149_v10 = vpop.f32.mrf.mxu1  ;;  %5251 = vmatpush.bf16.msra.mxu2 %v9489_v26  ;;  %v9481_v8 = vor.u32 %v10423_v31, %v9478_v56  ;;  %v9561_v6 = vor.u32 %v10443_v42, %v9558_v5 }
 0x3d3   : > { %v4150_v24 = vadd.f32 %v4149_v10, %v4131_v60  ;;  %5168 = vmatmul.bf16.gmra.mxu0 %v14014_v63  ;;  %5200 = vmatpush.bf16.msra.mxu1 %v9249_v43  ;;  %v10441_v43 = vld [vmem:[%s17959_s5 + $0xd64] sm:$0xf]  ;;  %v290_v10 = vld [vmem:[%s17956_s2 + $0x10] sm:$0xff] }
 0x3d4   : > { %5343 = vperm.xlu0 %11062, %v290_v10   ;;  %v10437_v10 = vld [vmem:[%s17959_s5 + $0xd44] sm:$0xf] }
 0x3d5   : > { %v4169_v36 = vadd.f32 %v15942_v35, %v4150_v24  ;;  %5125 = vmatmul.bf16.vlgmr.msrb.gmra.mxu1 %v13582_v25  ;;  %v10421_v35 = vld [vmem:[%s17959_s5 + $0xcc4] sm:$0xf]  ;;  %v9550_v24 = vld [vmem:[%s17959_s5 + $0xd68] sm:$0xf0] }
 0x3d6   : > { %5252 = vmatpush.bf16.msra.mxu2 %v9481_v8  ;;  %v9473_v26 = vor.u32 %v10421_v35, %v9470_v29  ;;  %v9553_v56 = vor.u32 %v10441_v43, %v9550_v24  ;;  %v10439_v8 = vld [vmem:[%s17959_s5 + $0xd54] sm:$0xf] }
 0x3d7   : > { %v16177_v57 = vadd.f32 %v16050_v16, %v4169_v36  ;;  %5269 = vmatpush.bf16.msrb.mxu1 %v9561_v6  ;;  %v9462_v36 = vld [vmem:[%s17959_s5 + $0xcb8] sm:$0xf0] }
 0x3d8   : > { %v4132_v46 = vpop.f32.mrf.mxu2  ;;  %v16179_v60 = vpop.f32.mrf.mxu0 }
 0x3d9   : > { %v4133_v16 = vadd.f32 %v4132_v46, %v15872_v3  ;;  %v10419_v3 = vld [vmem:[%s17959_s5 + $0xcb4] sm:$0xf]  ;;  %v9542_v46 = vld [vmem:[%s17959_s5 + $0xd58] sm:$0xf0] }
 0x3da   : > { %v16191_v49 = vpop.f32.mrf.mxu3  ;;  %v4151_v31 = vpop.f32.mrf.mxu1  ;;  %5253 = vmatpush.bf16.msra.mxu2 %v9473_v26  ;;  %v9465_v6 = vor.u32 %v10419_v3, %v9462_v36  ;;  %v9545_v35 = vor.u32 %v10439_v8, %v9542_v46 }
 0x3db   : > { %v4152_v42 = vadd.f32 %v4151_v31, %v4133_v16  ;;  %5270 = vmatpush.bf16.msrb.mxu1 %v9553_v56  ;;  %v10417_v16 = vld [vmem:[%s17959_s5 + $0xca4] sm:$0xf] }
 0x3dc   : > { %v288_v31 = vld [vmem:[%s17956_s2] sm:$0xff] }
 0x3dd   : > { %v16209_v5 = vadd.f32 %v16002_v50, %v4152_v42  ;;  %5111 = vmatmul.bf16.gmra.mxu2 %v13567_v22  ;;  %v9454_v50 = vld [vmem:[%s17959_s5 + $0xca8] sm:$0xf0]  ;;  %5333 = vperm.xlu2 %11064, %v288_v31  }
 0x3de   : > { %5254 = vmatpush.bf16.msra.mxu2 %v9465_v6  ;;  %v9457_v56 = vor.u32 %v10417_v16, %v9454_v50  ;;  %v9534_v42 = vld [vmem:[%s17959_s5 + $0xd48] sm:$0xf0]  ;;  %v10435_v6 = vld [vmem:[%s17959_s5 + $0xd34] sm:$0xf] }
 0x3df   : > { %5225 = vmatmul.bf16.gmra.mxu3 %v13390_v9  ;;  %5271 = vmatpush.bf16.msrb.mxu1 %v9545_v35  ;;  %v9537_v36 = vor.u32 %v10437_v10, %v9534_v42  ;;  %v10413_v10 = vld [vmem:[%s17959_s5 + $0xc84] sm:$0xf]  ;;  %v9518_v42 = vld [vmem:[%s17959_s5 + $0xd28] sm:$0xf0] }
 0x3e0   : > { %v4135_v29 = vpop.f32.mrf.mxu2  ;;  %v4263_v43 = vpop.f32.mrf.mxu0 }
 0x3e1   : > { %v4136_v26 = vadd.f32 %v4135_v29, %v15930_v61  ;;  %v16226_v9 = vadd.f32 %v4263_v43, %v4244_v28  ;;  %v10415_v61 = vld [vmem:[%s17959_s5 + $0xc94] sm:$0xf]  ;;  %v9446_v28 = vld [vmem:[%s17959_s5 + $0xc98] sm:$0xf0] }
 0x3e2   : > { %v4249_v24 = vpop.f32.mrf.mxu3  ;;  %v4154_v3 = vpop.f32.mrf.mxu1  ;;  %5255 = vmatpush.bf16.msra.mxu2 %v9457_v56  ;;  %v9449_v35 = vor.u32 %v10415_v61, %v9446_v28  ;;  %v10431_v61 = vld [vmem:[%s17959_s5 + $0xd14] sm:$0xf] }
 0x3e3   : > { %v4155_v8 = vadd.f32 %v4154_v3, %v4136_v26  ;;  %5239 = vmatmul.bf16.vlgmr.msra.gmra.mxu0 %v13465_v30  ;;  %5272 = vmatpush.bf16.msrb.mxu1 %v9537_v36  ;;  %v9526_v30 = vld [vmem:[%s17959_s5 + $0xd38] sm:$0xf0]  ;;  %v10433_v26 = vld [vmem:[%s17959_s5 + $0xd24] sm:$0xf] }
 0x3e4   : > { %v9529_v29 = vor.u32 %v10435_v6, %v9526_v30  ;;  %v9521_v36 = vor.u32 %v10433_v26, %v9518_v42  ;;  %v10429_v30 = vld [vmem:[%s17959_s5 + $0xd04] sm:$0xf] }
 0x3e5   : > { %v4174_v46 = vadd.f32 %v16062_v15, %v4155_v8  ;;  %5130 = vmatmul.bf16.gmra.mxu1 %v13691_v1  ;;  %v9438_v15 = vld [vmem:[%s17959_s5 + $0xc88] sm:$0xf0] }
 0x3e6   : > { %5256 = vmatpush.bf16.msra.mxu2 %v9449_v35  ;;  %v9441_v56 = vor.u32 %v10413_v10, %v9438_v15 }
 0x3e7   : > { %v4193_v43 = vadd.f32 %v16143_v52, %v4174_v46  ;;  %5273 = vmatpush.bf16.msrb.mxu1 %v9529_v29  ;;  %v9502_v29 = vld [vmem:[%s17959_s5 + $0xd08] sm:$0xf0] }
 0x3e8   : > { %v4137_v16 = vpop.f32.mrf.mxu2  ;;  %v16250_v50 = vpop.f32.mrf.mxu0  ;;  %v9505_v15 = vor.u32 %v10429_v30, %v9502_v29 }
 0x3e9   : > { %v4138_v31 = vadd.f32 %v4137_v16, %v15990_v2  ;;  %v9510_v2 = vld [vmem:[%s17959_s5 + $0xd18] sm:$0xf0] }
 0x3ea   : > { %v16262_v52 = vpop.f32.mrf.mxu3  ;;  %v4156_v3 = vpop.f32.mrf.mxu1  ;;  %5257 = vmatpush.bf16.msra.mxu2 %v9441_v56  ;;  %v9513_v6 = vor.u32 %v10431_v61, %v9510_v2 }
 0x3eb   : > { %v4157_v8 = vadd.f32 %v4156_v3, %v4138_v31  ;;  %5274 = vmatpush.bf16.msrb.mxu1 %v9521_v36 }
 0x3ed   : > { %v16274_v28 = vadd.f32 %v16110_v47, %v4157_v8  ;;  %5182 = vmatmul.bf16.vlgmr.msrb.gmra.mxu2 %v13276_v4 }
 0x3ef   : > { %5296 = vmatmul.bf16.vlgmr.msrb.gmra.mxu3 %v13909_v48  ;;  %5275 = vmatpush.bf16.msrb.mxu1 %v9513_v6 }
 0x3f0   : > { %v4206_v46 = vpop.f32.mrf.mxu2  ;;  %v4268_v35 = vpop.f32.mrf.mxu0 }
 0x3f1   : > { %v4207_v16 = vadd.f32 %v4206_v46, %v16177_v57  ;;  %v4269_v47 = vadd.f32 %v4268_v35, %v4249_v24 }
 0x3f2   : > { %v4320_v10 = vpop.f32.mrf.mxu3  ;;  %v4225_v4 = vpop.f32.mrf.mxu1 }
 0x3f3   : > { %v16285_v26 = vadd.f32 %v4225_v4, %v4207_v16  ;;  %5244 = vmatmul.bf16.gmra.mxu0 %v13567_v22  ;;  %5276 = vmatpush.bf16.msrb.mxu1 %v9505_v15 }
 0x3f5   : > { %5201 = vmatmul.bf16.vlgmr.msra.gmra.mxu1 %v13291_v17 }
 0x3f8   : > { %v16289_v48 = vpop.f32.mrf.mxu2  ;;  %v16291_v31 = vpop.f32.mrf.mxu0 }
 0x3fa   : > { %v16293_v56 = vpop.f32.mrf.mxu3  ;;  %v16295_v42 = vpop.f32.mrf.mxu1 }
 0x3fd   : > { %5187 = vmatmul.bf16.gmra.mxu2 %v13347_v51 }
 0x3ff   : > { %5301 = vmatmul.bf16.gmra.mxu3 %v14014_v63 }
 0x400   : > { %v4211_v57 = vpop.f32.mrf.mxu2  ;;  %v4339_v24 = vpop.f32.mrf.mxu0 }
 0x401   : > { %v4212_v3 = vadd.f32 %v4211_v57, %v4193_v43 }
 0x402   : > { %v4230_v36 = vpop.f32.mrf.mxu1  ;;  %v4325_v22 = vpop.f32.mrf.mxu3 }
 0x403   : > { %v16299_v8 = vadd.f32 %v4230_v36, %v4212_v3 }
 0x405   : > { %5206 = vmatmul.bf16.gmra.mxu1 %v13350_v45 }
 0x408   : > { %v16302_v17 = vpop.f32.mrf.mxu2  ;;  %v16304_v61 = vpop.f32.mrf.mxu0 }
 0x40a   : > { %v16306_v2 = vpop.f32.mrf.mxu1  ;;  %v16308_v6 = vpop.f32.mrf.mxu3 }
 0x40d   : > { %5258 = vmatmul.bf16.vlgmr.msra.gmra.mxu2 %v13582_v25 }
 0x410   : > { %v4282_v51 = vpop.f32.mrf.mxu2  ;;  %v4344_v35 = vpop.f32.mrf.mxu0 }
 0x411   : > { %v4283_v63 = vadd.f32 %v4282_v51, %v16226_v9 }
 0x412   : > { %v4301_v43 = vpop.f32.mrf.mxu1  ;;  %v5069_v45 = vpop.f32.mrf.mxu3 }
 0x413   : > { %v4302_v46 = vadd.f32 %v4301_v43, %v4283_v63 }
 0x415   : > { %v4321_v30 = vadd.f32 %v4320_v10, %v4302_v46  ;;  %5277 = vmatmul.bf16.vlgmr.msrb.gmra.mxu1 %v13855_v7 }
 0x417   : > { %v4340_v29 = vadd.f32 %v4339_v24, %v4321_v30 }
 0x418   : > { %v16313_v16 = vpop.f32.mrf.mxu2  ;;  %v16318_v4 = vpop.f32.mrf.mxu0 }
 0x419   : > { %18205 = vst [vmem:[#allocation7_spill] sm:$0xff] %v16318_v4 }
 0x41a   : > { %v16315_v15 = vpop.f32.mrf.mxu1  ;;  %v5071_v25 = vpop.f32.mrf.mxu3 }
 0x41d   : > { %5263 = vmatmul.bf16.gmra.mxu2 %v13691_v1 }
 0x420   : > { %v4287_v57 = vpop.f32.mrf.mxu2  ;;  %v5088_v7 = vpop.f32.mrf.mxu0 }
 0x421   : > { %v4288_v3 = vadd.f32 %v4287_v57, %v4269_v47 }
 0x422   : > { %v4306_v9 = vpop.f32.mrf.mxu1  ;;  %v5074_v24 = vpop.f32.mrf.mxu3 }
 0x423   : > { %v4307_v36 = vadd.f32 %v4306_v9, %v4288_v3 }
 0x425   : > { %v4326_v51 = vadd.f32 %v4325_v22, %v4307_v36  ;;  %5282 = vmatmul.bf16.gmra.mxu1 %v13962_v12 }
 0x427   : > { %v4345_v10 = vadd.f32 %v4344_v35, %v4326_v51 }
 0x428   : > { %v16321_v63 = vpop.f32.mrf.mxu2  ;;  %v5090_v1 = vpop.f32.mrf.mxu0 }
 0x42a   : > { %v16323_v43 = vpop.f32.mrf.mxu1  ;;  %v5076_v14 = vpop.f32.mrf.mxu3 }
 0x430   : > { %v4358_v46 = vpop.f32.mrf.mxu2  ;;  %v5093_v22 = vpop.f32.mrf.mxu0 }
 0x431   : > { %v16325_v30 = vadd.f32 %v4358_v46, %v4340_v29 }
 0x432   : > { %v5050_v41 = vpop.f32.mrf.mxu1  ;;  %v5145_v3 = vpop.f32.mrf.mxu3 }
 0x433   : > { %v5070_v62 = vadd.f32 %v5069_v45, %v5050_v41 }
 0x435   : > { %v5089_v46 = vadd.f32 %v5088_v7, %v5070_v62 }
 0x438   : > { %v16327_v47 = vpop.f32.mrf.mxu2  ;;  %v5095_v0 = vpop.f32.mrf.mxu0 }
 0x43a   : > { %v5052_v57 = vpop.f32.mrf.mxu1  ;;  %v5147_v33 = vpop.f32.mrf.mxu3 }
 0x43b   : > { %v5072_v11 = vadd.f32 %v5071_v25, %v5052_v57 }
 0x440   : > { %v4363_v12 = vpop.f32.mrf.mxu2  ;;  %v5164_v53 = vpop.f32.mrf.mxu0 }
 0x441   : > { %v16329_v35 = vadd.f32 %v4363_v12, %v4345_v10  ;;  %v5091_v10 = vadd.f32 %v5090_v1, %v5072_v11 }
 0x442   : > { %v5055_v9 = vpop.f32.mrf.mxu1  ;;  %v5150_v19 = vpop.f32.mrf.mxu3 }
 0x443   : > { %v5075_v36 = vadd.f32 %v5074_v24, %v5055_v9  ;;  %v4190_v24 = vadd.f32 %v16098_v34, %v16209_v5 }
 0x445   : > { %v5094_v51 = vadd.f32 %v5093_v22, %v5075_v36  ;;  %v4209_v62 = vadd.f32 %v16289_v48, %v4190_v24  ;;  %v18208_v48 = vmax.f32 %v14829_v39, %v15569_v27  ;;  %v18209_v39 = vmax.f32 %v14886_v44, %v15630_v38 }
 0x447   : > { %v4228_v11 = vadd.f32 %v16295_v42, %v4209_v62  ;;  %v4195_v42 = vadd.f32 %v16179_v60, %v16274_v28 }
 0x448   : > { %v16331_v55 = vpop.f32.mrf.mxu2  ;;  %v5166_v36 = vpop.f32.mrf.mxu0 }
 0x449   : > { %18206 = vst [vmem:[#allocation3_spill] sm:$0xff] %v16331_v55 }
 0x44a   : > { %v5057_v29 = vpop.f32.mrf.mxu1 }
 0x450   : > { %v5107_v41 = vpop.f32.mrf.mxu2  ;;  %v5169_v57 = vpop.f32.mrf.mxu0 }
 0x451   : > { %v5108_v45 = vadd.f32 %v5107_v41, %v5089_v46  ;;  %v18207_v46 = vmax.f32 %v14771_v21, %v15508_v54 }
 0x452   : > { %v5126_v58 = vpop.f32.mrf.mxu1 }
 0x453   : > { %v5127_v4 = vadd.f32 %v5126_v58, %v5108_v45  ;;  %v5152_v58 = vpop.f32.mrf.mxu3 }
 0x455   : > { %v5146_v59 = vadd.f32 %v5145_v3, %v5127_v4 }
 0x457   : > { %v5165_v23 = vadd.f32 %v5164_v53, %v5146_v59 }
 0x458   : > { %v5109_v12 = vpop.f32.mrf.mxu2 }
 0x459   : > { %v5110_v22 = vadd.f32 %v5109_v12, %v5091_v10  ;;  %v5315_v9 = vmax.f32 %v16285_v26, %v5165_v23  ;;  %v5077_v23 = vadd.f32 %v5076_v14, %v5057_v29  ;;  %v4214_v14 = vadd.f32 %v16302_v17, %v4195_v42  ;;  %v5171_v12 = vpop.f32.mrf.mxu0 }
 0x45a   : > { %v5128_v55 = vpop.f32.mrf.mxu1 }
 0x45b   : > { %v5129_v7 = vadd.f32 %v5128_v55, %v5110_v22  ;;  %v16340_v25 = vmax.f32 %v18207_v46, %v5315_v9  ;;  %v5221_v54 = vpop.f32.mrf.mxu3  ;;  %v5096_v41 = vadd.f32 %v5095_v0, %v5077_v23  ;;  %v4233_v0 = vadd.f32 %v16306_v2, %v4214_v14  ;;  %v16371_v14 = vpop.permute.xlu1 %5348 }
 0x45d   : > { %v5148_v53 = vadd.f32 %v5147_v33, %v5129_v7 }
 0x45f   : > { %v5167_v59 = vadd.f32 %v5166_v36, %v5148_v53 }
 0x460   : > { %v5112_v4 = vpop.f32.mrf.mxu2 }
 0x461   : > { %v5113_v34 = vadd.f32 %v5112_v4, %v5094_v51  ;;  %v5317_v5 = vmax.f32 %v4228_v11, %v5167_v59  ;;  %v5240_v2 = vpop.f32.mrf.mxu0 }
 0x462   : > { %v5131_v1 = vpop.f32.mrf.mxu1 }
 0x463   : > { %v5132_v26 = vadd.f32 %v5131_v1, %v5113_v34  ;;  %v16346_v55 = vmax.f32 %v18208_v48, %v5317_v5  ;;  %v5223_v22 = vpop.f32.mrf.mxu3  ;;  %v4266_v5 = vadd.f32 %v16250_v50, %v16191_v49  ;;  %v4271_v50 = vadd.f32 %v16291_v31, %v16262_v52 }
 0x465   : > { %v5151_v21 = vadd.f32 %v5150_v19, %v5132_v26 }
 0x467   : > { %v5170_v3 = vadd.f32 %v5169_v57, %v5151_v21 }
 0x468   : > { %v5114_v33 = vpop.f32.mrf.mxu2 }
 0x469   : > { %v5115_v45 = vadd.f32 %v5114_v33, %v5096_v41  ;;  %v5319_v51 = vmax.f32 %v16299_v8, %v5170_v3  ;;  %v18210_v8 = vmax.f32 %v14943_v37, %v15691_v20  ;;  %v4285_v37 = vadd.f32 %v16313_v16, %v4266_v5  ;;  %v5242_v57 = vpop.f32.mrf.mxu0 }
 0x46a   : > { %v5133_v10 = vpop.f32.mrf.mxu1 }
 0x46b   : > { %v5134_v29 = vadd.f32 %v5133_v10, %v5115_v45  ;;  %v16355_v27 = vmax.f32 %v18209_v39, %v5319_v51  ;;  %v5226_v62 = vpop.f32.mrf.mxu3  ;;  %v4304_v3 = vadd.f32 %v16315_v15, %v4285_v37  ;;  %v5334_v45 = vpop.permute.xlu2 %5333  ;;  %v18211_v15 = vmax.f32 %v15222_v32, %v15970_v18  ;;  %v18215_v37 = vld [vmem:[#allocation5_spill] sm:$0xff] }
 0x46d   : > { %v5153_v19 = vadd.f32 %v5152_v58, %v5134_v29  ;;  %v16374_v29 = vadd.f32 %v5334_v45, %v16340_v25 }
 0x46f   : > { %v5172_v24 = vadd.f32 %v5171_v12, %v5153_v19 }
 0x470   : > { %v5183_v9 = vpop.f32.mrf.mxu2 }
 0x471   : > { %v5321_v60 = vmax.f32 %v4233_v0, %v5172_v24  ;;  %v5245_v52 = vpop.f32.mrf.mxu0 }
 0x472   : > { %v5202_v28 = vpop.f32.mrf.mxu1 }
 0x473   : > { %v16361_v36 = vmax.f32 %v18210_v8, %v5321_v60  ;;  %v5228_v58 = vpop.f32.mrf.mxu3  ;;  %v5203_v11 = vadd.f32 %v5202_v28, %v5183_v9 }
 0x475   : > { %v5222_v34 = vadd.f32 %v5221_v54, %v5203_v11  ;;  %v4323_v54 = vadd.f32 %v16293_v56, %v4304_v3  ;;  %v4290_v56 = vadd.f32 %v16321_v63, %v4271_v50  ;;  %v18219_v3 = vld [vmem:[#allocation3_spill] sm:$0xff]  ;;  %v18220_v50 = vld [vmem:[#allocation2_spill] sm:$0xff] }
 0x477   : > { %v5241_v23 = vadd.f32 %v5240_v2, %v5222_v34  ;;  %v4309_v60 = vadd.f32 %v16323_v43, %v4290_v56 }
 0x478   : > { %v5185_v17 = vpop.f32.mrf.mxu2 }
 0x479   : > { %v4328_v11 = vadd.f32 %v16308_v6, %v4309_v60 }
 0x47a   : > { %v5204_v7 = vpop.f32.mrf.mxu1 }
 0x47b   : > { %v5297_v1 = vpop.f32.mrf.mxu3  ;;  %v5205_v20 = vadd.f32 %v5204_v7, %v5185_v17  ;;  %v5339_v7 = vpop.permute.xlu1 %5338 }
 0x47d   : > { %v5224_v41 = vadd.f32 %v5223_v22, %v5205_v20  ;;  %v18038_v22 = vmax.f32 %v16374_v29, 0.0 }
 0x47f   : > { %v5243_v49 = vadd.f32 %v5242_v57, %v5224_v41 }
 0x480   : > { %v5188_v44 = vpop.f32.mrf.mxu2 }
 0x482   : > { %v5207_v38 = vpop.f32.mrf.mxu1 }
 0x483   : > { %v5208_v46 = vadd.f32 %v5207_v38, %v5188_v44  ;;  %v5299_v16 = vpop.f32.mrf.mxu3 }
 0x485   : > { %v5227_v53 = vadd.f32 %v5226_v62, %v5208_v46 }
 0x487   : > { %v5246_v32 = vadd.f32 %v5245_v52, %v5227_v53  ;;  %v5247_v53 = vpop.f32.mrf.mxu0 }
 0x488   : > { %v5190_v59 = vpop.f32.mrf.mxu2 }
 0x48a   : > { %v5209_v4 = vpop.f32.mrf.mxu1 }
 0x48b   : > { %v5210_v28 = vadd.f32 %v5209_v4, %v5190_v59  ;;  %v5302_v43 = vpop.f32.mrf.mxu3 }
 0x48d   : > { %v5229_v44 = vadd.f32 %v5228_v58, %v5210_v28 }
 0x48f   : > { %v5248_v59 = vadd.f32 %v5247_v53, %v5229_v44 }
 0x490   : > { %v5259_v26 = vpop.f32.mrf.mxu2 }
 0x491   : > { %v5260_v48 = vadd.f32 %v5259_v26, %v5241_v23 }
 0x492   : > { %v5278_v21 = vpop.f32.mrf.mxu1 }
 0x493   : > { %v5279_v33 = vadd.f32 %v5278_v21, %v5260_v48  ;;  %v5304_v57 = vpop.f32.mrf.mxu3 }
 0x495   : > { %v5298_v42 = vadd.f32 %v5297_v1, %v5279_v33  ;;  %v18214_v1 = vld [vmem:[#allocation6_spill] sm:$0xff] }
 0x496   : > { %v18216_v20 = vmax.f32 %v18214_v1, %v18215_v37 }
 0x497   : > { %v5316_v51 = vmax.f32 %v16325_v30, %v5298_v42  ;;  %v4342_v30 = vadd.f32 %v16304_v61, %v4323_v54  ;;  %v18213_v61 = vmax.f32 %v15283_v40, %v16029_v13  ;;  %v5344_v13 = vpop.permute.xlu0 %5343  ;;  %v16417_v54 = vadd.f32 %v5339_v7, %v16346_v55 }
 0x498   : > { %v5261_v10 = vpop.f32.mrf.mxu2  ;;  %v16400_v5 = vadd.f32 %v5344_v13, %v16355_v27 }
 0x499   : > { %v5324_v39 = vmax.f32 %v18211_v15, %v5316_v51  ;;  %v5262_v19 = vadd.f32 %v5261_v10, %v5243_v49  ;;  %v4361_v31 = vadd.f32 %v16327_v47, %v4342_v30 }
 0x49a   : > { %v5280_v12 = vpop.f32.mrf.mxu1  ;;  %v18040_v33 = vmax.f32 %v16400_v5, 0.0 }
 0x49b   : > { %v5352_v0 = vadd.f32 %v5334_v45, %v5324_v39  ;;  %v5281_v24 = vadd.f32 %v5280_v12, %v5262_v19  ;;  %v18037_v39 = vmax.f32 %v16417_v54, 0.0 }
 0x49d   : > { %v5360_v9 = vmax.f32 %v5352_v0, 0.0  ;;  %v5300_v25 = vadd.f32 %v5299_v16, %v5281_v24  ;;  %v18221_v16 = vld [vmem:[#allocation4_spill] sm:$0xff]  ;;  %v16496_v0 = vadd.f32 %v16371_v14, %v16361_v36 }
 0x49e   : > { %v18222_v10 = vmax.f32 %v18220_v50, %v18221_v16 }
 0x49f   : > { %v5318_v18 = vmax.f32 %v4361_v31, %v5300_v25  ;;  %v16386_v63 = vpack.i.bf16 %v5360_v9, %v18038_v22  ;;  %v18039_v52 = vmax.f32 %v16496_v0, 0.0 }
 0x4a0   : > { %v5264_v8 = vpop.f32.mrf.mxu2 }
 0x4a1   : > { %18212 = vst [vmem:[#allocation15_spill] sm:$0xff] %v16386_v63  ;;  %v5326_v17 = vmax.f32 %v18213_v61, %v5318_v18  ;;  %v5265_v62 = vadd.f32 %v5264_v8, %v5246_v32  ;;  %11091 = vrot.lane.b32.xlu0 %v16386_v63, %s11585_s13  ;;  %11071 = vrot.lane.b32.xlu2 %v16386_v63, %s11597_s22 }
 0x4a2   : > { %11066 = vrot.lane.b32.xlu1 %v16386_v63, %s11598_s30  ;;  %v5283_v47 = vpop.f32.mrf.mxu1 }
 0x4a3   : > { %v5284_v38 = vadd.f32 %v5283_v47, %v5265_v62  ;;  %v5354_v46 = vadd.f32 %v5339_v7, %v5326_v17 }
 0x4a5   : > { %v5303_v40 = vadd.f32 %v5302_v43, %v5284_v38  ;;  %v5362_v4 = vmax.f32 %v5354_v46, 0.0 }
 0x4a7   : > { %v5320_v2 = vmax.f32 %v16329_v35, %v5303_v40  ;;  %v18217_v35 = vld [vmem:[#allocation7_spill] sm:$0xff]  ;;  %v16412_v21 = vpack.c.bf16 %v5362_v4, %v5360_v9  ;;  %v16436_v56 = vpack.i.bf16 %v5362_v4, %v18037_v39 }
 0x4a8   : > { %v5266_v34 = vpop.f32.mrf.mxu2  ;;  %v4347_v27 = vadd.f32 %v18217_v35, %v4328_v11 }
 0x4a9   : > { %v5328_v23 = vmax.f32 %v18216_v20, %v5320_v2  ;;  %v5267_v58 = vadd.f32 %v5266_v34, %v5248_v59  ;;  %11101 = vrot.lane.b32.xlu0 %v16386_v63, %s11599_s8  ;;  %11076 = vrot.lane.b32.xlu2 %v16386_v63, %s11600_s9  ;;  %18218 = vst [vmem:[#allocation9_spill] sm:$0xff] %v16412_v21 }
 0x4aa   : > { %11081 = vrot.lane.b32.xlu1 %v16386_v63, %s11584_s12  ;;  %v5285_v6 = vpop.f32.mrf.mxu1  ;;  %v4366_v41 = vadd.f32 %v18219_v3, %v4347_v27  ;;  %18223 = vst [vmem:[#allocation14_spill] sm:$0xff] %v16436_v56 }
 0x4ab   : > { %v5356_v26 = vadd.f32 %v5344_v13, %v5328_v23  ;;  %v5286_v48 = vadd.f32 %v5285_v6, %v5267_v58 }
 0x4ad   : > { %v5364_v42 = vmax.f32 %v5356_v26, 0.0  ;;  %v5305_v45 = vadd.f32 %v5304_v57, %v5286_v48 }
 0x4af   : > { %v5322_v51 = vmax.f32 %v4366_v41, %v5305_v45  ;;  %v16421_v49 = vpack.i.bf16 %v5364_v42, %v18040_v33 }
 0x4b1   : > { %v5330_v15 = vmax.f32 %v18222_v10, %v5322_v51  ;;  %11121 = vrot.lane.b32.xlu0 %v16386_v63, %s11583_s11  ;;  %11106 = vrot.lane.b32.xlu2 %v16386_v63, %s11601_s15 }
 0x4b2   : > { %11086 = vrot.lane.b32.xlu1 %v16386_v63, %s11595_s23 }
 0x4b3   : > { %v5358_v55 = vadd.f32 %v16371_v14, %v5330_v15 }
 0x4b5   : > { %v5366_v19 = vmax.f32 %v5358_v55, 0.0 }
 0x4b7   : > { %v16444_v12 = vpack.c.bf16 %v5366_v19, %v5364_v42  ;;  %v16509_v31 = vpack.i.bf16 %v5366_v19, %v18039_v52 }
 0x4b9   : > { %11151 = vrot.lane.b32.xlu0 %v16436_v56, %s11597_s22  ;;  %11126 = vrot.lane.b32.xlu2 %v16386_v63, %s11602_s16  ;;  %18224 = vst [vmem:[#allocation8_spill] sm:$0xff] %v16444_v12 }
 0x4ba   : > { %11096 = vrot.lane.b32.xlu1 %v16386_v63, %s11586_s14  ;;  %18225 = vst [vmem:[#allocation17_spill] sm:$0xff] %v16509_v31 }
 0x4c1   : > { %11156 = vrot.lane.b32.xlu0 %v16436_v56, %s11600_s9  ;;  %11136 = vrot.lane.b32.xlu2 %v16386_v63, %s11603_s17 }
 0x4c2   : > { %11111 = vrot.lane.b32.xlu1 %v16386_v63, %s11604_s18 }
 0x4c9   : > { %11186 = vrot.lane.b32.xlu0 %v16436_v56, %s11601_s15  ;;  %11146 = vrot.lane.b32.xlu2 %v16436_v56, %s11598_s30 }
 0x4ca   : > { %11116 = vrot.lane.b32.xlu1 %v16386_v63, %s11605_s19 }
 0x4d1   : > { %11206 = vrot.lane.b32.xlu0 %v16436_v56, %s11602_s16  ;;  %11161 = vrot.lane.b32.xlu2 %v16436_v56, %s11584_s12 }
 0x4d2   : > { %11131 = vrot.lane.b32.xlu1 %v16386_v63, %s11582_s10 }
 0x4d9   : > { %11216 = vrot.lane.b32.xlu0 %v16436_v56, %s11603_s17  ;;  %11166 = vrot.lane.b32.xlu2 %v16436_v56, %s11595_s23 }
 0x4da   : > { %11141 = vrot.lane.b32.xlu1 %v16386_v63, %s11606_s20 }
 0x4e1   : > { %11226 = vrot.lane.b32.xlu0 %v16421_v49, %s11597_s22  ;;  %11176 = vrot.lane.b32.xlu2 %v16436_v56, %s11586_s14 }
 0x4e2   : > { %11171 = vrot.lane.b32.xlu1 %v16436_v56, %s11585_s13 }
 0x4e9   : > { %11236 = vrot.lane.b32.xlu0 %v16421_v49, %s11584_s12  ;;  %11191 = vrot.lane.b32.xlu2 %v16436_v56, %s11604_s18 }
 0x4ea   : > { %11181 = vrot.lane.b32.xlu1 %v16436_v56, %s11599_s8 }
 0x4f1   : > { %11241 = vrot.lane.b32.xlu0 %v16421_v49, %s11595_s23  ;;  %11196 = vrot.lane.b32.xlu2 %v16436_v56, %s11605_s19 }
 0x4f2   : > { %11201 = vrot.lane.b32.xlu1 %v16436_v56, %s11583_s11 }
 0x4f9   : > { %11256 = vrot.lane.b32.xlu0 %v16421_v49, %s11599_s8  ;;  %11211 = vrot.lane.b32.xlu2 %v16436_v56, %s11582_s10 }
 0x4fa   : > { %11231 = vrot.lane.b32.xlu1 %v16421_v49, %s11600_s9 }
 0x4fb   : > { %v11072_v30 = vpop.permute.xlu2 %11071 }
 0x4fc   : > { %v16569_v40 = vunpack.i.h.bf16 %v11072_v30  ;;  %v11073_v13 = vunpack.i.l.bf16 %v11072_v30 }
 0x4fe   : > { %18229 = vst [vmem:[#allocation18_spill] sm:$0xff] %v16569_v40  ;;  %v16585_v37 = vsel %vm5532_vm13, %v11073_v13, %v16569_v40 }
 0x501   : > { %11271 = vrot.lane.b32.xlu0 %v16421_v49, %s11605_s19  ;;  %11221 = vrot.lane.b32.xlu2 %v16421_v49, %s11598_s30 }
 0x502   : > { %11266 = vrot.lane.b32.xlu1 %v16421_v49, %s11604_s18 }
 0x503   : > { %v16504_v24 = vpop.permute.xlu2 %11076 }
 0x504   : > { %v16598_v35 = vunpack.i.h.bf16 %v16504_v24  ;;  %v11078_v27 = vunpack.i.l.bf16 %v16504_v24 }
 0x506   : > { %18233 = vst [vmem:[#allocation22_spill] sm:$0xff] %v16598_v35  ;;  %v16613_v16 = vsel %vm5503_vm15, %v11078_v27, %v16598_v35 }
 0x509   : > { %11246 = vrot.lane.b32.xlu2 %v16421_v49, %s11585_s13  ;;  %11301 = vrot.lane.b32.xlu0 %v16509_v31, %s11598_s30 }
 0x50a   : > { %11286 = vrot.lane.b32.xlu1 %v16421_v49, %s11582_s10 }
 0x50b   : > { %v16517_v36 = vpop.permute.xlu2 %11106 }
 0x511   : > { %11251 = vrot.lane.b32.xlu2 %v16421_v49, %s11586_s14  ;;  %11331 = vrot.lane.b32.xlu0 %v16509_v31, %s11585_s13 }
 0x512   : > { %11296 = vrot.lane.b32.xlu1 %v16421_v49, %s11606_s20 }
 0x513   : > { %v16525_v14 = vpop.permute.xlu0 %11091  ;;  %v16527_v9 = vpop.permute.xlu2 %11126 }
 0x514   : > { %v11067_v25 = vpop.permute.xlu1 %11066 }
 0x515   : > { %v16545_v18 = vunpack.i.h.bf16 %v11067_v25  ;;  %v11068_v8 = vunpack.i.l.bf16 %v11067_v25 }
 0x517   : > { %18227 = vst [vmem:[#allocation16_spill] sm:$0xff] %v16545_v18  ;;  %v16555_v7 = vsel %vm5561_vm12, %v11068_v8, %v16545_v18  ;;  %v11109_v8 = vunpack.i.h.bf16 %v16517_v36 }
 0x519   : > { %11261 = vrot.lane.b32.xlu2 %v16421_v49, %s11601_s15  ;;  %11336 = vrot.lane.b32.xlu0 %v16509_v31, %s11586_s14 }
 0x51a   : > { %11306 = vrot.lane.b32.xlu1 %v16509_v31, %s11597_s22 }
 0x51b   : > { %v16535_v60 = vpop.permute.xlu0 %11101  ;;  %v16537_v28 = vpop.permute.xlu2 %11136 }
 0x51c   : > { %18226 = vst [vmem:[#allocation10_spill] sm:$0xff] %v16535_v60  ;;  %v16539_v32 = vpop.permute.xlu1 %11081  ;;  %v11138_v22 = vunpack.i.l.bf16 %v16537_v28 }
 0x51d   : > { %v16576_v2 = vunpack.i.h.bf16 %v16539_v32 }
 0x51f   : > { %18230 = vst [vmem:[#allocation11_spill] sm:$0xff] %v16576_v2 }
 0x521   : > { %11276 = vrot.lane.b32.xlu2 %v16421_v49, %s11583_s11  ;;  %11346 = vrot.lane.b32.xlu0 %v16509_v31, %s11601_s15 }
 0x522   : > { %11321 = vrot.lane.b32.xlu1 %v16509_v31, %s11584_s12 }
 0x523   : > { %v16549_v61 = vpop.permute.xlu0 %11121  ;;  %v11147_v17 = vpop.permute.xlu2 %11146 }
 0x524   : > { %v16551_v62 = vunpack.i.h.bf16 %v11147_v17  ;;  %v11148_v43 = vunpack.i.l.bf16 %v11147_v17  ;;  %v11087_v47 = vpop.permute.xlu1 %11086  ;;  %v11108_v17 = vunpack.i.l.bf16 %v16517_v36 }
 0x525   : > { %v11089_v26 = vunpack.i.h.bf16 %v11087_v47  ;;  %v11088_v48 = vunpack.i.l.bf16 %v11087_v47 }
 0x526   : > { %18228 = vst [vmem:[#allocation12_spill] sm:$0xff] %v16551_v62  ;;  %v16559_v44 = vsel %vm5561_vm12, %v11148_v43, %v16551_v62 }
 0x527   : > { %v16616_v10 = vsel %vm458_vm7, %v11088_v48, %v11089_v26 }
 0x529   : > { %11281 = vrot.lane.b32.xlu2 %v16421_v49, %s11602_s16  ;;  %11361 = vrot.lane.b32.xlu0 %v16509_v31, %s11583_s11  ;;  %s11607_s11 = smov 85  }
 0x52a   : > { %11326 = vrot.lane.b32.xlu1 %v16509_v31, %s11595_s23 }
 0x52b   : > { %v11152_v53 = vpop.permute.xlu0 %11151  ;;  %v16573_v11 = vpop.permute.xlu2 %11161 }
 0x52c   : > { %v16578_v59 = vunpack.i.h.bf16 %v11152_v53  ;;  %v11153_v4 = vunpack.i.l.bf16 %v11152_v53  ;;  %v16581_v34 = vunpack.i.h.bf16 %v16573_v11  ;;  %v11097_v1 = vpop.permute.xlu1 %11096 }
 0x52d   : > { %v16635_v43 = vunpack.i.h.bf16 %v11097_v1  ;;  %v11098_v47 = vunpack.i.l.bf16 %v11097_v1  ;;  %v16646_v1 = vsel %vm5791_vm2, %v11108_v17, %v11109_v8  ;;  %v11385_v17 = vpack.i.bf16 %v16545_v18, %v16555_v7 }
 0x52e   : > { %18231 = vst [vmem:[#allocation20_spill] sm:$0xff] %v16578_v59  ;;  %v16589_v20 = vsel %vm5532_vm13, %v11153_v4, %v16578_v59  ;;  %v18255_v18 = vunpack.i.h.bf16 %v16535_v60 }
 0x52f   : > { %18232 = vst [vmem:[#allocation13_spill] sm:$0xff] %v16581_v34  ;;  %v11415_v39 = vpack.i.bf16 %v16578_v59, %v16589_v20 }
 0x531   : > { %11291 = vrot.lane.b32.xlu2 %v16421_v49, %s11603_s17  ;;  %11366 = vrot.lane.b32.xlu0 %v16509_v31, %s11602_s16 }
 0x532   : > { %11341 = vrot.lane.b32.xlu1 %v16509_v31, %s11599_s8 }
 0x533   : > { %v11157_v57 = vpop.permute.xlu0 %11156  ;;  %v11167_v3 = vpop.permute.xlu2 %11166 }
 0x534   : > { %v16607_v41 = vunpack.i.h.bf16 %v11157_v57  ;;  %v11158_v42 = vunpack.i.l.bf16 %v11157_v57  ;;  %v11169_v45 = vunpack.i.h.bf16 %v11167_v3  ;;  %v11168_v51 = vunpack.i.l.bf16 %v11167_v3  ;;  %v16609_v50 = vpop.permute.xlu1 %11111 }
 0x535   : > { %v16650_v57 = vsel %vm18236_vm3, %v11098_v47, %v16635_v43  ;;  %v11410_v47 = vpack.i.bf16 %v16551_v62, %v16559_v44  ;;  %vm5677_vm3 = vcmask 809984  }
 0x536   : > { %18234 = vst [vmem:[#allocation19_spill] sm:$0xff] %v16607_v41  ;;  %v16620_v15 = vsel %vm5503_vm15, %v11158_v42, %v16607_v41  ;;  %v16622_v55 = vpack.c.bf16 %v11169_v45, %v11089_v26  ;;  %v16625_v19 = vsel %vm458_vm7, %v11168_v51, %v11169_v45 }
 0x538   : > { %18235 = vst [vmem:[#allocation21_spill] sm:$0xff] %v16622_v55 }
 0x539   : > { %11311 = vrot.lane.b32.xlu2 %v16509_v31, %s11600_s9  ;;  %11376 = vrot.lane.b32.xlu0 %v16509_v31, %s11603_s17 }
 0x53a   : > { %11356 = vrot.lane.b32.xlu1 %v16509_v31, %s11605_s19 }
 0x53b   : > { %v11187_v13 = vpop.permute.xlu0 %11186  ;;  %v11177_v53 = vpop.permute.xlu2 %11176 }
 0x53c   : > { %v11189_v4 = vunpack.i.h.bf16 %v11187_v13  ;;  %v11188_v27 = vunpack.i.l.bf16 %v11187_v13  ;;  %v16643_v26 = vunpack.i.h.bf16 %v11177_v53  ;;  %v11178_v36 = vunpack.i.l.bf16 %v11177_v53  ;;  %v11117_v48 = vpop.permute.xlu1 %11116 }
 0x53d   : > { %v11129_v53 = vunpack.i.h.bf16 %v16527_v9  ;;  %v11119_v52 = vunpack.i.h.bf16 %v11117_v48 }
 0x53e   : > { %v16652_v3 = vpack.c.bf16 %v11189_v4, %v11109_v8  ;;  %v16655_v42 = vsel %vm5791_vm2, %v11188_v27, %v11189_v4  ;;  %v16659_v45 = vsel %vm18238_vm14, %v11178_v36, %v16643_v26  ;;  %v11128_v4 = vunpack.i.l.bf16 %v16527_v9 }
 0x53f   : > { %v11390_v9 = vpack.i.bf16 %v16569_v40, %v16585_v37  ;;  %vm5820_vm14 = vcmask 941056  }
 0x540   : > { %18237 = vst [vmem:[#allocation23_spill] sm:$0xff] %v16652_v3  ;;  %v16682_v23 = vsel %vm5619_vm1, %v11128_v4, %v11129_v53 }
 0x541   : > { %11316 = vrot.lane.b32.xlu2 %v16436_v56, %s11606_s20  ;;  %11386 = vrot.lane.b32.xlu0 %v11385_v17, %s11607_s11  ;;  %18240 = vst [vmem:[#allocation5_spill] sm:$0xff] %v16682_v23 }
 0x542   : > { %11411 = vrot.lane.b32.xlu1 %v11410_v47, %s11607_s11 }
 0x543   : > { %v11207_v27 = vpop.permute.xlu0 %11206  ;;  %v16677_v36 = vpop.permute.xlu2 %11191 }
 0x544   : > { %v11209_v30 = vunpack.i.h.bf16 %v11207_v27  ;;  %v11208_v58 = vunpack.i.l.bf16 %v11207_v27  ;;  %v11132_v38 = vpop.permute.xlu1 %11131  ;;  %v16694_v27 = vunpack.i.h.bf16 %v16537_v28 }
 0x546   : > { %v16679_v51 = vpack.c.bf16 %v11209_v30, %v11129_v53  ;;  %v16685_v17 = vsel %vm5619_vm1, %v11208_v58, %v11209_v30  ;;  %18242 = vst [vmem:[#allocation3_spill] sm:$0xff] %v16694_v27  ;;  %v11118_v53 = vunpack.i.l.bf16 %v11117_v48  ;;  %v16707_v28 = vsel %vm5590_vm0, %v11138_v22, %v16694_v27 }
 0x547   : > { %18241 = vst [vmem:[#allocation7_spill] sm:$0xff] %v16685_v17  ;;  %v11133_v22 = vunpack.i.l.bf16 %v11132_v38 }
 0x548   : > { %18239 = vst [vmem:[#allocation6_spill] sm:$0xff] %v16679_v51  ;;  %v16710_v48 = vsel %vm5648_vm9, %v11118_v53, %v11119_v52  ;;  %v11163_v53 = vunpack.i.l.bf16 %v16573_v11 }
 0x549   : > { %11351 = vrot.lane.b32.xlu2 %v16509_v31, %s11604_s18  ;;  %11391 = vrot.lane.b32.xlu0 %v11390_v9, %s11607_s11  ;;  %18244 = vst [vmem:[#allocation4_spill] sm:$0xff] %v16707_v28 }
 0x54a   : > { %11416 = vrot.lane.b32.xlu1 %v11415_v39, %s11607_s11  ;;  %v16742_v11 = vsel %vm427_vm5, %v11163_v53, %v16581_v34 }
 0x54b   : > { %v11217_v58 = vpop.permute.xlu0 %11216  ;;  %v11197_v30 = vpop.permute.xlu2 %11196 }
 0x54c   : > { %v16701_v4 = vunpack.i.h.bf16 %v11217_v58  ;;  %v11218_v47 = vunpack.i.l.bf16 %v11217_v58  ;;  %v11199_v33 = vunpack.i.h.bf16 %v11197_v30  ;;  %v11198_v8 = vunpack.i.l.bf16 %v11197_v30  ;;  %v16703_v25 = vpop.permute.xlu1 %11141 }
 0x54d   : > { %v11395_v30 = vpack.i.bf16 %v16598_v35, %v16613_v16  ;;  %v11134_v58 = vunpack.i.h.bf16 %v11132_v38  ;;  %v11083_v38 = vunpack.i.l.bf16 %v16539_v32 }
 0x54e   : > { %18243 = vst [vmem:[#allocation2_spill] sm:$0xff] %v16701_v4  ;;  %v16712_v9 = vpack.c.bf16 %v11199_v33, %v11119_v52  ;;  %v16715_v39 = vsel %vm5648_vm9, %v11198_v8, %v11199_v33  ;;  %v16719_v24 = vsel %vm5590_vm0, %v11218_v47, %v16701_v4  ;;  %v11420_v33 = vpack.i.bf16 %v16607_v41, %v16620_v15 }
 0x54f   : > { %18246 = vst [vmem:[#allocation25_spill] sm:$0xff] %v16719_v24  ;;  %v16733_v8 = vunpack.i.h.bf16 %v16525_v14  ;;  %v11093_v47 = vunpack.i.l.bf16 %v16525_v14 }
 0x550   : > { %18245 = vst [vmem:[#allocation24_spill] sm:$0xff] %v16712_v9  ;;  %v11113_v9 = vunpack.i.l.bf16 %v16609_v50 }
 0x551   : > { %11371 = vrot.lane.b32.xlu2 %v16509_v31, %s11582_s10  ;;  %11396 = vrot.lane.b32.xlu0 %v11395_v30, %s11607_s11  ;;  %v16746_v14 = vsel %vm396_vm6, %v11093_v47, %v16733_v8 }
 0x552   : > { %11421 = vrot.lane.b32.xlu1 %v11420_v33, %s11607_s11  ;;  %v16754_v33 = vsel %vm18248_vm10, %v11133_v22, %v11134_v58  ;;  %v16778_v22 = vsel %vm427_vm5, %v11083_v38, %v16576_v2 }
 0x553   : > { %v11227_v52 = vpop.permute.xlu0 %11226  ;;  %v11212_v13 = vpop.permute.xlu2 %11211  ;;  %18249 = vst [vmem:[#allocation27_spill] sm:$0xff] %v16754_v33 }
 0x554   : > { %v11214_v6 = vunpack.i.h.bf16 %v11212_v13  ;;  %v11213_v46 = vunpack.i.l.bf16 %v11212_v13  ;;  %v11172_v55 = vpop.permute.xlu1 %11171  ;;  %v11425_v13 = vpack.i.bf16 %v16581_v34, %v16742_v11 }
 0x555   : > { %v16748_v35 = vunpack.i.h.bf16 %v11172_v55  ;;  %v11173_v30 = vunpack.i.l.bf16 %v11172_v55 }
 0x556   : > { %v16751_v41 = vpack.c.bf16 %v11214_v6, %v11134_v58  ;;  %v16757_v53 = vsel %vm18250_vm11, %v11213_v46, %v11214_v6  ;;  %v11103_v6 = vunpack.i.l.bf16 %v16535_v60  ;;  %v11228_v60 = vunpack.i.l.bf16 %v11227_v52 }
 0x557   : > { %18251 = vst [vmem:[#allocation28_spill] sm:$0xff] %v16757_v53  ;;  %v16763_v47 = vsel %vm396_vm6, %v11173_v30, %v16748_v35 }
 0x558   : > { %18247 = vst [vmem:[#allocation26_spill] sm:$0xff] %v16751_v41 }
 0x559   : > { %11381 = vrot.lane.b32.xlu2 %v16509_v31, %s11606_s20  ;;  %11426 = vrot.lane.b32.xlu0 %v11425_v13, %s11607_s11 }
 0x55b   : > { %v11237_v30 = vpop.permute.xlu0 %11236  ;;  %v11222_v55 = vpop.permute.xlu2 %11221 }
 0x55c   : > { %v16780_v32 = vunpack.i.h.bf16 %v11237_v30  ;;  %v11238_v41 = vunpack.i.l.bf16 %v11237_v30  ;;  %v16782_v58 = vunpack.i.h.bf16 %v11222_v55  ;;  %v11223_v3 = vunpack.i.l.bf16 %v11222_v55  ;;  %v16784_v40 = vpop.permute.xlu1 %11181 }
 0x55d   : > { %18254 = vst [vmem:[#allocation31_spill] sm:$0xff] %v16784_v40  ;;  %v11183_v46 = vunpack.i.l.bf16 %v16784_v40  ;;  %v16797_v30 = vsel %vm5677_vm3, %v11103_v6, %v18255_v18  ;;  %v11400_v55 = vpack.i.bf16 %v16576_v2, %v16778_v22  ;;  %v18256_v51 = vunpack.i.h.bf16 %v16784_v40 }
 0x55e   : > { %18252 = vst [vmem:[#allocation29_spill] sm:$0xff] %v16780_v32  ;;  %v16790_v59 = vsel %vm427_vm5, %v11238_v41, %v16780_v32  ;;  %v5564_v38 = vsel %vm5561_vm12, %v11223_v3, %v16782_v58  ;;  %v11114_v3 = vunpack.i.h.bf16 %v16609_v50  ;;  %v16813_v6 = vunpack.i.h.bf16 %v11227_v52 }
 0x55f   : > { %18253 = vst [vmem:[#allocation30_spill] sm:$0xff] %v16782_v58  ;;  %v11445_v13 = vpack.i.bf16 %v16780_v32, %v16790_v59  ;;  %v11430_v62 = vpack.i.bf16 %v16782_v58, %v5564_v38  ;;  %v16807_v41 = vsel %vm5677_vm3, %v11183_v46, %v18256_v51 }
 0x560   : > { %18257 = vst [vmem:[#allocation32_spill] sm:$0xff] %v16813_v6  ;;  %v5821_v46 = vsel %vm5820_vm14, %v11113_v9, %v11114_v3  ;;  %v5535_v50 = vsel %vm5532_vm13, %v11228_v60, %v16813_v6 }
 0x561   : > { %11401 = vrot.lane.b32.xlu2 %v11400_v55, %s11607_s11  ;;  %11446 = vrot.lane.b32.xlu1 %v11445_v13, %s11607_s11  ;;  %v11405_v18 = vpack.i.bf16 %v11114_v3, %v5821_v46  ;;  %v11435_v12 = vpack.i.bf16 %v16813_v6, %v5535_v50  ;;  %v18262_v6 = vpack.c.bf16 %v16589_v20, %v16585_v37 }
 0x562   : > { %11431 = vrot.lane.b32.xlu0 %v11430_v62, %s11607_s11 }
 0x563   : > { %v16818_v40 = vpop.permute.xlu0 %11241  ;;  %v11247_v51 = vpop.permute.xlu2 %11246 }
 0x564   : > { %v16821_v21 = vpop.permute.xlu1 %11201  ;;  %v16826_v52 = vunpack.i.h.bf16 %v11247_v51  ;;  %v11248_v55 = vunpack.i.l.bf16 %v11247_v51  ;;  %v11244_v20 = vunpack.i.h.bf16 %v16818_v40 }
 0x566   : > { %18258 = vst [vmem:[#allocation33_spill] sm:$0xff] %v16826_v52  ;;  %v16836_v4 = vsel %vm396_vm6, %v11248_v55, %v16826_v52 }
 0x569   : > { %11406 = vrot.lane.b32.xlu2 %v11405_v18, %s11607_s11  ;;  %v11455_v18 = vpack.i.bf16 %v16826_v52, %v16836_v4 }
 0x56a   : > { %11436 = vrot.lane.b32.xlu0 %v11435_v12, %s11607_s11 }
 0x56b   : > { %v16830_v62 = vpop.permute.xlu0 %11256  ;;  %v16832_v13 = vpop.permute.xlu2 %11251 }
 0x56c   : > { %v11232_v9 = vpop.permute.xlu1 %11231 }
 0x56d   : > { %v16838_v60 = vunpack.i.h.bf16 %v11232_v9  ;;  %v11233_v3 = vunpack.i.l.bf16 %v11232_v9 }
 0x56f   : > { %18259 = vst [vmem:[#allocation34_spill] sm:$0xff] %v16838_v60  ;;  %v16842_v46 = vsel %vm5503_vm15, %v11233_v3, %v16838_v60 }
 0x570   : > { %v11440_v12 = vpack.i.bf16 %v16838_v60, %v16842_v46 }
 0x572   : > { %11441 = vrot.lane.b32.xlu2 %v11440_v12, %s11607_s11  ;;  %11456 = vrot.lane.b32.xlu0 %v11455_v18, %s11607_s11 }
 0x573   : > { %v16850_v51 = vpop.permute.xlu0 %11271  ;;  %v11262_v55 = vpop.permute.xlu2 %11261 }
 0x574   : > { %v11267_v24 = vpop.permute.xlu1 %11266  ;;  %v11264_v32 = vunpack.i.h.bf16 %v11262_v55 }
 0x575   : > { %v11269_v2 = vunpack.i.h.bf16 %v11267_v24  ;;  %v11268_v9 = vunpack.i.l.bf16 %v11267_v24 }
 0x577   : > { %v5823_v34 = vsel %vm5820_vm14, %v11268_v9, %v11269_v2 }
 0x578   : > { %v11450_v3 = vpack.i.bf16 %v11269_v2, %v5823_v34 }
 0x57a   : > { %11451 = vrot.lane.b32.xlu1 %v11450_v3, %s11607_s11 }
 0x57b   : > { %v16854_v31 = vpop.permute.xlu2 %11276  ;;  %v11302_v52 = vpop.permute.xlu0 %11301 }
 0x57c   : > { %v16856_v27 = vpop.permute.xlu1 %11286  ;;  %v16858_v28 = vunpack.i.h.bf16 %v11302_v52  ;;  %v11303_v12 = vunpack.i.l.bf16 %v11302_v52  ;;  %v18261_v52 = vpack.c.bf16 %v16559_v44, %v16555_v7  ;;  %v11263_v7 = vunpack.i.l.bf16 %v11262_v55 }
 0x57d   : > { %v11194_v44 = vunpack.i.h.bf16 %v16677_v36 }
 0x57e   : > { %18260 = vst [vmem:[#allocation35_spill] sm:$0xff] %v16858_v28  ;;  %v5565_v23 = vsel %vm5561_vm12, %v11303_v12, %v16858_v28  ;;  %vm5706_vm12 = vcmask 801792  }
 0x57f   : > { %v11460_v24 = vpack.i.bf16 %v16858_v28, %v5565_v23  ;;  %v6108_v9 = vpack.c.bf16 %v5565_v23, %v5564_v38 }
 0x581   : > { %6359 = vmatpush.bf16.msrb.mxu2 %v6108_v9 }
 0x582   : > { %11461 = vrot.lane.b32.xlu1 %v11460_v24, %s11607_s11 }
 0x583   : > { %v16866_v2 = vpop.permute.xlu2 %11281  ;;  %v16868_v34 = vpop.permute.xlu0 %11331 }
 0x584   : > { %v16870_v3 = vpop.permute.xlu1 %11296  ;;  %v11333_v60 = vunpack.i.l.bf16 %v16868_v34 }
 0x585   : > { %6360 = vmatpush.bf16.msrb.mxu2 %v18261_v52  ;;  %v11193_v52 = vunpack.i.l.bf16 %v16677_v36 }
 0x58b   : > { %v16875_v18 = vpop.permute.xlu2 %11291  ;;  %v16877_v58 = vpop.permute.xlu0 %11336 }
 0x58c   : > { %v11307_v12 = vpop.permute.xlu1 %11306 }
 0x58d   : > { %v16879_v28 = vunpack.i.h.bf16 %v11307_v12  ;;  %v11308_v23 = vunpack.i.l.bf16 %v11307_v12 }
 0x58f   : > { %v5536_v38 = vsel %vm5532_vm13, %v11308_v23, %v16879_v28  ;;  %vm5969_vm13 = vcmask 695296  }
 0x590   : > { %v11465_v24 = vpack.i.bf16 %v16879_v28, %v5536_v38  ;;  %v6104_v9 = vpack.c.bf16 %v5536_v38, %v5535_v50  ;;  %v5794_v38 = vsel %vm5791_vm2, %v11263_v7, %v11264_v32  ;;  %v11480_v7 = vpack.i.bf16 %v16733_v8, %v16746_v14 }
 0x592   : > { %11466 = vrot.lane.b32.xlu1 %v11465_v24, %s11607_s11  ;;  %6361 = vmatpush.bf16.msrb.mxu2 %v6104_v9 }
 0x593   : > { %v11312_v56 = vpop.permute.xlu2 %11311  ;;  %v11347_v12 = vpop.permute.xlu0 %11346 }
 0x594   : > { %v16889_v63 = vunpack.i.h.bf16 %v11312_v56  ;;  %v11313_v23 = vunpack.i.l.bf16 %v11312_v56  ;;  %v11322_v33 = vpop.permute.xlu1 %11321  ;;  %v11349_v53 = vunpack.i.h.bf16 %v11347_v12  ;;  %v11348_v50 = vunpack.i.l.bf16 %v11347_v12 }
 0x595   : > { %v16892_v17 = vunpack.i.h.bf16 %v11322_v33  ;;  %v11323_v55 = vunpack.i.l.bf16 %v11322_v33  ;;  %v16916_v56 = vunpack.i.h.bf16 %v16868_v34 }
 0x596   : > { %v5507_v24 = vsel %vm5503_vm15, %v11313_v23, %v16889_v63  ;;  %v16896_v9 = vpack.c.bf16 %v11349_v53, %v11264_v32  ;;  %v5795_v36 = vsel %vm5791_vm2, %v11348_v50, %v11349_v53  ;;  %6362 = vmatpush.bf16.msrb.mxu2 %v18262_v6  ;;  %v5822_v32 = vsel %vm5820_vm14, %v11193_v52, %v11194_v44 }
 0x597   : > { %v11470_v12 = vpack.i.bf16 %v16889_v63, %v5507_v24  ;;  %v5450_v33 = vsel %vm427_vm5, %v11323_v55, %v16892_v17  ;;  %v6140_v23 = vpack.c.bf16 %v5795_v36, %v5794_v38  ;;  %v6100_v37 = vpack.c.bf16 %v5507_v24, %v16842_v46 }
 0x598   : > { %v11485_v53 = vpack.i.bf16 %v16892_v17, %v5450_v33  ;;  %v6092_v50 = vpack.c.bf16 %v5450_v33, %v16790_v59  ;;  %v11243_v6 = vunpack.i.l.bf16 %v16818_v40  ;;  %v11279_v52 = vunpack.i.h.bf16 %v16854_v31 }
 0x599   : > { %11471 = vrot.lane.b32.xlu0 %v11470_v12, %s11607_s11  ;;  %6417 = vmatpush.bf16.msra.mxu3 %v6140_v23  ;;  %v11278_v38 = vunpack.i.l.bf16 %v16854_v31  ;;  %v11123_v46 = vunpack.i.l.bf16 %v16549_v61  ;;  %v11475_v40 = vpack.i.bf16 %v11194_v44, %v5822_v32  ;;  %v6090_v24 = vpack.c.bf16 %v16742_v11, %v16778_v22 }
 0x59a   : > { %11486 = vrot.lane.b32.xlu2 %v11485_v53, %s11607_s11  ;;  %6330 = vmatpush.bf16.msrb.mxu0 %v6092_v50  ;;  %v18074_v36 = vunpack.i.h.bf16 %v16821_v21  ;;  %v11203_v31 = vunpack.i.l.bf16 %v16821_v21  ;;  %v18263_v44 = vpack.c.bf16 %v16655_v42, %v16646_v1  ;;  %v5477_v32 = vsel %vm458_vm7, %v11243_v6, %v11244_v20 }
 0x59b   : > { %11481 = vrot.lane.b32.xlu1 %v11480_v7, %s11607_s11  ;;  %6363 = vmatpush.bf16.msrb.mxu2 %v6100_v37  ;;  %v16926_v55 = vpop.permute.xlu2 %11316  ;;  %v11362_v34 = vpop.permute.xlu0 %11361  ;;  %v5422_v7 = vsel %vm396_vm6, %v11333_v60, %v16916_v56  ;;  %v16939_v11 = vunpack.i.h.bf16 %v16832_v13  ;;  %v5765_v37 = vsel %vm489_vm4, %v11278_v38, %v11279_v52  ;;  %v18264_v1 = vpack.c.bf16 %v16620_v15, %v16613_v16  ;;  %vm18272_vm6 = vmmov %vm18248_vm10 }
 0x59c   : > { %v11327_v12 = vpop.permute.xlu1 %11326  ;;  %v11364_v33 = vunpack.i.h.bf16 %v11362_v34  ;;  %v11363_v23 = vunpack.i.l.bf16 %v11362_v34  ;;  %v6088_v6 = vpack.c.bf16 %v5422_v7, %v16836_v4  ;;  %v16957_v38 = vunpack.i.h.bf16 %v16877_v58 }
 0x59d   : > { %v11329_v53 = vunpack.i.h.bf16 %v11327_v12  ;;  %v11328_v50 = vunpack.i.l.bf16 %v11327_v12  ;;  %6418 = vmatpush.bf16.msra.mxu3 %v18263_v44  ;;  %v11253_v12 = vunpack.i.l.bf16 %v16832_v13  ;;  %v11338_v13 = vunpack.i.l.bf16 %v16877_v58 }
 0x59e   : > { %v16941_v22 = vpack.c.bf16 %v11364_v33, %v11279_v52  ;;  %6331 = vmatpush.bf16.msrb.mxu0 %v6090_v24  ;;  %v5766_v34 = vsel %vm489_vm4, %v11363_v23, %v11364_v33  ;;  %v5764_v52 = vsel %vm489_vm4, %v11203_v31, %v18074_v36  ;;  %v11515_v16 = vpack.i.bf16 %v16916_v56, %v5422_v7 }
 0x59f   : > { %v16946_v59 = vpack.c.bf16 %v11329_v53, %v11244_v20  ;;  %6364 = vmatpush.bf16.msrb.mxu2 %v18264_v1  ;;  %v6136_v42 = vpack.c.bf16 %v5766_v34, %v5765_v37  ;;  %v5478_v60 = vsel %vm458_vm7, %v11328_v50, %v11329_v53  ;;  %v11259_v15 = vunpack.i.h.bf16 %v16830_v62  ;;  %vm18273_vm7 = vmmov %vm18272_vm6 }
 0x5a0   : > { %v6096_v44 = vpack.c.bf16 %v5478_v60, %v5477_v32  ;;  %v11258_v20 = vunpack.i.l.bf16 %v16830_v62  ;;  %v18265_v4 = vunpack.i.h.bf16 %v16549_v61  ;;  %vm18266_vm5 = vcmask 1039360  }
 0x5a1   : > { %11476 = vrot.lane.b32.xlu0 %v11475_v40, %s11607_s11  ;;  %6419 = vmatpush.bf16.msra.mxu3 %v6136_v42  ;;  %v5393_v31 = vsel %vm18266_vm5, %v11253_v12, %v16939_v11  ;;  %v11284_v23 = vunpack.i.h.bf16 %v16866_v2  ;;  %v18268_v42 = vpack.c.bf16 %v16763_v47, %v16746_v14 }
 0x5a2   : > { %6332 = vmatpush.bf16.msrb.mxu0 %v6088_v6  ;;  %v5763_v24 = vsel %vm489_vm4, %v11123_v46, %v18265_v4  ;;  %vm18267_vm4 = vmmov %vm18266_vm5  ;;  %v5680_v34 = vsel %vm5677_vm3, %v11258_v20, %v11259_v15  ;;  %v11500_v60 = vpack.i.bf16 %v16939_v11, %v5393_v31  ;;  %v11289_v4 = vunpack.i.h.bf16 %v16856_v27 }
 0x5a3   : > { %11516 = vrot.lane.b32.xlu1 %v11515_v16, %s11607_s11  ;;  %6365 = vmatpush.bf16.msrb.mxu2 %v6096_v44  ;;  %v11352_v58 = vpop.permute.xlu2 %11351  ;;  %v16970_v40 = vpop.permute.xlu0 %11366  ;;  %v6134_v33 = vpack.c.bf16 %v5764_v52, %v5763_v24  ;;  %v5394_v46 = vsel %vm18267_vm4, %v11338_v13, %v16957_v38  ;;  %v18269_v13 = vpack.c.bf16 %v16625_v19, %v16616_v10  ;;  %v11288_v24 = vunpack.i.l.bf16 %v16856_v27 }
 0x5a4   : > { %v11354_v53 = vunpack.i.h.bf16 %v11352_v58  ;;  %v11353_v50 = vunpack.i.l.bf16 %v11352_v58  ;;  %v11342_v62 = vpop.permute.xlu1 %11341  ;;  %v11369_v7 = vunpack.i.h.bf16 %v16970_v40  ;;  %v6084_v20 = vpack.c.bf16 %v5394_v46, %v5393_v31 }
 0x5a5   : > { %v11344_v32 = vunpack.i.h.bf16 %v11342_v62  ;;  %v11343_v37 = vunpack.i.l.bf16 %v11342_v62  ;;  %6420 = vmatpush.bf16.msra.mxu3 %v6134_v33  ;;  %v11520_v14 = vpack.i.bf16 %v16957_v38, %v5394_v46  ;;  %v11273_v58 = vunpack.i.l.bf16 %v16850_v51 }
 0x5a6   : > { %v5824_v12 = vsel %vm5820_vm14, %v11353_v50, %v11354_v53  ;;  %v16982_v1 = vpack.c.bf16 %v11369_v7, %v11284_v23  ;;  %6333 = vmatpush.bf16.msrb.mxu0 %v18268_v42  ;;  %v11495_v27 = vpack.i.bf16 %v16748_v35, %v16763_v47  ;;  %v5737_v47 = vsel %vm18272_vm6, %v11288_v24, %v11289_v4 }
 0x5a7   : > { %v11490_v6 = vpack.i.bf16 %v11354_v53, %v5824_v12  ;;  %v16988_v44 = vpack.c.bf16 %v11344_v32, %v11259_v15  ;;  %v5681_v52 = vsel %vm5677_vm3, %v11343_v37, %v11344_v32  ;;  %6366 = vmatpush.bf16.msrb.mxu2 %v18269_v13  ;;  %v11274_v15 = vunpack.i.h.bf16 %v16850_v51 }
 0x5a8   : > { %v6124_v16 = vpack.c.bf16 %v5681_v52, %v5680_v34  ;;  %v11510_v37 = vpack.i.bf16 %v16643_v26, %v16659_v45  ;;  %v17012_v51 = vunpack.i.h.bf16 %v16875_v18  ;;  %v18270_v34 = vpack.c.bf16 %v16659_v45, %v16650_v57 }
 0x5a9   : > { %11491 = vrot.lane.b32.xlu2 %v11490_v6, %s11607_s11  ;;  %11501 = vrot.lane.b32.xlu0 %v11500_v60, %s11607_s11  ;;  %v18271_v12 = vpack.c.bf16 %v16807_v41, %v16797_v30  ;;  %v5651_v6 = vsel %vm5648_vm9, %v11273_v58, %v11274_v15  ;;  %v18274_v30 = vmax.f32 %v16400_v5, 0.0  ;;  %v18275_v41 = vmax.f32 %v16496_v0, 0.0 }
 0x5aa   : > { %6388 = vmatpush.bf16.msra.mxu1 %v6124_v16  ;;  %6334 = vmatpush.bf16.msrb.mxu0 %v6084_v20  ;;  %v11368_v20 = vunpack.i.l.bf16 %v16970_v40  ;;  %v11298_v24 = vunpack.i.l.bf16 %v16870_v3  ;;  %v11505_v58 = vpack.i.bf16 %v16635_v43, %v16650_v57  ;;  %v18276_v0 = vmax.f32 %v16374_v29, 0.0 }
 0x5ab   : > { %11521 = vrot.lane.b32.xlu1 %v11520_v14, %s11607_s11  ;;  %v11372_v10 = vpop.permute.xlu2 %11371  ;;  %v17002_v19 = vpop.permute.xlu0 %11376  ;;  %v6080_v14 = vpack.c.bf16 %v18275_v41, %v18274_v30  ;;  %v18072_v57 = vunpack.i.h.bf16 %v16926_v55  ;;  %v11143_v40 = vunpack.i.l.bf16 %v16703_v25  ;;  %v18283_v41 = vld [vmem:[#allocation14_spill] sm:$0xff] }
 0x5ac   : > { %v11374_v31 = vunpack.i.h.bf16 %v11372_v10  ;;  %v11373_v33 = vunpack.i.l.bf16 %v11372_v10  ;;  %v11357_v53 = vpop.permute.xlu1 %11356  ;;  %v17005_v50 = vunpack.i.h.bf16 %v17002_v19  ;;  %v5623_v29 = vsel %vm5619_vm1, %v11368_v20, %v11369_v7  ;;  %v18282_v20 = vld [vmem:[#allocation15_spill] sm:$0xff] }
 0x5ad   : > { %v11359_v62 = vunpack.i.h.bf16 %v11357_v53  ;;  %v11358_v32 = vunpack.i.l.bf16 %v11357_v53 }
 0x5ae   : > { %v17014_v46 = vpack.c.bf16 %v11374_v31, %v11289_v4  ;;  %6335 = vmatpush.bf16.msrb.mxu0 %v18270_v34  ;;  %6389 = vmatpush.bf16.msra.mxu1 %v18271_v12  ;;  %v5738_v42 = vsel %vm18273_vm7, %v11373_v33, %v11374_v31  ;;  %v11299_v4 = vunpack.i.h.bf16 %v16870_v3  ;;  %v18277_v31 = vmax.f32 %v16417_v54, 0.0  ;;  %v18279_v12 = vld [vmem:[#allocation28_spill] sm:$0xff] }
 0x5af   : > { %v17024_v60 = vpack.c.bf16 %v11359_v62, %v11274_v15  ;;  %v5652_v52 = vsel %vm5648_vm9, %v11358_v32, %v11359_v62  ;;  %v6132_v13 = vpack.c.bf16 %v5738_v42, %v5737_v47  ;;  %v11283_v15 = vunpack.i.l.bf16 %v16866_v2  ;;  %v18280_v47 = vld [vmem:[#allocation27_spill] sm:$0xff]  ;;  %v9985_v2 = vld [vmem:[%s17957_s3 + $0x4] sm:$0xf] }
 0x5b0   : > { %v6120_v16 = vpack.c.bf16 %v5652_v52, %v5651_v6  ;;  %v6078_v33 = vpack.c.bf16 %v18277_v31, %v18276_v0  ;;  %v18073_v54 = vunpack.i.h.bf16 %v16703_v25  ;;  %v18278_v34 = vpack.c.bf16 %v16715_v39, %v16710_v48 }
 0x5b1   : > { %11496 = vrot.lane.b32.xlu2 %v11495_v27, %s11607_s11  ;;  %11511 = vrot.lane.b32.xlu0 %v11510_v37, %s11607_s11  ;;  %v18281_v42 = vpack.c.bf16 %v18279_v12, %v18280_v47  ;;  %v5709_v6 = vsel %vm5706_vm12, %v11298_v24, %v11299_v4  ;;  %v5622_v48 = vsel %vm5619_vm1, %v11283_v15, %v11284_v23  ;;  %v9630_v23 = vld [vmem:[%s17957_s3 + $0x1c] sm:$0xf0] }
 0x5b2   : > { %6390 = vmatpush.bf16.msra.mxu1 %v6120_v16  ;;  %6421 = vmatpush.bf16.msra.mxu3 %v6132_v13  ;;  %v11378_v13 = vunpack.i.l.bf16 %v17002_v19  ;;  %v6116_v16 = vpack.c.bf16 %v5623_v29, %v5622_v48  ;;  %v11293_v19 = vunpack.i.l.bf16 %v16875_v18  ;;  %v17101_v24 = vor.u32 %v9985_v2, %v9630_v23  ;;  %v18284_v18 = vld [vmem:[#allocation29_spill] sm:$0xff]  ;;  %v9986_v29 = vld [vmem:[%s17957_s3 + $0xc] sm:$0xf]  ;;  %v18289_v48 = vld [vmem:[#allocation4_spill] sm:$0xff] }
 0x5b3   : > { %11526 = vrot.lane.b32.xlu1 %v16421_v49, %s11607_s11  ;;  %6336 = vmatpush.bf16.msrb.mxu0 %v6080_v14  ;;  %v11382_v10 = vpop.permute.xlu2 %11381  ;;  %v17044_v5 = vpop.permute.xlu0 %11386  ;;  %v11318_v49 = vunpack.i.l.bf16 %v16926_v55  ;;  %v6093_v31 = vpack.c.bf16 %v16892_v17, %v18284_v18  ;;  %v18293_v2 = vld [vmem:[#allocation11_spill] sm:$0xff] }
 0x5b4   : > { %v11384_v3 = vunpack.i.h.bf16 %v11382_v10  ;;  %v11383_v53 = vunpack.i.l.bf16 %v11382_v10  ;;  %v17050_v27 = vpop.permute.xlu1 %11411  ;;  %v18080_v62 = vunpack.i.h.bf16 %v17044_v5  ;;  %v5594_v15 = vsel %vm5590_vm0, %v11378_v13, %v17005_v50  ;;  %6367 = vmatmul.bf16.vlgmr.msrb.gmra.mxu2 %v17101_v24 }
 0x5b5   : > { %v18079_v32 = vunpack.i.h.bf16 %v17050_v27  ;;  %v5708_v30 = vsel %vm5706_vm12, %v11318_v49, %v18072_v57  ;;  %v11550_v12 = vpack.i.bf16 %v17005_v50, %v5594_v15  ;;  %v5593_v47 = vsel %vm5590_vm0, %v11293_v19, %v17012_v51 }
 0x5b6   : > { %v17060_v37 = vpack.c.bf16 %v11384_v3, %v11299_v4  ;;  %6391 = vmatpush.bf16.msra.mxu1 %v18278_v34  ;;  %6422 = vmatpush.bf16.msra.mxu3 %v18281_v42  ;;  %v5710_v52 = vsel %vm5706_vm12, %v11383_v53, %v11384_v3  ;;  %v5707_v4 = vsel %vm5706_vm12, %v11143_v40, %v18073_v54  ;;  %v18285_v3 = vld [vmem:[#allocation7_spill] sm:$0xff]  ;;  %v18286_v53 = vld [vmem:[#allocation5_spill] sm:$0xff]  ;;  %v11388_v45 = vunpack.i.l.bf16 %v17044_v5 }
 0x5b7   : > { %v17075_v7 = vpack.c.bf16 %v18079_v32, %v18080_v62  ;;  %6337 = vmatpush.bf16.msrb.mxu0 %v6078_v33  ;;  %v6128_v39 = vpack.c.bf16 %v5710_v52, %v5709_v6  ;;  %v6126_v0 = vpack.c.bf16 %v5708_v30, %v5707_v4  ;;  %v18287_v49 = vpack.c.bf16 %v18285_v3, %v18286_v53  ;;  %v9638_v34 = vld [vmem:[%s17957_s3 + $0x24] sm:$0xf0]  ;;  %v9628_v52 = vld [vmem:[%s17957_s3] sm:$0xf]  ;;  %v9988_v40 = vld [vmem:[%s17957_s3 + $0x18] sm:$0xf0] }
 0x5b8   : > { %v17130_v42 = vor.u32 %v9986_v29, %v9638_v34  ;;  %v6112_v6 = vpack.c.bf16 %v5594_v15, %v5593_v47  ;;  %v18292_v30 = vld [vmem:[#allocation13_spill] sm:$0xff]  ;;  %v9989_v4 = vld [vmem:[%s17957_s3 + $0x20] sm:$0xf0] }
 0x5b9   : > { %11506 = vrot.lane.b32.xlu2 %v11505_v58, %s11607_s11  ;;  %11536 = vrot.lane.b32.xlu0 %v18282_v20, %s11607_s11  ;;  %v17143_v20 = vor.u32 %v9988_v40, %v9628_v52  ;;  %v18294_v23 = vpack.c.bf16 %v18292_v30, %v18293_v2  ;;  %v18296_v53 = vld [vmem:[#allocation25_spill] sm:$0xff]  ;;  %v324_v29 = vld [vmem:[%s17958_s4] sm:$0xff]  ;;  %v18298_v40 = vpack.c.bf16 %v16748_v35, %v16733_v8 }
 0x5ba   : > { %6392 = vmatpush.bf16.msra.mxu1 %v6116_v16  ;;  %6423 = vmatpush.bf16.msra.mxu3 %v6128_v39  ;;  %18288 = vst [vmem:[#allocation28_spill] sm:$0xff] %v17130_v42  ;;  %v18290_v39 = vld [vmem:[#allocation3_spill] sm:$0xff]  ;;  %v18291_v16 = vld [vmem:[#allocation17_spill] sm:$0xff]  ;;  %v9993_v30 = vld [vmem:[%s17957_s3 + $0x44] sm:$0xf] }
 0x5bb   : > { %11541 = vrot.lane.b32.xlu1 %v18283_v41, %s11607_s11  ;;  %v17096_v14 = vpop.permute.xlu0 %11391  ;;  %v11555_v13 = vpack.i.bf16 %v18290_v39, %v18289_v48  ;;  %v9636_v41 = vld [vmem:[%s17957_s3 + $0x8] sm:$0xf]  ;;  %6338 = vmatmul.bf16.vlgmr.msrb.gmra.mxu0 %v17143_v20  ;;  %v9992_v52 = vld [vmem:[%s17957_s3 + $0x3c] sm:$0xf]  ;;  %v9666_v35 = vld [vmem:[%s17957_s3 + $0x5c] sm:$0xf0] }
 0x5bc   : > { %v17105_v58 = vpop.permute.xlu1 %11416  ;;  %v18078_v10 = vunpack.i.h.bf16 %v17096_v14  ;;  %v17171_v34 = vor.u32 %v9989_v4, %v9636_v41  ;;  %v18300_v8 = vld [vmem:[#allocation2_spill] sm:$0xff]  ;;  %v9995_v41 = vld [vmem:[%s17957_s3 + $0x50] sm:$0xf0] }
 0x5bd   : > { %v18077_v33 = vunpack.i.h.bf16 %v17105_v58  ;;  %v11560_v2 = vpack.i.bf16 %v18300_v8, %v18296_v53 }
 0x5be   : > { %6393 = vmatpush.bf16.msra.mxu1 %v18287_v49  ;;  %6424 = vmatpush.bf16.msra.mxu3 %v6126_v0  ;;  %v18297_v49 = vpack.c.bf16 %v18296_v53, %v18289_v48  ;;  %v9996_v53 = vld [vmem:[%s17957_s3 + $0x58] sm:$0xf0] }
 0x5bf   : > { %v17126_v17 = vpack.c.bf16 %v18077_v33, %v18078_v10 }
 0x5c1   : > { %11531 = vrot.lane.b32.xlu2 %v18291_v16, %s11607_s11  ;;  %11551 = vrot.lane.b32.xlu0 %v11550_v12, %s11607_s11  ;;  %v11545_v12 = vpack.i.bf16 %v17012_v51, %v5593_v47  ;;  %v9658_v47 = vld [vmem:[%s17957_s3 + $0x54] sm:$0xf0] }
 0x5c2   : > { %6533 = vmatpush.bf16.msrb.mxu3 %v6093_v31  ;;  %6394 = vmatpush.bf16.msra.mxu1 %v6112_v6  ;;  %v18295_v31 = vld [vmem:[#allocation33_spill] sm:$0xff]  ;;  %v17194_v48 = vor.u32 %v9992_v52, %v9658_v47  ;;  %v9999_v52 = vld [vmem:[%s17957_s3 + $0x74] sm:$0xf]  ;;  %v9686_v47 = vld [vmem:[%s17957_s3 + $0x8c] sm:$0xf0] }
 0x5c3   : > { %6425 = vmatmul.bf16.vlgmr.msra.gmra.mxu3 %v17130_v42  ;;  %11556 = vrot.lane.b32.xlu1 %v11555_v13, %s11607_s11  ;;  %v17150_v19 = vpop.permute.xlu0 %11396  ;;  %v6089_v3 = vpack.c.bf16 %v16916_v56, %v18295_v31  ;;  %v325_v56 = vld [vmem:[%s17958_s4 + $0x8] sm:$0xff]  ;;  %v6085_v13 = vpack.c.bf16 %v16957_v38, %v16939_v11  ;;  %v327_v16 = vld [vmem:[%s17958_s4 + $0x18] sm:$0xff]  ;;  %v328_v11 = vld [vmem:[%s17958_s4 + $0x20] sm:$0xff]  ;;  %v18302_v31 = vpack.c.bf16 %v16643_v26, %v16635_v43 }
 0x5c4   : > { %v17158_v15 = vpop.permute.xlu1 %11421  ;;  %v18076_v0 = vunpack.i.h.bf16 %v17150_v19  ;;  %18299 = vst [vmem:[#allocation27_spill] sm:$0xff] %v17194_v48  ;;  %6372 = vmatmul.bf16.gmra.mxu2 %v17194_v48  ;;  %v9656_v38 = vld [vmem:[%s17957_s3 + $0x38] sm:$0xf]  ;;  %v18304_v26 = vld [vmem:[#allocation8_spill] sm:$0xff] }
 0x5c5   : > { %v18075_v18 = vunpack.i.h.bf16 %v17158_v15  ;;  %v17222_v4 = vor.u32 %v9995_v41, %v9656_v38  ;;  %v10002_v38 = vld [vmem:[%s17957_s3 + $0x88] sm:$0xf0] }
 0x5c6   : > { %6534 = vmatpush.bf16.msrb.mxu3 %v18294_v23  ;;  %6395 = vmatpush.bf16.msra.mxu1 %v18297_v49  ;;  %v17210_v23 = vor.u32 %v9993_v30, %v9666_v35  ;;  %v326_v49 = vld [vmem:[%s17958_s4 + $0x10] sm:$0xff]  ;;  %v10000_v30 = vld [vmem:[%s17957_s3 + $0x7c] sm:$0xf]  ;;  %v9694_v35 = vld [vmem:[%s17957_s3 + $0x94] sm:$0xf0] }
 0x5c7   : > { %v17178_v6 = vpack.c.bf16 %v18075_v18, %v18076_v0 }
 0x5c8   : > { %18301 = vst [vmem:[#allocation15_spill] sm:$0xff] %v17210_v23 }
 0x5c9   : > { %11546 = vrot.lane.b32.xlu2 %v11545_v12, %s11607_s11  ;;  %7337 = vperm.xlu0 %11062, %v324_v29   ;;  %v330_v29 = vld [vmem:[%s17958_s4 + $0x30] sm:$0xff]  ;;  %v17244_v12 = vpop.permute.xlu2 %11401 }
 0x5ca   : > { %6535 = vmatpush.bf16.msrb.mxu3 %v6089_v3  ;;  %6396 = vmatmul.bf16.vlgmr.msra.gmra.mxu1 %v17171_v34  ;;  %v9664_v3 = vld [vmem:[%s17957_s3 + $0x40] sm:$0xf] }
 0x5cb   : > { %7342 = vperm.xlu1 %11063, %v325_v56   ;;  %6343 = vmatmul.bf16.gmra.mxu0 %v17222_v4  ;;  %v17241_v43 = vor.u32 %v9996_v53, %v9664_v3  ;;  %v331_v56 = vld [vmem:[%s17958_s4 + $0x38] sm:$0xff]  ;;  %v10003_v53 = vld [vmem:[%s17957_s3 + $0x90] sm:$0xf0] }
 0x5cc   : > { %v9692_v3 = vld [vmem:[%s17957_s3 + $0x78] sm:$0xf] }
 0x5cd   : > { %18303 = vst [vmem:[#allocation14_spill] sm:$0xff] %v17241_v43 }
 0x5ce   : > { %6536 = vmatpush.bf16.msrb.mxu3 %v18298_v40  ;;  %v18305_v40 = vld [vmem:[#allocation9_spill] sm:$0xff] }
 0x5d1   : > { %11561 = vrot.lane.b32.xlu2 %v11560_v2, %s11607_s11  ;;  %7352 = vperm.xlu0 %11062, %v327_v16   ;;  %v329_v16 = vld [vmem:[%s17958_s4 + $0x28] sm:$0xff]  ;;  %v17269_v2 = vor.u32 %v10000_v30, %v9694_v35  ;;  %v10007_v30 = vld [vmem:[%s17957_s3 + $0xb4] sm:$0xf]  ;;  %v9722_v35 = vld [vmem:[%s17957_s3 + $0xcc] sm:$0xf0]  ;;  %s9984_s11 = sshll.u32 %s18358_s25, 5 }
 0x5d2   : > { %6537 = vmatpush.bf16.msrb.mxu3 %v6085_v13  ;;  %v17257_v13 = vor.u32 %v9999_v52, %v9686_v47  ;;  %v9714_v52 = vld [vmem:[%s17957_s3 + $0xc4] sm:$0xf0]  ;;  %s17927_s13 = scalar_lea.vmem %s17961_s7, %s9984_s11 }
 0x5d3   : > { %6430 = vmatmul.bf16.gmra.mxu3 %v17210_v23  ;;  %7357 = vperm.xlu1 %11063, %v328_v11   ;;  %18307 = vst [vmem:[#allocation7_spill] sm:$0xff] %v17269_v2  ;;  %v9684_v11 = vld [vmem:[%s17957_s3 + $0x70] sm:$0xf] }
 0x5d4   : > { %18306 = vst [vmem:[#allocation29_spill] sm:$0xff] %v17257_v13  ;;  %6377 = vmatmul.bf16.gmra.mxu2 %v17257_v13  ;;  %v17277_v41 = vor.u32 %v10002_v38, %v9684_v11  ;;  %v17311_v38 = vor.u32 %v10007_v30, %v9722_v35  ;;  %v9720_v30 = vld [vmem:[%s17957_s3 + $0xb0] sm:$0xf]  ;;  %v10010_v35 = vld [vmem:[%s17957_s3 + $0xc8] sm:$0xf0] }
 0x5d6   : > { %6538 = vmatpush.bf16.msrb.mxu3 %v18302_v31  ;;  %v17279_v31 = vpop.permute.xlu2 %11406  ;;  %18310 = vst [vmem:[#allocation3_spill] sm:$0xff] %v17311_v38 }
 0x5d9   : > { %7347 = vperm.xlu2 %11064, %v326_v49   ;;  %7367 = vperm.xlu0 %11062, %v330_v29   ;;  %v11447_v49 = vpop.permute.xlu1 %11446  ;;  %v11427_v29 = vpop.permute.xlu0 %11426 }
 0x5da   : > { %6539 = vmatpush.bf16.msrb.mxu3 %v18304_v26  ;;  %6401 = vmatmul.bf16.gmra.mxu1 %v17241_v43  ;;  %v17289_v26 = vor.u32 %v10003_v53, %v9692_v3  ;;  %v9712_v3 = vld [vmem:[%s17957_s3 + $0xa8] sm:$0xf]  ;;  %v10009_v53 = vld [vmem:[%s17957_s3 + $0xc0] sm:$0xf0]  ;;  %v11448_v57 = vunpack.i.l.bf16 %v11447_v49  ;;  %v11428_v18 = vunpack.i.l.bf16 %v11427_v29 }
 0x5db   : > { %7372 = vperm.xlu1 %11063, %v331_v56   ;;  %6348 = vmatmul.bf16.gmra.mxu0 %v17277_v41  ;;  %v10006_v56 = vld [vmem:[%s17957_s3 + $0xac] sm:$0xf] }
 0x5dc   : > { %18308 = vst [vmem:[#allocation5_spill] sm:$0xff] %v17289_v26  ;;  %v17298_v47 = vor.u32 %v10006_v56, %v9714_v52  ;;  %v17319_v56 = vor.u32 %v10009_v53, %v9712_v3  ;;  %v11449_v52 = vunpack.i.h.bf16 %v11447_v49  ;;  %v11413_v3 = vunpack.i.l.bf16 %v17050_v27 }
 0x5dd   : > { %v11404_v53 = vunpack.i.h.bf16 %v17244_v12  ;;  %v11429_v49 = vunpack.i.h.bf16 %v11427_v29 }
 0x5de   : > { %6540 = vmatpush.bf16.msrb.mxu3 %v18305_v40  ;;  %18309 = vst [vmem:[#allocation4_spill] sm:$0xff] %v17298_v47  ;;  %v17300_v40 = vpop.permute.xlu2 %11441 }
 0x5e1   : > { %7362 = vperm.xlu2 %11064, %v329_v16   ;;  %v11432_v11 = vpop.permute.xlu0 %11431 }
 0x5e2   : > { %v11434_v54 = vunpack.i.h.bf16 %v11432_v11  ;;  %v11433_v36 = vunpack.i.l.bf16 %v11432_v11 }
 0x5e3   : > { %6435 = vmatmul.bf16.gmra.mxu3 %v17269_v2  ;;  %v5984_v2 = vsel %vm5969_vm13, %v11448_v57, %v11449_v52  ;;  %v18311_v57 = vunpack.i.h.bf16 %v17044_v5 }
 0x5e4   : > { %6382 = vmatmul.bf16.gmra.mxu2 %v17298_v47  ;;  %v6000_v23 = vsel %vm5969_vm13, %v11433_v36, %v11434_v54  ;;  %v17335_v47 = vor.u32 %v10010_v35, %v9720_v30 }
 0x5e5   : > { %v5998_v36 = vsel %vm5969_vm13, %v11388_v45, %v18311_v57  ;;  %v11443_v57 = vunpack.i.l.bf16 %v17300_v40 }
 0x5ea   : > { %6406 = vmatmul.bf16.gmra.mxu1 %v17289_v26 }
 0x5eb   : > { %6353 = vmatmul.bf16.gmra.mxu0 %v17319_v56 }
 0x5ec   : > { %v17302_v16 = vpop.permute.xlu1 %11451 }
 0x5f3   : > { %6440 = vmatmul.bf16.gmra.mxu3 %v17311_v38  ;;  %v11403_v38 = vunpack.i.l.bf16 %v17244_v12  ;;  %v18312_v12 = vunpack.i.h.bf16 %v17050_v27 }
 0x5f4   : > { %v11487_v11 = vpop.permute.xlu2 %11486  ;;  %v11462_v0 = vpop.permute.xlu1 %11461 }
 0x5f5   : > { %v11489_v33 = vunpack.i.h.bf16 %v11487_v11  ;;  %v11488_v10 = vunpack.i.l.bf16 %v11487_v11  ;;  %v11464_v32 = vunpack.i.h.bf16 %v11462_v0  ;;  %v11463_v62 = vunpack.i.l.bf16 %v11462_v0  ;;  %v11437_v11 = vpop.permute.xlu0 %11436 }
 0x5f6   : > { %v5983_v0 = vsel %vm5969_vm13, %v11428_v18, %v11429_v49  ;;  %v11439_v5 = vunpack.i.h.bf16 %v11437_v11  ;;  %v11438_v45 = vunpack.i.l.bf16 %v11437_v11  ;;  %v11454_v18 = vunpack.i.h.bf16 %v17302_v16 }
 0x5f7   : > { %v6157_v42 = vpack.c.bf16 %v11489_v33, %v11449_v52  ;;  %v5985_v13 = vsel %vm5969_vm13, %v11488_v10, %v11489_v33  ;;  %v17338_v29 = vpack.c.bf16 %v11464_v32, %v11434_v54  ;;  %v6001_v26 = vsel %vm5969_vm13, %v11463_v62, %v11464_v32 }
 0x5f8   : > { %v6156_v48 = vpack.c.bf16 %v5985_v13, %v5984_v2  ;;  %v6172_v43 = vpack.c.bf16 %v6001_v26, %v6000_v23  ;;  %v5999_v10 = vsel %vm5969_vm13, %v11413_v3, %v18312_v12  ;;  %v6155_v54 = vpack.c.bf16 %v11429_v49, %v11404_v53 }
 0x5f9   : > { %6649 = vmatpush.bf16.msra.mxu3 %v6157_v42  ;;  %v5982_v62 = vsel %vm5969_vm13, %v11403_v38, %v11404_v53  ;;  %v6170_v33 = vpack.c.bf16 %v5999_v10, %v5998_v36  ;;  %v11393_v13 = vunpack.i.l.bf16 %v17096_v14  ;;  %v18313_v3 = vunpack.i.h.bf16 %v17096_v14 }
 0x5fa   : > { %6446 = vmatpush.bf16.msra.mxu0 %v6156_v48  ;;  %10524 = vmatpush.bf16.msrb.mxu1 %v6156_v48  ;;  %v6154_v32 = vpack.c.bf16 %v5983_v0, %v5982_v62  ;;  %v18314_v49 = vunpack.i.h.bf16 %v17105_v58  ;;  %v11444_v0 = vunpack.i.h.bf16 %v17300_v40  ;;  %v11398_v14 = vunpack.i.l.bf16 %v17150_v19 }
 0x5fb   : > { %6475 = vmatpush.bf16.msra.mxu2 %v6172_v43  ;;  %6411 = vmatmul.bf16.gmra.mxu1 %v17335_v47  ;;  %v11418_v43 = vunpack.i.l.bf16 %v17105_v58  ;;  %v5994_v53 = vsel %vm5969_vm13, %v11393_v13, %v18313_v3 }
 0x5fc   : > { %v5992_v58 = vsel %vm5969_vm13, %v11443_v57, %v11444_v0 }
 0x5fd   : > { %6650 = vmatpush.bf16.msra.mxu3 %v6155_v54  ;;  %v11457_v42 = vpop.permute.xlu0 %11456  ;;  %v5995_v11 = vsel %vm5969_vm13, %v11418_v43, %v18314_v49  ;;  %v18315_v43 = vunpack.i.h.bf16 %v17150_v19 }
 0x5fe   : > { %6447 = vmatpush.bf16.msra.mxu0 %v6154_v32  ;;  %10525 = vmatpush.bf16.msrb.mxu1 %v6154_v32  ;;  %v6166_v62 = vpack.c.bf16 %v5995_v11, %v5994_v53  ;;  %v11423_v32 = vunpack.i.l.bf16 %v17158_v15  ;;  %v11458_v3 = vunpack.i.l.bf16 %v11457_v42 }
 0x5ff   : > { %6476 = vmatpush.bf16.msra.mxu2 %v6170_v33  ;;  %v5990_v13 = vsel %vm5969_vm13, %v11398_v14, %v18315_v43 }
 0x603   : > { %6541 = vmatmul.bf16.vlgmr.msrb.gmra.mxu3 %v17143_v20  ;;  %v11492_v27 = vpop.permute.xlu2 %11491  ;;  %v5996_v20 = vsel %vm5969_vm13, %v11438_v45, %v11439_v5 }
 0x604   : > { %v11494_v48 = vunpack.i.h.bf16 %v11492_v27  ;;  %v11467_v23 = vpop.permute.xlu1 %11466  ;;  %v11493_v40 = vunpack.i.l.bf16 %v11492_v27 }
 0x605   : > { %v11469_v2 = vunpack.i.h.bf16 %v11467_v23  ;;  %v11468_v26 = vunpack.i.l.bf16 %v11467_v23 }
 0x606   : > { %v17354_v38 = vpack.c.bf16 %v11494_v48, %v11454_v18  ;;  %v5989_v27 = vsel %vm5969_vm13, %v11493_v40, %v11494_v48  ;;  %v9646_v40 = vld [vmem:[%s17957_s3 + $0x2c] sm:$0xf0] }
 0x607   : > { %v17356_v52 = vpack.c.bf16 %v11469_v2, %v11439_v5  ;;  %v5997_v30 = vsel %vm5969_vm13, %v11468_v26, %v11469_v2  ;;  %v18316_v2 = vunpack.i.h.bf16 %v17158_v15 }
 0x608   : > { %v6168_v35 = vpack.c.bf16 %v5997_v30, %v5996_v20  ;;  %v11453_v20 = vunpack.i.l.bf16 %v17302_v16  ;;  %v11409_v16 = vunpack.i.h.bf16 %v17279_v31 }
 0x609   : > { %v5991_v26 = vsel %vm5969_vm13, %v11423_v32, %v18316_v2 }
 0x60a   : > { %6477 = vmatpush.bf16.msra.mxu2 %v6168_v35  ;;  %v11459_v35 = vunpack.i.h.bf16 %v11457_v42  ;;  %v6162_v53 = vpack.c.bf16 %v5991_v26, %v5990_v13  ;;  %v11408_v42 = vunpack.i.l.bf16 %v17279_v31  ;;  %v18348_v31 = vld [vmem:[#allocation14_spill] sm:$0xff] }
 0x60b   : > { %v11472_v36 = vpop.permute.xlu0 %11471  ;;  %v11497_v12 = vpop.permute.xlu2 %11496 }
 0x60c   : > { %v11474_v10 = vunpack.i.h.bf16 %v11472_v36  ;;  %v11473_v54 = vunpack.i.l.bf16 %v11472_v36  ;;  %v11499_v49 = vunpack.i.h.bf16 %v11497_v12  ;;  %v11498_v19 = vunpack.i.l.bf16 %v11497_v12 }
 0x60d   : > { %v11482_v33 = vpop.permute.xlu1 %11481  ;;  %v5980_v12 = vsel %vm5969_vm13, %v11458_v3, %v11459_v35  ;;  %v5986_v13 = vsel %vm5969_vm13, %v11408_v42, %v11409_v16 }
 0x60e   : > { %v17370_v5 = vpack.c.bf16 %v11474_v10, %v11444_v0  ;;  %6478 = vmatpush.bf16.msra.mxu2 %v6166_v62  ;;  %v5993_v45 = vsel %vm5969_vm13, %v11473_v54, %v11474_v10  ;;  %v11484_v57 = vunpack.i.h.bf16 %v11482_v33  ;;  %v11483_v36 = vunpack.i.l.bf16 %v11482_v33 }
 0x60f   : > { %v6164_v23 = vpack.c.bf16 %v5993_v45, %v5992_v58  ;;  %v5988_v62 = vsel %vm5969_vm13, %v11453_v20, %v11454_v18  ;;  %v9987_v18 = vld [vmem:[%s17957_s3 + $0x14] sm:$0xf] }
 0x610   : > { %v6160_v14 = vpack.c.bf16 %v5989_v27, %v5988_v62  ;;  %v5978_v45 = vsel %vm5969_vm13, %v11483_v36, %v11484_v57  ;;  %v6151_v2 = vpack.c.bf16 %v11499_v49, %v11484_v57  ;;  %v17406_v27 = vor.u32 %v9987_v18, %v9646_v40  ;;  %v18319_v62 = vld [vmem:[#allocation31_spill] sm:$0xff] }
 0x612   : > { %6479 = vmatpush.bf16.msra.mxu2 %v6164_v23  ;;  %v5979_v23 = vsel %vm5969_vm13, %v11498_v19, %v11499_v49 }
 0x613   : > { %6546 = vmatmul.bf16.gmra.mxu3 %v17222_v4  ;;  %v17382_v30 = vpop.permute.xlu0 %11476  ;;  %v11507_v10 = vpop.permute.xlu2 %11506 }
 0x614   : > { %v11479_v11 = vunpack.i.h.bf16 %v17382_v30  ;;  %v11478_v15 = vunpack.i.l.bf16 %v17382_v30 }
 0x615   : > { %v11517_v0 = vpop.permute.xlu1 %11516 }
 0x616   : > { %v11519_v4 = vunpack.i.h.bf16 %v11517_v0  ;;  %v11518_v54 = vunpack.i.l.bf16 %v11517_v0  ;;  %6480 = vmatpush.bf16.msra.mxu2 %v6162_v53  ;;  %v5987_v33 = vsel %vm5969_vm13, %v11478_v15, %v11479_v11  ;;  %v6150_v53 = vpack.c.bf16 %v5979_v23, %v5978_v45 }
 0x618   : > { %v6153_v48 = vpack.c.bf16 %v11519_v4, %v11459_v35  ;;  %v5981_v32 = vsel %vm5969_vm13, %v11518_v54, %v11519_v4  ;;  %v6158_v35 = vpack.c.bf16 %v5987_v33, %v5986_v13  ;;  %v18317_v54 = vld [vmem:[#allocation10_spill] sm:$0xff] }
 0x619   : > { %v6152_v58 = vpack.c.bf16 %v5981_v32, %v5980_v12  ;;  %v18318_v42 = vunpack.i.h.bf16 %v18317_v54  ;;  %v11509_v32 = vunpack.i.h.bf16 %v11507_v10 }
 0x61a   : > { %6651 = vmatpush.bf16.msra.mxu3 %v6153_v48  ;;  %6481 = vmatpush.bf16.msra.mxu2 %v6160_v14  ;;  %v18320_v48 = vunpack.i.h.bf16 %v18319_v62  ;;  %v11508_v14 = vunpack.i.l.bf16 %v11507_v10 }
 0x61b   : > { %6448 = vmatpush.bf16.msra.mxu0 %v6152_v58  ;;  %10526 = vmatpush.bf16.msrb.mxu1 %v6152_v58  ;;  %v11502_v43 = vpop.permute.xlu0 %11501  ;;  %v11532_v36 = vpop.permute.xlu2 %11531 }
 0x61c   : > { %v11504_v26 = vunpack.i.h.bf16 %v11502_v43  ;;  %v11503_v20 = vunpack.i.l.bf16 %v11502_v43  ;;  %v6123_v12 = vpack.c.bf16 %v18320_v48, %v18318_v42  ;;  %v11534_v43 = vunpack.i.h.bf16 %v11532_v36  ;;  %v9644_v48 = vld [vmem:[%s17957_s3 + $0x10] sm:$0xf] }
 0x61d   : > { %v11522_v3 = vpop.permute.xlu1 %11521  ;;  %v11533_v13 = vunpack.i.l.bf16 %v11532_v36 }
 0x61e   : > { %v11524_v19 = vunpack.i.h.bf16 %v11522_v3  ;;  %v11523_v15 = vunpack.i.l.bf16 %v11522_v3  ;;  %6652 = vmatpush.bf16.msra.mxu3 %v6151_v2  ;;  %6482 = vmatpush.bf16.msra.mxu2 %v6158_v35  ;;  %v5976_v0 = vsel %vm5969_vm13, %v11503_v20, %v11504_v26  ;;  %v5974_v2 = vsel %vm5969_vm13, %v11508_v14, %v11509_v32  ;;  %v10011_v14 = vld [vmem:[%s17957_s3 + $0xd0] sm:$0xf0] }
 0x61f   : > { %6449 = vmatpush.bf16.msra.mxu0 %v6150_v53  ;;  %10527 = vmatpush.bf16.msrb.mxu1 %v6150_v53  ;;  %v9674_v53 = vld [vmem:[%s17957_s3 + $0x64] sm:$0xf0] }
 0x620   : > { %v6149_v4 = vpack.c.bf16 %v11524_v19, %v11504_v26  ;;  %v5977_v49 = vsel %vm5969_vm13, %v11523_v15, %v11524_v19  ;;  %v5973_v15 = vsel %vm5969_vm13, %v11533_v13, %v11534_v43 }
 0x621   : > { %6483 = vmatmul.bf16.vlgmr.msra.gmra.mxu2 %v17406_v27  ;;  %v6148_v57 = vpack.c.bf16 %v5977_v49, %v5976_v0 }
 0x622   : > { %6591 = vmatpush.bf16.msrb.mxu2 %v16988_v44  ;;  %6653 = vmatpush.bf16.msra.mxu3 %v6149_v4 }
 0x623   : > { %6450 = vmatpush.bf16.msra.mxu0 %v6148_v57  ;;  %10528 = vmatpush.bf16.msrb.mxu1 %v6148_v57  ;;  %v11512_v58 = vpop.permute.xlu0 %11511  ;;  %v11547_v35 = vpop.permute.xlu2 %11546 }
 0x624   : > { %v11514_v33 = vunpack.i.h.bf16 %v11512_v58  ;;  %v11513_v45 = vunpack.i.l.bf16 %v11512_v58  ;;  %6551 = vmatmul.bf16.gmra.mxu3 %v17277_v41  ;;  %v9994_v41 = vld [vmem:[%s17957_s3 + $0x4c] sm:$0xf] }
 0x625   : > { %v11527_v44 = vpop.permute.xlu1 %11526  ;;  %v17429_v57 = vor.u32 %v9994_v41, %v9674_v53 }
 0x626   : > { %6592 = vmatpush.bf16.msrb.mxu2 %v6123_v12  ;;  %v6147_v23 = vpack.c.bf16 %v11514_v33, %v11509_v32  ;;  %v11529_v18 = vunpack.i.h.bf16 %v11527_v44  ;;  %v11528_v40 = vunpack.i.l.bf16 %v11527_v44  ;;  %v5975_v26 = vsel %vm5969_vm13, %v11513_v45, %v11514_v33  ;;  %v9990_v12 = vld [vmem:[%s17957_s3 + $0x28] sm:$0xf0]  ;;  %v9728_v32 = vld [vmem:[%s17957_s3 + $0xb8] sm:$0xf] }
 0x627   : > { %v6146_v10 = vpack.c.bf16 %v5975_v26, %v5974_v2  ;;  %v11549_v45 = vunpack.i.h.bf16 %v11547_v35  ;;  %v11548_v44 = vunpack.i.l.bf16 %v11547_v35  ;;  %v18322_v2 = vld [vmem:[#allocation35_spill] sm:$0xff]  ;;  %v18323_v26 = vld [vmem:[#allocation30_spill] sm:$0xff] }
 0x628   : > { %6654 = vmatpush.bf16.msra.mxu3 %v6147_v23  ;;  %v5972_v20 = vsel %vm5969_vm13, %v11528_v40, %v11529_v18  ;;  %v6145_v3 = vpack.c.bf16 %v11534_v43, %v11529_v18  ;;  %v9645_v18 = vor.u32 %v9990_v12, %v9644_v48  ;;  %v17447_v40 = vor.u32 %v10011_v14, %v9728_v32  ;;  %v10001_v32 = vld [vmem:[%s17957_s3 + $0x84] sm:$0xf]  ;;  %v9702_v14 = vld [vmem:[%s17957_s3 + $0x9c] sm:$0xf0] }
 0x629   : > { %6451 = vmatpush.bf16.msra.mxu0 %v6146_v10  ;;  %10529 = vmatpush.bf16.msrb.mxu1 %v6146_v10  ;;  %v6144_v4 = vpack.c.bf16 %v5973_v15, %v5972_v20  ;;  %v18324_v10 = vpack.c.bf16 %v18322_v2, %v18323_v26  ;;  %v6004_v35 = vsel %vm5969_vm13, %v11548_v44, %v11549_v45  ;;  %v9672_v44 = vld [vmem:[%s17957_s3 + $0x48] sm:$0xf] }
 0x62a   : > { %6593 = vmatpush.bf16.msrb.mxu2 %v17024_v60  ;;  %v18321_v60 = vld [vmem:[#allocation24_spill] sm:$0xff] }
 0x62b   : > { %v11537_v19 = vpop.permute.xlu0 %11536  ;;  %v11562_v13 = vpop.permute.xlu2 %11561 }
 0x62c   : > { %v11539_v0 = vunpack.i.h.bf16 %v11537_v19  ;;  %v11538_v36 = vunpack.i.l.bf16 %v11537_v19  ;;  %6655 = vmatpush.bf16.msra.mxu3 %v6145_v3 }
 0x62d   : > { %v11542_v49 = vpop.permute.xlu1 %11541  ;;  %6452 = vmatpush.bf16.msra.mxu0 %v6144_v4  ;;  %10530 = vmatpush.bf16.msrb.mxu1 %v6144_v4 }
 0x62e   : > { %6594 = vmatpush.bf16.msrb.mxu2 %v18321_v60  ;;  %v11544_v54 = vunpack.i.h.bf16 %v11542_v49  ;;  %v11543_v42 = vunpack.i.l.bf16 %v11542_v49  ;;  %v5970_v62 = vsel %vm5969_vm13, %v11538_v36, %v11539_v0  ;;  %v11563_v36 = vunpack.i.l.bf16 %v11562_v13  ;;  %v18326_v49 = vld [vmem:[#allocation12_spill] sm:$0xff] }
 0x630   : > { %v6143_v58 = vpack.c.bf16 %v11544_v54, %v11539_v0  ;;  %v5971_v33 = vsel %vm5969_vm13, %v11543_v42, %v11544_v54  ;;  %v11564_v0 = vunpack.i.h.bf16 %v11562_v13  ;;  %v18327_v54 = vld [vmem:[#allocation16_spill] sm:$0xff] }
 0x631   : > { %6488 = vmatmul.bf16.gmra.mxu2 %v17429_v57  ;;  %v6142_v23 = vpack.c.bf16 %v5971_v33, %v5970_v62  ;;  %v18328_v42 = vpack.c.bf16 %v18326_v49, %v18327_v54  ;;  %v18329_v62 = vpack.c.bf16 %v17005_v50, %v17012_v51  ;;  %v18332_v50 = vpack.c.bf16 %v18300_v8, %v18290_v39  ;;  %v9652_v39 = vld [vmem:[%s17957_s3 + $0x18] sm:$0xf]  ;;  %v9991_v8 = vld [vmem:[%s17957_s3 + $0x30] sm:$0xf0] }
 0x632   : > { %6595 = vmatpush.bf16.msrb.mxu2 %v16982_v1  ;;  %6656 = vmatpush.bf16.msra.mxu3 %v6143_v58  ;;  %v18325_v1 = vld [vmem:[#allocation6_spill] sm:$0xff]  ;;  %v6003_v12 = vsel %vm5969_vm13, %v11563_v36, %v11564_v0  ;;  %v18330_v58 = vld [vmem:[#allocation32_spill] sm:$0xff]  ;;  %v18343_v36 = vunpack.i.h.bf16 %v16821_v21 }
 0x633   : > { %6453 = vmatpush.bf16.msra.mxu0 %v6142_v23  ;;  %10531 = vmatpush.bf16.msrb.mxu1 %v6142_v23  ;;  %v11552_v43 = vpop.permute.xlu0 %11551  ;;  %v18331_v33 = vpack.c.bf16 %v16879_v28, %v18330_v58  ;;  %v9997_v28 = vld [vmem:[%s17957_s3 + $0x60] sm:$0xf0]  ;;  %v18333_v23 = vld [vmem:[#allocation20_spill] sm:$0xff]  ;;  %v9700_v21 = vld [vmem:[%s17957_s3 + $0x80] sm:$0xf] }
 0x634   : > { %v11554_v20 = vunpack.i.h.bf16 %v11552_v43  ;;  %v11553_v3 = vunpack.i.l.bf16 %v11552_v43  ;;  %6556 = vmatmul.bf16.gmra.mxu3 %v17319_v56  ;;  %v18334_v43 = vld [vmem:[#allocation18_spill] sm:$0xff] }
 0x635   : > { %v11557_v41 = vpop.permute.xlu1 %11556  ;;  %v18335_v13 = vpack.c.bf16 %v18333_v23, %v18334_v43 }
 0x636   : > { %6596 = vmatpush.bf16.msrb.mxu2 %v18325_v1  ;;  %v6177_v53 = vpack.c.bf16 %v11554_v20, %v11549_v45  ;;  %v6005_v19 = vsel %vm5969_vm13, %v11553_v3, %v11554_v20  ;;  %v11559_v15 = vunpack.i.h.bf16 %v11557_v41  ;;  %v11558_v60 = vunpack.i.l.bf16 %v11557_v41  ;;  %6454 = vmatmul.bf16.vlgmr.msra.gmra.mxu0 %v9645_v18  ;;  %v18336_v1 = vld [vmem:[#allocation23_spill] sm:$0xff]  ;;  %v18337_v20 = vld [vmem:[#allocation34_spill] sm:$0xff] }
 0x637   : > { %6562 = vmatpush.bf16.msrb.mxu0 %v18324_v10  ;;  %6469 = vmatmul.bf16.vlgmr.msrb.gmra.mxu1 %v17447_v40  ;;  %v6176_v4 = vpack.c.bf16 %v6005_v19, %v6004_v35  ;;  %v17477_v45 = vor.u32 %v10001_v32, %v9702_v14  ;;  %v6368_v2 = vpop.f32.mrf.mxu2  ;;  %v17496_v10 = vor.u32 %v9991_v8, %v9652_v39  ;;  %v18340_v19 = vld [vmem:[#allocation22_spill] sm:$0xff]  ;;  %v18344_v14 = vld [vmem:[#allocation21_spill] sm:$0xff]  ;;  %v18346_v39 = vunpack.i.h.bf16 %v16703_v25 }
 0x638   : > { %10532 = vmatpush.bf16.msrb.mxu3 %v6177_v53  ;;  %v6002_v56 = vsel %vm5969_vm13, %v11558_v60, %v11559_v15  ;;  %v6175_v48 = vpack.c.bf16 %v11564_v0, %v11559_v15  ;;  %v6339_v26 = vpop.f32.mrf.mxu0  ;;  %v18338_v3 = vpack.c.bf16 %v16889_v63, %v18337_v20  ;;  %v18342_v0 = vunpack.i.h.bf16 %v16549_v61  ;;  %v10005_v25 = vld [vmem:[%s17957_s3 + $0xa0] sm:$0xf0] }
 0x639   : > { %6510 = vmatpush.bf16.msra.mxu1 %v6176_v4  ;;  %v6174_v51 = vpack.c.bf16 %v6003_v12, %v6002_v56  ;;  %v6369_v4 = vadd.f32 %v6368_v2, %v6339_v26  ;;  %v10004_v56 = vld [vmem:[%s17957_s3 + $0x98] sm:$0xf0]  ;;  %v18347_v8 = vunpack.i.h.bf16 %v16926_v55 }
 0x63a   : > { %6597 = vmatpush.bf16.msrb.mxu2 %v18329_v62  ;;  %v6135_v63 = vpack.c.bf16 %v18343_v36, %v18342_v0  ;;  %v18351_v36 = vld [vmem:[#allocation29_spill] sm:$0xff] }
 0x63b   : > { %6563 = vmatpush.bf16.msrb.mxu0 %v18328_v42  ;;  %v6127_v23 = vpack.c.bf16 %v18347_v8, %v18346_v39 }
 0x63c   : > { %10533 = vmatpush.bf16.msrb.mxu3 %v6175_v48 }
 0x63d   : > { %6511 = vmatpush.bf16.msra.mxu1 %v6174_v51 }
 0x63e   : > { %6598 = vmatpush.bf16.msrb.mxu2 %v18332_v50  ;;  %v9701_v50 = vor.u32 %v10004_v56, %v9700_v21  ;;  %v10464_v56 = vld [vmem:[%s17960_s6 + $0x18] sm:$0xff] }
 0x63f   : > { %6564 = vmatpush.bf16.msrb.mxu0 %v18331_v33  ;;  %v6370_v60 = vpop.f32.mrf.mxu2 }
 0x640   : > { %v6341_v49 = vpop.f32.mrf.mxu0 }
 0x641   : > { %6620 = vmatpush.bf16.msrb.mxu1 %v16896_v9  ;;  %6493 = vmatmul.bf16.gmra.mxu2 %v17477_v45  ;;  %v9673_v9 = vor.u32 %v9997_v28, %v9672_v44  ;;  %v6371_v42 = vadd.f32 %v6370_v60, %v6341_v49  ;;  %v18345_v28 = vld [vmem:[#allocation26_spill] sm:$0xff]  ;;  %v18350_v60 = vld [vmem:[#allocation5_spill] sm:$0xff]  ;;  %v10467_v49 = vld [vmem:[%s17960_s6 + $0x30] sm:$0xff] }
 0x642   : > { %6713 = vmatpush.bf16.msra.mxu2 %v6177_v53  ;;  %v18339_v53 = vld [vmem:[#allocation19_spill] sm:$0xff] }
 0x643   : > { %6565 = vmatpush.bf16.msrb.mxu0 %v18335_v13  ;;  %v18341_v15 = vpack.c.bf16 %v18339_v53, %v18340_v19 }
 0x644   : > { %6657 = vmatmul.bf16.vlgmr.msra.gmra.mxu3 %v9645_v18  ;;  %v10008_v18 = vld [vmem:[%s17957_s3 + $0xbc] sm:$0xf] }
 0x645   : > { %6621 = vmatpush.bf16.msrb.mxu1 %v18336_v1 }
 0x646   : > { %6714 = vmatpush.bf16.msra.mxu2 %v6175_v48  ;;  %v6426_v35 = vpop.f32.mrf.mxu3  ;;  %6459 = vmatmul.bf16.gmra.mxu0 %v9673_v9  ;;  %v9680_v48 = vld [vmem:[%s17957_s3 + $0x50] sm:$0xf] }
 0x647   : > { %6566 = vmatpush.bf16.msrb.mxu0 %v18338_v3  ;;  %9738 = vmatmul.msk.bf16.vlgmr.msra.gmra.mxu1 %vm799_vm8, %v17496_v10  ;;  %v6397_v41 = vpop.f32.mrf.mxu1  ;;  %v6373_v58 = vpop.f32.mrf.mxu2 }
 0x648   : > { %v6398_v54 = vadd.f32 %v6397_v41, %v6369_v4 }
 0x649   : > { %6622 = vmatpush.bf16.msrb.mxu1 %v16941_v22  ;;  %v9730_v22 = vld [vmem:[%s17957_s3 + $0xd4] sm:$0xf0] }
 0x64a   : > { %v17519_v62 = vadd.f32 %v6426_v35, %v6398_v54  ;;  %v17521_v61 = vor.u32 %v10008_v18, %v9730_v22  ;;  %v18353_v18 = vld [vmem:[#allocation4_spill] sm:$0xff]  ;;  %v18354_v22 = vld [vmem:[#allocation15_spill] sm:$0xff] }
 0x64b   : > { %6567 = vmatpush.bf16.msrb.mxu0 %v18341_v15  ;;  %v10466_v54 = vld [vmem:[%s17960_s6 + $0x28] sm:$0xff] }
 0x64d   : > { %6623 = vmatpush.bf16.msrb.mxu1 %v6135_v63  ;;  %v10468_v63 = vld [vmem:[%s17960_s6 + $0x38] sm:$0xff] }
 0x64e   : > { %v6428_v32 = vpop.f32.mrf.mxu3 }
 0x64f   : > { %6568 = vmatpush.bf16.msrb.mxu0 %v16946_v59  ;;  %v9998_v59 = vld [vmem:[%s17957_s3 + $0x68] sm:$0xf0]  ;;  %v6399_v12 = vpop.f32.mrf.mxu1  ;;  %v17553_v13 = vpop.f32.mrf.mxu2 }
 0x650   : > { %v6400_v33 = vadd.f32 %v6399_v12, %v6371_v42  ;;  %v17539_v51 = vor.u32 %v9998_v59, %v9680_v48  ;;  %v10463_v12 = vld [vmem:[%s17960_s6 + $0x10] sm:$0xff] }
 0x651   : > { %6624 = vmatpush.bf16.msrb.mxu1 %v17014_v46  ;;  %v6344_v46 = vpop.f32.mrf.mxu0  ;;  %6498 = vmatmul.bf16.gmra.mxu2 %v17521_v61 }
 0x652   : > { %v17541_v44 = vadd.f32 %v6428_v32, %v6400_v33  ;;  %v6374_v43 = vadd.f32 %v6373_v58, %v6344_v46  ;;  %v18355_v32 = vld [vmem:[#allocation7_spill] sm:$0xff] }
 0x653   : > { %6569 = vmatpush.bf16.msrb.mxu0 %v18344_v14  ;;  %v10478_v14 = vld [vmem:[%s17960_s6 + $0x88] sm:$0xff] }
 0x654   : > { %6662 = vmatmul.bf16.gmra.mxu3 %v9673_v9 }
 0x655   : > { %6625 = vmatpush.bf16.msrb.mxu1 %v18345_v28  ;;  %v10461_v28 = vld [vmem:[%s17960_s6] sm:$0xff] }
 0x656   : > { %6464 = vmatmul.bf16.gmra.mxu0 %v9701_v50  ;;  %v17599_v53 = vpop.f32.mrf.mxu3 }
 0x657   : > { %6678 = vmatpush.bf16.msra.mxu0 %v17338_v29  ;;  %9739 = vmatmul.msk.bf16.gmra.mxu1 %vm799_vm8, %v17539_v51  ;;  %v6402_v29 = vpop.f32.mrf.mxu1  ;;  %v6378_v26 = vpop.f32.mrf.mxu2 }
 0x659   : > { %6626 = vmatpush.bf16.msrb.mxu1 %v17060_v37  ;;  %v17555_v2 = vpop.f32.mrf.mxu0  ;;  %v9708_v37 = vld [vmem:[%s17957_s3 + $0x88] sm:$0xf] }
 0x65b   : > { %6679 = vmatpush.bf16.msra.mxu0 %v17075_v7  ;;  %v17557_v7 = vadd.f32 %v6402_v29, %v6374_v43  ;;  %v10476_v29 = vld [vmem:[%s17960_s6 + $0x78] sm:$0xff] }
 0x65d   : > { %6627 = vmatpush.bf16.msrb.mxu1 %v6127_v23 }
 0x65e   : > { %v17602_v0 = vpop.f32.mrf.mxu3 }
 0x65f   : > { %6680 = vmatpush.bf16.msra.mxu0 %v17356_v52  ;;  %v17566_v55 = vpop.f32.mrf.mxu1  ;;  %v17570_v52 = vor.u32 %v10005_v25, %v9708_v37  ;;  %v17583_v20 = vpop.f32.mrf.mxu2 }
 0x661   : > { %6599 = vmatmul.bf16.vlgmr.msrb.gmra.mxu2 %v17171_v34  ;;  %v6349_v9 = vpop.f32.mrf.mxu0  ;;  %v6159_v34 = vpack.c.bf16 %v11479_v11, %v11409_v16  ;;  %v18349_v11 = vld [vmem:[#allocation27_spill] sm:$0xff]  ;;  %6836 = vmatpush.bf16.msra.mxu1 %v10468_v63 }
 0x662   : > { %v6379_v1 = vadd.f32 %v6378_v26, %v6349_v9  ;;  %v10475_v26 = vld [vmem:[%s17960_s6 + $0x70] sm:$0xff]  ;;  %v18356_v9 = vld [vmem:[#allocation3_spill] sm:$0xff] }
 0x663   : > { %6681 = vmatpush.bf16.msra.mxu0 %v17126_v17 }
 0x664   : > { %6667 = vmatmul.bf16.gmra.mxu3 %v9701_v50 }
 0x665   : > { %6837 = vmatpush.bf16.msra.mxu1 %v10467_v49 }
 0x666   : > { %6570 = vmatmul.bf16.vlgmr.msrb.gmra.mxu0 %v17101_v24  ;;  %v9736_v24 = vld [vmem:[%s17957_s3 + $0xc0] sm:$0xf]  ;;  %v17610_v4 = vpop.f32.mrf.mxu3 }
 0x667   : > { %6682 = vmatpush.bf16.msra.mxu0 %v17370_v5  ;;  %9740 = vmatmul.msk.bf16.gmra.mxu1 %vm799_vm8, %v17570_v52  ;;  %v6407_v17 = vpop.f32.mrf.mxu1  ;;  %v6383_v16 = vpop.f32.mrf.mxu2 }
 0x668   : > { %v17581_v5 = vadd.f32 %v6407_v17, %v6379_v1 }
 0x669   : > { %6838 = vmatpush.bf16.msra.mxu1 %v10466_v54 }
 0x66b   : > { %6683 = vmatpush.bf16.msra.mxu0 %v17178_v6  ;;  %v17585_v6 = vpop.f32.mrf.mxu0 }
 0x66e   : > { %v17621_v42 = vpop.f32.mrf.mxu3 }
 0x66f   : > { %6684 = vmatpush.bf16.msra.mxu0 %v17354_v38  ;;  %v10012_v38 = vld [vmem:[%s17957_s3 + $0xd8] sm:$0xf0]  ;;  %v17593_v3 = vpop.f32.mrf.mxu1  ;;  %v17623_v21 = vpop.f32.mrf.mxu2 }
 0x670   : > { %v9737_v30 = vor.u32 %v10012_v38, %v9736_v24  ;;  %v10473_v24 = vld [vmem:[%s17960_s6 + $0x60] sm:$0xff] }
 0x671   : > { %6604 = vmatmul.bf16.gmra.mxu2 %v18348_v31 }
 0x673   : > { %6685 = vmatpush.bf16.msra.mxu0 %v6159_v34  ;;  %v6354_v35 = vpop.f32.mrf.mxu0 }
 0x674   : > { %6672 = vmatmul.bf16.gmra.mxu3 %v17447_v40  ;;  %v6384_v41 = vadd.f32 %v6383_v16, %v6354_v35  ;;  %v18352_v40 = vld [vmem:[#allocation28_spill] sm:$0xff] }
 0x676   : > { %6575 = vmatmul.bf16.gmra.mxu0 %v18349_v11  ;;  %v6441_v48 = vpop.f32.mrf.mxu3  ;;  %v10471_v11 = vld [vmem:[%s17960_s6 + $0x50] sm:$0xff] }
 0x677   : > { %9741 = vmatmul.msk.bf16.gmra.mxu1 %vm799_vm8, %v9737_v30  ;;  %6975 = vmatpush.bf16.msrb.mxu0 %v10478_v14 }
 0x678   : > { %v6412_v19 = vpop.f32.mrf.mxu1 }
 0x679   : > { %v6413_v15 = vadd.f32 %v6412_v19, %v6384_v41 }
 0x67b   : > { %v17644_v58 = vpop.f32.mrf.mxu0  ;;  %v6442_v39 = vadd.f32 %v6441_v48, %v6413_v15 }
 0x67e   : > { %v17648_v50 = vpop.f32.mrf.mxu3 }
 0x680   : > { %v17646_v33 = vpop.f32.mrf.mxu1 }
 0x681   : > { %6609 = vmatmul.bf16.gmra.mxu2 %v18350_v60 }
 0x684   : > { %9745 = vmatmul.msk.bf16.vlgmr.msrb.gmra.mxu3 %vm799_vm8, %v9737_v30 }
 0x686   : > { %6580 = vmatmul.bf16.gmra.mxu0 %v18351_v36  ;;  %v17663_v25 = vpop.f32.mrf.mxu3 }
 0x687   : > { %6628 = vmatmul.bf16.vlgmr.msrb.gmra.mxu1 %v18352_v40  ;;  %v6376_v40 = vadd.f32 %v17553_v13, %v17555_v2  ;;  %v6432_v13 = vadd.f32 %v17599_v53, %v17557_v7 }
 0x68e   : > { %v17678_v38 = vpop.f32.mrf.mxu3 }
 0x691   : > { %6614 = vmatmul.bf16.gmra.mxu2 %v17335_v47  ;;  %v10465_v47 = vld [vmem:[%s17960_s6 + $0x20] sm:$0xff] }
 0x692   : > { %6839 = vmatpush.bf16.msra.mxu1 %v10465_v47 }
 0x696   : > { %6585 = vmatmul.bf16.gmra.mxu0 %v18353_v18  ;;  %6840 = vmatpush.bf16.msra.mxu1 %v10464_v56  ;;  %v17693_v19 = vpop.f32.mrf.mxu3 }
 0x697   : > { %6633 = vmatmul.bf16.gmra.mxu1 %v18354_v22 }
 0x69a   : > { %6841 = vmatpush.bf16.msra.mxu1 %v10463_v12  ;;  %v10486_v12 = vld [vmem:[%s17960_s6 + $0xc8] sm:$0xff] }
 0x6a1   : > { %9742 = vmatmul.msk.bf16.vlgmr.msra.gmra.mxu2 %vm799_vm8, %v17496_v10  ;;  %v10462_v10 = vld [vmem:[%s17960_s6 + $0x8] sm:$0xff] }
 0x6a2   : > { %6842 = vmatpush.bf16.msra.mxu1 %v10462_v10 }
 0x6a4   : > { %v6484_v59 = vpop.f32.mrf.mxu2 }
 0x6a6   : > { %6686 = vmatmul.bf16.vlgmr.msra.gmra.mxu0 %v17406_v27  ;;  %v10477_v27 = vld [vmem:[%s17960_s6 + $0x80] sm:$0xff]  ;;  %6843 = vmatpush.bf16.msra.mxu1 %v10461_v28 }
 0x6a7   : > { %6638 = vmatmul.bf16.gmra.mxu1 %v18355_v32  ;;  %6976 = vmatpush.bf16.msrb.mxu0 %v10477_v27 }
 0x6ab   : > { %6977 = vmatpush.bf16.msrb.mxu0 %v10476_v29  ;;  %v10485_v29 = vld [vmem:[%s17960_s6 + $0xc0] sm:$0xff] }
 0x6ac   : > { %v6486_v46 = vpop.f32.mrf.mxu2 }
 0x6af   : > { %6978 = vmatpush.bf16.msrb.mxu0 %v10475_v26 }
 0x6b1   : > { %9743 = vmatmul.msk.bf16.gmra.mxu2 %vm799_vm8, %v17539_v51  ;;  %v10474_v51 = vld [vmem:[%s17960_s6 + $0x68] sm:$0xff] }
 0x6b3   : > { %v6455_v8 = vpop.f32.mrf.mxu0  ;;  %6979 = vmatpush.bf16.msrb.mxu0 %v10474_v51 }
 0x6b4   : > { %v6470_v23 = vpop.f32.mrf.mxu1  ;;  %v6489_v37 = vpop.f32.mrf.mxu2  ;;  %v6456_v35 = vadd.f32 %v6455_v8, %v17519_v62  ;;  %v6405_v62 = vadd.f32 %v17566_v55, %v6376_v40 }
 0x6b5   : > { %v17661_v43 = vadd.f32 %v6470_v23, %v6442_v39  ;;  %v6437_v23 = vadd.f32 %v17610_v4, %v17581_v5  ;;  %v10498_v5 = vld [vmem:[%s17960_s6 + $0x128] sm:$0xff] }
 0x6b6   : > { %6691 = vmatmul.bf16.gmra.mxu0 %v17429_v57  ;;  %v10472_v57 = vld [vmem:[%s17960_s6 + $0x58] sm:$0xff]  ;;  %v6485_v15 = vadd.f32 %v6484_v59, %v6456_v35  ;;  %v6434_v2 = vadd.f32 %v17602_v0, %v6405_v62  ;;  %v10487_v59 = vld [vmem:[%s17960_s6 + $0xd0] sm:$0xff]  ;;  %v6381_v0 = vadd.f32 %v17583_v20, %v17585_v6  ;;  %v10482_v4 = vld [vmem:[%s17960_s6 + $0xa8] sm:$0xff] }
 0x6b7   : > { %6643 = vmatmul.bf16.gmra.mxu1 %v18356_v9  ;;  %6980 = vmatpush.bf16.msrb.mxu0 %v10473_v24  ;;  %v10484_v20 = vld [vmem:[%s17960_s6 + $0xb8] sm:$0xff]  ;;  %v10483_v24 = vld [vmem:[%s17960_s6 + $0xb0] sm:$0xff]  ;;  %v10497_v35 = vld [vmem:[%s17960_s6 + $0x120] sm:$0xff] }
 0x6b8   : > { %v6410_v39 = vadd.f32 %v17593_v3, %v6381_v0 }
 0x6bb   : > { %v6457_v17 = vpop.f32.mrf.mxu0  ;;  %6981 = vmatpush.bf16.msrb.mxu0 %v10472_v57 }
 0x6bc   : > { %v17673_v1 = vpop.f32.mrf.mxu1  ;;  %v6491_v34 = vpop.f32.mrf.mxu2  ;;  %v6458_v41 = vadd.f32 %v6457_v17, %v17541_v44 }
 0x6bd   : > { %v17704_v44 = vpop.f32.mrf.mxu3 }
 0x6bf   : > { %6982 = vmatpush.bf16.msrb.mxu0 %v10471_v11 }
 0x6c1   : > { %9744 = vmatmul.msk.bf16.gmra.mxu2 %vm799_vm8, %v17570_v52  ;;  %v6487_v52 = vadd.f32 %v6486_v46, %v6458_v41 }
 0x6c3   : > { %v6460_v31 = vpop.f32.mrf.mxu0  ;;  %7253 = vmatpush.bf16.msra.mxu0 %v10498_v5 }
 0x6c4   : > { %v6513_v30 = vpop.f32.mrf.mxu1  ;;  %v17688_v16 = vpop.f32.mrf.mxu2  ;;  %v6461_v48 = vadd.f32 %v6460_v31, %v6432_v13 }
 0x6c5   : > { %v6514_v63 = vadd.f32 %v6513_v30, %v6485_v15  ;;  %v17720_v27 = vpop.f32.mrf.mxu3  ;;  %v6386_v15 = vadd.f32 %v17623_v21, %v17644_v58 }
 0x6c6   : > { %6696 = vmatmul.bf16.gmra.mxu0 %v17477_v45  ;;  %v10488_v45 = vld [vmem:[%s17960_s6 + $0xd8] sm:$0xff]  ;;  %v6490_v32 = vadd.f32 %v6489_v37, %v6461_v48  ;;  %v6439_v37 = vadd.f32 %v17621_v42, %v6410_v39 }
 0x6c7   : > { %7114 = vmatpush.bf16.msrb.mxu1 %v10488_v45  ;;  %7254 = vmatpush.bf16.msra.mxu0 %v10497_v35  ;;  %v6415_v40 = vadd.f32 %v17646_v33, %v6386_v15  ;;  %v10494_v33 = vld [vmem:[%s17960_s6 + $0x108] sm:$0xff] }
 0x6c9   : > { %v6444_v62 = vadd.f32 %v17648_v50, %v6415_v40 }
 0x6cb   : > { %v6462_v60 = vpop.f32.mrf.mxu0  ;;  %7115 = vmatpush.bf16.msrb.mxu1 %v10487_v59  ;;  %v10480_v59 = vld [vmem:[%s17960_s6 + $0x98] sm:$0xff] }
 0x6cc   : > { %v6515_v36 = vpop.f32.mrf.mxu1  ;;  %v6496_v18 = vpop.f32.mrf.mxu2  ;;  %v6463_v55 = vadd.f32 %v6462_v60, %v6434_v2  ;;  %v10496_v60 = vld [vmem:[%s17960_s6 + $0x118] sm:$0xff]  ;;  %7010 = vmatpush.bf16.msrb.mxu2 %v10480_v59 }
 0x6cd   : > { %v6516_v49 = vadd.f32 %v6515_v36, %v6487_v52  ;;  %7255 = vmatpush.bf16.msra.mxu0 %v10496_v60 }
 0x6ce   : > { %v6492_v14 = vadd.f32 %v6491_v34, %v6463_v55  ;;  %v17739_v34 = vpop.f32.mrf.mxu3 }
 0x6cf   : > { %v17697_v22 = vpack.c.bf16 %v6516_v49, %v6514_v63  ;;  %7116 = vmatpush.bf16.msrb.mxu1 %v10486_v12  ;;  %v10495_v49 = vld [vmem:[%s17960_s6 + $0x110] sm:$0xff] }
 0x6d1   : > { %6844 = vmatmul.bf16.vlgmr.msra.gmra.mxu1 %v17697_v22  ;;  %7256 = vmatpush.bf16.msra.mxu0 %v10495_v49 }
 0x6d3   : > { %v6465_v54 = vpop.f32.mrf.mxu0  ;;  %7117 = vmatpush.bf16.msrb.mxu1 %v10485_v29 }
 0x6d4   : > { %v6518_v47 = vpop.f32.mrf.mxu1  ;;  %v17709_v56 = vpop.f32.mrf.mxu2  ;;  %v6466_v51 = vadd.f32 %v6465_v54, %v6437_v23  ;;  %v6473_v54 = vadd.f32 %v17673_v1, %v6444_v62  ;;  %v10493_v1 = vld [vmem:[%s17960_s6 + $0x100] sm:$0xff] }
 0x6d5   : > { %v6519_v10 = vadd.f32 %v6518_v47, %v6490_v32  ;;  %7257 = vmatpush.bf16.msra.mxu0 %v10494_v33 }
 0x6d6   : > { %6701 = vmatmul.bf16.gmra.mxu0 %v17521_v61  ;;  %v6495_v42 = vadd.f32 %v17688_v16, %v6466_v51  ;;  %v10481_v16 = vld [vmem:[%s17960_s6 + $0xa0] sm:$0xff]  ;;  %v6557_v36 = vpop.f32.mrf.mxu3 }
 0x6d7   : > { %7118 = vmatpush.bf16.msrb.mxu1 %v10484_v20  ;;  %v10469_v20 = vld [vmem:[%s17960_s6 + $0x40] sm:$0xff] }
 0x6d9   : > { %7258 = vmatpush.bf16.msra.mxu0 %v10493_v1 }
 0x6db   : > { %v6467_v7 = vpop.f32.mrf.mxu0  ;;  %7119 = vmatpush.bf16.msrb.mxu1 %v10483_v24 }
 0x6dc   : > { %v6520_v53 = vpop.f32.mrf.mxu1  ;;  %v6501_v61 = vpop.f32.mrf.mxu2  ;;  %v6468_v3 = vadd.f32 %v6467_v7, %v6439_v37 }
 0x6dd   : > { %v6521_v46 = vadd.f32 %v6520_v53, %v6492_v14  ;;  %v6502_v47 = vadd.f32 %v6501_v61, %v6473_v54  ;;  %v10491_v53 = vld [vmem:[%s17960_s6 + $0xf0] sm:$0xff]  ;;  %v10470_v61 = vld [vmem:[%s17960_s6 + $0x48] sm:$0xff] }
 0x6de   : > { %v17784_v13 = vpop.f32.mrf.mxu3  ;;  %6871 = vmatpush.bf16.msra.mxu3 %v10470_v61 }
 0x6df   : > { %v17722_v28 = vpack.c.bf16 %v6521_v46, %v6519_v10  ;;  %7120 = vmatpush.bf16.msrb.mxu1 %v10482_v4 }
 0x6e1   : > { %6849 = vmatmul.bf16.gmra.mxu1 %v17722_v28 }
 0x6e2   : > { %6872 = vmatpush.bf16.msra.mxu3 %v10469_v20 }
 0x6e3   : > { %v6571_v8 = vpop.f32.mrf.mxu0  ;;  %7121 = vmatpush.bf16.msrb.mxu1 %v10481_v16 }
 0x6e4   : > { %v6523_v6 = vpop.f32.mrf.mxu1  ;;  %v6572_v26 = vadd.f32 %v6571_v8, %v17663_v25  ;;  %v6600_v9 = vpop.f32.mrf.mxu2  ;;  %v6497_v25 = vadd.f32 %v6496_v18, %v6468_v3 }
 0x6e5   : > { %v6524_v30 = vadd.f32 %v6523_v6, %v6495_v42  ;;  %v10479_v6 = vld [vmem:[%s17960_s6 + $0x90] sm:$0xff] }
 0x6e6   : > { %v17736_v17 = vadd.f32 %v6600_v9, %v6572_v26  ;;  %6983 = vmatmul.bf16.vlgmr.msrb.gmra.mxu0 %v17697_v22  ;;  %v6658_v7 = vpop.f32.mrf.mxu3  ;;  %7011 = vmatpush.bf16.msrb.mxu2 %v10479_v6 }
 0x6eb   : > { %v17751_v31 = vpop.f32.mrf.mxu0 }
 0x6ec   : > { %v6525_v57 = vpop.f32.mrf.mxu1  ;;  %v17756_v41 = vpop.f32.mrf.mxu2  ;;  %v6574_v5 = vadd.f32 %v17751_v31, %v17678_v38  ;;  %v10490_v31 = vld [vmem:[%s17960_s6 + $0xe8] sm:$0xff] }
 0x6ed   : > { %v6526_v11 = vadd.f32 %v6525_v57, %v6497_v25  ;;  %7149 = vmatpush.bf16.msrb.mxu3 %v10490_v31 }
 0x6ee   : > { %v6603_v57 = vadd.f32 %v17756_v41, %v6574_v5  ;;  %v10500_v41 = vld [vmem:[%s17960_s6 + $0x138] sm:$0xff] }
 0x6ef   : > { %v17760_v52 = vpack.c.bf16 %v6526_v11, %v6524_v30  ;;  %7288 = vmatpush.bf16.msra.mxu2 %v10500_v41 }
 0x6f1   : > { %6854 = vmatmul.bf16.gmra.mxu1 %v17760_v52 }
 0x6f3   : > { %v6576_v21 = vpop.f32.mrf.mxu0 }
 0x6f4   : > { %v6528_v63 = vpop.f32.mrf.mxu1  ;;  %v6577_v58 = vadd.f32 %v6576_v21, %v17693_v19  ;;  %v6605_v18 = vpop.f32.mrf.mxu2  ;;  %v6500_v19 = vadd.f32 %v17709_v56, %v17661_v43  ;;  %v10492_v56 = vld [vmem:[%s17960_s6 + $0xf8] sm:$0xff] }
 0x6f5   : > { %7259 = vmatpush.bf16.msra.mxu0 %v10492_v56 }
 0x6f6   : > { %v17775_v45 = vadd.f32 %v6605_v18, %v6577_v58  ;;  %6988 = vmatmul.bf16.gmra.mxu0 %v17722_v28  ;;  %v6529_v50 = vadd.f32 %v6528_v63, %v6500_v19 }
 0x6f9   : > { %7260 = vmatpush.bf16.msra.mxu0 %v10491_v53 }
 0x6fb   : > { %v17786_v48 = vpop.f32.mrf.mxu0 }
 0x6fc   : > { %v6530_v2 = vpop.f32.mrf.mxu1  ;;  %v17794_v12 = vpop.f32.mrf.mxu2 }
 0x6fd   : > { %v6531_v55 = vadd.f32 %v6530_v2, %v6502_v47 }
 0x6ff   : > { %v17796_v43 = vpack.c.bf16 %v6531_v55, %v6529_v50 }
 0x701   : > { %6859 = vmatmul.bf16.gmra.mxu1 %v17796_v43 }
 0x703   : > { %v6581_v32 = vpop.f32.mrf.mxu0 }
 0x704   : > { %v6582_v14 = vadd.f32 %v6581_v32, %v17720_v27  ;;  %v6610_v0 = vpop.f32.mrf.mxu2  ;;  %v6629_v29 = vpop.f32.mrf.mxu1 }
 0x705   : > { %v6660_v27 = vpop.f32.mrf.mxu3  ;;  %v6630_v30 = vadd.f32 %v6629_v29, %v17736_v17 }
 0x706   : > { %v17806_v10 = vadd.f32 %v6610_v0, %v6582_v14  ;;  %6993 = vmatmul.bf16.gmra.mxu0 %v17760_v52 }
 0x707   : > { %v6659_v15 = vadd.f32 %v6658_v7, %v6630_v30 }
 0x70b   : > { %v17809_v46 = vpop.f32.mrf.mxu0 }
 0x70c   : > { %v17814_v39 = vpop.f32.mrf.mxu2  ;;  %v6631_v9 = vpop.f32.mrf.mxu1 }
 0x70d   : > { %v6663_v51 = vpop.f32.mrf.mxu3  ;;  %v6632_v35 = vadd.f32 %v6631_v9, %v6603_v57 }
 0x70f   : > { %v6661_v16 = vadd.f32 %v6660_v27, %v6632_v35 }
 0x711   : > { %7122 = vmatmul.bf16.vlgmr.msrb.gmra.mxu1 %v17697_v22 }
 0x713   : > { %v6586_v8 = vpop.f32.mrf.mxu0 }
 0x714   : > { %v6587_v23 = vadd.f32 %v6586_v8, %v6557_v36  ;;  %v6615_v37 = vpop.f32.mrf.mxu2  ;;  %v6634_v4 = vpop.f32.mrf.mxu1 }
 0x715   : > { %v6665_v42 = vpop.f32.mrf.mxu3  ;;  %v6635_v33 = vadd.f32 %v6634_v4, %v17775_v45 }
 0x716   : > { %v17823_v26 = vadd.f32 %v6615_v37, %v6587_v23  ;;  %6998 = vmatmul.bf16.gmra.mxu0 %v17796_v43  ;;  %v10489_v23 = vld [vmem:[%s17960_s6 + $0xe0] sm:$0xff] }
 0x717   : > { %7150 = vmatpush.bf16.msrb.mxu3 %v10489_v23 }
 0x71b   : > { %v17826_v3 = vpop.f32.mrf.mxu0 }
 0x71c   : > { %v17828_v24 = vpop.f32.mrf.mxu2  ;;  %v6636_v36 = vpop.f32.mrf.mxu1 }
 0x71d   : > { %v6668_v63 = vpop.f32.mrf.mxu3 }
 0x721   : > { %7127 = vmatmul.bf16.gmra.mxu1 %v17722_v28 }
 0x723   : > { %v6687_v25 = vpop.f32.mrf.mxu0 }
 0x724   : > { %v6716_v11 = vpop.f32.mrf.mxu2  ;;  %v6688_v60 = vadd.f32 %v6687_v25, %v6659_v15  ;;  %v6639_v54 = vpop.f32.mrf.mxu1 }
 0x725   : > { %v6670_v2 = vpop.f32.mrf.mxu3  ;;  %v6640_v0 = vadd.f32 %v6639_v54, %v17806_v10 }
 0x726   : > { %7261 = vmatmul.bf16.vlgmr.msra.gmra.mxu0 %v17697_v22  ;;  %v6717_v21 = vadd.f32 %v6716_v11, %v6688_v60  ;;  %v6579_v22 = vadd.f32 %v17786_v48, %v17704_v44  ;;  %v6664_v44 = vadd.f32 %v6663_v51, %v6635_v33  ;;  %v6589_v51 = vadd.f32 %v17826_v3, %v17784_v13 }
 0x727   : > { %v6669_v27 = vadd.f32 %v6668_v63, %v6640_v0 }
 0x728   : > { %v6608_v62 = vadd.f32 %v17794_v12, %v6579_v22  ;;  %v6584_v12 = vadd.f32 %v17809_v46, %v17739_v34  ;;  %v6618_v57 = vadd.f32 %v17828_v24, %v6589_v51 }
 0x72a   : > { %v6637_v47 = vadd.f32 %v6636_v36, %v6608_v62  ;;  %v6613_v53 = vadd.f32 %v17814_v39, %v6584_v12  ;;  %v10499_v39 = vld [vmem:[%s17960_s6 + $0x130] sm:$0xff] }
 0x72b   : > { %v6689_v40 = vpop.f32.mrf.mxu0  ;;  %7289 = vmatpush.bf16.msra.mxu2 %v10499_v39 }
 0x72c   : > { %v6690_v38 = vadd.f32 %v6689_v40, %v6661_v16  ;;  %v6718_v17 = vpop.f32.mrf.mxu2  ;;  %v6666_v48 = vadd.f32 %v6665_v42, %v6637_v47  ;;  %v6641_v14 = vpop.f32.mrf.mxu1 }
 0x72d   : > { %v6673_v7 = vpop.f32.mrf.mxu3  ;;  %v6642_v29 = vadd.f32 %v6641_v14, %v6613_v53 }
 0x72e   : > { %v6719_v58 = vadd.f32 %v6718_v17, %v6690_v38 }
 0x72f   : > { %v6671_v34 = vadd.f32 %v6670_v2, %v6642_v29 }
 0x730   : > { %v17844_v49 = vpack.c.bf16 %v6719_v58, %v6717_v21 }
 0x731   : > { %7132 = vmatmul.bf16.gmra.mxu1 %v17760_v52 }
 0x732   : > { %9786 = vmatmul.msk.bf16.vlgmr.msra.gmra.mxu3 %vm799_vm8, %v17844_v49  ;;  %9850 = vmatmul.msk.bf16.vlgmr.msrb.gmra.mxu2 %vm799_vm8, %v17844_v49 }
 0x733   : > { %v6692_v18 = vpop.f32.mrf.mxu0 }
 0x734   : > { %v6721_v19 = vpop.f32.mrf.mxu2  ;;  %v6693_v50 = vadd.f32 %v6692_v18, %v6664_v44  ;;  %v6644_v20 = vpop.f32.mrf.mxu1 }
 0x735   : > { %v6675_v46 = vpop.f32.mrf.mxu3  ;;  %v6645_v30 = vadd.f32 %v6644_v20, %v17823_v26 }
 0x736   : > { %7266 = vmatmul.bf16.gmra.mxu0 %v17722_v28  ;;  %v6722_v56 = vadd.f32 %v6721_v19, %v6693_v50 }
 0x737   : > { %v6674_v35 = vadd.f32 %v6673_v7, %v6645_v30 }
 0x73b   : > { %v6694_v55 = vpop.f32.mrf.mxu0 }
 0x73c   : > { %v6695_v59 = vadd.f32 %v6694_v55, %v6666_v48  ;;  %v6723_v1 = vpop.f32.mrf.mxu2  ;;  %v6646_v42 = vpop.f32.mrf.mxu1 }
 0x73d   : > { %v6731_v4 = vpop.f32.mrf.mxu3  ;;  %v6647_v11 = vadd.f32 %v6646_v42, %v6618_v57 }
 0x73e   : > { %v6724_v32 = vadd.f32 %v6723_v1, %v6695_v59 }
 0x73f   : > { %v6676_v15 = vadd.f32 %v6675_v46, %v6647_v11 }
 0x740   : > { %v6739_v45 = vpack.c.bf16 %v6724_v32, %v6722_v56 }
 0x741   : > { %7137 = vmatmul.bf16.gmra.mxu1 %v17796_v43 }
 0x742   : > { %9787 = vmatmul.msk.bf16.gmra.mxu3 %vm799_vm8, %v6739_v45  ;;  %9851 = vmatmul.msk.bf16.gmra.mxu2 %vm799_vm8, %v6739_v45 }
 0x743   : > { %v6697_v28 = vpop.f32.mrf.mxu0 }
 0x744   : > { %v6726_v61 = vpop.f32.mrf.mxu2  ;;  %v6698_v6 = vadd.f32 %v6697_v28, %v6669_v27 }
 0x745   : > { %v6733_v3 = vpop.f32.mrf.mxu3 }
 0x746   : > { %7271 = vmatmul.bf16.gmra.mxu0 %v17760_v52  ;;  %v6727_v9 = vadd.f32 %v6726_v61, %v6698_v6 }
 0x74b   : > { %v6699_v8 = vpop.f32.mrf.mxu0 }
 0x74c   : > { %v6700_v37 = vadd.f32 %v6699_v8, %v6671_v34  ;;  %v6728_v10 = vpop.f32.mrf.mxu2 }
 0x74e   : > { %v6729_v52 = vadd.f32 %v6728_v10, %v6700_v37 }
 0x750   : > { %v6741_v5 = vpack.c.bf16 %v6729_v52, %v6727_v9 }
 0x752   : > { %9788 = vmatmul.msk.bf16.gmra.mxu3 %vm799_vm8, %v6741_v5  ;;  %9852 = vmatmul.msk.bf16.gmra.mxu2 %vm799_vm8, %v6741_v5 }
 0x753   : > { %v6702_v25 = vpop.f32.mrf.mxu0 }
 0x754   : > { %v6703_v16 = vadd.f32 %v6702_v25, %v6674_v35 }
 0x756   : > { %7276 = vmatmul.bf16.gmra.mxu0 %v17796_v43  ;;  %v6732_v36 = vadd.f32 %v6731_v4, %v6703_v16  ;;  %v6845_v43 = vpop.f32.mrf.mxu1 }
 0x75b   : > { %v6704_v60 = vpop.f32.mrf.mxu0 }
 0x75c   : > { %v6705_v13 = vadd.f32 %v6704_v60, %v6676_v15 }
 0x75e   : > { %v6734_v40 = vadd.f32 %v6733_v3, %v6705_v13  ;;  %v6847_v24 = vpop.f32.mrf.mxu1 }
 0x760   : > { %v6743_v63 = vpack.c.bf16 %v6734_v40, %v6732_v36 }
 0x762   : > { %9789 = vmatmul.msk.bf16.gmra.mxu3 %vm799_vm8, %v6743_v63  ;;  %9853 = vmatmul.msk.bf16.gmra.mxu2 %vm799_vm8, %v6743_v63 }
 0x763   : > { %v6984_v26 = vpop.f32.mrf.mxu0 }
 0x766   : > { %v6850_v31 = vpop.f32.mrf.mxu1 }
 0x76b   : > { %v6986_v38 = vpop.f32.mrf.mxu0 }
 0x76e   : > { %v6852_v17 = vpop.f32.mrf.mxu1 }
 0x772   : > { %9914 = vmatmul.msk.bf16.vlgmr.msrb.gmra.mxu3 %vm799_vm8, %v17844_v49  ;;  %9978 = vmatmul.msk.bf16.vlgmr.msra.gmra.mxu2 %vm799_vm8, %v17844_v49 }
 0x773   : > { %v6989_v41 = vpop.f32.mrf.mxu0 }
 0x776   : > { %v6855_v19 = vpop.f32.mrf.mxu1 }
 0x77b   : > { %v6991_v21 = vpop.f32.mrf.mxu0 }
 0x77e   : > { %v6857_v56 = vpop.f32.mrf.mxu1 }
 0x782   : > { %9915 = vmatmul.msk.bf16.gmra.mxu3 %vm799_vm8, %v6739_v45  ;;  %9979 = vmatmul.msk.bf16.gmra.mxu2 %vm799_vm8, %v6739_v45 }
 0x783   : > { %v6994_v47 = vpop.f32.mrf.mxu0 }
 0x786   : > { %v6860_v0 = vpop.f32.mrf.mxu1 }
 0x78b   : > { %v6996_v32 = vpop.f32.mrf.mxu0 }
 0x78e   : > { %v6862_v6 = vpop.f32.mrf.mxu1 }
 0x792   : > { %9916 = vmatmul.msk.bf16.gmra.mxu3 %vm799_vm8, %v6741_v5  ;;  %9980 = vmatmul.msk.bf16.gmra.mxu2 %vm799_vm8, %v6741_v5 }
 0x793   : > { %v6999_v61 = vpop.f32.mrf.mxu0 }
 0x796   : > { %v7123_v5 = vpop.f32.mrf.mxu1 }
 0x79b   : > { %v7001_v8 = vpop.f32.mrf.mxu0 }
 0x79e   : > { %v7125_v16 = vpop.f32.mrf.mxu1 }
 0x7a2   : > { %9917 = vmatmul.msk.bf16.gmra.mxu3 %vm799_vm8, %v6743_v63  ;;  %9981 = vmatmul.msk.bf16.gmra.mxu2 %vm799_vm8, %v6743_v63 }
 0x7a3   : > { %v7262_v4 = vpop.f32.mrf.mxu0 }
 0x7ab   : > { %v7264_v60 = vpop.f32.mrf.mxu0 }
 0x7b5   : > { %v6874_v58 = vpop.f32.mrf.mxu3  ;;  %v7013_v22 = vpop.f32.mrf.mxu2 }
 0x7b6   : > { %v6875_v49 = vadd.f32 %v6874_v58, %v6845_v43  ;;  %v7014_v18 = vadd.f32 %v7013_v22, %v6984_v26  ;;  %v7128_v43 = vpop.f32.mrf.mxu1  ;;  %v7267_v26 = vpop.f32.mrf.mxu0 }
 0x7b7   : > { %v7338_v22 = vpop.permute.xlu0 %7337 }
 0x7b8   : > { %v7311_v62 = vmax.f32 %v6875_v49, %v7014_v18 }
 0x7bd   : > { %v6876_v33 = vpop.f32.mrf.mxu3  ;;  %v7015_v54 = vpop.f32.mrf.mxu2 }
 0x7be   : > { %v6877_v2 = vadd.f32 %v6876_v33, %v6847_v24  ;;  %v7016_v44 = vadd.f32 %v7015_v54, %v6986_v38  ;;  %v7343_v33 = vpop.permute.xlu1 %7342  ;;  %v7130_v54 = vpop.f32.mrf.mxu1 }
 0x7c0   : > { %v7312_v48 = vmax.f32 %v6877_v2, %v7016_v44 }
 0x7c5   : > { %v6879_v50 = vpop.f32.mrf.mxu3  ;;  %v7018_v55 = vpop.f32.mrf.mxu2 }
 0x7c6   : > { %v17887_v59 = vadd.f32 %v6879_v50, %v6850_v31  ;;  %v17889_v1 = vadd.f32 %v7018_v55, %v6989_v41 }
 0x7c8   : > { %v7313_v14 = vmax.f32 %v17887_v59, %v17889_v1 }
 0x7cd   : > { %v6881_v12 = vpop.f32.mrf.mxu3  ;;  %v7020_v7 = vpop.f32.mrf.mxu2 }
 0x7ce   : > { %v17893_v45 = vadd.f32 %v6881_v12, %v6852_v17  ;;  %v17895_v28 = vadd.f32 %v7020_v7, %v6991_v21 }
 0x7d0   : > { %v7314_v53 = vmax.f32 %v17893_v45, %v17895_v28 }
 0x7d5   : > { %v6884_v29 = vpop.f32.mrf.mxu3  ;;  %v7023_v27 = vpop.f32.mrf.mxu2 }
 0x7d6   : > { %v17899_v20 = vadd.f32 %v6884_v29, %v6855_v19  ;;  %v17901_v34 = vadd.f32 %v7023_v27, %v6994_v47  ;;  %v7269_v19 = vpop.f32.mrf.mxu0 }
 0x7d8   : > { %v7315_v46 = vmax.f32 %v17899_v20, %v17901_v34 }
 0x7dd   : > { %v6886_v23 = vpop.f32.mrf.mxu3  ;;  %v7025_v39 = vpop.f32.mrf.mxu2 }
 0x7de   : > { %v17905_v37 = vadd.f32 %v6886_v23, %v6857_v56  ;;  %v17907_v10 = vadd.f32 %v7025_v39, %v6996_v32  ;;  %v7348_v23 = vpop.permute.xlu2 %7347 }
 0x7e0   : > { %v7316_v9 = vmax.f32 %v17905_v37, %v17907_v10 }
 0x7e5   : > { %v6889_v52 = vpop.f32.mrf.mxu3  ;;  %v7028_v51 = vpop.f32.mrf.mxu2 }
 0x7e6   : > { %v17911_v42 = vadd.f32 %v6889_v52, %v6860_v0  ;;  %v17913_v25 = vadd.f32 %v7028_v51, %v6999_v61  ;;  %v7133_v0 = vpop.f32.mrf.mxu1  ;;  %v7272_v61 = vpop.f32.mrf.mxu0 }
 0x7e7   : > { %v7353_v51 = vpop.permute.xlu0 %7352 }
 0x7e8   : > { %v7317_v57 = vmax.f32 %v17911_v42, %v17913_v25 }
 0x7ed   : > { %v6891_v30 = vpop.f32.mrf.mxu3  ;;  %v7030_v11 = vpop.f32.mrf.mxu2 }
 0x7ee   : > { %v17917_v35 = vadd.f32 %v6891_v30, %v6862_v6  ;;  %v17919_v15 = vadd.f32 %v7030_v11, %v7001_v8  ;;  %v7135_v59 = vpop.f32.mrf.mxu1  ;;  %v7274_v1 = vpop.f32.mrf.mxu0 }
 0x7f0   : > { %v7318_v13 = vmax.f32 %v17917_v35, %v17919_v15 }
 0x7f5   : > { %v7152_v3 = vpop.f32.mrf.mxu3  ;;  %v7291_v36 = vpop.f32.mrf.mxu2 }
 0x7f6   : > { %v7153_v40 = vadd.f32 %v7152_v3, %v7123_v5  ;;  %v7292_v63 = vadd.f32 %v7291_v36, %v7262_v4 }
 0x7f8   : > { %v7319_v24 = vmax.f32 %v7153_v40, %v7292_v63 }
 0x7fa   : > { %v7327_v41 = vmax.f32 %v7311_v62, %v7319_v24  ;;  %v7138_v24 = vpop.f32.mrf.mxu1 }
 0x7fc   : > { %v7375_v49 = vadd.f32 %v7338_v22, %v7327_v41 }
 0x7fd   : > { %v7154_v38 = vpop.f32.mrf.mxu3  ;;  %v7293_v31 = vpop.f32.mrf.mxu2 }
 0x7fe   : > { %v7155_v17 = vadd.f32 %v7154_v38, %v7125_v16  ;;  %v7294_v21 = vadd.f32 %v7293_v31, %v7264_v60  ;;  %v7383_v50 = vmax.f32 %v7375_v49, 0.0  ;;  %v7277_v38 = vpop.f32.mrf.mxu0 }
 0x800   : > { %v7320_v58 = vmax.f32 %v7155_v17, %v7294_v21  ;;  %v7363_v17 = vpop.permute.xlu2 %7362 }
 0x802   : > { %v7328_v18 = vmax.f32 %v7312_v48, %v7320_v58 }
 0x804   : > { %v7376_v47 = vadd.f32 %v7343_v33, %v7328_v18 }
 0x805   : > { %v7157_v2 = vpop.f32.mrf.mxu3  ;;  %v7296_v44 = vpop.f32.mrf.mxu2 }
 0x806   : > { %v7384_v55 = vmax.f32 %v7376_v47, 0.0  ;;  %v7158_v56 = vadd.f32 %v7157_v2, %v7128_v43  ;;  %v7297_v32 = vadd.f32 %v7296_v44, %v7267_v26  ;;  %v7358_v26 = vpop.permute.xlu1 %7357 }
 0x808   : > { %v10504_v62 = vpack.c.bf16 %v7384_v55, %v7383_v50  ;;  %v7321_v48 = vmax.f32 %v7158_v56, %v7297_v32  ;;  %v7368_v50 = vpop.permute.xlu0 %7367 }
 0x80a   : > { %10505 = vst [vmem:[%s17927_s13] sm:$0xff] %v10504_v62   ;;  %v7329_v29 = vmax.f32 %v7313_v14, %v7321_v48 }
 0x80c   : > { %v7377_v39 = vadd.f32 %v7348_v23, %v7329_v29 }
 0x80d   : > { %v7159_v12 = vpop.f32.mrf.mxu3  ;;  %v7298_v7 = vpop.f32.mrf.mxu2 }
 0x80e   : > { %v7160_v27 = vadd.f32 %v7159_v12, %v7130_v54  ;;  %v7299_v6 = vadd.f32 %v7298_v7, %v7269_v19  ;;  %v7385_v11 = vmax.f32 %v7377_v39, 0.0  ;;  %v7140_v54 = vpop.f32.mrf.mxu1  ;;  %v7279_v19 = vpop.f32.mrf.mxu0 }
 0x80f   : > { %v7373_v32 = vpop.permute.xlu1 %7372 }
 0x810   : > { %v7322_v8 = vmax.f32 %v7160_v27, %v7299_v6 }
 0x812   : > { %v7330_v52 = vmax.f32 %v7314_v53, %v7322_v8 }
 0x814   : > { %v7378_v5 = vadd.f32 %v7353_v51, %v7330_v52 }
 0x815   : > { %v7162_v4 = vpop.f32.mrf.mxu3  ;;  %v7301_v30 = vpop.f32.mrf.mxu2 }
 0x816   : > { %v7386_v16 = vmax.f32 %v7378_v5, 0.0  ;;  %v7163_v60 = vadd.f32 %v7162_v4, %v7133_v0  ;;  %v7302_v3 = vadd.f32 %v7301_v30, %v7272_v61 }
 0x818   : > { %v10509_v14 = vpack.c.bf16 %v7386_v16, %v7385_v11  ;;  %v7323_v36 = vmax.f32 %v7163_v60, %v7302_v3 }
 0x81a   : > { %10521 = vst [vmem:[%s17927_s13 + $0x8] sm:$0xff] %v10509_v14   ;;  %v7331_v45 = vmax.f32 %v7315_v46, %v7323_v36 }
 0x81c   : > { %v7379_v31 = vadd.f32 %v7358_v26, %v7331_v45 }
 0x81d   : > { %v7164_v40 = vpop.f32.mrf.mxu3  ;;  %v7303_v63 = vpop.f32.mrf.mxu2 }
 0x81e   : > { %v7165_v28 = vadd.f32 %v7164_v40, %v7135_v59  ;;  %v7304_v53 = vadd.f32 %v7303_v63, %v7274_v1  ;;  %v7387_v49 = vmax.f32 %v7379_v31, 0.0 }
 0x820   : > { %v7324_v43 = vmax.f32 %v7165_v28, %v7304_v53 }
 0x822   : > { %v7332_v41 = vmax.f32 %v7316_v9, %v7324_v43 }
 0x824   : > { %v7380_v21 = vadd.f32 %v7363_v17, %v7332_v41 }
 0x825   : > { %v7167_v58 = vpop.f32.mrf.mxu3  ;;  %v7306_v22 = vpop.f32.mrf.mxu2 }
 0x826   : > { %v7388_v18 = vmax.f32 %v7380_v21, 0.0  ;;  %v7168_v20 = vadd.f32 %v7167_v58, %v7138_v24  ;;  %v7307_v34 = vadd.f32 %v7306_v22, %v7277_v38 }
 0x828   : > { %v10514_v46 = vpack.c.bf16 %v7388_v18, %v7387_v49  ;;  %v7325_v33 = vmax.f32 %v7168_v20, %v7307_v34 }
 0x82a   : > { %10522 = vst [vmem:[%s17927_s13 + $0x10] sm:$0xff] %v10514_v46   ;;  %v7333_v37 = vmax.f32 %v7317_v57, %v7325_v33 }
 0x82c   : > { %v7381_v55 = vadd.f32 %v7368_v50, %v7333_v37 }
 0x82d   : > { %v7169_v47 = vpop.f32.mrf.mxu3  ;;  %v7308_v2 = vpop.f32.mrf.mxu2 }
 0x82e   : > { %v7170_v10 = vadd.f32 %v7169_v47, %v7140_v54  ;;  %v7309_v9 = vadd.f32 %v7308_v2, %v7279_v19  ;;  %v7389_v48 = vmax.f32 %v7381_v55, 0.0 }
 0x830   : > { %v7326_v44 = vmax.f32 %v7170_v10, %v7309_v9 }
 0x832   : > { %v7334_v56 = vmax.f32 %v7318_v13, %v7326_v44 }
 0x834   : > { %v7382_v62 = vadd.f32 %v7373_v32, %v7334_v56 }
 0x836   : > { %v7390_v12 = vmax.f32 %v7382_v62, 0.0 }
 0x838   : > { %v10519_v7 = vpack.c.bf16 %v7390_v12, %v7389_v48 }
 0x83a   : > { %10523 = vst [vmem:[%s17927_s13 + $0x18] sm:$0xff] %v10519_v7  }
 0x83b PF: > { %s17_s24 = sadd.s32 1, %s11577_s24  }
 0x83c   : > { %p14_p4 = scmp.ge.s32.totalorder %s17_s24, 4  }
 0x83e   :  { %16 = sbr.rel (!%p14_p4) target bundleno = 1 (0x1), region = 84 }

</bundles_post_ra>
